<compile_context>
chip_gen: v6e
topology: v6e:2x2x1
jax: 0.10.0
libtpu: 0.0.40
codegen_flags: <defaults>
</compile_context>

<pallas_src>
import functools

import jax
import jax.numpy as jnp
from jax.experimental import pallas as pl
from jax.experimental.pallas import tpu as pltpu

IMG_SHAPE = (1, 32, 32)
LATENT_DIM = 100
PADDED_LATENT = 128                                   # 100 -> 128 lane-aligned K
OUT_DIM = IMG_SHAPE[0] * IMG_SHAPE[1] * IMG_SHAPE[2]  # 1024
LAYER_DIMS = [LATENT_DIM, 128, 256, 512, 1024, OUT_DIM]
PADDED_DIMS = [PADDED_LATENT] + LAYER_DIMS[1:]
N_LAYERS = len(LAYER_DIMS) - 1
OUT_DIMS = tuple(LAYER_DIMS[1:])                      # (128, 256, 512, 1024, 1024)
BIAS_OFFSETS = tuple(sum(OUT_DIMS[:i]) for i in range(N_LAYERS))
TOTAL_BIAS = sum(OUT_DIMS)                            # 2944 = 23 * 128


def _generator_kernel(*refs, n_layers, out_dims, bias_offsets):
    """Fused 5-layer MLP over one batch tile.

    refs layout:
      refs[0]                   : x        (tile_B, 128) f32, VMEM
      refs[1]                   : biases   (1, 2944)     f32, VMEM (all layers)
      refs[2 : 2+L]             : w0..w4   HBM (pl.ANY), bf16
      refs[2+L]                 : out      (tile_B, 1024) f32, VMEM
      refs[3+L : 3+2L]          : weight VMEM scratch (bf16), persist across grid
      refs[3+2L]                : DMA semaphores (L,)
    """
    x_ref = refs[0]
    b_ref = refs[1]
    w_hbm = refs[2:2 + n_layers]
    o_ref = refs[2 + n_layers]
    w_bufs = refs[3 + n_layers:3 + 2 * n_layers]
    sems = refs[3 + 2 * n_layers]

    first_step = pl.program_id(0) == 0

    # Stream all weight matrices HBM -> VMEM once (first batch tile only);
    # scratch persists across grid steps, so later tiles reuse resident weights.
    @pl.when(first_step)
    def _issue_weight_dmas():
        for i in range(n_layers):
            pltpu.make_async_copy(w_hbm[i], w_bufs[i], sems.at[i]).start()

    h = x_ref[...]                                    # (tile_B, 128) f32
    for i in range(n_layers):
        # Per-layer wait so layer-(i+1) weight DMA overlaps layer-i compute.
        @pl.when(first_step)
        def _wait(i=i):
            pltpu.make_async_copy(w_hbm[i], w_bufs[i], sems.at[i]).wait()

        w = w_bufs[i][...].astype(jnp.float32)        # weights bf16-rounded, math f32
        off = bias_offsets[i]
        b = b_ref[:, off:off + out_dims[i]]           # static lane-aligned slice
        y = jnp.dot(h, w, preferred_element_type=jnp.float32) + b
        if i < n_layers - 1:
            y = jnp.maximum(y, 0.2 * y)               # LeakyReLU(0.2)
        h = y
    o_ref[...] = h.astype(o_ref.dtype)


def _choose_tile(b_padded):
    """Largest batch tile (<=256 rows) that divides the padded batch."""
    for t in (256, 128, 64, 32, 16, 8):
        if b_padded % t == 0:
            return t
    return b_padded


def _fused_generator(z_pad, b_all, weights):
    """z_pad: (Bp, 128) f32; b_all: (1, 2944) f32; weights: 5 bf16 matrices."""
    bp = z_pad.shape[0]
    tile_b = _choose_tile(bp)
    grid = (bp // tile_b,)

    in_specs = (
        [pl.BlockSpec((tile_b, PADDED_LATENT), lambda i: (i, 0)),
         pl.BlockSpec((1, TOTAL_BIAS), lambda i: (0, 0))]     # resident across steps
        + [pl.BlockSpec(memory_space=pl.ANY)] * N_LAYERS      # weights stay in HBM
    )
    scratch_shapes = (
        [pltpu.VMEM((PADDED_DIMS[i], PADDED_DIMS[i + 1]), jnp.bfloat16)
         for i in range(N_LAYERS)]
        + [pltpu.SemaphoreType.DMA((N_LAYERS,))]
    )
    kernel = functools.partial(
        _generator_kernel, n_layers=N_LAYERS,
        out_dims=OUT_DIMS, bias_offsets=BIAS_OFFSETS)

    return pl.pallas_call(
        kernel,
        out_shape=jax.ShapeDtypeStruct((bp, OUT_DIM), jnp.float32),
        grid=grid,
        in_specs=in_specs,
        out_specs=pl.BlockSpec((tile_b, OUT_DIM), lambda i: (i, 0)),
        scratch_shapes=scratch_shapes,
        compiler_params=pltpu.CompilerParams(
            # "arbitrary": the load-weights-once guard relies on sequential
            # grid execution on one core (per review correctness note).
            dimension_semantics=("arbitrary",)),
    )(z_pad, b_all, *weights)


def init_generator_params(key):
    """Deterministic init mirroring nn.Linear shapes: W_i (in, out), b_i (out,)."""
    params = []
    for i in range(N_LAYERS):
        fan_in, fan_out = LAYER_DIMS[i], LAYER_DIMS[i + 1]
        key, kw, kb = jax.random.split(key, 3)
        bound = 1.0 / jnp.sqrt(jnp.float32(fan_in))
        w = jax.random.uniform(kw, (fan_in, fan_out), jnp.float32, -bound, bound)
        b = jax.random.uniform(kb, (fan_out,), jnp.float32, -bound, bound)
        params.append((w, b))
    return params


def prepare_params(params):
    """One-time prep: cast W to bf16 (halves HBM streaming), zero-pad W0's
    K rows 100 -> 128, concatenate all biases into a single (1, 2944) f32."""
    weights = []
    biases = []
    for i, (w, b) in enumerate(params):
        w16 = w.astype(jnp.bfloat16)
        if i == 0:
            w16 = jnp.pad(w16, ((0, PADDED_LATENT - LATENT_DIM), (0, 0)))
        weights.append(w16)
        biases.append(b.astype(jnp.float32))
    b_all = jnp.concatenate(biases).reshape(1, TOTAL_BIAS)
    return b_all, tuple(weights)


@jax.jit
def generator_forward(z, b_all, weights):
    """z: (B, latent_dim) -> img: (B, 1, 32, 32)  (NCHW, matching PyTorch)."""
    B = z.shape[0]
    z_pad = jnp.pad(z.astype(jnp.float32),
                    ((0, 0), (0, PADDED_LATENT - LATENT_DIM)))
    bp = ((B + 7) // 8) * 8                       # sublane-align batch
    if bp != B:
        z_pad = jnp.pad(z_pad, ((0, bp - B), (0, 0)))
    out = _fused_generator(z_pad, b_all, weights)
    return out[:B].reshape(B, *IMG_SHAPE)


def reference_forward(z, params):
    """Pure-JAX reference: f32 activations, weights bf16-rounded like the kernel."""
    h = z.astype(jnp.float32)
    for i, (w, b) in enumerate(params):
        w_q = w.astype(jnp.bfloat16).astype(jnp.float32)
        y = jnp.dot(h, w_q, preferred_element_type=jnp.float32) + b
        if i < N_LAYERS - 1:
            y = jnp.maximum(y, 0.2 * y)
        h = y
    return h.reshape(h.shape[0], *IMG_SHAPE)


if __name__ == "__main__":
    key = jax.random.PRNGKey(0)
    k_params, k_z = jax.random.split(key)

    params = init_generator_params(k_params)
    b_all, weights = prepare_params(params)

    batch = 8
    z = jax.random.normal(k_z, (batch, LATENT_DIM), jnp.float32)

    img = jax.block_until_ready(generator_forward(z, b_all, weights))

    assert img.shape == (batch, *IMG_SHAPE), img.shape
    assert img.dtype == jnp.float32

    ref = reference_forward(z, params)
    max_err = float(jnp.max(jnp.abs(img - ref)))
    assert jnp.allclose(img, ref, atol=2e-2, rtol=2e-2), (
        "mismatch vs reference, max abs err = %f" % max_err)

    print("KERNEL_OK")
</pallas_src>

<mosaic_0001>
module attributes {stable_mosaic.version = 11 : i64} {
  func.func @_generator_kernel(%arg0: i32, %arg1: memref<8x128xf32, #tpu.memory_space<vmem>>, %arg2: memref<1x2944xf32, #tpu.memory_space<vmem>>, %arg3: memref<128x128xbf16, #tpu.memory_space<any>>, %arg4: memref<128x256xbf16, #tpu.memory_space<any>>, %arg5: memref<256x512xbf16, #tpu.memory_space<any>>, %arg6: memref<512x1024xbf16, #tpu.memory_space<any>>, %arg7: memref<1024x1024xbf16, #tpu.memory_space<any>>, %arg8: memref<8x1024xf32, #tpu.memory_space<vmem>>, %arg9: memref<128x128xbf16, #tpu.memory_space<vmem>>, %arg10: memref<128x256xbf16, #tpu.memory_space<vmem>>, %arg11: memref<256x512xbf16, #tpu.memory_space<vmem>>, %arg12: memref<512x1024xbf16, #tpu.memory_space<vmem>>, %arg13: memref<1024x1024xbf16, #tpu.memory_space<vmem>>, %arg14: memref<5x!tpu.dma_semaphore, #tpu.memory_space<semaphore_mem>>) attributes {dimension_semantics = [#tpu.dimension_semantics<arbitrary>], iteration_bounds = array<i64: 1>, scalar_prefetch = 0 : i64, scratch_operands = 6 : i64, tpu.core_type = #tpu.core_type<tc>, window_params = [{transform_indices = @transform_0, window_bounds = array<i64: 8, 128>}, {pipeline_mode = #tpu.pipeline_mode<synchronous>, transform_indices = @transform_1, window_bounds = array<i64: 1, 2944>}, {}, {}, {}, {}, {}, {transform_indices = @transform_7, window_bounds = array<i64: 8, 1024>}]} {
    %c0_i32 = arith.constant 0 : i32
    %0 = arith.cmpi eq, %arg0, %c0_i32 : i32
    %1 = arith.extui %0 : i1 to i32
    %c0_i32_0 = arith.constant 0 : i32
    %2 = arith.cmpi ne, %1, %c0_i32_0 : i32
    scf.if %2 {
      %c0_i32_33 = arith.constant 0 : i32
      %57 = tpu.memref_slice %arg14[%c0_i32_33] : memref<5x!tpu.dma_semaphore, #tpu.memory_space<semaphore_mem>> -> memref<1x!tpu.dma_semaphore, #tpu.memory_space<semaphore_mem>>
      %58 = tpu.memref_squeeze %57 : memref<1x!tpu.dma_semaphore, #tpu.memory_space<semaphore_mem>> -> memref<!tpu.dma_semaphore, #tpu.memory_space<semaphore_mem>>
      tpu.enqueue_dma source(%arg3 : memref<128x128xbf16, #tpu.memory_space<any>>) target(%arg9 : memref<128x128xbf16, #tpu.memory_space<vmem>>) target_semaphore(%58 : memref<!tpu.dma_semaphore, #tpu.memory_space<semaphore_mem>>)
      %c1_i32 = arith.constant 1 : i32
      %59 = tpu.memref_slice %arg14[%c1_i32] : memref<5x!tpu.dma_semaphore, #tpu.memory_space<semaphore_mem>> -> memref<1x!tpu.dma_semaphore, #tpu.memory_space<semaphore_mem>>
      %60 = tpu.memref_squeeze %59 : memref<1x!tpu.dma_semaphore, #tpu.memory_space<semaphore_mem>> -> memref<!tpu.dma_semaphore, #tpu.memory_space<semaphore_mem>>
      tpu.enqueue_dma source(%arg4 : memref<128x256xbf16, #tpu.memory_space<any>>) target(%arg10 : memref<128x256xbf16, #tpu.memory_space<vmem>>) target_semaphore(%60 : memref<!tpu.dma_semaphore, #tpu.memory_space<semaphore_mem>>)
      %c2_i32 = arith.constant 2 : i32
      %61 = tpu.memref_slice %arg14[%c2_i32] : memref<5x!tpu.dma_semaphore, #tpu.memory_space<semaphore_mem>> -> memref<1x!tpu.dma_semaphore, #tpu.memory_space<semaphore_mem>>
      %62 = tpu.memref_squeeze %61 : memref<1x!tpu.dma_semaphore, #tpu.memory_space<semaphore_mem>> -> memref<!tpu.dma_semaphore, #tpu.memory_space<semaphore_mem>>
      tpu.enqueue_dma source(%arg5 : memref<256x512xbf16, #tpu.memory_space<any>>) target(%arg11 : memref<256x512xbf16, #tpu.memory_space<vmem>>) target_semaphore(%62 : memref<!tpu.dma_semaphore, #tpu.memory_space<semaphore_mem>>)
      %c3_i32 = arith.constant 3 : i32
      %63 = tpu.memref_slice %arg14[%c3_i32] : memref<5x!tpu.dma_semaphore, #tpu.memory_space<semaphore_mem>> -> memref<1x!tpu.dma_semaphore, #tpu.memory_space<semaphore_mem>>
      %64 = tpu.memref_squeeze %63 : memref<1x!tpu.dma_semaphore, #tpu.memory_space<semaphore_mem>> -> memref<!tpu.dma_semaphore, #tpu.memory_space<semaphore_mem>>
      tpu.enqueue_dma source(%arg6 : memref<512x1024xbf16, #tpu.memory_space<any>>) target(%arg12 : memref<512x1024xbf16, #tpu.memory_space<vmem>>) target_semaphore(%64 : memref<!tpu.dma_semaphore, #tpu.memory_space<semaphore_mem>>)
      %c4_i32 = arith.constant 4 : i32
      %65 = tpu.memref_slice %arg14[%c4_i32] : memref<5x!tpu.dma_semaphore, #tpu.memory_space<semaphore_mem>> -> memref<1x!tpu.dma_semaphore, #tpu.memory_space<semaphore_mem>>
      %66 = tpu.memref_squeeze %65 : memref<1x!tpu.dma_semaphore, #tpu.memory_space<semaphore_mem>> -> memref<!tpu.dma_semaphore, #tpu.memory_space<semaphore_mem>>
      tpu.enqueue_dma source(%arg7 : memref<1024x1024xbf16, #tpu.memory_space<any>>) target(%arg13 : memref<1024x1024xbf16, #tpu.memory_space<vmem>>) target_semaphore(%66 : memref<!tpu.dma_semaphore, #tpu.memory_space<semaphore_mem>>)
    } else {
    }
    %c0 = arith.constant 0 : index
    %c0_1 = arith.constant 0 : index
    %3 = vector.load %arg1[%c0, %c0_1] : memref<8x128xf32, #tpu.memory_space<vmem>>, vector<8x128xf32>
    %4 = arith.extui %0 : i1 to i32
    %c0_i32_2 = arith.constant 0 : i32
    %5 = arith.cmpi ne, %4, %c0_i32_2 : i32
    scf.if %5 {
      %c0_i32_33 = arith.constant 0 : i32
      %57 = tpu.memref_slice %arg14[%c0_i32_33] : memref<5x!tpu.dma_semaphore, #tpu.memory_space<semaphore_mem>> -> memref<1x!tpu.dma_semaphore, #tpu.memory_space<semaphore_mem>>
      %58 = tpu.memref_squeeze %57 : memref<1x!tpu.dma_semaphore, #tpu.memory_space<semaphore_mem>> -> memref<!tpu.dma_semaphore, #tpu.memory_space<semaphore_mem>>
      tpu.wait_dma2 semaphore(%58 : memref<!tpu.dma_semaphore, #tpu.memory_space<semaphore_mem>>) src(%arg3 : memref<128x128xbf16, #tpu.memory_space<any>>) dst(%arg9 : memref<128x128xbf16, #tpu.memory_space<vmem>>)
    } else {
    }
    %c0_3 = arith.constant 0 : index
    %c0_4 = arith.constant 0 : index
    %6 = vector.load %arg9[%c0_3, %c0_4] : memref<128x128xbf16, #tpu.memory_space<vmem>>, vector<128x128xbf16>
    %7 = arith.extf %6 : vector<128x128xbf16> to vector<128x128xf32>
    %c0_5 = arith.constant 0 : index
    %c0_6 = arith.constant 0 : index
    %8 = vector.load %arg2[%c0_5, %c0_6] : memref<1x2944xf32, #tpu.memory_space<vmem>>, vector<1x128xf32>
    %cst = arith.constant dense<0.000000e+00> : vector<8x128xf32>
    %9 = tpu.matmul %3, %7, %cst {dimension_numbers = #tpu.dot_dimension_numbers<[1], [0], [0], [1], [0, 0, 1, 1], [], []>} : vector<8x128xf32>, vector<128x128xf32>, vector<8x128xf32> -> vector<8x128xf32>
    %10 = vector.broadcast %8 : vector<1x128xf32> to vector<8x128xf32>
    %11 = arith.addf %9, %10 : vector<8x128xf32>
    %cst_7 = arith.constant 2.000000e-01 : f32
    %12 = vector.broadcast %cst_7 : f32 to vector<8x128xf32>
    %13 = arith.mulf %12, %11 : vector<8x128xf32>
    %14 = arith.maximumf %11, %13 : vector<8x128xf32>
    %15 = arith.extui %0 : i1 to i32
    %c0_i32_8 = arith.constant 0 : i32
    %16 = arith.cmpi ne, %15, %c0_i32_8 : i32
    scf.if %16 {
      %c1_i32 = arith.constant 1 : i32
      %57 = tpu.memref_slice %arg14[%c1_i32] : memref<5x!tpu.dma_semaphore, #tpu.memory_space<semaphore_mem>> -> memref<1x!tpu.dma_semaphore, #tpu.memory_space<semaphore_mem>>
      %58 = tpu.memref_squeeze %57 : memref<1x!tpu.dma_semaphore, #tpu.memory_space<semaphore_mem>> -> memref<!tpu.dma_semaphore, #tpu.memory_space<semaphore_mem>>
      tpu.wait_dma2 semaphore(%58 : memref<!tpu.dma_semaphore, #tpu.memory_space<semaphore_mem>>) src(%arg4 : memref<128x256xbf16, #tpu.memory_space<any>>) dst(%arg10 : memref<128x256xbf16, #tpu.memory_space<vmem>>)
    } else {
    }
    %c0_9 = arith.constant 0 : index
    %c0_10 = arith.constant 0 : index
    %17 = vector.load %arg10[%c0_9, %c0_10] : memref<128x256xbf16, #tpu.memory_space<vmem>>, vector<128x256xbf16>
    %18 = arith.extf %17 : vector<128x256xbf16> to vector<128x256xf32>
    %c0_11 = arith.constant 0 : index
    %c128 = arith.constant 128 : index
    %19 = vector.load %arg2[%c0_11, %c128] : memref<1x2944xf32, #tpu.memory_space<vmem>>, vector<1x256xf32>
    %cst_12 = arith.constant dense<0.000000e+00> : vector<8x256xf32>
    %20 = tpu.matmul %14, %18, %cst_12 {dimension_numbers = #tpu.dot_dimension_numbers<[1], [0], [0], [1], [0, 0, 1, 1], [], []>} : vector<8x128xf32>, vector<128x256xf32>, vector<8x256xf32> -> vector<8x256xf32>
    %21 = vector.broadcast %19 : vector<1x256xf32> to vector<8x256xf32>
    %22 = arith.addf %20, %21 : vector<8x256xf32>
    %cst_13 = arith.constant 2.000000e-01 : f32
    %23 = vector.broadcast %cst_13 : f32 to vector<8x256xf32>
    %24 = arith.mulf %23, %22 : vector<8x256xf32>
    %25 = arith.maximumf %22, %24 : vector<8x256xf32>
    %26 = arith.extui %0 : i1 to i32
    %c0_i32_14 = arith.constant 0 : i32
    %27 = arith.cmpi ne, %26, %c0_i32_14 : i32
    scf.if %27 {
      %c2_i32 = arith.constant 2 : i32
      %57 = tpu.memref_slice %arg14[%c2_i32] : memref<5x!tpu.dma_semaphore, #tpu.memory_space<semaphore_mem>> -> memref<1x!tpu.dma_semaphore, #tpu.memory_space<semaphore_mem>>
      %58 = tpu.memref_squeeze %57 : memref<1x!tpu.dma_semaphore, #tpu.memory_space<semaphore_mem>> -> memref<!tpu.dma_semaphore, #tpu.memory_space<semaphore_mem>>
      tpu.wait_dma2 semaphore(%58 : memref<!tpu.dma_semaphore, #tpu.memory_space<semaphore_mem>>) src(%arg5 : memref<256x512xbf16, #tpu.memory_space<any>>) dst(%arg11 : memref<256x512xbf16, #tpu.memory_space<vmem>>)
    } else {
    }
    %c0_15 = arith.constant 0 : index
    %c0_16 = arith.constant 0 : index
    %28 = vector.load %arg11[%c0_15, %c0_16] : memref<256x512xbf16, #tpu.memory_space<vmem>>, vector<256x512xbf16>
    %29 = arith.extf %28 : vector<256x512xbf16> to vector<256x512xf32>
    %c0_17 = arith.constant 0 : index
    %c384 = arith.constant 384 : index
    %30 = vector.load %arg2[%c0_17, %c384] : memref<1x2944xf32, #tpu.memory_space<vmem>>, vector<1x512xf32>
    %cst_18 = arith.constant dense<0.000000e+00> : vector<8x512xf32>
    %31 = tpu.matmul %25, %29, %cst_18 {dimension_numbers = #tpu.dot_dimension_numbers<[1], [0], [0], [1], [0, 0, 1, 1], [], []>} : vector<8x256xf32>, vector<256x512xf32>, vector<8x512xf32> -> vector<8x512xf32>
    %32 = vector.broadcast %30 : vector<1x512xf32> to vector<8x512xf32>
    %33 = arith.addf %31, %32 : vector<8x512xf32>
    %cst_19 = arith.constant 2.000000e-01 : f32
    %34 = vector.broadcast %cst_19 : f32 to vector<8x512xf32>
    %35 = arith.mulf %34, %33 : vector<8x512xf32>
    %36 = arith.maximumf %33, %35 : vector<8x512xf32>
    %37 = arith.extui %0 : i1 to i32
    %c0_i32_20 = arith.constant 0 : i32
    %38 = arith.cmpi ne, %37, %c0_i32_20 : i32
    scf.if %38 {
      %c3_i32 = arith.constant 3 : i32
      %57 = tpu.memref_slice %arg14[%c3_i32] : memref<5x!tpu.dma_semaphore, #tpu.memory_space<semaphore_mem>> -> memref<1x!tpu.dma_semaphore, #tpu.memory_space<semaphore_mem>>
      %58 = tpu.memref_squeeze %57 : memref<1x!tpu.dma_semaphore, #tpu.memory_space<semaphore_mem>> -> memref<!tpu.dma_semaphore, #tpu.memory_space<semaphore_mem>>
      tpu.wait_dma2 semaphore(%58 : memref<!tpu.dma_semaphore, #tpu.memory_space<semaphore_mem>>) src(%arg6 : memref<512x1024xbf16, #tpu.memory_space<any>>) dst(%arg12 : memref<512x1024xbf16, #tpu.memory_space<vmem>>)
    } else {
    }
    %c0_21 = arith.constant 0 : index
    %c0_22 = arith.constant 0 : index
    %39 = vector.load %arg12[%c0_21, %c0_22] : memref<512x1024xbf16, #tpu.memory_space<vmem>>, vector<512x1024xbf16>
    %40 = arith.extf %39 : vector<512x1024xbf16> to vector<512x1024xf32>
    %c0_23 = arith.constant 0 : index
    %c896 = arith.constant 896 : index
    %41 = vector.load %arg2[%c0_23, %c896] : memref<1x2944xf32, #tpu.memory_space<vmem>>, vector<1x1024xf32>
    %cst_24 = arith.constant dense<0.000000e+00> : vector<8x1024xf32>
    %42 = tpu.matmul %36, %40, %cst_24 {dimension_numbers = #tpu.dot_dimension_numbers<[1], [0], [0], [1], [0, 0, 1, 1], [], []>} : vector<8x512xf32>, vector<512x1024xf32>, vector<8x1024xf32> -> vector<8x1024xf32>
    %43 = vector.broadcast %41 : vector<1x1024xf32> to vector<8x1024xf32>
    %44 = arith.addf %42, %43 : vector<8x1024xf32>
    %cst_25 = arith.constant 2.000000e-01 : f32
    %45 = vector.broadcast %cst_25 : f32 to vector<8x1024xf32>
    %46 = arith.mulf %45, %44 : vector<8x1024xf32>
    %47 = arith.maximumf %44, %46 : vector<8x1024xf32>
    %48 = arith.extui %0 : i1 to i32
    %c0_i32_26 = arith.constant 0 : i32
    %49 = arith.cmpi ne, %48, %c0_i32_26 : i32
    scf.if %49 {
      %c4_i32 = arith.constant 4 : i32
      %57 = tpu.memref_slice %arg14[%c4_i32] : memref<5x!tpu.dma_semaphore, #tpu.memory_space<semaphore_mem>> -> memref<1x!tpu.dma_semaphore, #tpu.memory_space<semaphore_mem>>
      %58 = tpu.memref_squeeze %57 : memref<1x!tpu.dma_semaphore, #tpu.memory_space<semaphore_mem>> -> memref<!tpu.dma_semaphore, #tpu.memory_space<semaphore_mem>>
      tpu.wait_dma2 semaphore(%58 : memref<!tpu.dma_semaphore, #tpu.memory_space<semaphore_mem>>) src(%arg7 : memref<1024x1024xbf16, #tpu.memory_space<any>>) dst(%arg13 : memref<1024x1024xbf16, #tpu.memory_space<vmem>>)
    } else {
    }
    %c0_27 = arith.constant 0 : index
    %c0_28 = arith.constant 0 : index
    %50 = vector.load %arg13[%c0_27, %c0_28] : memref<1024x1024xbf16, #tpu.memory_space<vmem>>, vector<1024x1024xbf16>
    %51 = arith.extf %50 : vector<1024x1024xbf16> to vector<1024x1024xf32>
    %c0_29 = arith.constant 0 : index
    %c1920 = arith.constant 1920 : index
    %52 = vector.load %arg2[%c0_29, %c1920] : memref<1x2944xf32, #tpu.memory_space<vmem>>, vector<1x1024xf32>
    %cst_30 = arith.constant dense<0.000000e+00> : vector<8x1024xf32>
    %53 = tpu.matmul %47, %51, %cst_30 {dimension_numbers = #tpu.dot_dimension_numbers<[1], [0], [0], [1], [0, 0, 1, 1], [], []>} : vector<8x1024xf32>, vector<1024x1024xf32>, vector<8x1024xf32> -> vector<8x1024xf32>
    %54 = vector.broadcast %52 : vector<1x1024xf32> to vector<8x1024xf32>
    %55 = arith.addf %53, %54 : vector<8x1024xf32>
    %c0_31 = arith.constant 0 : index
    %c0_32 = arith.constant 0 : index
    %56 = vector.load %arg8[%c0_31, %c0_32] : memref<8x1024xf32, #tpu.memory_space<vmem>>, vector<8x1024xf32>
    tpu.vector_store %arg8[%c0_31, %c0_32], %55 {strides = array<i32>} : memref<8x1024xf32, #tpu.memory_space<vmem>>, vector<8x1024xf32>,
    return
  }
  func.func @transform_0(%arg0: i32) -> (i32, i32) {
    %c0_i32 = arith.constant 0 : i32
    %c0_i32_0 = arith.constant 0 : i32
    return %arg0, %c0_i32 : i32, i32
  }
  func.func @transform_1(%arg0: i32) -> (i32, i32) {
    %c0_i32 = arith.constant 0 : i32
    %c0_i32_0 = arith.constant 0 : i32
    %c0_i32_1 = arith.constant 0 : i32
    return %c0_i32, %c0_i32_0 : i32, i32
  }
  func.func @transform_7(%arg0: i32) -> (i32, i32) {
    %c0_i32 = arith.constant 0 : i32
    %c0_i32_0 = arith.constant 0 : i32
    return %arg0, %c0_i32 : i32, i32
  }
}

</mosaic_0001>

<bundles_post_ra>
// kernel: generator_forward.1
= control target key start
LH: loop header
LB: loop body
LE: loop exit
PB: predicated region body
PF: predicated region fallthrough
CT: control target
= control target key end

     0   :  { %12 = vsyncpa [#allocation9], 0  ;;  %s5134_s24 = smov [#allocation8]   ;;  %s5400_s0 = inlined_call_operand.vmem [shape: f32[8,128], index: 0, kind: input, shape index: {}]   ;;  %s5401_s1 = inlined_call_operand.hbm [shape: f32[1,2944], index: 1, kind: input, shape index: {}]   ;;  %s5402_s2 = inlined_call_operand.hbm [shape: bf16[128,128], index: 2, kind: input, shape index: {}]   ;;  %s5403_s3 = inlined_call_operand.hbm [shape: bf16[128,256], index: 3, kind: input, shape index: {}]   ;;  %s5404_s4 = inlined_call_operand.hbm [shape: bf16[256,512], index: 4, kind: input, shape index: {}]   ;;  %s5405_s5 = inlined_call_operand.hbm [shape: bf16[512,1024], index: 5, kind: input, shape index: {}]   ;;  %s5406_s6 = inlined_call_operand.hbm [shape: bf16[1024,1024], index: 6, kind: input, shape index: {}]   ;;  %s5407_s7 = inlined_call_operand.vmem [shape: f32[8,1024], index: 7, kind: output, shape index: {}]  }
   0x1   :  { %s21_s25 = sshll.u32 %s5134_s24, 4  ;;  %s22_s25 = int_to_ptr.vmem [resolvable:$true] %s21_s25 }
   0x2   :  { %s5010_s26 = scalar_lea.vmem %s22_s25, 368  ;;  %s5014_s27 = scalar_lea.vmem %s22_s25, 384 }
   0x3   :  { %p5011_p0 = scmp.ne.s32.totalorder %s22_s25, %s5010_s26  ;;  %p5015_p1 = scmp.lt.s32.totalorder %s22_s25, %s22_s25 }
   0x4   :  { %p5016_p2 = scmp.lt.s32.totalorder %s5014_s27, %s5010_s26 }
   0x6   :  { %p5017_p3 = por %p5016_p2, %p5015_p1 }
   0x8   :  { %p5018_p4 = pnand %p5017_p3, %p5011_p0 }
   0xa   :  { %5021 = shalt.err (!%p5018_p4)
}
   0xb   :  { %24 = dma.hbm_to_vmem [thread:$0]  %s5401_s1, 368, %s22_s25, [#allocation9]  }
   0xc   :  { %5122 = dma.done.wait [#allocation9], 368  }
   0xd   :  { %5123 = vsyncadd [#allocation9], 4294966928  ;;  %s5135_s30 = smov [#allocation2]   ;;  %s5136_s9 = smov [#allocation3]  }
   0xe   :  { %s39_s8 = sshll.u32 %s5135_s30, 4  ;;  %s51_s10 = sshll.u32 %s5136_s9, 4  ;;  %s40_s8 = int_to_ptr.vmem [resolvable:$true] %s39_s8  ;;  %s52_s10 = int_to_ptr.vmem [resolvable:$true] %s51_s10 }
   0xf   :  { %s5030_s11 = scalar_lea.vmem %s40_s8, 1024  ;;  %p5035_p6 = scmp.lt.s32.totalorder %s40_s8, %s40_s8 }
  0x10   :  { %p5031_p5 = scmp.ne.s32.totalorder %s40_s8, %s5030_s11  ;;  %p5036_p7 = scmp.lt.s32.totalorder %s5030_s11, %s5030_s11 }
  0x12   :  { %p5037_p8 = por %p5036_p7, %p5035_p6 }
  0x14   :  { %p5038_p9 = pnand %p5037_p8, %p5031_p5 }
  0x16   :  { %5041 = shalt.err (!%p5038_p9)  }
  0x17   :  { %42 = dma.hbm_to_vmem [thread:$0]  %s5402_s2, 1024, %s40_s8, [#allocation7] }
  0x18   :  { %s5050_s1 = scalar_lea.vmem %s52_s10, 2048  ;;  %p5055_p11 = scmp.lt.s32.totalorder %s52_s10, %s52_s10 }
  0x19   :  { %p5051_p10 = scmp.ne.s32.totalorder %s52_s10, %s5050_s1  ;;  %p5056_p12 = scmp.lt.s32.totalorder %s5050_s1, %s5050_s1 }
  0x1b   :  { %p5057_p13 = por %p5056_p12, %p5055_p11 }
  0x1d   :  { %p5058_p0 = pnand %p5057_p13, %p5051_p10 }
  0x1f   :  { %5061 = shalt.err (!%p5058_p0)  }
  0x20   :  { %54 = dma.hbm_to_vmem [thread:$0]  %s5403_s3, 2048, %s52_s10, [#allocation7 + $0x1]  ;;  %v5194_v0 = vld [vmem:[%s5400_s0] sm:$0xff] }
  0x21   :  { %s5137_s16 = smov [#allocation4]   ;;  %s5138_s18 = smov [#allocation5]  }
  0x22   :  { %s63_s17 = sshll.u32 %s5137_s16, 4  ;;  %s75_s19 = sshll.u32 %s5138_s18, 4  ;;  %s64_s17 = int_to_ptr.vmem [resolvable:$true] %s63_s17  ;;  %s76_s19 = int_to_ptr.vmem [resolvable:$true] %s75_s19 }
  0x23   :  { %s5070_s2 = scalar_lea.vmem %s64_s17, 8192  ;;  %p5075_p2 = scmp.lt.s32.totalorder %s64_s17, %s64_s17 }
  0x24   :  { %p5071_p1 = scmp.ne.s32.totalorder %s64_s17, %s5070_s2  ;;  %p5076_p3 = scmp.lt.s32.totalorder %s5070_s2, %s5070_s2 }
  0x26   :  { %p5077_p4 = por %p5076_p3, %p5075_p2 }
  0x28   :  { %p5078_p5 = pnand %p5077_p4, %p5071_p1 }
  0x2a   :  { %5081 = shalt.err (!%p5078_p5)  }
  0x2b   :  { %66 = dma.hbm_to_vmem [thread:$0]  %s5404_s4, 8192, %s64_s17, [#allocation7 + $0x2] }
  0x2c   :  { %s5090_s23 = scalar_lea.vmem %s76_s19, 32768  ;;  %p5095_p7 = scmp.lt.s32.totalorder %s76_s19, %s76_s19 }
  0x2d   :  { %p5091_p6 = scmp.ne.s32.totalorder %s76_s19, %s5090_s23  ;;  %p5096_p8 = scmp.lt.s32.totalorder %s5090_s23, %s5090_s23 }
  0x2f   :  { %p5097_p9 = por %p5096_p8, %p5095_p7 }
  0x31   :  { %p5098_p10 = pnand %p5097_p9, %p5091_p6 }
  0x33   :  { %5101 = shalt.err (!%p5098_p10)  }
  0x34   :  { %78 = dma.hbm_to_vmem [thread:$0]  %s5405_s5, 32768, %s76_s19, [#allocation7 + $0x3] }
  0x35   :  { %s5139_s25 = smov [#allocation6]  }
  0x36   :  { %s87_s26 = sshll.u32 %s5139_s25, 4  ;;  %s88_s26 = int_to_ptr.vmem [resolvable:$true] %s87_s26 }
  0x37   :  { %s5110_s27 = scalar_lea.vmem %s88_s26, 65536  ;;  %p5115_p12 = scmp.lt.s32.totalorder %s88_s26, %s88_s26 }
  0x38   :  { %p5111_p11 = scmp.ne.s32.totalorder %s88_s26, %s5110_s27  ;;  %p5116_p13 = scmp.lt.s32.totalorder %s5110_s27, %s5110_s27 }
  0x3a   :  { %p5117_p0 = por %p5116_p13, %p5115_p12 }
  0x3c   :  { %p5118_p1 = pnand %p5117_p0, %p5111_p11 }
  0x3e   :  { %5121 = shalt.err (!%p5118_p1)  }
  0x3f   :  { %90 = dma.hbm_to_vmem [thread:$0]  %s5406_s6, 65536, %s88_s26, [#allocation7 + $0x4] }
  0x40   :  { %5124 = dma.done.wait [#allocation7], 1024 }
  0x41   :  { %5125 = vsyncadd [#allocation7], 4294966272  ;;  %v5140_v1 = vmov 0.0   ;;  %vm5141_vm0 = vmmov 0   ;;  %v4940_v2 = vld [vmem:[#allocation2 + $0x38] sm:$0xff]   ;;  %v4939_v3 = vld [vmem:[#allocation2 + $0x30] sm:$0xff]  }
  0x42   :  { %4958 = vmatprep.subr.mxu0 %v5140_v1  ;;  %4990 = vmatprep.mubr.msk.f32.mxu0 %vm5141_vm0, %v5140_v1  ;;  %v4932_v4 = vunpack.c.l.bf16 %v4940_v2  ;;  %v4933_v5 = vunpack.c.h.bf16 %v4940_v2  ;;  %v4929_v6 = vunpack.c.h.bf16 %v4939_v3  ;;  %v4938_v7 = vld [vmem:[#allocation2 + $0x28] sm:$0xff]   ;;  %v4928_v8 = vunpack.c.l.bf16 %v4939_v3  ;;  %v4937_v10 = vld [vmem:[#allocation2 + $0x20] sm:$0xff]   ;;  %v4936_v13 = vld [vmem:[#allocation2 + $0x18] sm:$0xff]  }
  0x43   :  { %v4925_v9 = vunpack.c.h.bf16 %v4938_v7  ;;  %v4924_v11 = vunpack.c.l.bf16 %v4938_v7  ;;  %v4921_v12 = vunpack.c.h.bf16 %v4937_v10  ;;  %v4920_v14 = vunpack.c.l.bf16 %v4937_v10  ;;  %v4935_v16 = vld [vmem:[#allocation2 + $0x10] sm:$0xff]   ;;  %v4934_v19 = vld [vmem:[#allocation2 + $0x8] sm:$0xff]   ;;  %v4903_v22 = vld [vmem:[#allocation2] sm:$0xff]  }
  0x44   :  { %4959 = vmatpush3.msra.mxu0 %v4933_v5  ;;  %v4917_v15 = vunpack.c.h.bf16 %v4936_v13  ;;  %v4916_v17 = vunpack.c.l.bf16 %v4936_v13  ;;  %v4913_v18 = vunpack.c.h.bf16 %v4935_v16  ;;  %v4912_v20 = vunpack.c.l.bf16 %v4935_v16  ;;  %v4896_v26 = vld [vmem:[#allocation8] ss:$0 sm:$0xff] }
  0x45   :  { %4960 = vmatprep.subr.mxu0 %v5140_v1  ;;  %v4909_v21 = vunpack.c.h.bf16 %v4934_v19  ;;  %v4908_v23 = vunpack.c.l.bf16 %v4934_v19  ;;  %v4905_v24 = vunpack.c.h.bf16 %v4903_v22  ;;  %v4904_v25 = vunpack.c.l.bf16 %v4903_v22 }
  0x46   :  { %4961 = vmatpush3.msra.mxu0 %v4932_v4 }
  0x47   :  { %4962 = vmatprep.subr.mxu0 %v5140_v1 }
  0x48   :  { %4963 = vmatpush3.msra.mxu0 %v4929_v6 }
  0x49   :  { %4964 = vmatprep.subr.mxu0 %v5140_v1 }
  0x4a   :  { %4965 = vmatpush3.msra.mxu0 %v4928_v8 }
  0x4b   :  { %4966 = vmatprep.subr.mxu0 %v5140_v1 }
  0x4c   :  { %4967 = vmatpush3.msra.mxu0 %v4925_v9 }
  0x4d   :  { %4968 = vmatprep.subr.mxu0 %v5140_v1 }
  0x4e   :  { %4969 = vmatpush3.msra.mxu0 %v4924_v11 }
  0x4f   :  { %4970 = vmatprep.subr.mxu0 %v5140_v1 }
  0x50   :  { %4971 = vmatpush3.msra.mxu0 %v4921_v12 }
  0x51   :  { %4972 = vmatprep.subr.mxu0 %v5140_v1 }
  0x52   :  { %4973 = vmatpush3.msra.mxu0 %v4920_v14 }
  0x53   :  { %4974 = vmatprep.subr.mxu0 %v5140_v1 }
  0x54   :  { %4975 = vmatpush3.msra.mxu0 %v4917_v15 }
  0x55   :  { %4976 = vmatprep.subr.mxu0 %v5140_v1 }
  0x56   :  { %4977 = vmatpush3.msra.mxu0 %v4916_v17 }
  0x57   :  { %4978 = vmatprep.subr.mxu0 %v5140_v1 }
  0x58   :  { %4979 = vmatpush3.msra.mxu0 %v4913_v18 }
  0x59   :  { %4980 = vmatprep.subr.mxu0 %v5140_v1 }
  0x5a   :  { %4981 = vmatpush3.msra.mxu0 %v4912_v20 }
  0x5b   :  { %4982 = vmatprep.subr.mxu0 %v5140_v1 }
  0x5c   :  { %4983 = vmatpush3.msra.mxu0 %v4909_v21 }
  0x5d   :  { %4984 = vmatprep.subr.mxu0 %v5140_v1 }
  0x5e   :  { %4985 = vmatpush3.msra.mxu0 %v4908_v23 }
  0x5f   :  { %4986 = vmatprep.subr.mxu0 %v5140_v1 }
  0x60   :  { %4987 = vmatpush3.msra.mxu0 %v4905_v24 }
  0x61   :  { %4988 = vmatprep.subr.mxu0 %v5140_v1 }
  0x62   :  { %4989 = vmatpush3.msra.mxu0 %v4904_v25 }
  0x63   :  { %4991 = vmatmul.mubr.f32.vlgmr.msra.gmra.mxu0 %v5194_v0 }
 0x123   :  { %v204_v27 = vpop.f32.mrf.mxu0 }
 0x124   :  { %v5223_v28 = vadd.f32 %v4896_v26, %v204_v27 }
 0x125   :  { %v4992_v29 = vpop.f32.mrf.mxu0 }
 0x126   :  { %v5226_v30 = vmul.f32 0.2, %v5223_v28 }
 0x128   :  { %v209_v31 = vmax.f32 %v5223_v28, %v5226_v30 }
 0x129   :  { %5126 = dma.done.wait [#allocation7 + $0x1], 2048 }
 0x12a   :  { %5127 = vsyncadd [#allocation7 + $0x1], 4294965248  ;;  %342 = vmatprep.mubr.f32.mxu1 %v5140_v1  ;;  %v233_v32 = vld [vmem:[#allocation3 + $0x78] sm:$0xff]  ;;  %v232_v33 = vld [vmem:[#allocation3 + $0x70] sm:$0xff]  ;;  %v268_v16 = vlaneseq }
 0x12b   :  { %v231_v34 = vld [vmem:[#allocation3 + $0x68] sm:$0xff]  ;;  %v265_v35 = vunpack.c.h.bf16 %v233_v32  ;;  %v264_v36 = vunpack.c.l.bf16 %v233_v32  ;;  %v263_v37 = vunpack.c.h.bf16 %v232_v33  ;;  %v262_v38 = vunpack.c.l.bf16 %v232_v33  ;;  %v230_v39 = vld [vmem:[#allocation3 + $0x60] sm:$0xff]  ;;  %v229_v42 = vld [vmem:[#allocation3 + $0x58] sm:$0xff] }
 0x12c   :  { %v261_v40 = vunpack.c.h.bf16 %v231_v34  ;;  %v260_v41 = vunpack.c.l.bf16 %v231_v34  ;;  %v259_v43 = vunpack.c.h.bf16 %v230_v39  ;;  %v258_v44 = vunpack.c.l.bf16 %v230_v39  ;;  %v228_v45 = vld [vmem:[#allocation3 + $0x50] sm:$0xff]  ;;  %v227_v48 = vld [vmem:[#allocation3 + $0x48] sm:$0xff]  ;;  %v226_v51 = vld [vmem:[#allocation3 + $0x40] sm:$0xff] }
 0x12d   :  { %278 = vmatprep.subr.mxu1 %v265_v35  ;;  %v257_v46 = vunpack.c.h.bf16 %v229_v42  ;;  %v256_v47 = vunpack.c.l.bf16 %v229_v42  ;;  %v255_v49 = vunpack.c.h.bf16 %v228_v45  ;;  %v254_v50 = vunpack.c.l.bf16 %v228_v45  ;;  %v225_v54 = vld [vmem:[#allocation3 + $0x38] sm:$0xff]  ;;  %v224_v57 = vld [vmem:[#allocation3 + $0x30] sm:$0xff]  ;;  %v223_v60 = vld [vmem:[#allocation3 + $0x28] sm:$0xff] }
 0x12e   :  { %279 = vmatpush1.msra.mxu1 %v264_v36  ;;  %v253_v52 = vunpack.c.h.bf16 %v227_v48  ;;  %v252_v53 = vunpack.c.l.bf16 %v227_v48  ;;  %v251_v55 = vunpack.c.h.bf16 %v226_v51  ;;  %v250_v56 = vunpack.c.l.bf16 %v226_v51  ;;  %v222_v63 = vld [vmem:[#allocation3 + $0x20] sm:$0xff]  ;;  %v221_v2 = vld [vmem:[#allocation3 + $0x18] sm:$0xff]  ;;  %v220_v5 = vld [vmem:[#allocation3 + $0x10] sm:$0xff] }
 0x12f   :  { %280 = vmatprep.subr.mxu1 %v263_v37  ;;  %v249_v58 = vunpack.c.h.bf16 %v225_v54  ;;  %v248_v59 = vunpack.c.l.bf16 %v225_v54  ;;  %v247_v61 = vunpack.c.h.bf16 %v224_v57  ;;  %v246_v62 = vunpack.c.l.bf16 %v224_v57  ;;  %v219_v8 = vld [vmem:[#allocation3 + $0x8] sm:$0xff]  ;;  %v218_v11 = vld [vmem:[#allocation3] sm:$0xff] }
 0x130   :  { %281 = vmatpush1.msra.mxu1 %v262_v38  ;;  %v245_v0 = vunpack.c.h.bf16 %v223_v60  ;;  %v244_v1 = vunpack.c.l.bf16 %v223_v60  ;;  %v243_v3 = vunpack.c.h.bf16 %v222_v63  ;;  %v242_v4 = vunpack.c.l.bf16 %v222_v63  ;;  %v266_v19 = vld [vmem:[#allocation8 + $0x1] sm:$0x3] }
 0x131   :  { %282 = vmatprep.subr.mxu1 %v261_v40  ;;  %v241_v6 = vunpack.c.h.bf16 %v221_v2  ;;  %v240_v7 = vunpack.c.l.bf16 %v221_v2  ;;  %v239_v9 = vunpack.c.h.bf16 %v220_v5  ;;  %v238_v10 = vunpack.c.l.bf16 %v220_v5 }
 0x132   :  { %283 = vmatpush1.msra.mxu1 %v260_v41  ;;  %v237_v12 = vunpack.c.h.bf16 %v219_v8  ;;  %v236_v13 = vunpack.c.l.bf16 %v219_v8  ;;  %v235_v14 = vunpack.c.h.bf16 %v218_v11  ;;  %v234_v15 = vunpack.c.l.bf16 %v218_v11 }
 0x133   :  { %284 = vmatprep.subr.mxu1 %v259_v43  ;;  %v5234_v17 = vshrl.u32 %v268_v16, 7 }
 0x134   :  { %285 = vmatpush1.msra.mxu1 %v258_v44 }
 0x135   :  { %286 = vmatprep.subr.mxu1 %v257_v46  ;;  %v5237_v18 = vsub.s32 0, %v5234_v17  ;;  %v5240_v20 = vsub.s32 1, %v5234_v17 }
 0x136   :  { %287 = vmatpush1.msra.mxu1 %v256_v47 }
 0x137   :  { %288 = vmatprep.subr.mxu1 %v255_v49  ;;  %v271_v21 = vrot.slane %v266_v19, %v5237_v18  ;;  %v275_v22 = vrot.slane %v266_v19, %v5240_v20 }
 0x138   :  { %289 = vmatpush1.msra.mxu1 %v254_v50 }
 0x139   :  { %290 = vmatprep.subr.mxu1 %v253_v52 }
 0x13a   :  { %291 = vmatpush1.msra.mxu1 %v252_v53 }
 0x13b   :  { %292 = vmatprep.subr.mxu1 %v251_v55 }
 0x13c   :  { %293 = vmatpush1.msra.mxu1 %v250_v56 }
 0x13d   :  { %294 = vmatprep.subr.mxu1 %v249_v58 }
 0x13e   :  { %295 = vmatpush1.msra.mxu1 %v248_v59 }
 0x13f   :  { %296 = vmatprep.subr.mxu1 %v247_v61 }
 0x140   :  { %297 = vmatpush1.msra.mxu1 %v246_v62 }
 0x141   :  { %298 = vmatprep.subr.mxu1 %v245_v0 }
 0x142   :  { %299 = vmatpush1.msra.mxu1 %v244_v1 }
 0x143   :  { %300 = vmatprep.subr.mxu1 %v243_v3 }
 0x144   :  { %301 = vmatpush1.msra.mxu1 %v242_v4 }
 0x145   :  { %302 = vmatprep.subr.mxu1 %v241_v6 }
 0x146   :  { %303 = vmatpush1.msra.mxu1 %v240_v7 }
 0x147   :  { %304 = vmatprep.subr.mxu1 %v239_v9 }
 0x148   :  { %305 = vmatpush1.msra.mxu1 %v238_v10 }
 0x149   :  { %306 = vmatprep.subr.mxu1 %v237_v12 }
 0x14a   :  { %307 = vmatpush1.msra.mxu1 %v236_v13 }
 0x14b   :  { %308 = vmatprep.subr.mxu1 %v235_v14 }
 0x14c   :  { %309 = vmatpush1.msra.mxu1 %v234_v15 }
 0x14d   :  { %343 = vmatmul.mubr.f32.vlgmr.msra.gmra.mxu1 %v209_v31 }
 0x20d   :  { %v344_v23 = vpop.f32.mrf.mxu1 }
 0x20e   :  { %v345_v24 = vadd.f32 %v344_v23, %v271_v21 }
 0x20f   :  { %v346_v25 = vpop.f32.mrf.mxu1 }
 0x210   :  { %v349_v26 = vmul.f32 0.2, %v345_v24  ;;  %v347_v27 = vadd.f32 %v346_v25, %v275_v22 }
 0x212   :  { %v5244_v28 = vmax.f32 %v345_v24, %v349_v26  ;;  %v350_v29 = vmul.f32 0.2, %v347_v27 }
 0x214   :  { %v352_v30 = vmax.f32 %v347_v27, %v350_v29 }
 0x215   :  { %5128 = dma.done.wait [#allocation7 + $0x2], 8192 }
 0x216   :  { %5129 = vsyncadd [#allocation7 + $0x2], 4294959104  ;;  %639 = vmatprep.mubr.f32.mxu0 %v352_v30  ;;  %710 = vmatprep.mubr.f32.mxu1 %v352_v30  ;;  %v391_v31 = vld [vmem:[#allocation4 + $0xf0] sm:$0xff]  ;;  %v392_v32 = vld [vmem:[#allocation4 + $0xf8] sm:$0xff] }
 0x217   :  { %v389_v33 = vld [vmem:[#allocation4 + $0xe0] sm:$0xff]  ;;  %v486_v34 = vunpack.c.h.bf16 %v391_v31  ;;  %v488_v35 = vunpack.c.h.bf16 %v392_v32  ;;  %v485_v36 = vunpack.c.l.bf16 %v391_v31  ;;  %v487_v37 = vunpack.c.l.bf16 %v392_v32  ;;  %v390_v38 = vld [vmem:[#allocation4 + $0xe8] sm:$0xff]  ;;  %v387_v39 = vld [vmem:[#allocation4 + $0xd0] sm:$0xff] }
 0x218   :  { %v388_v40 = vld [vmem:[#allocation4 + $0xd8] sm:$0xff]  ;;  %v482_v41 = vunpack.c.h.bf16 %v389_v33  ;;  %v484_v42 = vunpack.c.h.bf16 %v390_v38  ;;  %v481_v43 = vunpack.c.l.bf16 %v389_v33  ;;  %v483_v44 = vunpack.c.l.bf16 %v390_v38  ;;  %v385_v45 = vld [vmem:[#allocation4 + $0xc0] sm:$0xff]  ;;  %v386_v46 = vld [vmem:[#allocation4 + $0xc8] sm:$0xff] }
 0x219   :  { %575 = vmatprep.subr.mxu0 %v486_v34  ;;  %646 = vmatprep.subr.mxu1 %v488_v35  ;;  %v478_v47 = vunpack.c.h.bf16 %v387_v39  ;;  %v480_v48 = vunpack.c.h.bf16 %v388_v40  ;;  %v477_v49 = vunpack.c.l.bf16 %v387_v39  ;;  %v479_v50 = vunpack.c.l.bf16 %v388_v40  ;;  %v383_v51 = vld [vmem:[#allocation4 + $0xb0] sm:$0xff]  ;;  %v384_v52 = vld [vmem:[#allocation4 + $0xb8] sm:$0xff]  ;;  %v381_v57 = vld [vmem:[#allocation4 + $0xa0] sm:$0xff] }
 0x21a   :  { %576 = vmatpush1.msra.mxu0 %v485_v36  ;;  %647 = vmatpush1.msra.mxu1 %v487_v37  ;;  %v474_v53 = vunpack.c.h.bf16 %v385_v45  ;;  %v476_v54 = vunpack.c.h.bf16 %v386_v46  ;;  %v473_v55 = vunpack.c.l.bf16 %v385_v45  ;;  %v475_v56 = vunpack.c.l.bf16 %v386_v46  ;;  %v382_v58 = vld [vmem:[#allocation4 + $0xa8] sm:$0xff]  ;;  %v379_v63 = vld [vmem:[#allocation4 + $0x90] sm:$0xff]  ;;  %v380_v0 = vld [vmem:[#allocation4 + $0x98] sm:$0xff] }
 0x21b   :  { %577 = vmatprep.subr.mxu0 %v482_v41  ;;  %648 = vmatprep.subr.mxu1 %v484_v42  ;;  %v470_v59 = vunpack.c.h.bf16 %v383_v51  ;;  %v472_v60 = vunpack.c.h.bf16 %v384_v52  ;;  %v469_v61 = vunpack.c.l.bf16 %v383_v51  ;;  %v471_v62 = vunpack.c.l.bf16 %v384_v52  ;;  %v377_v5 = vld [vmem:[#allocation4 + $0x80] sm:$0xff]  ;;  %v378_v6 = vld [vmem:[#allocation4 + $0x88] sm:$0xff]  ;;  %v375_v11 = vld [vmem:[#allocation4 + $0x70] sm:$0xff] }
 0x21c   :  { %578 = vmatpush1.msra.mxu0 %v481_v43  ;;  %649 = vmatpush1.msra.mxu1 %v483_v44  ;;  %v466_v1 = vunpack.c.h.bf16 %v381_v57  ;;  %v468_v2 = vunpack.c.h.bf16 %v382_v58  ;;  %v465_v3 = vunpack.c.l.bf16 %v381_v57  ;;  %v467_v4 = vunpack.c.l.bf16 %v382_v58  ;;  %v376_v12 = vld [vmem:[#allocation4 + $0x78] sm:$0xff]  ;;  %v373_v19 = vld [vmem:[#allocation4 + $0x60] sm:$0xff]  ;;  %v374_v21 = vld [vmem:[#allocation4 + $0x68] sm:$0xff] }
 0x21d   :  { %579 = vmatprep.subr.mxu0 %v478_v47  ;;  %650 = vmatprep.subr.mxu1 %v480_v48  ;;  %v462_v7 = vunpack.c.h.bf16 %v379_v63  ;;  %v464_v8 = vunpack.c.h.bf16 %v380_v0  ;;  %v461_v9 = vunpack.c.l.bf16 %v379_v63  ;;  %v463_v10 = vunpack.c.l.bf16 %v380_v0  ;;  %v371_v26 = vld [vmem:[#allocation4 + $0x50] sm:$0xff]  ;;  %v372_v27 = vld [vmem:[#allocation4 + $0x58] sm:$0xff]  ;;  %v369_v33 = vld [vmem:[#allocation4 + $0x40] sm:$0xff] }
 0x21e   :  { %580 = vmatpush1.msra.mxu0 %v477_v49  ;;  %651 = vmatpush1.msra.mxu1 %v479_v50  ;;  %v458_v13 = vunpack.c.h.bf16 %v377_v5  ;;  %v460_v14 = vunpack.c.h.bf16 %v378_v6  ;;  %v457_v15 = vunpack.c.l.bf16 %v377_v5  ;;  %v459_v16 = vunpack.c.l.bf16 %v378_v6  ;;  %v370_v34 = vld [vmem:[#allocation4 + $0x48] sm:$0xff]  ;;  %v367_v39 = vld [vmem:[#allocation4 + $0x30] sm:$0xff]  ;;  %v368_v40 = vld [vmem:[#allocation4 + $0x38] sm:$0xff] }
 0x21f   :  { %581 = vmatprep.subr.mxu0 %v474_v53  ;;  %652 = vmatprep.subr.mxu1 %v476_v54  ;;  %v454_v22 = vunpack.c.h.bf16 %v375_v11  ;;  %v456_v23 = vunpack.c.h.bf16 %v376_v12  ;;  %v453_v24 = vunpack.c.l.bf16 %v375_v11  ;;  %v455_v25 = vunpack.c.l.bf16 %v376_v12  ;;  %v365_v45 = vld [vmem:[#allocation4 + $0x20] sm:$0xff]  ;;  %v366_v46 = vld [vmem:[#allocation4 + $0x28] sm:$0xff]  ;;  %v363_v51 = vld [vmem:[#allocation4 + $0x10] sm:$0xff] }
 0x220   :  { %582 = vmatpush1.msra.mxu0 %v473_v55  ;;  %653 = vmatpush1.msra.mxu1 %v475_v56  ;;  %v450_v29 = vunpack.c.h.bf16 %v373_v19  ;;  %v452_v30 = vunpack.c.h.bf16 %v374_v21  ;;  %v449_v31 = vunpack.c.l.bf16 %v373_v19  ;;  %v451_v32 = vunpack.c.l.bf16 %v374_v21  ;;  %v364_v52 = vld [vmem:[#allocation4 + $0x18] sm:$0xff]  ;;  %v361_v57 = vld [vmem:[#allocation4] sm:$0xff]  ;;  %v362_v58 = vld [vmem:[#allocation4 + $0x8] sm:$0xff] }
 0x221   :  { %583 = vmatprep.subr.mxu0 %v470_v59  ;;  %654 = vmatprep.subr.mxu1 %v472_v60  ;;  %v446_v35 = vunpack.c.h.bf16 %v371_v26  ;;  %v448_v36 = vunpack.c.h.bf16 %v372_v27  ;;  %v445_v37 = vunpack.c.l.bf16 %v371_v26  ;;  %v447_v38 = vunpack.c.l.bf16 %v372_v27  ;;  %v423_v63 = vld [vmem:[#allocation4 + $0x1f0] sm:$0xff]  ;;  %v424_v0 = vld [vmem:[#allocation4 + $0x1f8] sm:$0xff]  ;;  %v421_v5 = vld [vmem:[#allocation4 + $0x1e0] sm:$0xff] }
 0x222   :  { %584 = vmatpush1.msra.mxu0 %v469_v61  ;;  %655 = vmatpush1.msra.mxu1 %v471_v62  ;;  %v442_v41 = vunpack.c.h.bf16 %v369_v33  ;;  %v444_v42 = vunpack.c.h.bf16 %v370_v34  ;;  %v441_v43 = vunpack.c.l.bf16 %v369_v33  ;;  %v443_v44 = vunpack.c.l.bf16 %v370_v34  ;;  %v422_v6 = vld [vmem:[#allocation4 + $0x1e8] sm:$0xff]  ;;  %v419_v11 = vld [vmem:[#allocation4 + $0x1d0] sm:$0xff]  ;;  %v420_v12 = vld [vmem:[#allocation4 + $0x1d8] sm:$0xff] }
 0x223   :  { %585 = vmatprep.subr.mxu0 %v466_v1  ;;  %656 = vmatprep.subr.mxu1 %v468_v2  ;;  %v438_v47 = vunpack.c.h.bf16 %v367_v39  ;;  %v440_v48 = vunpack.c.h.bf16 %v368_v40  ;;  %v437_v49 = vunpack.c.l.bf16 %v367_v39  ;;  %v439_v50 = vunpack.c.l.bf16 %v368_v40  ;;  %v417_v19 = vld [vmem:[#allocation4 + $0x1c0] sm:$0xff]  ;;  %v418_v21 = vld [vmem:[#allocation4 + $0x1c8] sm:$0xff]  ;;  %v415_v26 = vld [vmem:[#allocation4 + $0x1b0] sm:$0xff] }
 0x224   :  { %586 = vmatpush1.msra.mxu0 %v465_v3  ;;  %657 = vmatpush1.msra.mxu1 %v467_v4  ;;  %v434_v53 = vunpack.c.h.bf16 %v365_v45  ;;  %v436_v54 = vunpack.c.h.bf16 %v366_v46  ;;  %v433_v55 = vunpack.c.l.bf16 %v365_v45  ;;  %v435_v56 = vunpack.c.l.bf16 %v366_v46  ;;  %v416_v27 = vld [vmem:[#allocation4 + $0x1b8] sm:$0xff]  ;;  %v413_v33 = vld [vmem:[#allocation4 + $0x1a0] sm:$0xff]  ;;  %v414_v34 = vld [vmem:[#allocation4 + $0x1a8] sm:$0xff] }
 0x225   :  { %587 = vmatprep.subr.mxu0 %v462_v7  ;;  %658 = vmatprep.subr.mxu1 %v464_v8  ;;  %v430_v59 = vunpack.c.h.bf16 %v363_v51  ;;  %v432_v60 = vunpack.c.h.bf16 %v364_v52  ;;  %v429_v61 = vunpack.c.l.bf16 %v363_v51  ;;  %v431_v62 = vunpack.c.l.bf16 %v364_v52  ;;  %v411_v39 = vld [vmem:[#allocation4 + $0x190] sm:$0xff]  ;;  %v412_v40 = vld [vmem:[#allocation4 + $0x198] sm:$0xff]  ;;  %v409_v45 = vld [vmem:[#allocation4 + $0x180] sm:$0xff] }
 0x226   :  { %588 = vmatpush1.msra.mxu0 %v461_v9  ;;  %659 = vmatpush1.msra.mxu1 %v463_v10  ;;  %v426_v1 = vunpack.c.h.bf16 %v361_v57  ;;  %v428_v2 = vunpack.c.h.bf16 %v362_v58  ;;  %v425_v3 = vunpack.c.l.bf16 %v361_v57  ;;  %v427_v4 = vunpack.c.l.bf16 %v362_v58  ;;  %v410_v46 = vld [vmem:[#allocation4 + $0x188] sm:$0xff]  ;;  %v407_v51 = vld [vmem:[#allocation4 + $0x170] sm:$0xff]  ;;  %v408_v52 = vld [vmem:[#allocation4 + $0x178] sm:$0xff] }
 0x227   :  { %589 = vmatprep.subr.mxu0 %v458_v13  ;;  %660 = vmatprep.subr.mxu1 %v460_v14  ;;  %v550_v7 = vunpack.c.h.bf16 %v423_v63  ;;  %v552_v8 = vunpack.c.h.bf16 %v424_v0  ;;  %v549_v9 = vunpack.c.l.bf16 %v423_v63  ;;  %v551_v10 = vunpack.c.l.bf16 %v424_v0  ;;  %v405_v57 = vld [vmem:[#allocation4 + $0x160] sm:$0xff]  ;;  %v406_v58 = vld [vmem:[#allocation4 + $0x168] sm:$0xff]  ;;  %v403_v63 = vld [vmem:[#allocation4 + $0x150] sm:$0xff] }
 0x228   :  { %590 = vmatpush1.msra.mxu0 %v457_v15  ;;  %661 = vmatpush1.msra.mxu1 %v459_v16  ;;  %v546_v13 = vunpack.c.h.bf16 %v421_v5  ;;  %v548_v14 = vunpack.c.h.bf16 %v422_v6  ;;  %v545_v15 = vunpack.c.l.bf16 %v421_v5  ;;  %v547_v16 = vunpack.c.l.bf16 %v422_v6  ;;  %v404_v0 = vld [vmem:[#allocation4 + $0x158] sm:$0xff]  ;;  %v401_v5 = vld [vmem:[#allocation4 + $0x140] sm:$0xff]  ;;  %v402_v6 = vld [vmem:[#allocation4 + $0x148] sm:$0xff] }
 0x229   :  { %591 = vmatprep.subr.mxu0 %v454_v22  ;;  %662 = vmatprep.subr.mxu1 %v456_v23  ;;  %v542_v22 = vunpack.c.h.bf16 %v419_v11  ;;  %v544_v23 = vunpack.c.h.bf16 %v420_v12 }
 0x22a   :  { %592 = vmatpush1.msra.mxu0 %v453_v24  ;;  %663 = vmatpush1.msra.mxu1 %v455_v25  ;;  %v541_v24 = vunpack.c.l.bf16 %v419_v11  ;;  %v543_v25 = vunpack.c.l.bf16 %v420_v12  ;;  %v399_v11 = vld [vmem:[#allocation4 + $0x130] sm:$0xff]  ;;  %v400_v12 = vld [vmem:[#allocation4 + $0x138] sm:$0xff] }
 0x22b   :  { %593 = vmatprep.subr.mxu0 %v450_v29  ;;  %664 = vmatprep.subr.mxu1 %v452_v30  ;;  %v538_v29 = vunpack.c.h.bf16 %v417_v19  ;;  %v540_v30 = vunpack.c.h.bf16 %v418_v21 }
 0x22c   :  { %594 = vmatpush1.msra.mxu0 %v449_v31  ;;  %665 = vmatpush1.msra.mxu1 %v451_v32  ;;  %v537_v31 = vunpack.c.l.bf16 %v417_v19  ;;  %v539_v32 = vunpack.c.l.bf16 %v418_v21  ;;  %v397_v19 = vld [vmem:[#allocation4 + $0x120] sm:$0xff]  ;;  %v398_v21 = vld [vmem:[#allocation4 + $0x128] sm:$0xff] }
 0x22d   :  { %595 = vmatprep.subr.mxu0 %v446_v35  ;;  %666 = vmatprep.subr.mxu1 %v448_v36  ;;  %v534_v35 = vunpack.c.h.bf16 %v415_v26  ;;  %v536_v36 = vunpack.c.h.bf16 %v416_v27 }
 0x22e   :  { %596 = vmatpush1.msra.mxu0 %v445_v37  ;;  %667 = vmatpush1.msra.mxu1 %v447_v38  ;;  %v533_v37 = vunpack.c.l.bf16 %v415_v26  ;;  %v535_v38 = vunpack.c.l.bf16 %v416_v27  ;;  %v395_v26 = vld [vmem:[#allocation4 + $0x110] sm:$0xff]  ;;  %v396_v27 = vld [vmem:[#allocation4 + $0x118] sm:$0xff] }
 0x22f   :  { %597 = vmatprep.subr.mxu0 %v442_v41  ;;  %668 = vmatprep.subr.mxu1 %v444_v42  ;;  %v530_v41 = vunpack.c.h.bf16 %v413_v33  ;;  %v532_v42 = vunpack.c.h.bf16 %v414_v34 }
 0x230   :  { %598 = vmatpush1.msra.mxu0 %v441_v43  ;;  %669 = vmatpush1.msra.mxu1 %v443_v44  ;;  %v529_v43 = vunpack.c.l.bf16 %v413_v33  ;;  %v531_v44 = vunpack.c.l.bf16 %v414_v34  ;;  %v393_v33 = vld [vmem:[#allocation4 + $0x100] sm:$0xff]  ;;  %v394_v34 = vld [vmem:[#allocation4 + $0x108] sm:$0xff] }
 0x231   :  { %599 = vmatprep.subr.mxu0 %v438_v47  ;;  %670 = vmatprep.subr.mxu1 %v440_v48  ;;  %v526_v47 = vunpack.c.h.bf16 %v411_v39  ;;  %v528_v48 = vunpack.c.h.bf16 %v412_v40 }
 0x232   :  { %600 = vmatpush1.msra.mxu0 %v437_v49  ;;  %671 = vmatpush1.msra.mxu1 %v439_v50  ;;  %v525_v49 = vunpack.c.l.bf16 %v411_v39  ;;  %v527_v50 = vunpack.c.l.bf16 %v412_v40  ;;  %v490_v39 = vunpack.c.h.bf16 %v393_v33  ;;  %v492_v40 = vunpack.c.h.bf16 %v394_v34 }
 0x233   :  { %601 = vmatprep.subr.mxu0 %v434_v53  ;;  %672 = vmatprep.subr.mxu1 %v436_v54  ;;  %v522_v53 = vunpack.c.h.bf16 %v409_v45  ;;  %v524_v54 = vunpack.c.h.bf16 %v410_v46 }
 0x234   :  { %602 = vmatpush1.msra.mxu0 %v433_v55  ;;  %673 = vmatpush1.msra.mxu1 %v435_v56  ;;  %v521_v55 = vunpack.c.l.bf16 %v409_v45  ;;  %v523_v56 = vunpack.c.l.bf16 %v410_v46  ;;  %v5252_v45 = vsub.s32 3, %v5234_v17 }
 0x235   :  { %603 = vmatprep.subr.mxu0 %v430_v59  ;;  %674 = vmatprep.subr.mxu1 %v432_v60  ;;  %v518_v59 = vunpack.c.h.bf16 %v407_v51  ;;  %v520_v60 = vunpack.c.h.bf16 %v408_v52 }
 0x236   :  { %604 = vmatpush1.msra.mxu0 %v429_v61  ;;  %675 = vmatpush1.msra.mxu1 %v431_v62  ;;  %v517_v61 = vunpack.c.l.bf16 %v407_v51  ;;  %v519_v62 = vunpack.c.l.bf16 %v408_v52 }
 0x237   :  { %605 = vmatprep.subr.mxu0 %v426_v1  ;;  %676 = vmatprep.subr.mxu1 %v428_v2  ;;  %v514_v1 = vunpack.c.h.bf16 %v405_v57  ;;  %v516_v2 = vunpack.c.h.bf16 %v406_v58 }
 0x238   :  { %606 = vmatpush1.msra.mxu0 %v425_v3  ;;  %677 = vmatpush1.msra.mxu1 %v427_v4  ;;  %v513_v3 = vunpack.c.l.bf16 %v405_v57  ;;  %v515_v4 = vunpack.c.l.bf16 %v406_v58 }
 0x239   :  { %607 = vmatprep.subr.mxu0 %v550_v7  ;;  %678 = vmatprep.subr.mxu1 %v552_v8  ;;  %v510_v7 = vunpack.c.h.bf16 %v403_v63  ;;  %v512_v8 = vunpack.c.h.bf16 %v404_v0 }
 0x23a   :  { %608 = vmatpush2.msra.mxu0 %v549_v9  ;;  %679 = vmatpush2.msra.mxu1 %v551_v10  ;;  %v509_v9 = vunpack.c.l.bf16 %v403_v63  ;;  %v511_v10 = vunpack.c.l.bf16 %v404_v0 }
 0x23b   :  { %609 = vmatprep.subr.mxu0 %v546_v13  ;;  %680 = vmatprep.subr.mxu1 %v548_v14  ;;  %v506_v13 = vunpack.c.h.bf16 %v401_v5  ;;  %v508_v14 = vunpack.c.h.bf16 %v402_v6 }
 0x23c   :  { %610 = vmatpush2.msra.mxu0 %v545_v15  ;;  %681 = vmatpush2.msra.mxu1 %v547_v16  ;;  %v505_v15 = vunpack.c.l.bf16 %v401_v5  ;;  %v507_v16 = vunpack.c.l.bf16 %v402_v6 }
 0x23d   :  { %611 = vmatprep.subr.mxu0 %v542_v22  ;;  %682 = vmatprep.subr.mxu1 %v544_v23  ;;  %v502_v22 = vunpack.c.h.bf16 %v399_v11  ;;  %v504_v23 = vunpack.c.h.bf16 %v400_v12 }
 0x23e   :  { %612 = vmatpush2.msra.mxu0 %v541_v24  ;;  %683 = vmatpush2.msra.mxu1 %v543_v25  ;;  %v501_v24 = vunpack.c.l.bf16 %v399_v11  ;;  %v503_v25 = vunpack.c.l.bf16 %v400_v12 }
 0x23f   :  { %613 = vmatprep.subr.mxu0 %v538_v29  ;;  %684 = vmatprep.subr.mxu1 %v540_v30  ;;  %v498_v29 = vunpack.c.h.bf16 %v397_v19  ;;  %v500_v30 = vunpack.c.h.bf16 %v398_v21 }
 0x240   :  { %614 = vmatpush2.msra.mxu0 %v537_v31  ;;  %685 = vmatpush2.msra.mxu1 %v539_v32  ;;  %v497_v31 = vunpack.c.l.bf16 %v397_v19  ;;  %v499_v32 = vunpack.c.l.bf16 %v398_v21 }
 0x241   :  { %615 = vmatprep.subr.mxu0 %v534_v35  ;;  %686 = vmatprep.subr.mxu1 %v536_v36  ;;  %v494_v35 = vunpack.c.h.bf16 %v395_v26  ;;  %v496_v36 = vunpack.c.h.bf16 %v396_v27 }
 0x242   :  { %616 = vmatpush2.msra.mxu0 %v533_v37  ;;  %687 = vmatpush2.msra.mxu1 %v535_v38  ;;  %v493_v37 = vunpack.c.l.bf16 %v395_v26  ;;  %v495_v38 = vunpack.c.l.bf16 %v396_v27 }
 0x243   :  { %617 = vmatprep.subr.mxu0 %v530_v41  ;;  %688 = vmatprep.subr.mxu1 %v532_v42  ;;  %v489_v41 = vunpack.c.l.bf16 %v393_v33  ;;  %v491_v42 = vunpack.c.l.bf16 %v394_v34 }
 0x244   :  { %618 = vmatpush2.msra.mxu0 %v529_v43  ;;  %689 = vmatpush2.msra.mxu1 %v531_v44  ;;  %v5249_v43 = vsub.s32 2, %v5234_v17  ;;  %v553_v44 = vld [vmem:[#allocation8 + $0x3] sm:$0xf] }
 0x245   :  { %619 = vmatprep.subr.mxu0 %v526_v47  ;;  %690 = vmatprep.subr.mxu1 %v528_v48  ;;  %v558_v46 = vrot.slane %v553_v44, %v5237_v18  ;;  %v562_v48 = vrot.slane %v553_v44, %v5240_v20 }
 0x246   :  { %620 = vmatpush2.msra.mxu0 %v525_v49  ;;  %691 = vmatpush2.msra.mxu1 %v527_v50  ;;  %v566_v47 = vrot.slane %v553_v44, %v5249_v43  ;;  %v570_v49 = vrot.slane %v553_v44, %v5252_v45 }
 0x247   :  { %621 = vmatprep.subr.mxu0 %v522_v53  ;;  %692 = vmatprep.subr.mxu1 %v524_v54 }
 0x248   :  { %622 = vmatpush2.msra.mxu0 %v521_v55  ;;  %693 = vmatpush2.msra.mxu1 %v523_v56 }
 0x249   :  { %623 = vmatprep.subr.mxu0 %v518_v59  ;;  %694 = vmatprep.subr.mxu1 %v520_v60 }
 0x24a   :  { %624 = vmatpush2.msra.mxu0 %v517_v61  ;;  %695 = vmatpush2.msra.mxu1 %v519_v62 }
 0x24b   :  { %625 = vmatprep.subr.mxu0 %v514_v1  ;;  %696 = vmatprep.subr.mxu1 %v516_v2 }
 0x24c   :  { %626 = vmatpush2.msra.mxu0 %v513_v3  ;;  %697 = vmatpush2.msra.mxu1 %v515_v4 }
 0x24d   :  { %627 = vmatprep.subr.mxu0 %v510_v7  ;;  %698 = vmatprep.subr.mxu1 %v512_v8 }
 0x24e   :  { %628 = vmatpush2.msra.mxu0 %v509_v9  ;;  %699 = vmatpush2.msra.mxu1 %v511_v10 }
 0x24f   :  { %629 = vmatprep.subr.mxu0 %v506_v13  ;;  %700 = vmatprep.subr.mxu1 %v508_v14 }
 0x250   :  { %630 = vmatpush2.msra.mxu0 %v505_v15  ;;  %701 = vmatpush2.msra.mxu1 %v507_v16 }
 0x251   :  { %631 = vmatprep.subr.mxu0 %v502_v22  ;;  %702 = vmatprep.subr.mxu1 %v504_v23 }
 0x252   :  { %632 = vmatpush2.msra.mxu0 %v501_v24  ;;  %703 = vmatpush2.msra.mxu1 %v503_v25 }
 0x253   :  { %633 = vmatprep.subr.mxu0 %v498_v29  ;;  %704 = vmatprep.subr.mxu1 %v500_v30 }
 0x254   :  { %634 = vmatpush2.msra.mxu0 %v497_v31  ;;  %705 = vmatpush2.msra.mxu1 %v499_v32 }
 0x255   :  { %635 = vmatprep.subr.mxu0 %v494_v35  ;;  %706 = vmatprep.subr.mxu1 %v496_v36 }
 0x256   :  { %636 = vmatpush2.msra.mxu0 %v493_v37  ;;  %707 = vmatpush2.msra.mxu1 %v495_v38 }
 0x257   :  { %637 = vmatprep.subr.mxu0 %v490_v39  ;;  %708 = vmatprep.subr.mxu1 %v492_v40 }
 0x258   :  { %638 = vmatpush2.msra.mxu0 %v489_v41  ;;  %709 = vmatpush2.msra.mxu1 %v491_v42 }
 0x259   :  { %640 = vmatmul.mubr.f32.vlgmr.msra.gmra.mxu0 %v5244_v28  ;;  %711 = vmatmul.mubr.f32.vlgmr.msra.gmra.mxu1 %v5244_v28 }
 0x319   :  { %v641_v50 = vpop.f32.mrf.mxu0  ;;  %v712_v51 = vpop.f32.mrf.mxu1 }
 0x31a   :  { %v642_v52 = vadd.f32 %v641_v50, %v558_v46  ;;  %v713_v53 = vadd.f32 %v712_v51, %v566_v47 }
 0x31b   :  { %v643_v28 = vpop.f32.mrf.mxu0  ;;  %v714_v54 = vpop.f32.mrf.mxu1 }
 0x31c   :  { %v717_v55 = vmul.f32 0.2, %v642_v52  ;;  %v719_v56 = vmul.f32 0.2, %v713_v53  ;;  %v644_v57 = vadd.f32 %v643_v28, %v562_v48  ;;  %v715_v58 = vadd.f32 %v714_v54, %v570_v49 }
 0x31e   :  { %v5258_v59 = vmax.f32 %v642_v52, %v717_v55  ;;  %v5260_v60 = vmax.f32 %v713_v53, %v719_v56  ;;  %v718_v61 = vmul.f32 0.2, %v644_v57  ;;  %v720_v62 = vmul.f32 0.2, %v715_v58 }
 0x320   :  { %v5262_v63 = vmax.f32 %v644_v57, %v718_v61  ;;  %v5264_v0 = vmax.f32 %v715_v58, %v720_v62 }
 0x321   :  { %5130 = dma.done.wait [#allocation7 + $0x3], 32768 }
 0x322   :  { %5131 = vsyncadd [#allocation7 + $0x3], 4294934528  ;;  %1607 = vmatprep.mubr.f32.mxu0 %v5262_v63  ;;  %1678 = vmatprep.mubr.f32.mxu1 %v5264_v0  ;;  %v793_v1 = vld [vmem:[#allocation5 + $0x1e0] sm:$0xff] }
 0x323   :  { %v921_v2 = vld [vmem:[#allocation5 + $0x5e0] sm:$0xff]  ;;  %v1110_v4 = vunpack.c.h.bf16 %v793_v1  ;;  %v1109_v6 = vunpack.c.l.bf16 %v793_v1 }
 0x324   :  { %v789_v3 = vld [vmem:[#allocation5 + $0x1c0] sm:$0xff]  ;;  %v1366_v5 = vunpack.c.h.bf16 %v921_v2  ;;  %v1365_v7 = vunpack.c.l.bf16 %v921_v2 }
 0x325   :  { %v917_v8 = vld [vmem:[#allocation5 + $0x5c0] sm:$0xff]  ;;  %v1102_v11 = vunpack.c.h.bf16 %v789_v3  ;;  %v1101_v13 = vunpack.c.l.bf16 %v789_v3  ;;  %1543 = vmatprep.subr.mxu0 %v1110_v4 }
 0x326   :  { %v785_v9 = vld [vmem:[#allocation5 + $0x1a0] sm:$0xff]  ;;  %v1358_v12 = vunpack.c.h.bf16 %v917_v8  ;;  %v1357_v14 = vunpack.c.l.bf16 %v917_v8  ;;  %1614 = vmatprep.subr.mxu1 %v1366_v5  ;;  %1544 = vmatpush1.msra.mxu0 %v1109_v6 }
 0x327   :  { %v913_v10 = vld [vmem:[#allocation5 + $0x5a0] sm:$0xff]  ;;  %v1094_v19 = vunpack.c.h.bf16 %v785_v9  ;;  %1615 = vmatpush1.msra.mxu1 %v1365_v7  ;;  %v1093_v22 = vunpack.c.l.bf16 %v785_v9  ;;  %1545 = vmatprep.subr.mxu0 %v1102_v11 }
 0x328   :  { %v781_v15 = vld [vmem:[#allocation5 + $0x180] sm:$0xff]  ;;  %v1350_v21 = vunpack.c.h.bf16 %v913_v10  ;;  %v1349_v23 = vunpack.c.l.bf16 %v913_v10  ;;  %1616 = vmatprep.subr.mxu1 %v1358_v12  ;;  %1546 = vmatpush1.msra.mxu0 %v1101_v13 }
 0x329   :  { %v909_v16 = vld [vmem:[#allocation5 + $0x580] sm:$0xff]  ;;  %v1086_v26 = vunpack.c.h.bf16 %v781_v15  ;;  %1617 = vmatpush1.msra.mxu1 %v1357_v14  ;;  %v1085_v29 = vunpack.c.l.bf16 %v781_v15  ;;  %1547 = vmatprep.subr.mxu0 %v1094_v19 }
 0x32a   :  { %v777_v24 = vld [vmem:[#allocation5 + $0x160] sm:$0xff]  ;;  %v1342_v27 = vunpack.c.h.bf16 %v909_v16  ;;  %v1341_v30 = vunpack.c.l.bf16 %v909_v16  ;;  %1618 = vmatprep.subr.mxu1 %v1350_v21  ;;  %1548 = vmatpush1.msra.mxu0 %v1093_v22 }
 0x32b   :  { %v905_v25 = vld [vmem:[#allocation5 + $0x560] sm:$0xff]  ;;  %v1078_v33 = vunpack.c.h.bf16 %v777_v24  ;;  %1619 = vmatpush1.msra.mxu1 %v1349_v23  ;;  %v1077_v35 = vunpack.c.l.bf16 %v777_v24  ;;  %1549 = vmatprep.subr.mxu0 %v1086_v26 }
 0x32c   :  { %v773_v31 = vld [vmem:[#allocation5 + $0x140] sm:$0xff]  ;;  %v1334_v34 = vunpack.c.h.bf16 %v905_v25  ;;  %v1333_v36 = vunpack.c.l.bf16 %v905_v25  ;;  %1620 = vmatprep.subr.mxu1 %v1342_v27  ;;  %1550 = vmatpush1.msra.mxu0 %v1085_v29 }
 0x32d   :  { %v901_v32 = vld [vmem:[#allocation5 + $0x540] sm:$0xff]  ;;  %v1070_v39 = vunpack.c.h.bf16 %v773_v31  ;;  %1621 = vmatpush1.msra.mxu1 %v1341_v30  ;;  %v1069_v41 = vunpack.c.l.bf16 %v773_v31  ;;  %1551 = vmatprep.subr.mxu0 %v1078_v33 }
 0x32e   :  { %v769_v37 = vld [vmem:[#allocation5 + $0x120] sm:$0xff]  ;;  %v1326_v40 = vunpack.c.h.bf16 %v901_v32  ;;  %v1325_v42 = vunpack.c.l.bf16 %v901_v32  ;;  %1622 = vmatprep.subr.mxu1 %v1334_v34  ;;  %1552 = vmatpush1.msra.mxu0 %v1077_v35 }
 0x32f   :  { %v897_v38 = vld [vmem:[#allocation5 + $0x520] sm:$0xff]  ;;  %v1062_v47 = vunpack.c.h.bf16 %v769_v37  ;;  %1623 = vmatpush1.msra.mxu1 %v1333_v36  ;;  %v1061_v49 = vunpack.c.l.bf16 %v769_v37  ;;  %1553 = vmatprep.subr.mxu0 %v1070_v39 }
 0x330   :  { %v765_v44 = vld [vmem:[#allocation5 + $0x100] sm:$0xff]  ;;  %v1318_v48 = vunpack.c.h.bf16 %v897_v38  ;;  %v1317_v50 = vunpack.c.l.bf16 %v897_v38  ;;  %1624 = vmatprep.subr.mxu1 %v1326_v40  ;;  %1554 = vmatpush1.msra.mxu0 %v1069_v41 }
 0x331   :  { %v893_v46 = vld [vmem:[#allocation5 + $0x500] sm:$0xff]  ;;  %v1054_v53 = vunpack.c.h.bf16 %v765_v44  ;;  %1625 = vmatpush1.msra.mxu1 %v1325_v42  ;;  %v1053_v54 = vunpack.c.l.bf16 %v765_v44  ;;  %1555 = vmatprep.subr.mxu0 %v1062_v47 }
 0x332   :  { %v761_v51 = vld [vmem:[#allocation5 + $0xe0] sm:$0xff]  ;;  %v1310_v28 = vunpack.c.h.bf16 %v893_v46  ;;  %v1309_v55 = vunpack.c.l.bf16 %v893_v46  ;;  %1626 = vmatprep.subr.mxu1 %v1318_v48  ;;  %1556 = vmatpush1.msra.mxu0 %v1061_v49 }
 0x333   :  { %v889_v52 = vld [vmem:[#allocation5 + $0x4e0] sm:$0xff]  ;;  %v1046_v58 = vunpack.c.h.bf16 %v761_v51  ;;  %1627 = vmatpush1.msra.mxu1 %v1317_v50  ;;  %v1045_v62 = vunpack.c.l.bf16 %v761_v51  ;;  %1557 = vmatprep.subr.mxu0 %v1054_v53 }
 0x334   :  { %v757_v56 = vld [vmem:[#allocation5 + $0xc0] sm:$0xff]  ;;  %v1302_v61 = vunpack.c.h.bf16 %v889_v52  ;;  %v1301_v1 = vunpack.c.l.bf16 %v889_v52  ;;  %1628 = vmatprep.subr.mxu1 %v1310_v28  ;;  %1558 = vmatpush1.msra.mxu0 %v1053_v54 }
 0x335   :  { %v885_v57 = vld [vmem:[#allocation5 + $0x4c0] sm:$0xff]  ;;  %v1038_v4 = vunpack.c.h.bf16 %v757_v56  ;;  %1629 = vmatpush1.msra.mxu1 %v1309_v55  ;;  %v1037_v6 = vunpack.c.l.bf16 %v757_v56  ;;  %1559 = vmatprep.subr.mxu0 %v1046_v58 }
 0x336   :  { %v753_v2 = vld [vmem:[#allocation5 + $0xa0] sm:$0xff]  ;;  %v1294_v5 = vunpack.c.h.bf16 %v885_v57  ;;  %v1293_v7 = vunpack.c.l.bf16 %v885_v57  ;;  %1630 = vmatprep.subr.mxu1 %v1302_v61  ;;  %1560 = vmatpush1.msra.mxu0 %v1045_v62 }
 0x337   :  { %v881_v3 = vld [vmem:[#allocation5 + $0x4a0] sm:$0xff]  ;;  %v1030_v10 = vunpack.c.h.bf16 %v753_v2  ;;  %1631 = vmatpush1.msra.mxu1 %v1301_v1  ;;  %v1029_v12 = vunpack.c.l.bf16 %v753_v2  ;;  %1561 = vmatprep.subr.mxu0 %v1038_v4 }
 0x338   :  { %v749_v8 = vld [vmem:[#allocation5 + $0x80] sm:$0xff]  ;;  %v1286_v11 = vunpack.c.h.bf16 %v881_v3  ;;  %v1285_v13 = vunpack.c.l.bf16 %v881_v3  ;;  %1632 = vmatprep.subr.mxu1 %v1294_v5  ;;  %1562 = vmatpush1.msra.mxu0 %v1037_v6 }
 0x339   :  { %v877_v9 = vld [vmem:[#allocation5 + $0x480] sm:$0xff]  ;;  %v1022_v16 = vunpack.c.h.bf16 %v749_v8  ;;  %1633 = vmatpush1.msra.mxu1 %v1293_v7  ;;  %v1021_v21 = vunpack.c.l.bf16 %v749_v8  ;;  %1563 = vmatprep.subr.mxu0 %v1030_v10 }
 0x33a   :  { %v745_v14 = vld [vmem:[#allocation5 + $0x60] sm:$0xff]  ;;  %v1278_v19 = vunpack.c.h.bf16 %v877_v9  ;;  %v1277_v22 = vunpack.c.l.bf16 %v877_v9  ;;  %1634 = vmatprep.subr.mxu1 %v1286_v11  ;;  %1564 = vmatpush1.msra.mxu0 %v1029_v12 }
 0x33b   :  { %v873_v15 = vld [vmem:[#allocation5 + $0x460] sm:$0xff]  ;;  %v1014_v25 = vunpack.c.h.bf16 %v745_v14  ;;  %1635 = vmatpush1.msra.mxu1 %v1285_v13  ;;  %v1013_v27 = vunpack.c.l.bf16 %v745_v14  ;;  %1565 = vmatprep.subr.mxu0 %v1022_v16 }
 0x33c   :  { %v741_v23 = vld [vmem:[#allocation5 + $0x40] sm:$0xff]  ;;  %v1270_v26 = vunpack.c.h.bf16 %v873_v15  ;;  %v1269_v29 = vunpack.c.l.bf16 %v873_v15  ;;  %1636 = vmatprep.subr.mxu1 %v1278_v19  ;;  %1566 = vmatpush1.msra.mxu0 %v1021_v21 }
 0x33d   :  { %v869_v24 = vld [vmem:[#allocation5 + $0x440] sm:$0xff]  ;;  %v1006_v32 = vunpack.c.h.bf16 %v741_v23  ;;  %1637 = vmatpush1.msra.mxu1 %v1277_v22  ;;  %v1005_v34 = vunpack.c.l.bf16 %v741_v23  ;;  %1567 = vmatprep.subr.mxu0 %v1014_v25 }
 0x33e   :  { %v737_v30 = vld [vmem:[#allocation5 + $0x20] sm:$0xff]  ;;  %v1262_v33 = vunpack.c.h.bf16 %v869_v24  ;;  %v1261_v35 = vunpack.c.l.bf16 %v869_v24  ;;  %1638 = vmatprep.subr.mxu1 %v1270_v26  ;;  %1568 = vmatpush1.msra.mxu0 %v1013_v27 }
 0x33f   :  { %v865_v31 = vld [vmem:[#allocation5 + $0x420] sm:$0xff]  ;;  %v998_v38 = vunpack.c.h.bf16 %v737_v30  ;;  %1639 = vmatpush1.msra.mxu1 %v1269_v29  ;;  %v997_v40 = vunpack.c.l.bf16 %v737_v30  ;;  %1569 = vmatprep.subr.mxu0 %v1006_v32 }
 0x340   :  { %v733_v36 = vld [vmem:[#allocation5] sm:$0xff]  ;;  %v1254_v39 = vunpack.c.h.bf16 %v865_v31  ;;  %v1253_v41 = vunpack.c.l.bf16 %v865_v31  ;;  %1640 = vmatprep.subr.mxu1 %v1262_v33  ;;  %1570 = vmatpush1.msra.mxu0 %v1005_v34 }
 0x341   :  { %v861_v37 = vld [vmem:[#allocation5 + $0x400] sm:$0xff]  ;;  %v990_v46 = vunpack.c.h.bf16 %v733_v36  ;;  %1641 = vmatpush1.msra.mxu1 %v1261_v35  ;;  %v989_v48 = vunpack.c.l.bf16 %v733_v36  ;;  %1571 = vmatprep.subr.mxu0 %v998_v38 }
 0x342   :  { %v857_v42 = vld [vmem:[#allocation5 + $0x3e0] sm:$0xff]  ;;  %v1246_v47 = vunpack.c.h.bf16 %v861_v37  ;;  %v1245_v49 = vunpack.c.l.bf16 %v861_v37  ;;  %1642 = vmatprep.subr.mxu1 %v1254_v39  ;;  %1572 = vmatpush1.msra.mxu0 %v997_v40 }
 0x343   :  { %v985_v44 = vld [vmem:[#allocation5 + $0x7e0] sm:$0xff]  ;;  %v1238_v52 = vunpack.c.h.bf16 %v857_v42  ;;  %1643 = vmatpush1.msra.mxu1 %v1253_v41  ;;  %v1237_v28 = vunpack.c.l.bf16 %v857_v42  ;;  %1573 = vmatprep.subr.mxu0 %v990_v46 }
 0x344   :  { %v853_v50 = vld [vmem:[#allocation5 + $0x3c0] sm:$0xff]  ;;  %v1494_v53 = vunpack.c.h.bf16 %v985_v44  ;;  %v1493_v54 = vunpack.c.l.bf16 %v985_v44  ;;  %1644 = vmatprep.subr.mxu1 %v1246_v47  ;;  %1574 = vmatpush1.msra.mxu0 %v989_v48 }
 0x345   :  { %v981_v51 = vld [vmem:[#allocation5 + $0x7c0] sm:$0xff]  ;;  %v1230_v57 = vunpack.c.h.bf16 %v853_v50  ;;  %1645 = vmatpush1.msra.mxu1 %v1245_v49  ;;  %v1229_v61 = vunpack.c.l.bf16 %v853_v50  ;;  %1575 = vmatprep.subr.mxu0 %v1238_v52 }
 0x346   :  { %v849_v55 = vld [vmem:[#allocation5 + $0x3a0] sm:$0xff]  ;;  %v1486_v58 = vunpack.c.h.bf16 %v981_v51  ;;  %v1485_v62 = vunpack.c.l.bf16 %v981_v51  ;;  %1646 = vmatprep.subr.mxu1 %v1494_v53  ;;  %1576 = vmatpush2.msra.mxu0 %v1237_v28 }
 0x347   :  { %v977_v56 = vld [vmem:[#allocation5 + $0x7a0] sm:$0xff]  ;;  %v1222_v3 = vunpack.c.h.bf16 %v849_v55  ;;  %1647 = vmatpush2.msra.mxu1 %v1493_v54  ;;  %v1221_v5 = vunpack.c.l.bf16 %v849_v55  ;;  %1577 = vmatprep.subr.mxu0 %v1230_v57 }
 0x348   :  { %v845_v1 = vld [vmem:[#allocation5 + $0x380] sm:$0xff]  ;;  %v1478_v4 = vunpack.c.h.bf16 %v977_v56  ;;  %v1477_v6 = vunpack.c.l.bf16 %v977_v56  ;;  %1648 = vmatprep.subr.mxu1 %v1486_v58  ;;  %1578 = vmatpush2.msra.mxu0 %v1229_v61 }
 0x349   :  { %v973_v2 = vld [vmem:[#allocation5 + $0x780] sm:$0xff]  ;;  %v1214_v9 = vunpack.c.h.bf16 %v845_v1  ;;  %1649 = vmatpush2.msra.mxu1 %v1485_v62  ;;  %v1213_v11 = vunpack.c.l.bf16 %v845_v1  ;;  %1579 = vmatprep.subr.mxu0 %v1222_v3 }
 0x34a   :  { %v841_v7 = vld [vmem:[#allocation5 + $0x360] sm:$0xff]  ;;  %v1470_v10 = vunpack.c.h.bf16 %v973_v2  ;;  %v1469_v12 = vunpack.c.l.bf16 %v973_v2  ;;  %1650 = vmatprep.subr.mxu1 %v1478_v4  ;;  %1580 = vmatpush2.msra.mxu0 %v1221_v5 }
 0x34b   :  { %v969_v8 = vld [vmem:[#allocation5 + $0x760] sm:$0xff]  ;;  %v1206_v15 = vunpack.c.h.bf16 %v841_v7  ;;  %1651 = vmatpush2.msra.mxu1 %v1477_v6  ;;  %v1205_v19 = vunpack.c.l.bf16 %v841_v7  ;;  %1581 = vmatprep.subr.mxu0 %v1214_v9 }
 0x34c   :  { %v837_v13 = vld [vmem:[#allocation5 + $0x340] sm:$0xff]  ;;  %v1462_v16 = vunpack.c.h.bf16 %v969_v8  ;;  %v1461_v21 = vunpack.c.l.bf16 %v969_v8  ;;  %1652 = vmatprep.subr.mxu1 %v1470_v10  ;;  %1582 = vmatpush2.msra.mxu0 %v1213_v11 }
 0x34d   :  { %v965_v14 = vld [vmem:[#allocation5 + $0x740] sm:$0xff]  ;;  %v1198_v24 = vunpack.c.h.bf16 %v837_v13  ;;  %1653 = vmatpush2.msra.mxu1 %v1469_v12  ;;  %v1197_v26 = vunpack.c.l.bf16 %v837_v13  ;;  %1583 = vmatprep.subr.mxu0 %v1206_v15 }
 0x34e   :  { %v833_v22 = vld [vmem:[#allocation5 + $0x320] sm:$0xff]  ;;  %v1454_v25 = vunpack.c.h.bf16 %v965_v14  ;;  %v1453_v27 = vunpack.c.l.bf16 %v965_v14  ;;  %1654 = vmatprep.subr.mxu1 %v1462_v16  ;;  %1584 = vmatpush2.msra.mxu0 %v1205_v19 }
 0x34f   :  { %v961_v23 = vld [vmem:[#allocation5 + $0x720] sm:$0xff]  ;;  %v1190_v31 = vunpack.c.h.bf16 %v833_v22  ;;  %1655 = vmatpush2.msra.mxu1 %v1461_v21  ;;  %v1189_v33 = vunpack.c.l.bf16 %v833_v22  ;;  %1585 = vmatprep.subr.mxu0 %v1198_v24 }
 0x350   :  { %v829_v29 = vld [vmem:[#allocation5 + $0x300] sm:$0xff]  ;;  %v1446_v32 = vunpack.c.h.bf16 %v961_v23  ;;  %v1445_v34 = vunpack.c.l.bf16 %v961_v23  ;;  %1656 = vmatprep.subr.mxu1 %v1454_v25  ;;  %1586 = vmatpush2.msra.mxu0 %v1197_v26 }
 0x351   :  { %v957_v30 = vld [vmem:[#allocation5 + $0x700] sm:$0xff]  ;;  %v1182_v37 = vunpack.c.h.bf16 %v829_v29  ;;  %1657 = vmatpush2.msra.mxu1 %v1453_v27  ;;  %v1181_v39 = vunpack.c.l.bf16 %v829_v29  ;;  %1587 = vmatprep.subr.mxu0 %v1190_v31  ;;  %v794_v27 = vld [vmem:[#allocation5 + $0x1e8] sm:$0xff] }
 0x352   :  { %v825_v35 = vld [vmem:[#allocation5 + $0x2e0] sm:$0xff]  ;;  %v1438_v38 = vunpack.c.h.bf16 %v957_v30  ;;  %v1437_v40 = vunpack.c.l.bf16 %v957_v30  ;;  %1658 = vmatprep.subr.mxu1 %v1446_v32  ;;  %1588 = vmatpush2.msra.mxu0 %v1189_v33  ;;  %v922_v31 = vld [vmem:[#allocation5 + $0x5e8] sm:$0xff] }
 0x353   :  { %v953_v36 = vld [vmem:[#allocation5 + $0x6e0] sm:$0xff]  ;;  %v1174_v44 = vunpack.c.h.bf16 %v825_v35  ;;  %1659 = vmatpush2.msra.mxu1 %v1445_v34  ;;  %v1173_v47 = vunpack.c.l.bf16 %v825_v35  ;;  %1589 = vmatprep.subr.mxu0 %v1182_v37  ;;  %v1112_v34 = vunpack.c.h.bf16 %v794_v27  ;;  %v790_v35 = vld [vmem:[#allocation5 + $0x1c8] sm:$0xff]  ;;  %v1368_v37 = vunpack.c.h.bf16 %v922_v31 }
 0x354   :  { %v821_v41 = vld [vmem:[#allocation5 + $0x2c0] sm:$0xff]  ;;  %v1430_v46 = vunpack.c.h.bf16 %v953_v36  ;;  %v1429_v48 = vunpack.c.l.bf16 %v953_v36  ;;  %1660 = vmatprep.subr.mxu1 %v1438_v38  ;;  %1590 = vmatpush2.msra.mxu0 %v1181_v39  ;;  %v918_v36 = vld [vmem:[#allocation5 + $0x5c8] sm:$0xff]  ;;  %v1111_v38 = vunpack.c.l.bf16 %v794_v27  ;;  %v1367_v39 = vunpack.c.l.bf16 %v922_v31 }
 0x355   :  { %v949_v42 = vld [vmem:[#allocation5 + $0x6c0] sm:$0xff]  ;;  %v1166_v51 = vunpack.c.h.bf16 %v821_v41  ;;  %1661 = vmatpush2.msra.mxu1 %v1437_v40  ;;  %v1165_v53 = vunpack.c.l.bf16 %v821_v41  ;;  %1591 = vmatprep.subr.mxu0 %v1174_v44  ;;  %v786_v40 = vld [vmem:[#allocation5 + $0x1a8] sm:$0xff]  ;;  %v1360_v44 = vunpack.c.h.bf16 %v918_v36 }
 0x356   :  { %v817_v49 = vld [vmem:[#allocation5 + $0x2a0] sm:$0xff]  ;;  %v1422_v52 = vunpack.c.h.bf16 %v949_v42  ;;  %v1421_v28 = vunpack.c.l.bf16 %v949_v42  ;;  %1662 = vmatprep.subr.mxu1 %v1430_v46  ;;  %1592 = vmatpush2.msra.mxu0 %v1173_v47  ;;  %v914_v41 = vld [vmem:[#allocation5 + $0x5a8] sm:$0xff]  ;;  %v1104_v42 = vunpack.c.h.bf16 %v790_v35  ;;  %v1103_v46 = vunpack.c.l.bf16 %v790_v35 }
 0x357   :  { %v945_v50 = vld [vmem:[#allocation5 + $0x6a0] sm:$0xff]  ;;  %v1158_v56 = vunpack.c.h.bf16 %v817_v49  ;;  %1663 = vmatpush2.msra.mxu1 %v1429_v48  ;;  %v1157_v58 = vunpack.c.l.bf16 %v817_v49  ;;  %1593 = vmatprep.subr.mxu0 %v1166_v51  ;;  %v1359_v47 = vunpack.c.l.bf16 %v918_v36  ;;  %v782_v48 = vld [vmem:[#allocation5 + $0x188] sm:$0xff]  ;;  %v1352_v51 = vunpack.c.h.bf16 %v914_v41 }
 0x358   :  { %v813_v54 = vld [vmem:[#allocation5 + $0x280] sm:$0xff]  ;;  %v1414_v57 = vunpack.c.h.bf16 %v945_v50  ;;  %v1413_v61 = vunpack.c.l.bf16 %v945_v50  ;;  %1664 = vmatprep.subr.mxu1 %v1422_v52  ;;  %1594 = vmatpush2.msra.mxu0 %v1165_v53  ;;  %v910_v49 = vld [vmem:[#allocation5 + $0x588] sm:$0xff]  ;;  %v1096_v50 = vunpack.c.h.bf16 %v786_v40  ;;  %v1095_v52 = vunpack.c.l.bf16 %v786_v40 }
 0x359   :  { %v941_v55 = vld [vmem:[#allocation5 + $0x680] sm:$0xff]  ;;  %v1150_v2 = vunpack.c.h.bf16 %v813_v54  ;;  %1665 = vmatpush2.msra.mxu1 %v1421_v28  ;;  %v1149_v4 = vunpack.c.l.bf16 %v813_v54  ;;  %1595 = vmatprep.subr.mxu0 %v1158_v56  ;;  %v1351_v53 = vunpack.c.l.bf16 %v914_v41  ;;  %v778_v28 = vld [vmem:[#allocation5 + $0x168] sm:$0xff]  ;;  %v1344_v56 = vunpack.c.h.bf16 %v910_v49 }
 0x35a   :  { %v809_v62 = vld [vmem:[#allocation5 + $0x260] sm:$0xff]  ;;  %v1406_v3 = vunpack.c.h.bf16 %v941_v55  ;;  %v1405_v5 = vunpack.c.l.bf16 %v941_v55  ;;  %1666 = vmatprep.subr.mxu1 %v1414_v57  ;;  %1596 = vmatpush2.msra.mxu0 %v1157_v58  ;;  %v906_v54 = vld [vmem:[#allocation5 + $0x568] sm:$0xff]  ;;  %v1088_v55 = vunpack.c.h.bf16 %v782_v48  ;;  %v1087_v57 = vunpack.c.l.bf16 %v782_v48 }
 0x35b   :  { %v937_v1 = vld [vmem:[#allocation5 + $0x660] sm:$0xff]  ;;  %v1142_v8 = vunpack.c.h.bf16 %v809_v62  ;;  %1667 = vmatpush2.msra.mxu1 %v1413_v61  ;;  %v1141_v10 = vunpack.c.l.bf16 %v809_v62  ;;  %1597 = vmatprep.subr.mxu0 %v1150_v2  ;;  %v1343_v58 = vunpack.c.l.bf16 %v910_v49  ;;  %v774_v61 = vld [vmem:[#allocation5 + $0x148] sm:$0xff]  ;;  %v1336_v2 = vunpack.c.h.bf16 %v906_v54 }
 0x35c   :  { %v805_v6 = vld [vmem:[#allocation5 + $0x240] sm:$0xff]  ;;  %v1398_v9 = vunpack.c.h.bf16 %v937_v1  ;;  %v1397_v11 = vunpack.c.l.bf16 %v937_v1  ;;  %1668 = vmatprep.subr.mxu1 %v1406_v3  ;;  %1598 = vmatpush2.msra.mxu0 %v1149_v4  ;;  %v902_v62 = vld [vmem:[#allocation5 + $0x548] sm:$0xff]  ;;  %v1080_v1 = vunpack.c.h.bf16 %v778_v28  ;;  %v1079_v3 = vunpack.c.l.bf16 %v778_v28 }
 0x35d   :  { %v933_v7 = vld [vmem:[#allocation5 + $0x640] sm:$0xff]  ;;  %v1134_v14 = vunpack.c.h.bf16 %v805_v6  ;;  %1669 = vmatpush2.msra.mxu1 %v1405_v5  ;;  %v1133_v16 = vunpack.c.l.bf16 %v805_v6  ;;  %1599 = vmatprep.subr.mxu0 %v1142_v8  ;;  %v1335_v4 = vunpack.c.l.bf16 %v906_v54  ;;  %v770_v5 = vld [vmem:[#allocation5 + $0x128] sm:$0xff]  ;;  %v1328_v8 = vunpack.c.h.bf16 %v902_v62 }
 0x35e   :  { %v801_v12 = vld [vmem:[#allocation5 + $0x220] sm:$0xff]  ;;  %v1390_v15 = vunpack.c.h.bf16 %v933_v7  ;;  %v1389_v19 = vunpack.c.l.bf16 %v933_v7  ;;  %1670 = vmatprep.subr.mxu1 %v1398_v9  ;;  %1600 = vmatpush2.msra.mxu0 %v1141_v10  ;;  %v898_v6 = vld [vmem:[#allocation5 + $0x528] sm:$0xff]  ;;  %v1072_v7 = vunpack.c.h.bf16 %v774_v61  ;;  %v1071_v9 = vunpack.c.l.bf16 %v774_v61 }
 0x35f   :  { %v929_v13 = vld [vmem:[#allocation5 + $0x620] sm:$0xff]  ;;  %v1126_v23 = vunpack.c.h.bf16 %v801_v12  ;;  %1671 = vmatpush2.msra.mxu1 %v1397_v11  ;;  %v1125_v25 = vunpack.c.l.bf16 %v801_v12  ;;  %1601 = vmatprep.subr.mxu0 %v1134_v14  ;;  %v1327_v10 = vunpack.c.l.bf16 %v902_v62  ;;  %v766_v11 = vld [vmem:[#allocation5 + $0x108] sm:$0xff]  ;;  %v1320_v14 = vunpack.c.h.bf16 %v898_v6 }
 0x360   :  { %v797_v21 = vld [vmem:[#allocation5 + $0x200] sm:$0xff]  ;;  %v1382_v24 = vunpack.c.h.bf16 %v929_v13  ;;  %v1381_v26 = vunpack.c.l.bf16 %v929_v13  ;;  %1672 = vmatprep.subr.mxu1 %v1390_v15  ;;  %1602 = vmatpush2.msra.mxu0 %v1133_v16  ;;  %v894_v12 = vld [vmem:[#allocation5 + $0x508] sm:$0xff]  ;;  %v1064_v13 = vunpack.c.h.bf16 %v770_v5  ;;  %v1063_v15 = vunpack.c.l.bf16 %v770_v5 }
 0x361   :  { %v925_v22 = vld [vmem:[#allocation5 + $0x600] sm:$0xff]  ;;  %v1118_v29 = vunpack.c.h.bf16 %v797_v21  ;;  %1673 = vmatpush2.msra.mxu1 %v1389_v19  ;;  %v1117_v32 = vunpack.c.l.bf16 %v797_v21  ;;  %1603 = vmatprep.subr.mxu0 %v1126_v23  ;;  %v1319_v16 = vunpack.c.l.bf16 %v898_v6  ;;  %v762_v19 = vld [vmem:[#allocation5 + $0xe8] sm:$0xff]  ;;  %v1312_v23 = vunpack.c.h.bf16 %v894_v12 }
 0x362   :  { %v1374_v30 = vunpack.c.h.bf16 %v925_v22  ;;  %v1373_v33 = vunpack.c.l.bf16 %v925_v22  ;;  %1674 = vmatprep.subr.mxu1 %v1382_v24  ;;  %1604 = vmatpush2.msra.mxu0 %v1125_v25  ;;  %v890_v21 = vld [vmem:[#allocation5 + $0x4e8] sm:$0xff]  ;;  %v1056_v22 = vunpack.c.h.bf16 %v766_v11  ;;  %v1055_v24 = vunpack.c.l.bf16 %v766_v11 }
 0x363   :  { %1675 = vmatpush2.msra.mxu1 %v1381_v26  ;;  %1605 = vmatprep.subr.mxu0 %v1118_v29  ;;  %v1311_v25 = vunpack.c.l.bf16 %v894_v12  ;;  %v758_v26 = vld [vmem:[#allocation5 + $0xc8] sm:$0xff]  ;;  %v1048_v29 = vunpack.c.h.bf16 %v762_v19  ;;  %v1047_v31 = vunpack.c.l.bf16 %v762_v19 }
 0x364   :  { %1676 = vmatprep.subr.mxu1 %v1374_v30  ;;  %1606 = vmatpush2.msra.mxu0 %v1117_v32  ;;  %v886_v27 = vld [vmem:[#allocation5 + $0x4c8] sm:$0xff]  ;;  %v1304_v30 = vunpack.c.h.bf16 %v890_v21  ;;  %v1303_v32 = vunpack.c.l.bf16 %v890_v21  ;;  %v1040_v35 = vunpack.c.h.bf16 %v758_v26 }
 0x365   :  { %1677 = vmatpush2.msra.mxu1 %v1373_v33  ;;  %1608 = vmatmul.mubr.f32.vlgmr.msra.gmra.mxu0 %v5258_v59  ;;  %v754_v33 = vld [vmem:[#allocation5 + $0xa8] sm:$0xff]  ;;  %v1296_v36 = vunpack.c.h.bf16 %v886_v27 }
 0x366   :  { %1685 = vmatprep.subr.mxu0 %v1112_v34  ;;  %1756 = vmatprep.subr.mxu1 %v1368_v37  ;;  %v882_v34 = vld [vmem:[#allocation5 + $0x4a8] sm:$0xff]  ;;  %v1039_v37 = vunpack.c.l.bf16 %v758_v26  ;;  %v1032_v41 = vunpack.c.h.bf16 %v754_v33 }
 0x367   :  { %1679 = vmatmul.mubr.f32.vlgmr.msra.gmra.mxu1 %v5260_v60  ;;  %1686 = vmatpush1.msra.mxu0 %v1111_v38  ;;  %v1295_v38 = vunpack.c.l.bf16 %v886_v27  ;;  %v878_v40 = vld [vmem:[#allocation5 + $0x488] sm:$0xff] }
 0x368   :  { %1757 = vmatpush1.msra.mxu1 %v1367_v39  ;;  %1687 = vmatprep.subr.mxu0 %v1104_v42  ;;  %v750_v39 = vld [vmem:[#allocation5 + $0x88] sm:$0xff]  ;;  %v1288_v42 = vunpack.c.h.bf16 %v882_v34 }
 0x369   :  { %1758 = vmatprep.subr.mxu1 %v1360_v44  ;;  %1688 = vmatpush1.msra.mxu0 %v1103_v46  ;;  %v1031_v44 = vunpack.c.l.bf16 %v754_v33  ;;  %v1287_v46 = vunpack.c.l.bf16 %v882_v34  ;;  %v874_v48 = vld [vmem:[#allocation5 + $0x468] sm:$0xff]  ;;  %v1024_v49 = vunpack.c.h.bf16 %v750_v39 }
 0x36a   :  { %1759 = vmatpush1.msra.mxu1 %v1359_v47  ;;  %1689 = vmatprep.subr.mxu0 %v1096_v50  ;;  %v746_v47 = vld [vmem:[#allocation5 + $0x68] sm:$0xff]  ;;  %v1280_v50 = vunpack.c.h.bf16 %v878_v40 }
 0x36b   :  { %1760 = vmatprep.subr.mxu1 %v1352_v51  ;;  %1690 = vmatpush1.msra.mxu0 %v1095_v52  ;;  %v1023_v51 = vunpack.c.l.bf16 %v750_v39  ;;  %v1279_v52 = vunpack.c.l.bf16 %v878_v40  ;;  %v870_v28 = vld [vmem:[#allocation5 + $0x448] sm:$0xff]  ;;  %v1016_v54 = vunpack.c.h.bf16 %v746_v47 }
 0x36c   :  { %1761 = vmatpush1.msra.mxu1 %v1351_v53  ;;  %1691 = vmatprep.subr.mxu0 %v1088_v55  ;;  %v742_v53 = vld [vmem:[#allocation5 + $0x48] sm:$0xff]  ;;  %v1272_v55 = vunpack.c.h.bf16 %v874_v48 }
 0x36d   :  { %1762 = vmatprep.subr.mxu1 %v1344_v56  ;;  %1692 = vmatpush1.msra.mxu0 %v1087_v57  ;;  %v1015_v56 = vunpack.c.l.bf16 %v746_v47  ;;  %v1271_v57 = vunpack.c.l.bf16 %v874_v48  ;;  %v866_v61 = vld [vmem:[#allocation5 + $0x428] sm:$0xff]  ;;  %v1008_v62 = vunpack.c.h.bf16 %v742_v53 }
 0x36e   :  { %1763 = vmatpush1.msra.mxu1 %v1343_v58  ;;  %1693 = vmatprep.subr.mxu0 %v1080_v1  ;;  %v738_v58 = vld [vmem:[#allocation5 + $0x28] sm:$0xff]  ;;  %v1264_v1 = vunpack.c.h.bf16 %v870_v28 }
 0x36f   :  { %1764 = vmatprep.subr.mxu1 %v1336_v2  ;;  %1694 = vmatpush1.msra.mxu0 %v1079_v3  ;;  %v1007_v2 = vunpack.c.l.bf16 %v742_v53  ;;  %v1263_v3 = vunpack.c.l.bf16 %v870_v28  ;;  %v862_v5 = vld [vmem:[#allocation5 + $0x408] sm:$0xff]  ;;  %v1000_v6 = vunpack.c.h.bf16 %v738_v58 }
 0x370   :  { %1765 = vmatpush1.msra.mxu1 %v1335_v4  ;;  %1695 = vmatprep.subr.mxu0 %v1072_v7  ;;  %v734_v4 = vld [vmem:[#allocation5 + $0x8] sm:$0xff]  ;;  %v1256_v7 = vunpack.c.h.bf16 %v866_v61 }
 0x371   :  { %1766 = vmatprep.subr.mxu1 %v1328_v8  ;;  %1696 = vmatpush1.msra.mxu0 %v1071_v9  ;;  %v999_v8 = vunpack.c.l.bf16 %v738_v58  ;;  %v1255_v9 = vunpack.c.l.bf16 %v866_v61  ;;  %v986_v11 = vld [vmem:[#allocation5 + $0x7e8] sm:$0xff]  ;;  %v992_v12 = vunpack.c.h.bf16 %v734_v4 }
 0x372   :  { %1767 = vmatpush1.msra.mxu1 %v1327_v10  ;;  %1697 = vmatprep.subr.mxu0 %v1064_v13  ;;  %v858_v10 = vld [vmem:[#allocation5 + $0x3e8] sm:$0xff]  ;;  %v1248_v13 = vunpack.c.h.bf16 %v862_v5 }
 0x373   :  { %1768 = vmatprep.subr.mxu1 %v1320_v14  ;;  %1698 = vmatpush1.msra.mxu0 %v1063_v15  ;;  %v991_v14 = vunpack.c.l.bf16 %v734_v4  ;;  %v1247_v15 = vunpack.c.l.bf16 %v862_v5  ;;  %v982_v19 = vld [vmem:[#allocation5 + $0x7c8] sm:$0xff]  ;;  %v1240_v21 = vunpack.c.h.bf16 %v858_v10 }
 0x374   :  { %1769 = vmatpush1.msra.mxu1 %v1319_v16  ;;  %1699 = vmatprep.subr.mxu0 %v1056_v22  ;;  %v854_v16 = vld [vmem:[#allocation5 + $0x3c8] sm:$0xff]  ;;  %v1496_v22 = vunpack.c.h.bf16 %v986_v11 }
 0x375   :  { %1770 = vmatprep.subr.mxu1 %v1312_v23  ;;  %1700 = vmatpush1.msra.mxu0 %v1055_v24  ;;  %v1239_v23 = vunpack.c.l.bf16 %v858_v10  ;;  %v1495_v24 = vunpack.c.l.bf16 %v986_v11  ;;  %v978_v26 = vld [vmem:[#allocation5 + $0x7a8] sm:$0xff]  ;;  %v1232_v27 = vunpack.c.h.bf16 %v854_v16 }
 0x376   :  { %1771 = vmatpush1.msra.mxu1 %v1311_v25  ;;  %1701 = vmatprep.subr.mxu0 %v1048_v29  ;;  %v850_v25 = vld [vmem:[#allocation5 + $0x3a8] sm:$0xff]  ;;  %v1488_v29 = vunpack.c.h.bf16 %v982_v19 }
 0x377   :  { %1772 = vmatprep.subr.mxu1 %v1304_v30  ;;  %1702 = vmatpush1.msra.mxu0 %v1047_v31  ;;  %v1231_v30 = vunpack.c.l.bf16 %v854_v16  ;;  %v1487_v31 = vunpack.c.l.bf16 %v982_v19  ;;  %v974_v33 = vld [vmem:[#allocation5 + $0x788] sm:$0xff]  ;;  %v1224_v34 = vunpack.c.h.bf16 %v850_v25 }
 0x378   :  { %1773 = vmatpush1.msra.mxu1 %v1303_v32  ;;  %1703 = vmatprep.subr.mxu0 %v1040_v35  ;;  %v846_v32 = vld [vmem:[#allocation5 + $0x388] sm:$0xff]  ;;  %v1480_v35 = vunpack.c.h.bf16 %v978_v26 }
 0x379   :  { %1774 = vmatprep.subr.mxu1 %v1296_v36  ;;  %1704 = vmatpush1.msra.mxu0 %v1039_v37  ;;  %v1223_v36 = vunpack.c.l.bf16 %v850_v25  ;;  %v1479_v37 = vunpack.c.l.bf16 %v978_v26  ;;  %v970_v39 = vld [vmem:[#allocation5 + $0x768] sm:$0xff]  ;;  %v1216_v40 = vunpack.c.h.bf16 %v846_v32 }
 0x37a   :  { %1775 = vmatpush1.msra.mxu1 %v1295_v38  ;;  %1705 = vmatprep.subr.mxu0 %v1032_v41  ;;  %v842_v38 = vld [vmem:[#allocation5 + $0x368] sm:$0xff]  ;;  %v1472_v41 = vunpack.c.h.bf16 %v974_v33 }
 0x37b   :  { %1776 = vmatprep.subr.mxu1 %v1288_v42  ;;  %1706 = vmatpush1.msra.mxu0 %v1031_v44  ;;  %v1215_v42 = vunpack.c.l.bf16 %v846_v32  ;;  %v1471_v44 = vunpack.c.l.bf16 %v974_v33  ;;  %v966_v47 = vld [vmem:[#allocation5 + $0x748] sm:$0xff]  ;;  %v1208_v48 = vunpack.c.h.bf16 %v842_v38 }
 0x37c   :  { %1777 = vmatpush1.msra.mxu1 %v1287_v46  ;;  %1707 = vmatprep.subr.mxu0 %v1024_v49  ;;  %v838_v46 = vld [vmem:[#allocation5 + $0x348] sm:$0xff]  ;;  %v1464_v49 = vunpack.c.h.bf16 %v970_v39 }
 0x37d   :  { %1778 = vmatprep.subr.mxu1 %v1280_v50  ;;  %1708 = vmatpush1.msra.mxu0 %v1023_v51  ;;  %v1207_v50 = vunpack.c.l.bf16 %v842_v38  ;;  %v1463_v51 = vunpack.c.l.bf16 %v970_v39  ;;  %v962_v53 = vld [vmem:[#allocation5 + $0x728] sm:$0xff]  ;;  %v1200_v28 = vunpack.c.h.bf16 %v838_v46 }
 0x37e   :  { %1779 = vmatpush1.msra.mxu1 %v1279_v52  ;;  %1709 = vmatprep.subr.mxu0 %v1016_v54  ;;  %v834_v52 = vld [vmem:[#allocation5 + $0x328] sm:$0xff]  ;;  %v1456_v54 = vunpack.c.h.bf16 %v966_v47 }
 0x37f   :  { %1780 = vmatprep.subr.mxu1 %v1272_v55  ;;  %1710 = vmatpush1.msra.mxu0 %v1015_v56  ;;  %v1199_v55 = vunpack.c.l.bf16 %v838_v46  ;;  %v1455_v56 = vunpack.c.l.bf16 %v966_v47  ;;  %v958_v58 = vld [vmem:[#allocation5 + $0x708] sm:$0xff]  ;;  %v1192_v61 = vunpack.c.h.bf16 %v834_v52 }
 0x380   :  { %1781 = vmatpush1.msra.mxu1 %v1271_v57  ;;  %1711 = vmatprep.subr.mxu0 %v1008_v62  ;;  %v830_v57 = vld [vmem:[#allocation5 + $0x308] sm:$0xff]  ;;  %v1448_v62 = vunpack.c.h.bf16 %v962_v53 }
 0x381   :  { %1782 = vmatprep.subr.mxu1 %v1264_v1  ;;  %1712 = vmatpush1.msra.mxu0 %v1007_v2  ;;  %v1191_v1 = vunpack.c.l.bf16 %v834_v52  ;;  %v1447_v2 = vunpack.c.l.bf16 %v962_v53  ;;  %v954_v4 = vld [vmem:[#allocation5 + $0x6e8] sm:$0xff]  ;;  %v1184_v5 = vunpack.c.h.bf16 %v830_v57 }
 0x382   :  { %1783 = vmatpush1.msra.mxu1 %v1263_v3  ;;  %1713 = vmatprep.subr.mxu0 %v1000_v6  ;;  %v826_v3 = vld [vmem:[#allocation5 + $0x2e8] sm:$0xff]  ;;  %v1440_v6 = vunpack.c.h.bf16 %v958_v58 }
 0x383   :  { %1784 = vmatprep.subr.mxu1 %v1256_v7  ;;  %1714 = vmatpush1.msra.mxu0 %v999_v8  ;;  %v1183_v7 = vunpack.c.l.bf16 %v830_v57  ;;  %v1439_v8 = vunpack.c.l.bf16 %v958_v58  ;;  %v950_v10 = vld [vmem:[#allocation5 + $0x6c8] sm:$0xff]  ;;  %v1176_v11 = vunpack.c.h.bf16 %v826_v3  ;;  %v795_v58 = vld [vmem:[#allocation5 + $0x1f0] sm:$0xff] }
 0x384   :  { %1785 = vmatpush1.msra.mxu1 %v1255_v9  ;;  %1715 = vmatprep.subr.mxu0 %v992_v12  ;;  %v822_v9 = vld [vmem:[#allocation5 + $0x2c8] sm:$0xff]  ;;  %v1432_v12 = vunpack.c.h.bf16 %v954_v4 }
 0x385   :  { %1786 = vmatprep.subr.mxu1 %v1248_v13  ;;  %1716 = vmatpush1.msra.mxu0 %v991_v14  ;;  %v1175_v13 = vunpack.c.l.bf16 %v826_v3  ;;  %v1431_v14 = vunpack.c.l.bf16 %v954_v4  ;;  %v946_v16 = vld [vmem:[#allocation5 + $0x6a8] sm:$0xff]  ;;  %v1168_v19 = vunpack.c.h.bf16 %v822_v9  ;;  %v791_v3 = vld [vmem:[#allocation5 + $0x1d0] sm:$0xff] }
 0x386   :  { %1787 = vmatpush1.msra.mxu1 %v1247_v15  ;;  %1717 = vmatprep.subr.mxu0 %v1240_v21  ;;  %v818_v15 = vld [vmem:[#allocation5 + $0x2a8] sm:$0xff]  ;;  %v1424_v21 = vunpack.c.h.bf16 %v950_v10  ;;  %v919_v4 = vld [vmem:[#allocation5 + $0x5d0] sm:$0xff] }
 0x387   :  { %1788 = vmatprep.subr.mxu1 %v1496_v22  ;;  %1718 = vmatpush2.msra.mxu0 %v1239_v23  ;;  %v1167_v22 = vunpack.c.l.bf16 %v822_v9  ;;  %v1423_v23 = vunpack.c.l.bf16 %v950_v10  ;;  %v942_v25 = vld [vmem:[#allocation5 + $0x688] sm:$0xff]  ;;  %v1160_v26 = vunpack.c.h.bf16 %v818_v15  ;;  %v915_v9 = vld [vmem:[#allocation5 + $0x5b0] sm:$0xff]  ;;  %v1106_v10 = vunpack.c.h.bf16 %v791_v3 }
 0x388   :  { %1789 = vmatpush2.msra.mxu1 %v1495_v24  ;;  %1719 = vmatprep.subr.mxu0 %v1232_v27  ;;  %v814_v24 = vld [vmem:[#allocation5 + $0x288] sm:$0xff]  ;;  %v1416_v27 = vunpack.c.h.bf16 %v946_v16 }
 0x389   :  { %1790 = vmatprep.subr.mxu1 %v1488_v29  ;;  %1720 = vmatpush2.msra.mxu0 %v1231_v30  ;;  %v1159_v29 = vunpack.c.l.bf16 %v818_v15  ;;  %v1415_v30 = vunpack.c.l.bf16 %v946_v16  ;;  %v938_v32 = vld [vmem:[#allocation5 + $0x668] sm:$0xff]  ;;  %v1152_v33 = vunpack.c.h.bf16 %v814_v24  ;;  %v911_v15 = vld [vmem:[#allocation5 + $0x590] sm:$0xff] }
 0x38a   :  { %1791 = vmatpush2.msra.mxu1 %v1487_v31  ;;  %1721 = vmatprep.subr.mxu0 %v1224_v34  ;;  %v810_v31 = vld [vmem:[#allocation5 + $0x268] sm:$0xff]  ;;  %v1408_v34 = vunpack.c.h.bf16 %v942_v25 }
 0x38b   :  { %1792 = vmatprep.subr.mxu1 %v1480_v35  ;;  %1722 = vmatpush2.msra.mxu0 %v1223_v36  ;;  %v1151_v35 = vunpack.c.l.bf16 %v814_v24  ;;  %v1407_v36 = vunpack.c.l.bf16 %v942_v25  ;;  %v934_v38 = vld [vmem:[#allocation5 + $0x648] sm:$0xff]  ;;  %v1144_v39 = vunpack.c.h.bf16 %v810_v31  ;;  %v907_v24 = vld [vmem:[#allocation5 + $0x570] sm:$0xff] }
 0x38c   :  { %1793 = vmatpush2.msra.mxu1 %v1479_v37  ;;  %1723 = vmatprep.subr.mxu0 %v1216_v40  ;;  %v806_v37 = vld [vmem:[#allocation5 + $0x248] sm:$0xff]  ;;  %v1400_v40 = vunpack.c.h.bf16 %v938_v32 }
 0x38d   :  { %1794 = vmatprep.subr.mxu1 %v1472_v41  ;;  %1724 = vmatpush2.msra.mxu0 %v1215_v42  ;;  %v1143_v41 = vunpack.c.l.bf16 %v810_v31  ;;  %v1399_v42 = vunpack.c.l.bf16 %v938_v32  ;;  %v930_v46 = vld [vmem:[#allocation5 + $0x628] sm:$0xff]  ;;  %v1136_v47 = vunpack.c.h.bf16 %v806_v37  ;;  %v903_v31 = vld [vmem:[#allocation5 + $0x550] sm:$0xff] }
 0x38e   :  { %1795 = vmatpush2.msra.mxu1 %v1471_v44  ;;  %1725 = vmatprep.subr.mxu0 %v1208_v48  ;;  %v802_v44 = vld [vmem:[#allocation5 + $0x228] sm:$0xff]  ;;  %v1392_v48 = vunpack.c.h.bf16 %v934_v38 }
 0x38f   :  { %1796 = vmatprep.subr.mxu1 %v1464_v49  ;;  %1726 = vmatpush2.msra.mxu0 %v1207_v50  ;;  %v1135_v49 = vunpack.c.l.bf16 %v806_v37  ;;  %v1391_v50 = vunpack.c.l.bf16 %v934_v38  ;;  %v926_v52 = vld [vmem:[#allocation5 + $0x608] sm:$0xff]  ;;  %v1128_v53 = vunpack.c.h.bf16 %v802_v44  ;;  %v899_v37 = vld [vmem:[#allocation5 + $0x530] sm:$0xff] }
 0x390   :  { %1797 = vmatpush2.msra.mxu1 %v1463_v51  ;;  %1727 = vmatprep.subr.mxu0 %v1200_v28  ;;  %v798_v51 = vld [vmem:[#allocation5 + $0x208] sm:$0xff]  ;;  %v1384_v28 = vunpack.c.h.bf16 %v930_v46  ;;  %v1376_v57 = vunpack.c.h.bf16 %v926_v52 }
 0x391   :  { %1798 = vmatprep.subr.mxu1 %v1456_v54  ;;  %1728 = vmatpush2.msra.mxu0 %v1199_v55  ;;  %v1127_v54 = vunpack.c.l.bf16 %v802_v44  ;;  %v1383_v55 = vunpack.c.l.bf16 %v930_v46  ;;  %v895_v44 = vld [vmem:[#allocation5 + $0x510] sm:$0xff] }
 0x392   :  { %1799 = vmatpush2.msra.mxu1 %v1455_v56  ;;  %1729 = vmatprep.subr.mxu0 %v1192_v61  ;;  %v1120_v56 = vunpack.c.h.bf16 %v798_v51  ;;  %v1119_v61 = vunpack.c.l.bf16 %v798_v51  ;;  %v891_v51 = vld [vmem:[#allocation5 + $0x4f0] sm:$0xff] }
 0x393   :  { %1800 = vmatprep.subr.mxu1 %v1448_v62  ;;  %1730 = vmatpush2.msra.mxu0 %v1191_v1  ;;  %v923_v62 = vld [vmem:[#allocation5 + $0x5f0] sm:$0xff]  ;;  %v1375_v1 = vunpack.c.l.bf16 %v926_v52 }
 0x394   :  { %1801 = vmatpush2.msra.mxu1 %v1447_v2  ;;  %1731 = vmatprep.subr.mxu0 %v1184_v5  ;;  %v1114_v2 = vunpack.c.h.bf16 %v795_v58  ;;  %v1370_v5 = vunpack.c.h.bf16 %v923_v62 }
 0x395   :  { %1802 = vmatprep.subr.mxu1 %v1440_v6  ;;  %1732 = vmatpush2.msra.mxu0 %v1183_v7  ;;  %v1113_v6 = vunpack.c.l.bf16 %v795_v58  ;;  %v1369_v7 = vunpack.c.l.bf16 %v923_v62  ;;  %v1306_v58 = vunpack.c.h.bf16 %v891_v51  ;;  %v1305_v62 = vunpack.c.l.bf16 %v891_v51 }
 0x396   :  { %1803 = vmatpush2.msra.mxu1 %v1439_v8  ;;  %1733 = vmatprep.subr.mxu0 %v1176_v11  ;;  %v787_v8 = vld [vmem:[#allocation5 + $0x1b0] sm:$0xff]  ;;  %v1362_v11 = vunpack.c.h.bf16 %v919_v4 }
 0x397   :  { %1804 = vmatprep.subr.mxu1 %v1432_v12  ;;  %1734 = vmatpush2.msra.mxu0 %v1175_v13  ;;  %v1105_v12 = vunpack.c.l.bf16 %v791_v3  ;;  %v1361_v13 = vunpack.c.l.bf16 %v919_v4  ;;  %v1098_v16 = vunpack.c.h.bf16 %v787_v8 }
 0x398   :  { %1805 = vmatpush2.msra.mxu1 %v1431_v14  ;;  %1735 = vmatprep.subr.mxu0 %v1168_v19  ;;  %v783_v14 = vld [vmem:[#allocation5 + $0x190] sm:$0xff]  ;;  %v1354_v19 = vunpack.c.h.bf16 %v915_v9 }
 0x399   :  { %1806 = vmatprep.subr.mxu1 %v1424_v21  ;;  %1736 = vmatpush2.msra.mxu0 %v1167_v22  ;;  %v1097_v21 = vunpack.c.l.bf16 %v787_v8  ;;  %v1353_v22 = vunpack.c.l.bf16 %v915_v9  ;;  %v1090_v25 = vunpack.c.h.bf16 %v783_v14  ;;  %v879_v8 = vld [vmem:[#allocation5 + $0x490] sm:$0xff] }
 0x39a   :  { %1807 = vmatpush2.msra.mxu1 %v1423_v23  ;;  %1737 = vmatprep.subr.mxu0 %v1160_v26  ;;  %v779_v23 = vld [vmem:[#allocation5 + $0x170] sm:$0xff]  ;;  %v1346_v26 = vunpack.c.h.bf16 %v911_v15 }
 0x39b   :  { %1808 = vmatprep.subr.mxu1 %v1416_v27  ;;  %1738 = vmatpush2.msra.mxu0 %v1159_v29  ;;  %v1089_v27 = vunpack.c.l.bf16 %v783_v14  ;;  %v1345_v29 = vunpack.c.l.bf16 %v911_v15  ;;  %v1082_v32 = vunpack.c.h.bf16 %v779_v23  ;;  %v875_v14 = vld [vmem:[#allocation5 + $0x470] sm:$0xff] }
 0x39c   :  { %1809 = vmatpush2.msra.mxu1 %v1415_v30  ;;  %1739 = vmatprep.subr.mxu0 %v1152_v33  ;;  %v775_v30 = vld [vmem:[#allocation5 + $0x150] sm:$0xff]  ;;  %v1338_v33 = vunpack.c.h.bf16 %v907_v24 }
 0x39d   :  { %1810 = vmatprep.subr.mxu1 %v1408_v34  ;;  %1740 = vmatpush2.msra.mxu0 %v1151_v35  ;;  %v1081_v34 = vunpack.c.l.bf16 %v779_v23  ;;  %v1337_v35 = vunpack.c.l.bf16 %v907_v24  ;;  %v1074_v38 = vunpack.c.h.bf16 %v775_v30  ;;  %v871_v23 = vld [vmem:[#allocation5 + $0x450] sm:$0xff] }
 0x39e   :  { %1811 = vmatpush2.msra.mxu1 %v1407_v36  ;;  %1741 = vmatprep.subr.mxu0 %v1144_v39  ;;  %v771_v36 = vld [vmem:[#allocation5 + $0x130] sm:$0xff]  ;;  %v1330_v39 = vunpack.c.h.bf16 %v903_v31 }
 0x39f   :  { %1812 = vmatprep.subr.mxu1 %v1400_v40  ;;  %1742 = vmatpush2.msra.mxu0 %v1143_v41  ;;  %v1073_v40 = vunpack.c.l.bf16 %v775_v30  ;;  %v1329_v41 = vunpack.c.l.bf16 %v903_v31  ;;  %v1066_v46 = vunpack.c.h.bf16 %v771_v36  ;;  %v867_v30 = vld [vmem:[#allocation5 + $0x430] sm:$0xff] }
 0x3a0   :  { %1813 = vmatpush2.msra.mxu1 %v1399_v42  ;;  %1743 = vmatprep.subr.mxu0 %v1136_v47  ;;  %v767_v42 = vld [vmem:[#allocation5 + $0x110] sm:$0xff]  ;;  %v1322_v47 = vunpack.c.h.bf16 %v899_v37 }
 0x3a1   :  { %1814 = vmatprep.subr.mxu1 %v1392_v48  ;;  %1744 = vmatpush2.msra.mxu0 %v1135_v49  ;;  %v1065_v48 = vunpack.c.l.bf16 %v771_v36  ;;  %v1321_v49 = vunpack.c.l.bf16 %v899_v37  ;;  %v1058_v52 = vunpack.c.h.bf16 %v767_v42  ;;  %v863_v36 = vld [vmem:[#allocation5 + $0x410] sm:$0xff] }
 0x3a2   :  { %1815 = vmatpush2.msra.mxu1 %v1391_v50  ;;  %1745 = vmatprep.subr.mxu0 %v1128_v53  ;;  %v763_v50 = vld [vmem:[#allocation5 + $0xf0] sm:$0xff]  ;;  %v1314_v53 = vunpack.c.h.bf16 %v895_v44 }
 0x3a3   :  { %1816 = vmatprep.subr.mxu1 %v1384_v28  ;;  %1746 = vmatpush2.msra.mxu0 %v1127_v54  ;;  %v1057_v28 = vunpack.c.l.bf16 %v767_v42  ;;  %v1313_v54 = vunpack.c.l.bf16 %v895_v44  ;;  %v987_v42 = vld [vmem:[#allocation5 + $0x7f0] sm:$0xff] }
 0x3a4   :  { %1817 = vmatpush2.msra.mxu1 %v1383_v55  ;;  %1747 = vmatprep.subr.mxu0 %v1120_v56  ;;  %v759_v55 = vld [vmem:[#allocation5 + $0xd0] sm:$0xff] }
 0x3a5   :  { %1818 = vmatprep.subr.mxu1 %v1376_v57  ;;  %1748 = vmatpush2.msra.mxu0 %v1119_v61  ;;  %v887_v56 = vld [vmem:[#allocation5 + $0x4d0] sm:$0xff]  ;;  %v1050_v57 = vunpack.c.h.bf16 %v763_v50  ;;  %v1049_v61 = vunpack.c.l.bf16 %v763_v50  ;;  %v1042_v3 = vunpack.c.h.bf16 %v759_v55 }
 0x3a6   :  { %1749 = vmatprep.mubr.f32.mxu0 %v5262_v63  ;;  %1819 = vmatpush2.msra.mxu1 %v1375_v1  ;;  %v755_v1 = vld [vmem:[#allocation5 + $0xb0] sm:$0xff]  ;;  %v1298_v4 = vunpack.c.h.bf16 %v887_v56 }
 0x3a7   :  { %1750 = vmatmul.mubr.f32.vlgmr.msra.gmra.mxu0 %v5258_v59  ;;  %1820 = vmatprep.mubr.f32.mxu1 %v5264_v0  ;;  %v1034_v9 = vunpack.c.h.bf16 %v755_v1  ;;  %v983_v50 = vld [vmem:[#allocation5 + $0x7d0] sm:$0xff] }
 0x3a8   :  { %1827 = vmatprep.subr.mxu0 %v1114_v2  ;;  %1898 = vmatprep.subr.mxu1 %v1370_v5  ;;  %v883_v2 = vld [vmem:[#allocation5 + $0x4b0] sm:$0xff]  ;;  %v1041_v5 = vunpack.c.l.bf16 %v759_v55 }
 0x3a9   :  { %1821 = vmatmul.mubr.f32.vlgmr.msra.gmra.mxu1 %v5260_v60  ;;  %1828 = vmatpush1.msra.mxu0 %v1113_v6  ;;  %v1297_v6 = vunpack.c.l.bf16 %v887_v56  ;;  %v979_v55 = vld [vmem:[#allocation5 + $0x7b0] sm:$0xff] }
 0x3aa   :  { %1899 = vmatpush1.msra.mxu1 %v1369_v7  ;;  %1829 = vmatprep.subr.mxu0 %v1106_v10  ;;  %v751_v7 = vld [vmem:[#allocation5 + $0x90] sm:$0xff]  ;;  %v1290_v10 = vunpack.c.h.bf16 %v883_v2 }
 0x3ab   :  { %1900 = vmatprep.subr.mxu1 %v1362_v11  ;;  %1830 = vmatpush1.msra.mxu0 %v1105_v12  ;;  %v1033_v11 = vunpack.c.l.bf16 %v755_v1  ;;  %v1289_v12 = vunpack.c.l.bf16 %v883_v2  ;;  %v1026_v15 = vunpack.c.h.bf16 %v751_v7  ;;  %v975_v1 = vld [vmem:[#allocation5 + $0x790] sm:$0xff] }
 0x3ac   :  { %1901 = vmatpush1.msra.mxu1 %v1361_v13  ;;  %1831 = vmatprep.subr.mxu0 %v1098_v16  ;;  %v747_v13 = vld [vmem:[#allocation5 + $0x70] sm:$0xff]  ;;  %v1282_v16 = vunpack.c.h.bf16 %v879_v8 }
 0x3ad   :  { %1902 = vmatprep.subr.mxu1 %v1354_v19  ;;  %1832 = vmatpush1.msra.mxu0 %v1097_v21  ;;  %v1025_v19 = vunpack.c.l.bf16 %v751_v7  ;;  %v1281_v21 = vunpack.c.l.bf16 %v879_v8  ;;  %v1018_v24 = vunpack.c.h.bf16 %v747_v13  ;;  %v971_v7 = vld [vmem:[#allocation5 + $0x770] sm:$0xff] }
 0x3ae   :  { %1903 = vmatpush1.msra.mxu1 %v1353_v22  ;;  %1833 = vmatprep.subr.mxu0 %v1090_v25  ;;  %v743_v22 = vld [vmem:[#allocation5 + $0x50] sm:$0xff]  ;;  %v1274_v25 = vunpack.c.h.bf16 %v875_v14 }
 0x3af   :  { %1904 = vmatprep.subr.mxu1 %v1346_v26  ;;  %1834 = vmatpush1.msra.mxu0 %v1089_v27  ;;  %v1017_v26 = vunpack.c.l.bf16 %v747_v13  ;;  %v1273_v27 = vunpack.c.l.bf16 %v875_v14  ;;  %v1010_v31 = vunpack.c.h.bf16 %v743_v22  ;;  %v967_v13 = vld [vmem:[#allocation5 + $0x750] sm:$0xff] }
 0x3b0   :  { %1905 = vmatpush1.msra.mxu1 %v1345_v29  ;;  %1835 = vmatprep.subr.mxu0 %v1082_v32  ;;  %v739_v29 = vld [vmem:[#allocation5 + $0x30] sm:$0xff]  ;;  %v1266_v32 = vunpack.c.h.bf16 %v871_v23 }
 0x3b1   :  { %1906 = vmatprep.subr.mxu1 %v1338_v33  ;;  %1836 = vmatpush1.msra.mxu0 %v1081_v34  ;;  %v1009_v33 = vunpack.c.l.bf16 %v743_v22  ;;  %v1265_v34 = vunpack.c.l.bf16 %v871_v23  ;;  %v1002_v37 = vunpack.c.h.bf16 %v739_v29  ;;  %v963_v22 = vld [vmem:[#allocation5 + $0x730] sm:$0xff] }
 0x3b2   :  { %1907 = vmatpush1.msra.mxu1 %v1337_v35  ;;  %1837 = vmatprep.subr.mxu0 %v1074_v38  ;;  %v735_v35 = vld [vmem:[#allocation5 + $0x10] sm:$0xff]  ;;  %v1258_v38 = vunpack.c.h.bf16 %v867_v30 }
 0x3b3   :  { %1908 = vmatprep.subr.mxu1 %v1330_v39  ;;  %1838 = vmatpush1.msra.mxu0 %v1073_v40  ;;  %v1001_v39 = vunpack.c.l.bf16 %v739_v29  ;;  %v1257_v40 = vunpack.c.l.bf16 %v867_v30  ;;  %v994_v44 = vunpack.c.h.bf16 %v735_v35  ;;  %v959_v29 = vld [vmem:[#allocation5 + $0x710] sm:$0xff] }
 0x3b4   :  { %1909 = vmatpush1.msra.mxu1 %v1329_v41  ;;  %1839 = vmatprep.subr.mxu0 %v1066_v46  ;;  %v859_v41 = vld [vmem:[#allocation5 + $0x3f0] sm:$0xff]  ;;  %v1250_v46 = vunpack.c.h.bf16 %v863_v36 }
 0x3b5   :  { %1910 = vmatprep.subr.mxu1 %v1322_v47  ;;  %1840 = vmatpush1.msra.mxu0 %v1065_v48  ;;  %v993_v47 = vunpack.c.l.bf16 %v735_v35  ;;  %v1249_v48 = vunpack.c.l.bf16 %v863_v36  ;;  %v1242_v51 = vunpack.c.h.bf16 %v859_v41  ;;  %v955_v35 = vld [vmem:[#allocation5 + $0x6f0] sm:$0xff] }
 0x3b6   :  { %1911 = vmatpush1.msra.mxu1 %v1321_v49  ;;  %1841 = vmatprep.subr.mxu0 %v1058_v52  ;;  %v855_v49 = vld [vmem:[#allocation5 + $0x3d0] sm:$0xff]  ;;  %v1498_v52 = vunpack.c.h.bf16 %v987_v42 }
 0x3b7   :  { %1912 = vmatprep.subr.mxu1 %v1314_v53  ;;  %1842 = vmatpush1.msra.mxu0 %v1057_v28  ;;  %v1241_v53 = vunpack.c.l.bf16 %v859_v41  ;;  %v1497_v28 = vunpack.c.l.bf16 %v987_v42  ;;  %v1234_v56 = vunpack.c.h.bf16 %v855_v49  ;;  %v951_v41 = vld [vmem:[#allocation5 + $0x6d0] sm:$0xff] }
 0x3b8   :  { %1913 = vmatpush1.msra.mxu1 %v1313_v54  ;;  %1843 = vmatprep.subr.mxu0 %v1050_v57  ;;  %v851_v54 = vld [vmem:[#allocation5 + $0x3b0] sm:$0xff]  ;;  %v1490_v57 = vunpack.c.h.bf16 %v983_v50 }
 0x3b9   :  { %1914 = vmatprep.subr.mxu1 %v1306_v58  ;;  %1844 = vmatpush1.msra.mxu0 %v1049_v61  ;;  %v1233_v58 = vunpack.c.l.bf16 %v855_v49  ;;  %v1489_v61 = vunpack.c.l.bf16 %v983_v50  ;;  %v1226_v2 = vunpack.c.h.bf16 %v851_v54  ;;  %v947_v49 = vld [vmem:[#allocation5 + $0x6b0] sm:$0xff] }
 0x3ba   :  { %1915 = vmatpush1.msra.mxu1 %v1305_v62  ;;  %1845 = vmatprep.subr.mxu0 %v1042_v3  ;;  %v847_v62 = vld [vmem:[#allocation5 + $0x390] sm:$0xff]  ;;  %v1482_v3 = vunpack.c.h.bf16 %v979_v55 }
 0x3bb   :  { %1916 = vmatprep.subr.mxu1 %v1298_v4  ;;  %1846 = vmatpush1.msra.mxu0 %v1041_v5  ;;  %v1225_v4 = vunpack.c.l.bf16 %v851_v54  ;;  %v1481_v5 = vunpack.c.l.bf16 %v979_v55  ;;  %v1218_v8 = vunpack.c.h.bf16 %v847_v62  ;;  %v943_v54 = vld [vmem:[#allocation5 + $0x690] sm:$0xff] }
 0x3bc   :  { %1917 = vmatpush1.msra.mxu1 %v1297_v6  ;;  %1847 = vmatprep.subr.mxu0 %v1034_v9  ;;  %v843_v6 = vld [vmem:[#allocation5 + $0x370] sm:$0xff]  ;;  %v1474_v9 = vunpack.c.h.bf16 %v975_v1 }
 0x3bd   :  { %1918 = vmatprep.subr.mxu1 %v1290_v10  ;;  %1848 = vmatpush1.msra.mxu0 %v1033_v11  ;;  %v1217_v10 = vunpack.c.l.bf16 %v847_v62  ;;  %v1473_v11 = vunpack.c.l.bf16 %v975_v1  ;;  %v1210_v14 = vunpack.c.h.bf16 %v843_v6  ;;  %v939_v62 = vld [vmem:[#allocation5 + $0x670] sm:$0xff] }
 0x3be   :  { %1919 = vmatpush1.msra.mxu1 %v1289_v12  ;;  %1849 = vmatprep.subr.mxu0 %v1026_v15  ;;  %v839_v12 = vld [vmem:[#allocation5 + $0x350] sm:$0xff]  ;;  %v1466_v15 = vunpack.c.h.bf16 %v971_v7 }
 0x3bf   :  { %1920 = vmatprep.subr.mxu1 %v1282_v16  ;;  %1850 = vmatpush1.msra.mxu0 %v1025_v19  ;;  %v1209_v16 = vunpack.c.l.bf16 %v843_v6  ;;  %v1465_v19 = vunpack.c.l.bf16 %v971_v7  ;;  %v1202_v23 = vunpack.c.h.bf16 %v839_v12  ;;  %v935_v6 = vld [vmem:[#allocation5 + $0x650] sm:$0xff] }
 0x3c0   :  { %1921 = vmatpush1.msra.mxu1 %v1281_v21  ;;  %1851 = vmatprep.subr.mxu0 %v1018_v24  ;;  %v835_v21 = vld [vmem:[#allocation5 + $0x330] sm:$0xff]  ;;  %v1458_v24 = vunpack.c.h.bf16 %v967_v13 }
 0x3c1   :  { %1922 = vmatprep.subr.mxu1 %v1274_v25  ;;  %1852 = vmatpush1.msra.mxu0 %v1017_v26  ;;  %v1201_v25 = vunpack.c.l.bf16 %v839_v12  ;;  %v1457_v26 = vunpack.c.l.bf16 %v967_v13  ;;  %v1194_v30 = vunpack.c.h.bf16 %v835_v21  ;;  %v931_v12 = vld [vmem:[#allocation5 + $0x630] sm:$0xff] }
 0x3c2   :  { %1923 = vmatpush1.msra.mxu1 %v1273_v27  ;;  %1853 = vmatprep.subr.mxu0 %v1010_v31  ;;  %v831_v27 = vld [vmem:[#allocation5 + $0x310] sm:$0xff]  ;;  %v1450_v31 = vunpack.c.h.bf16 %v963_v22 }
 0x3c3   :  { %1924 = vmatprep.subr.mxu1 %v1266_v32  ;;  %1854 = vmatpush1.msra.mxu0 %v1009_v33  ;;  %v1193_v32 = vunpack.c.l.bf16 %v835_v21  ;;  %v1449_v33 = vunpack.c.l.bf16 %v963_v22  ;;  %v1186_v36 = vunpack.c.h.bf16 %v831_v27  ;;  %v927_v21 = vld [vmem:[#allocation5 + $0x610] sm:$0xff] }
 0x3c4   :  { %1925 = vmatpush1.msra.mxu1 %v1265_v34  ;;  %1855 = vmatprep.subr.mxu0 %v1002_v37  ;;  %v827_v34 = vld [vmem:[#allocation5 + $0x2f0] sm:$0xff]  ;;  %v1442_v37 = vunpack.c.h.bf16 %v959_v29 }
 0x3c5   :  { %1926 = vmatprep.subr.mxu1 %v1258_v38  ;;  %1856 = vmatpush1.msra.mxu0 %v1001_v39  ;;  %v1185_v38 = vunpack.c.l.bf16 %v831_v27  ;;  %v1441_v39 = vunpack.c.l.bf16 %v959_v29  ;;  %v1178_v42 = vunpack.c.h.bf16 %v827_v34  ;;  %v1378_v27 = vunpack.c.h.bf16 %v927_v21  ;;  %v796_v29 = vld [vmem:[#allocation5 + $0x1f8] sm:$0xff] }
 0x3c6   :  { %1927 = vmatpush1.msra.mxu1 %v1257_v40  ;;  %1857 = vmatprep.subr.mxu0 %v994_v44  ;;  %v823_v40 = vld [vmem:[#allocation5 + $0x2d0] sm:$0xff]  ;;  %v1434_v44 = vunpack.c.h.bf16 %v955_v35 }
 0x3c7   :  { %1928 = vmatprep.subr.mxu1 %v1250_v46  ;;  %1858 = vmatpush1.msra.mxu0 %v993_v47  ;;  %v1177_v46 = vunpack.c.l.bf16 %v827_v34  ;;  %v1433_v47 = vunpack.c.l.bf16 %v955_v35  ;;  %v1170_v50 = vunpack.c.h.bf16 %v823_v40  ;;  %v792_v34 = vld [vmem:[#allocation5 + $0x1d8] sm:$0xff] }
 0x3c8   :  { %1929 = vmatpush1.msra.mxu1 %v1249_v48  ;;  %1859 = vmatprep.subr.mxu0 %v1242_v51  ;;  %v819_v48 = vld [vmem:[#allocation5 + $0x2b0] sm:$0xff]  ;;  %v1426_v51 = vunpack.c.h.bf16 %v951_v41  ;;  %v920_v35 = vld [vmem:[#allocation5 + $0x5d8] sm:$0xff] }
 0x3c9   :  { %1930 = vmatprep.subr.mxu1 %v1498_v52  ;;  %1860 = vmatpush2.msra.mxu0 %v1241_v53  ;;  %v1169_v52 = vunpack.c.l.bf16 %v823_v40  ;;  %v1425_v53 = vunpack.c.l.bf16 %v951_v41  ;;  %v1162_v55 = vunpack.c.h.bf16 %v819_v48  ;;  %v916_v40 = vld [vmem:[#allocation5 + $0x5b8] sm:$0xff]  ;;  %v1108_v41 = vunpack.c.h.bf16 %v792_v34 }
 0x3ca   :  { %1931 = vmatpush2.msra.mxu1 %v1497_v28  ;;  %1861 = vmatprep.subr.mxu0 %v1234_v56  ;;  %v815_v28 = vld [vmem:[#allocation5 + $0x290] sm:$0xff]  ;;  %v1418_v56 = vunpack.c.h.bf16 %v947_v49 }
 0x3cb   :  { %1932 = vmatprep.subr.mxu1 %v1490_v57  ;;  %1862 = vmatpush2.msra.mxu0 %v1233_v58  ;;  %v1161_v57 = vunpack.c.l.bf16 %v819_v48  ;;  %v1417_v58 = vunpack.c.l.bf16 %v947_v49  ;;  %v1154_v1 = vunpack.c.h.bf16 %v815_v28  ;;  %v912_v48 = vld [vmem:[#allocation5 + $0x598] sm:$0xff] }
 0x3cc   :  { %1933 = vmatpush2.msra.mxu1 %v1489_v61  ;;  %1863 = vmatprep.subr.mxu0 %v1226_v2  ;;  %v811_v61 = vld [vmem:[#allocation5 + $0x270] sm:$0xff]  ;;  %v1410_v2 = vunpack.c.h.bf16 %v943_v54 }
 0x3cd   :  { %1934 = vmatprep.subr.mxu1 %v1482_v3  ;;  %1864 = vmatpush2.msra.mxu0 %v1225_v4  ;;  %v1153_v3 = vunpack.c.l.bf16 %v815_v28  ;;  %v1409_v4 = vunpack.c.l.bf16 %v943_v54  ;;  %v1146_v7 = vunpack.c.h.bf16 %v811_v61  ;;  %v908_v28 = vld [vmem:[#allocation5 + $0x578] sm:$0xff] }
 0x3ce   :  { %1935 = vmatpush2.msra.mxu1 %v1481_v5  ;;  %1865 = vmatprep.subr.mxu0 %v1218_v8  ;;  %v807_v5 = vld [vmem:[#allocation5 + $0x250] sm:$0xff]  ;;  %v1402_v8 = vunpack.c.h.bf16 %v939_v62 }
 0x3cf   :  { %1936 = vmatprep.subr.mxu1 %v1474_v9  ;;  %1866 = vmatpush2.msra.mxu0 %v1217_v10  ;;  %v1145_v9 = vunpack.c.l.bf16 %v811_v61  ;;  %v1401_v10 = vunpack.c.l.bf16 %v939_v62  ;;  %v1138_v13 = vunpack.c.h.bf16 %v807_v5  ;;  %v904_v61 = vld [vmem:[#allocation5 + $0x558] sm:$0xff] }
 0x3d0   :  { %1937 = vmatpush2.msra.mxu1 %v1473_v11  ;;  %1867 = vmatprep.subr.mxu0 %v1210_v14  ;;  %v803_v11 = vld [vmem:[#allocation5 + $0x230] sm:$0xff]  ;;  %v1394_v14 = vunpack.c.h.bf16 %v935_v6 }
 0x3d1   :  { %1938 = vmatprep.subr.mxu1 %v1466_v15  ;;  %1868 = vmatpush2.msra.mxu0 %v1209_v16  ;;  %v1137_v15 = vunpack.c.l.bf16 %v807_v5  ;;  %v1393_v16 = vunpack.c.l.bf16 %v935_v6  ;;  %v1130_v22 = vunpack.c.h.bf16 %v803_v11  ;;  %v900_v5 = vld [vmem:[#allocation5 + $0x538] sm:$0xff] }
 0x3d2   :  { %1939 = vmatpush2.msra.mxu1 %v1465_v19  ;;  %1869 = vmatprep.subr.mxu0 %v1202_v23  ;;  %v799_v19 = vld [vmem:[#allocation5 + $0x210] sm:$0xff]  ;;  %v1386_v23 = vunpack.c.h.bf16 %v931_v12 }
 0x3d3   :  { %1940 = vmatprep.subr.mxu1 %v1458_v24  ;;  %1870 = vmatpush2.msra.mxu0 %v1201_v25  ;;  %v1129_v24 = vunpack.c.l.bf16 %v803_v11  ;;  %v1385_v25 = vunpack.c.l.bf16 %v931_v12  ;;  %v896_v11 = vld [vmem:[#allocation5 + $0x518] sm:$0xff] }
 0x3d4   :  { %1941 = vmatpush2.msra.mxu1 %v1457_v26  ;;  %1871 = vmatprep.subr.mxu0 %v1194_v30  ;;  %v1122_v26 = vunpack.c.h.bf16 %v799_v19  ;;  %v1121_v30 = vunpack.c.l.bf16 %v799_v19  ;;  %v892_v19 = vld [vmem:[#allocation5 + $0x4f8] sm:$0xff] }
 0x3d5   :  { %1942 = vmatprep.subr.mxu1 %v1450_v31  ;;  %1872 = vmatpush2.msra.mxu0 %v1193_v32  ;;  %v924_v31 = vld [vmem:[#allocation5 + $0x5f8] sm:$0xff]  ;;  %v1377_v32 = vunpack.c.l.bf16 %v927_v21 }
 0x3d6   :  { %1943 = vmatpush2.msra.mxu1 %v1449_v33  ;;  %1873 = vmatprep.subr.mxu0 %v1186_v36  ;;  %v1116_v33 = vunpack.c.h.bf16 %v796_v29  ;;  %v1372_v36 = vunpack.c.h.bf16 %v924_v31 }
 0x3d7   :  { %1944 = vmatprep.subr.mxu1 %v1442_v37  ;;  %1874 = vmatpush2.msra.mxu0 %v1185_v38  ;;  %v1115_v37 = vunpack.c.l.bf16 %v796_v29  ;;  %v1371_v38 = vunpack.c.l.bf16 %v924_v31  ;;  %v1308_v29 = vunpack.c.h.bf16 %v892_v19  ;;  %v1307_v31 = vunpack.c.l.bf16 %v892_v19 }
 0x3d8   :  { %1945 = vmatpush2.msra.mxu1 %v1441_v39  ;;  %1875 = vmatprep.subr.mxu0 %v1178_v42  ;;  %v788_v39 = vld [vmem:[#allocation5 + $0x1b8] sm:$0xff]  ;;  %v1364_v42 = vunpack.c.h.bf16 %v920_v35 }
 0x3d9   :  { %1946 = vmatprep.subr.mxu1 %v1434_v44  ;;  %1876 = vmatpush2.msra.mxu0 %v1177_v46  ;;  %v1107_v44 = vunpack.c.l.bf16 %v792_v34  ;;  %v1363_v46 = vunpack.c.l.bf16 %v920_v35  ;;  %v1100_v49 = vunpack.c.h.bf16 %v788_v39 }
 0x3da   :  { %1947 = vmatpush2.msra.mxu1 %v1433_v47  ;;  %1877 = vmatprep.subr.mxu0 %v1170_v50  ;;  %v784_v47 = vld [vmem:[#allocation5 + $0x198] sm:$0xff]  ;;  %v1356_v50 = vunpack.c.h.bf16 %v916_v40 }
 0x3db   :  { %1948 = vmatprep.subr.mxu1 %v1426_v51  ;;  %1878 = vmatpush2.msra.mxu0 %v1169_v52  ;;  %v1099_v51 = vunpack.c.l.bf16 %v788_v39  ;;  %v1355_v52 = vunpack.c.l.bf16 %v916_v40  ;;  %v1092_v54 = vunpack.c.h.bf16 %v784_v47  ;;  %v880_v39 = vld [vmem:[#allocation5 + $0x498] sm:$0xff] }
 0x3dc   :  { %1949 = vmatpush2.msra.mxu1 %v1425_v53  ;;  %1879 = vmatprep.subr.mxu0 %v1162_v55  ;;  %v780_v53 = vld [vmem:[#allocation5 + $0x178] sm:$0xff]  ;;  %v1348_v55 = vunpack.c.h.bf16 %v912_v48 }
 0x3dd   :  { %1950 = vmatprep.subr.mxu1 %v1418_v56  ;;  %1880 = vmatpush2.msra.mxu0 %v1161_v57  ;;  %v1091_v56 = vunpack.c.l.bf16 %v784_v47  ;;  %v1347_v57 = vunpack.c.l.bf16 %v912_v48  ;;  %v1084_v62 = vunpack.c.h.bf16 %v780_v53  ;;  %v876_v47 = vld [vmem:[#allocation5 + $0x478] sm:$0xff] }
 0x3de   :  { %1951 = vmatpush2.msra.mxu1 %v1417_v58  ;;  %1881 = vmatprep.subr.mxu0 %v1154_v1  ;;  %v776_v58 = vld [vmem:[#allocation5 + $0x158] sm:$0xff]  ;;  %v1340_v1 = vunpack.c.h.bf16 %v908_v28 }
 0x3df   :  { %1952 = vmatprep.subr.mxu1 %v1410_v2  ;;  %1882 = vmatpush2.msra.mxu0 %v1153_v3  ;;  %v1083_v2 = vunpack.c.l.bf16 %v780_v53  ;;  %v1339_v3 = vunpack.c.l.bf16 %v908_v28  ;;  %v1076_v6 = vunpack.c.h.bf16 %v776_v58  ;;  %v872_v53 = vld [vmem:[#allocation5 + $0x458] sm:$0xff] }
 0x3e0   :  { %1953 = vmatpush2.msra.mxu1 %v1409_v4  ;;  %1883 = vmatprep.subr.mxu0 %v1146_v7  ;;  %v772_v4 = vld [vmem:[#allocation5 + $0x138] sm:$0xff]  ;;  %v1332_v7 = vunpack.c.h.bf16 %v904_v61 }
 0x3e1   :  { %1954 = vmatprep.subr.mxu1 %v1402_v8  ;;  %1884 = vmatpush2.msra.mxu0 %v1145_v9  ;;  %v1075_v8 = vunpack.c.l.bf16 %v776_v58  ;;  %v1331_v9 = vunpack.c.l.bf16 %v904_v61  ;;  %v1068_v12 = vunpack.c.h.bf16 %v772_v4  ;;  %v868_v58 = vld [vmem:[#allocation5 + $0x438] sm:$0xff] }
 0x3e2   :  { %1955 = vmatpush2.msra.mxu1 %v1401_v10  ;;  %1885 = vmatprep.subr.mxu0 %v1138_v13  ;;  %v768_v10 = vld [vmem:[#allocation5 + $0x118] sm:$0xff]  ;;  %v1324_v13 = vunpack.c.h.bf16 %v900_v5 }
 0x3e3   :  { %1956 = vmatprep.subr.mxu1 %v1394_v14  ;;  %1886 = vmatpush2.msra.mxu0 %v1137_v15  ;;  %v1067_v14 = vunpack.c.l.bf16 %v772_v4  ;;  %v1323_v15 = vunpack.c.l.bf16 %v900_v5  ;;  %v1060_v21 = vunpack.c.h.bf16 %v768_v10  ;;  %v864_v4 = vld [vmem:[#allocation5 + $0x418] sm:$0xff] }
 0x3e4   :  { %1957 = vmatpush2.msra.mxu1 %v1393_v16  ;;  %1887 = vmatprep.subr.mxu0 %v1130_v22  ;;  %v764_v16 = vld [vmem:[#allocation5 + $0xf8] sm:$0xff]  ;;  %v1316_v22 = vunpack.c.h.bf16 %v896_v11 }
 0x3e5   :  { %1958 = vmatprep.subr.mxu1 %v1386_v23  ;;  %1888 = vmatpush2.msra.mxu0 %v1129_v24  ;;  %v1059_v23 = vunpack.c.l.bf16 %v768_v10  ;;  %v1315_v24 = vunpack.c.l.bf16 %v896_v11  ;;  %v988_v10 = vld [vmem:[#allocation5 + $0x7f8] sm:$0xff] }
 0x3e6   :  { %1959 = vmatpush2.msra.mxu1 %v1385_v25  ;;  %1889 = vmatprep.subr.mxu0 %v1122_v26  ;;  %v760_v25 = vld [vmem:[#allocation5 + $0xd8] sm:$0xff] }
 0x3e7   :  { %1960 = vmatprep.subr.mxu1 %v1378_v27  ;;  %1890 = vmatpush2.msra.mxu0 %v1121_v30  ;;  %v888_v26 = vld [vmem:[#allocation5 + $0x4d8] sm:$0xff]  ;;  %v1052_v27 = vunpack.c.h.bf16 %v764_v16  ;;  %v1051_v30 = vunpack.c.l.bf16 %v764_v16  ;;  %v1044_v34 = vunpack.c.h.bf16 %v760_v25 }
 0x3e8   :  { %1891 = vmatprep.mubr.f32.mxu0 %v5262_v63  ;;  %1961 = vmatpush2.msra.mxu1 %v1377_v32  ;;  %v756_v32 = vld [vmem:[#allocation5 + $0xb8] sm:$0xff]  ;;  %v1300_v35 = vunpack.c.h.bf16 %v888_v26 }
 0x3e9   :  { %1892 = vmatmul.mubr.f32.vlgmr.msra.gmra.mxu0 %v5258_v59  ;;  %1962 = vmatprep.mubr.f32.mxu1 %v5264_v0  ;;  %v1036_v40 = vunpack.c.h.bf16 %v756_v32  ;;  %v984_v16 = vld [vmem:[#allocation5 + $0x7d8] sm:$0xff] }
 0x3ea   :  { %1969 = vmatprep.subr.mxu0 %v1116_v33  ;;  %2040 = vmatprep.subr.mxu1 %v1372_v36  ;;  %v884_v33 = vld [vmem:[#allocation5 + $0x4b8] sm:$0xff]  ;;  %v1043_v36 = vunpack.c.l.bf16 %v760_v25 }
 0x3eb   :  { %1963 = vmatmul.mubr.f32.vlgmr.msra.gmra.mxu1 %v5260_v60  ;;  %1970 = vmatpush1.msra.mxu0 %v1115_v37  ;;  %v1299_v37 = vunpack.c.l.bf16 %v888_v26  ;;  %v980_v25 = vld [vmem:[#allocation5 + $0x7b8] sm:$0xff] }
 0x3ec   :  { %2041 = vmatpush1.msra.mxu1 %v1371_v38  ;;  %1971 = vmatprep.subr.mxu0 %v1108_v41  ;;  %v752_v38 = vld [vmem:[#allocation5 + $0x98] sm:$0xff]  ;;  %v1292_v41 = vunpack.c.h.bf16 %v884_v33 }
 0x3ed   :  { %2042 = vmatprep.subr.mxu1 %v1364_v42  ;;  %1972 = vmatpush1.msra.mxu0 %v1107_v44  ;;  %v1035_v42 = vunpack.c.l.bf16 %v756_v32  ;;  %v1291_v44 = vunpack.c.l.bf16 %v884_v33  ;;  %v1028_v48 = vunpack.c.h.bf16 %v752_v38  ;;  %v976_v32 = vld [vmem:[#allocation5 + $0x798] sm:$0xff] }
 0x3ee   :  { %2043 = vmatpush1.msra.mxu1 %v1363_v46  ;;  %1973 = vmatprep.subr.mxu0 %v1100_v49  ;;  %v748_v46 = vld [vmem:[#allocation5 + $0x78] sm:$0xff]  ;;  %v1284_v49 = vunpack.c.h.bf16 %v880_v39 }
 0x3ef   :  { %2044 = vmatprep.subr.mxu1 %v1356_v50  ;;  %1974 = vmatpush1.msra.mxu0 %v1099_v51  ;;  %v1027_v50 = vunpack.c.l.bf16 %v752_v38  ;;  %v1283_v51 = vunpack.c.l.bf16 %v880_v39  ;;  %v1020_v28 = vunpack.c.h.bf16 %v748_v46  ;;  %v972_v38 = vld [vmem:[#allocation5 + $0x778] sm:$0xff] }
 0x3f0   :  { %2045 = vmatpush1.msra.mxu1 %v1355_v52  ;;  %1975 = vmatprep.subr.mxu0 %v1092_v54  ;;  %v744_v52 = vld [vmem:[#allocation5 + $0x58] sm:$0xff]  ;;  %v1276_v54 = vunpack.c.h.bf16 %v876_v47 }
 0x3f1   :  { %2046 = vmatprep.subr.mxu1 %v1348_v55  ;;  %1976 = vmatpush1.msra.mxu0 %v1091_v56  ;;  %v1019_v55 = vunpack.c.l.bf16 %v748_v46  ;;  %v1275_v56 = vunpack.c.l.bf16 %v876_v47  ;;  %v1012_v61 = vunpack.c.h.bf16 %v744_v52  ;;  %v968_v46 = vld [vmem:[#allocation5 + $0x758] sm:$0xff] }
 0x3f2   :  { %2047 = vmatpush1.msra.mxu1 %v1347_v57  ;;  %1977 = vmatprep.subr.mxu0 %v1084_v62  ;;  %v740_v57 = vld [vmem:[#allocation5 + $0x38] sm:$0xff]  ;;  %v1268_v62 = vunpack.c.h.bf16 %v872_v53 }
 0x3f3   :  { %2048 = vmatprep.subr.mxu1 %v1340_v1  ;;  %1978 = vmatpush1.msra.mxu0 %v1083_v2  ;;  %v1011_v1 = vunpack.c.l.bf16 %v744_v52  ;;  %v1267_v2 = vunpack.c.l.bf16 %v872_v53  ;;  %v1004_v5 = vunpack.c.h.bf16 %v740_v57  ;;  %v964_v52 = vld [vmem:[#allocation5 + $0x738] sm:$0xff] }
 0x3f4   :  { %2049 = vmatpush1.msra.mxu1 %v1339_v3  ;;  %1979 = vmatprep.subr.mxu0 %v1076_v6  ;;  %v736_v3 = vld [vmem:[#allocation5 + $0x18] sm:$0xff]  ;;  %v1260_v6 = vunpack.c.h.bf16 %v868_v58 }
 0x3f5   :  { %2050 = vmatprep.subr.mxu1 %v1332_v7  ;;  %1980 = vmatpush1.msra.mxu0 %v1075_v8  ;;  %v1003_v7 = vunpack.c.l.bf16 %v740_v57  ;;  %v1259_v8 = vunpack.c.l.bf16 %v868_v58  ;;  %v996_v11 = vunpack.c.h.bf16 %v736_v3  ;;  %v960_v57 = vld [vmem:[#allocation5 + $0x718] sm:$0xff] }
 0x3f6   :  { %2051 = vmatpush1.msra.mxu1 %v1331_v9  ;;  %1981 = vmatprep.subr.mxu0 %v1068_v12  ;;  %v860_v9 = vld [vmem:[#allocation5 + $0x3f8] sm:$0xff]  ;;  %v1252_v12 = vunpack.c.h.bf16 %v864_v4 }
 0x3f7   :  { %2052 = vmatprep.subr.mxu1 %v1324_v13  ;;  %1982 = vmatpush1.msra.mxu0 %v1067_v14  ;;  %v995_v13 = vunpack.c.l.bf16 %v736_v3  ;;  %v1251_v14 = vunpack.c.l.bf16 %v864_v4  ;;  %v1244_v19 = vunpack.c.h.bf16 %v860_v9  ;;  %v956_v3 = vld [vmem:[#allocation5 + $0x6f8] sm:$0xff] }
 0x3f8   :  { %2053 = vmatpush1.msra.mxu1 %v1323_v15  ;;  %1983 = vmatprep.subr.mxu0 %v1060_v21  ;;  %v856_v15 = vld [vmem:[#allocation5 + $0x3d8] sm:$0xff]  ;;  %v1500_v21 = vunpack.c.h.bf16 %v988_v10 }
 0x3f9   :  { %2054 = vmatprep.subr.mxu1 %v1316_v22  ;;  %1984 = vmatpush1.msra.mxu0 %v1059_v23  ;;  %v1243_v22 = vunpack.c.l.bf16 %v860_v9  ;;  %v1499_v23 = vunpack.c.l.bf16 %v988_v10  ;;  %v1236_v26 = vunpack.c.h.bf16 %v856_v15  ;;  %v952_v9 = vld [vmem:[#allocation5 + $0x6d8] sm:$0xff] }
 0x3fa   :  { %2055 = vmatpush1.msra.mxu1 %v1315_v24  ;;  %1985 = vmatprep.subr.mxu0 %v1052_v27  ;;  %v852_v24 = vld [vmem:[#allocation5 + $0x3b8] sm:$0xff]  ;;  %v1492_v27 = vunpack.c.h.bf16 %v984_v16 }
 0x3fb   :  { %2056 = vmatprep.subr.mxu1 %v1308_v29  ;;  %1986 = vmatpush1.msra.mxu0 %v1051_v30  ;;  %v1235_v29 = vunpack.c.l.bf16 %v856_v15  ;;  %v1491_v30 = vunpack.c.l.bf16 %v984_v16  ;;  %v1228_v33 = vunpack.c.h.bf16 %v852_v24  ;;  %v948_v15 = vld [vmem:[#allocation5 + $0x6b8] sm:$0xff] }
 0x3fc   :  { %2057 = vmatpush1.msra.mxu1 %v1307_v31  ;;  %1987 = vmatprep.subr.mxu0 %v1044_v34  ;;  %v848_v31 = vld [vmem:[#allocation5 + $0x398] sm:$0xff]  ;;  %v1484_v34 = vunpack.c.h.bf16 %v980_v25 }
 0x3fd   :  { %2058 = vmatprep.subr.mxu1 %v1300_v35  ;;  %1988 = vmatpush1.msra.mxu0 %v1043_v36  ;;  %v1227_v35 = vunpack.c.l.bf16 %v852_v24  ;;  %v1483_v36 = vunpack.c.l.bf16 %v980_v25  ;;  %v1220_v39 = vunpack.c.h.bf16 %v848_v31  ;;  %v944_v24 = vld [vmem:[#allocation5 + $0x698] sm:$0xff] }
 0x3fe   :  { %2059 = vmatpush1.msra.mxu1 %v1299_v37  ;;  %1989 = vmatprep.subr.mxu0 %v1036_v40  ;;  %v844_v37 = vld [vmem:[#allocation5 + $0x378] sm:$0xff]  ;;  %v1476_v40 = vunpack.c.h.bf16 %v976_v32 }
 0x3ff   :  { %2060 = vmatprep.subr.mxu1 %v1292_v41  ;;  %1990 = vmatpush1.msra.mxu0 %v1035_v42  ;;  %v1219_v41 = vunpack.c.l.bf16 %v848_v31  ;;  %v1475_v42 = vunpack.c.l.bf16 %v976_v32  ;;  %v1212_v47 = vunpack.c.h.bf16 %v844_v37  ;;  %v940_v31 = vld [vmem:[#allocation5 + $0x678] sm:$0xff] }
 0x400   :  { %2061 = vmatpush1.msra.mxu1 %v1291_v44  ;;  %1991 = vmatprep.subr.mxu0 %v1028_v48  ;;  %v840_v44 = vld [vmem:[#allocation5 + $0x358] sm:$0xff]  ;;  %v1468_v48 = vunpack.c.h.bf16 %v972_v38 }
 0x401   :  { %2062 = vmatprep.subr.mxu1 %v1284_v49  ;;  %1992 = vmatpush1.msra.mxu0 %v1027_v50  ;;  %v1211_v49 = vunpack.c.l.bf16 %v844_v37  ;;  %v1467_v50 = vunpack.c.l.bf16 %v972_v38  ;;  %v1204_v53 = vunpack.c.h.bf16 %v840_v44  ;;  %v936_v37 = vld [vmem:[#allocation5 + $0x658] sm:$0xff] }
 0x402   :  { %2063 = vmatpush1.msra.mxu1 %v1283_v51  ;;  %1993 = vmatprep.subr.mxu0 %v1020_v28  ;;  %v836_v51 = vld [vmem:[#allocation5 + $0x338] sm:$0xff]  ;;  %v1460_v28 = vunpack.c.h.bf16 %v968_v46 }
 0x403   :  { %2064 = vmatprep.subr.mxu1 %v1276_v54  ;;  %1994 = vmatpush1.msra.mxu0 %v1019_v55  ;;  %v1203_v54 = vunpack.c.l.bf16 %v840_v44  ;;  %v1459_v55 = vunpack.c.l.bf16 %v968_v46  ;;  %v1196_v58 = vunpack.c.h.bf16 %v836_v51  ;;  %v932_v44 = vld [vmem:[#allocation5 + $0x638] sm:$0xff]  ;;  %v5278_v46 = vld [vmem:[#allocation8 + $0x7] sm:$0xff] }
 0x404   :  { %2065 = vmatpush1.msra.mxu1 %v1275_v56  ;;  %1995 = vmatprep.subr.mxu0 %v1012_v61  ;;  %v832_v56 = vld [vmem:[#allocation5 + $0x318] sm:$0xff]  ;;  %v1452_v61 = vunpack.c.h.bf16 %v964_v52 }
 0x405   :  { %2066 = vmatprep.subr.mxu1 %v1268_v62  ;;  %1996 = vmatpush1.msra.mxu0 %v1011_v1  ;;  %v1195_v62 = vunpack.c.l.bf16 %v836_v51  ;;  %v1451_v1 = vunpack.c.l.bf16 %v964_v52  ;;  %v1188_v4 = vunpack.c.h.bf16 %v832_v56  ;;  %v800_v51 = vld [vmem:[#allocation5 + $0x218] sm:$0xff] }
 0x406   :  { %2067 = vmatpush1.msra.mxu1 %v1267_v2  ;;  %1997 = vmatprep.subr.mxu0 %v1004_v5  ;;  %v828_v2 = vld [vmem:[#allocation5 + $0x2f8] sm:$0xff]  ;;  %v1444_v5 = vunpack.c.h.bf16 %v960_v57 }
 0x407   :  { %2068 = vmatprep.subr.mxu1 %v1260_v6  ;;  %1998 = vmatpush1.msra.mxu0 %v1003_v7  ;;  %v1187_v6 = vunpack.c.l.bf16 %v832_v56  ;;  %v1443_v7 = vunpack.c.l.bf16 %v960_v57  ;;  %v1180_v10 = vunpack.c.h.bf16 %v828_v2  ;;  %v928_v52 = vld [vmem:[#allocation5 + $0x618] sm:$0xff]  ;;  %v1387_v56 = vunpack.c.l.bf16 %v932_v44 }
 0x408   :  { %2069 = vmatpush1.msra.mxu1 %v1259_v8  ;;  %1999 = vmatprep.subr.mxu0 %v996_v11  ;;  %v824_v8 = vld [vmem:[#allocation5 + $0x2d8] sm:$0xff]  ;;  %v1436_v11 = vunpack.c.h.bf16 %v956_v3  ;;  %v1124_v57 = vunpack.c.h.bf16 %v800_v51 }
 0x409   :  { %2070 = vmatprep.subr.mxu1 %v1252_v12  ;;  %2000 = vmatpush1.msra.mxu0 %v995_v13  ;;  %v1179_v12 = vunpack.c.l.bf16 %v828_v2  ;;  %v1435_v13 = vunpack.c.l.bf16 %v956_v3  ;;  %v1172_v16 = vunpack.c.h.bf16 %v824_v8  ;;  %v1379_v2 = vunpack.c.l.bf16 %v928_v52 }
 0x40a   :  { %2071 = vmatpush1.msra.mxu1 %v1251_v14  ;;  %2001 = vmatprep.subr.mxu0 %v1244_v19  ;;  %v820_v14 = vld [vmem:[#allocation5 + $0x2b8] sm:$0xff]  ;;  %v1428_v19 = vunpack.c.h.bf16 %v952_v9 }
 0x40b   :  { %2072 = vmatprep.subr.mxu1 %v1500_v21  ;;  %2002 = vmatpush2.msra.mxu0 %v1243_v22  ;;  %v1171_v21 = vunpack.c.l.bf16 %v824_v8  ;;  %v1427_v22 = vunpack.c.l.bf16 %v952_v9  ;;  %v1164_v25 = vunpack.c.h.bf16 %v820_v14 }
 0x40c   :  { %2073 = vmatpush2.msra.mxu1 %v1499_v23  ;;  %2003 = vmatprep.subr.mxu0 %v1236_v26  ;;  %v816_v23 = vld [vmem:[#allocation5 + $0x298] sm:$0xff]  ;;  %v1420_v26 = vunpack.c.h.bf16 %v948_v15 }
 0x40d   :  { %2074 = vmatprep.subr.mxu1 %v1492_v27  ;;  %2004 = vmatpush2.msra.mxu0 %v1235_v29  ;;  %v1163_v27 = vunpack.c.l.bf16 %v820_v14  ;;  %v1419_v29 = vunpack.c.l.bf16 %v948_v15  ;;  %v1156_v32 = vunpack.c.h.bf16 %v816_v23  ;;  %v1514_v14 = vrot.slane %v5278_v46, %v5249_v43 }
 0x40e   :  { %2075 = vmatpush2.msra.mxu1 %v1491_v30  ;;  %2005 = vmatprep.subr.mxu0 %v1228_v33  ;;  %v812_v30 = vld [vmem:[#allocation5 + $0x278] sm:$0xff]  ;;  %v1412_v33 = vunpack.c.h.bf16 %v944_v24 }
 0x40f   :  { %2076 = vmatprep.subr.mxu1 %v1484_v34  ;;  %2006 = vmatpush2.msra.mxu0 %v1227_v35  ;;  %v1155_v34 = vunpack.c.l.bf16 %v816_v23  ;;  %v1411_v35 = vunpack.c.l.bf16 %v944_v24  ;;  %v1148_v38 = vunpack.c.h.bf16 %v812_v30 }
 0x410   :  { %2077 = vmatpush2.msra.mxu1 %v1483_v36  ;;  %2007 = vmatprep.subr.mxu0 %v1220_v39  ;;  %v808_v36 = vld [vmem:[#allocation5 + $0x258] sm:$0xff]  ;;  %v1404_v39 = vunpack.c.h.bf16 %v940_v31 }
 0x411   :  { %2078 = vmatprep.subr.mxu1 %v1476_v40  ;;  %2008 = vmatpush2.msra.mxu0 %v1219_v41  ;;  %v1147_v40 = vunpack.c.l.bf16 %v812_v30  ;;  %v1403_v41 = vunpack.c.l.bf16 %v940_v31 }
 0x412   :  { %2079 = vmatpush2.msra.mxu1 %v1475_v42  ;;  %2009 = vmatprep.subr.mxu0 %v1212_v47  ;;  %v804_v42 = vld [vmem:[#allocation5 + $0x238] sm:$0xff]  ;;  %v1140_v47 = vunpack.c.h.bf16 %v808_v36 }
 0x413   :  { %2080 = vmatprep.subr.mxu1 %v1468_v48  ;;  %2010 = vmatpush2.msra.mxu0 %v1211_v49  ;;  %v1396_v48 = vunpack.c.h.bf16 %v936_v37  ;;  %v1139_v49 = vunpack.c.l.bf16 %v808_v36 }
 0x414   :  { %2081 = vmatpush2.msra.mxu1 %v1467_v50  ;;  %2011 = vmatprep.subr.mxu0 %v1204_v53  ;;  %v1395_v50 = vunpack.c.l.bf16 %v936_v37  ;;  %v1132_v53 = vunpack.c.h.bf16 %v804_v42 }
 0x415   :  { %2082 = vmatprep.subr.mxu1 %v1460_v28  ;;  %2012 = vmatpush2.msra.mxu0 %v1203_v54  ;;  %v1388_v28 = vunpack.c.h.bf16 %v932_v44  ;;  %v1506_v54 = vrot.slane %v5278_v46, %v5237_v18 }
 0x416   :  { %2083 = vmatpush2.msra.mxu1 %v1459_v55  ;;  %2013 = vmatprep.subr.mxu0 %v1196_v58  ;;  %v1131_v55 = vunpack.c.l.bf16 %v804_v42  ;;  %v1380_v58 = vunpack.c.h.bf16 %v928_v52 }
 0x417   :  { %2084 = vmatprep.subr.mxu1 %v1452_v61  ;;  %2014 = vmatpush2.msra.mxu0 %v1195_v62  ;;  %v1510_v61 = vrot.slane %v5278_v46, %v5240_v20  ;;  %v1123_v62 = vunpack.c.l.bf16 %v800_v51 }
 0x418   :  { %2085 = vmatpush2.msra.mxu1 %v1451_v1  ;;  %2015 = vmatprep.subr.mxu0 %v1188_v4 }
 0x419   :  { %2086 = vmatprep.subr.mxu1 %v1444_v5  ;;  %2016 = vmatpush2.msra.mxu0 %v1187_v6 }
 0x41a   :  { %2087 = vmatpush2.msra.mxu1 %v1443_v7  ;;  %2017 = vmatprep.subr.mxu0 %v1180_v10 }
 0x41b   :  { %2088 = vmatprep.subr.mxu1 %v1436_v11  ;;  %2018 = vmatpush2.msra.mxu0 %v1179_v12 }
 0x41c   :  { %2089 = vmatpush2.msra.mxu1 %v1435_v13  ;;  %2019 = vmatprep.subr.mxu0 %v1172_v16 }
 0x41d   :  { %2090 = vmatprep.subr.mxu1 %v1428_v19  ;;  %2020 = vmatpush2.msra.mxu0 %v1171_v21 }
 0x41e   :  { %2091 = vmatpush2.msra.mxu1 %v1427_v22  ;;  %2021 = vmatprep.subr.mxu0 %v1164_v25 }
 0x41f   :  { %2092 = vmatprep.subr.mxu1 %v1420_v26  ;;  %2022 = vmatpush2.msra.mxu0 %v1163_v27  ;;  %v1521_v27 = vsub.s32 4, %v5234_v17 }
 0x420   :  { %2093 = vmatpush2.msra.mxu1 %v1419_v29  ;;  %2023 = vmatprep.subr.mxu0 %v1156_v32  ;;  %v1525_v29 = vsub.s32 5, %v5234_v17 }
 0x421   :  { %2094 = vmatprep.subr.mxu1 %v1412_v33  ;;  %2024 = vmatpush2.msra.mxu0 %v1155_v34  ;;  %v1522_v30 = vrot.slane %v5278_v46, %v1521_v27 }
 0x422   :  { %2095 = vmatpush2.msra.mxu1 %v1411_v35  ;;  %2025 = vmatprep.subr.mxu0 %v1148_v38  ;;  %v1526_v31 = vrot.slane %v5278_v46, %v1525_v29 }
 0x423   :  { %2096 = vmatprep.subr.mxu1 %v1404_v39  ;;  %2026 = vmatpush2.msra.mxu0 %v1147_v40 }
 0x424   :  { %2097 = vmatpush2.msra.mxu1 %v1403_v41  ;;  %2027 = vmatprep.subr.mxu0 %v1140_v47  ;;  %v1529_v47 = vsub.s32 6, %v5234_v17 }
 0x425   :  { %2098 = vmatprep.subr.mxu1 %v1396_v48  ;;  %2028 = vmatpush2.msra.mxu0 %v1139_v49  ;;  %v1609_v1 = vpop.f32.mrf.mxu0  ;;  %v1533_v48 = vsub.s32 7, %v5234_v17 }
 0x426   :  { %2099 = vmatpush2.msra.mxu1 %v1395_v50  ;;  %2029 = vmatprep.subr.mxu0 %v1132_v53  ;;  %v1610_v3 = vadd.f32 %v1609_v1, %v1506_v54  ;;  %v1530_v49 = vrot.slane %v5278_v46, %v1529_v47 }
 0x427   :  { %2100 = vmatprep.subr.mxu1 %v1388_v28  ;;  %v1680_v4 = vpop.f32.mrf.mxu1  ;;  %2030 = vmatpush2.msra.mxu0 %v1131_v55  ;;  %v1611_v5 = vpop.f32.mrf.mxu0  ;;  %v1534_v50 = vrot.slane %v5278_v46, %v1533_v48 }
 0x428   :  { %2101 = vmatpush2.msra.mxu1 %v1387_v56  ;;  %2031 = vmatprep.subr.mxu0 %v1124_v57  ;;  %v1681_v6 = vadd.f32 %v1680_v4, %v1610_v3  ;;  %v1612_v7 = vadd.f32 %v1611_v5, %v1510_v61 }
 0x429   :  { %2102 = vmatprep.subr.mxu1 %v1380_v58  ;;  %v1682_v8 = vpop.f32.mrf.mxu1  ;;  %2032 = vmatpush2.msra.mxu0 %v1123_v62 }
 0x42a   :  { %2033 = vmatprep.mubr.f32.mxu0 %v5262_v63  ;;  %2103 = vmatpush2.msra.mxu1 %v1379_v2  ;;  %v2111_v9 = vmul.f32 0.2, %v1681_v6  ;;  %v1683_v10 = vadd.f32 %v1682_v8, %v1612_v7  ;;  %v1518_v63 = vrot.slane %v5278_v46, %v5252_v45 }
 0x42b   :  { %2104 = vmatprep.mubr.f32.mxu1 %v5264_v0  ;;  %2034 = vmatmul.mubr.f32.vlgmr.msra.gmra.mxu0 %v5258_v59 }
 0x42c   :  { %2105 = vmatmul.mubr.f32.vlgmr.msra.gmra.mxu1 %v5260_v60  ;;  %v5288_v11 = vmax.f32 %v1681_v6, %v2111_v9  ;;  %v2112_v12 = vmul.f32 0.2, %v1683_v10 }
 0x42e   :  { %v5290_v13 = vmax.f32 %v1683_v10, %v2112_v12 }
 0x467   :  { %v1751_v15 = vpop.f32.mrf.mxu0 }
 0x468   :  { %v1752_v16 = vadd.f32 %v1751_v15, %v1514_v14 }
 0x469   :  { %v1822_v0 = vpop.f32.mrf.mxu1  ;;  %v1753_v19 = vpop.f32.mrf.mxu0 }
 0x46a   :  { %v1823_v21 = vadd.f32 %v1822_v0, %v1752_v16  ;;  %v1754_v22 = vadd.f32 %v1753_v19, %v1518_v63 }
 0x46b   :  { %v1824_v59 = vpop.f32.mrf.mxu1 }
 0x46c   :  { %v2113_v23 = vmul.f32 0.2, %v1823_v21  ;;  %v1825_v60 = vadd.f32 %v1824_v59, %v1754_v22 }
 0x46e   :  { %v5296_v24 = vmax.f32 %v1823_v21, %v2113_v23  ;;  %v2114_v25 = vmul.f32 0.2, %v1825_v60 }
 0x470   :  { %v5298_v26 = vmax.f32 %v1825_v60, %v2114_v25 }
 0x4a9   :  { %v1893_v32 = vpop.f32.mrf.mxu0 }
 0x4aa   :  { %v1894_v33 = vadd.f32 %v1893_v32, %v1522_v30 }
 0x4ab   :  { %v1964_v34 = vpop.f32.mrf.mxu1  ;;  %v1895_v35 = vpop.f32.mrf.mxu0 }
 0x4ac   :  { %v1965_v36 = vadd.f32 %v1964_v34, %v1894_v33  ;;  %v1896_v37 = vadd.f32 %v1895_v35, %v1526_v31 }
 0x4ad   :  { %v1966_v38 = vpop.f32.mrf.mxu1 }
 0x4ae   :  { %v2115_v39 = vmul.f32 0.2, %v1965_v36  ;;  %v1967_v40 = vadd.f32 %v1966_v38, %v1896_v37 }
 0x4b0   :  { %v5308_v41 = vmax.f32 %v1965_v36, %v2115_v39  ;;  %v2116_v42 = vmul.f32 0.2, %v1967_v40 }
 0x4b2   :  { %v5310_v44 = vmax.f32 %v1967_v40, %v2116_v42 }
 0x4eb   :  { %v2035_v51 = vpop.f32.mrf.mxu0 }
 0x4ec   :  { %v2106_v52 = vpop.f32.mrf.mxu1  ;;  %v2036_v53 = vadd.f32 %v2035_v51, %v1530_v49 }
 0x4ed   :  { %v2037_v28 = vpop.f32.mrf.mxu0 }
 0x4ee   :  { %v2107_v54 = vadd.f32 %v2106_v52, %v2036_v53  ;;  %v2038_v55 = vadd.f32 %v2037_v28, %v1534_v50  ;;  %v2108_v56 = vpop.f32.mrf.mxu1 }
 0x4f0   :  { %v2117_v57 = vmul.f32 0.2, %v2107_v54  ;;  %v2109_v58 = vadd.f32 %v2108_v56, %v2038_v55 }
 0x4f2   :  { %v5320_v61 = vmax.f32 %v2107_v54, %v2117_v57  ;;  %v2118_v62 = vmul.f32 0.2, %v2109_v58 }
 0x4f4   :  { %v5322_v1 = vmax.f32 %v2109_v58, %v2118_v62 }
 0x4f5   :  { %5132 = dma.done.wait [#allocation7 + $0x4], 65536 }
 0x4f6   :  { %5133 = vsyncadd [#allocation7 + $0x4], 4294901760  ;;  %3777 = vmatprep.mubr.f32.mxu0 %v5290_v13  ;;  %3848 = vmatprep.mubr.f32.mxu1 %v5298_v26  ;;  %v2195_v46 = vld [vmem:[#allocation6 + $0x1e0] sm:$0xff] }
 0x4f7   :  { %v2323_v2 = vld [vmem:[#allocation6 + $0x5e0] sm:$0xff]  ;;  %v2768_v4 = vunpack.c.h.bf16 %v2195_v46  ;;  %v2767_v6 = vunpack.c.l.bf16 %v2195_v46 }
 0x4f8   :  { %v2191_v3 = vld [vmem:[#allocation6 + $0x1c0] sm:$0xff]  ;;  %v3024_v5 = vunpack.c.h.bf16 %v2323_v2  ;;  %v3023_v7 = vunpack.c.l.bf16 %v2323_v2 }
 0x4f9   :  { %v2319_v8 = vld [vmem:[#allocation6 + $0x5c0] sm:$0xff]  ;;  %v2760_v12 = vunpack.c.h.bf16 %v2191_v3  ;;  %v2759_v63 = vunpack.c.l.bf16 %v2191_v3  ;;  %3713 = vmatprep.subr.mxu0 %v2768_v4 }
 0x4fa   :  { %v2187_v9 = vld [vmem:[#allocation6 + $0x1a0] sm:$0xff]  ;;  %v3016_v14 = vunpack.c.h.bf16 %v2319_v8  ;;  %v3015_v15 = vunpack.c.l.bf16 %v2319_v8  ;;  %3784 = vmatprep.subr.mxu1 %v3024_v5  ;;  %3714 = vmatpush1.msra.mxu0 %v2767_v6 }
 0x4fb   :  { %v2315_v10 = vld [vmem:[#allocation6 + $0x5a0] sm:$0xff]  ;;  %v2752_v19 = vunpack.c.h.bf16 %v2187_v9  ;;  %3785 = vmatpush1.msra.mxu1 %v3023_v7  ;;  %v2751_v22 = vunpack.c.l.bf16 %v2187_v9  ;;  %3715 = vmatprep.subr.mxu0 %v2760_v12 }
 0x4fc   :  { %v2183_v16 = vld [vmem:[#allocation6 + $0x180] sm:$0xff]  ;;  %v3008_v21 = vunpack.c.h.bf16 %v2315_v10  ;;  %v3007_v59 = vunpack.c.l.bf16 %v2315_v10  ;;  %3786 = vmatprep.subr.mxu1 %v3016_v14  ;;  %3716 = vmatpush1.msra.mxu0 %v2759_v63 }
 0x4fd   :  { %v2311_v0 = vld [vmem:[#allocation6 + $0x580] sm:$0xff]  ;;  %v2744_v25 = vunpack.c.h.bf16 %v2183_v16  ;;  %3787 = vmatpush1.msra.mxu1 %v3015_v15  ;;  %v2743_v31 = vunpack.c.l.bf16 %v2183_v16  ;;  %3717 = vmatprep.subr.mxu0 %v2752_v19 }
 0x4fe   :  { %v2179_v23 = vld [vmem:[#allocation6 + $0x160] sm:$0xff]  ;;  %v3000_v30 = vunpack.c.h.bf16 %v2311_v0  ;;  %v2999_v32 = vunpack.c.l.bf16 %v2311_v0  ;;  %3788 = vmatprep.subr.mxu1 %v3008_v21  ;;  %3718 = vmatpush1.msra.mxu0 %v2751_v22 }
 0x4ff   :  { %v2307_v60 = vld [vmem:[#allocation6 + $0x560] sm:$0xff]  ;;  %v2736_v35 = vunpack.c.h.bf16 %v2179_v23  ;;  %3789 = vmatpush1.msra.mxu1 %v3007_v59  ;;  %v2735_v37 = vunpack.c.l.bf16 %v2179_v23  ;;  %3719 = vmatprep.subr.mxu0 %v2744_v25 }
 0x500   :  { %v2175_v33 = vld [vmem:[#allocation6 + $0x140] sm:$0xff]  ;;  %v2992_v36 = vunpack.c.h.bf16 %v2307_v60  ;;  %v2991_v38 = vunpack.c.l.bf16 %v2307_v60  ;;  %3790 = vmatprep.subr.mxu1 %v3000_v30  ;;  %3720 = vmatpush1.msra.mxu0 %v2743_v31 }
 0x501   :  { %v2303_v34 = vld [vmem:[#allocation6 + $0x540] sm:$0xff]  ;;  %v2728_v42 = vunpack.c.h.bf16 %v2175_v33  ;;  %3791 = vmatpush1.msra.mxu1 %v2999_v32  ;;  %v2727_v50 = vunpack.c.l.bf16 %v2175_v33  ;;  %3721 = vmatprep.subr.mxu0 %v2736_v35 }
 0x502   :  { %v2171_v39 = vld [vmem:[#allocation6 + $0x120] sm:$0xff]  ;;  %v2984_v49 = vunpack.c.h.bf16 %v2303_v34  ;;  %v2983_v51 = vunpack.c.l.bf16 %v2303_v34  ;;  %3792 = vmatprep.subr.mxu1 %v2992_v36  ;;  %3722 = vmatpush1.msra.mxu0 %v2735_v37 }
 0x503   :  { %v2299_v40 = vld [vmem:[#allocation6 + $0x520] sm:$0xff]  ;;  %v2720_v28 = vunpack.c.h.bf16 %v2171_v39  ;;  %3793 = vmatpush1.msra.mxu1 %v2991_v38  ;;  %v2719_v55 = vunpack.c.l.bf16 %v2171_v39  ;;  %3723 = vmatprep.subr.mxu0 %v2728_v42 }
 0x504   :  { %v2167_v52 = vld [vmem:[#allocation6 + $0x100] sm:$0xff]  ;;  %v2976_v54 = vunpack.c.h.bf16 %v2299_v40  ;;  %v2975_v56 = vunpack.c.l.bf16 %v2299_v40  ;;  %3794 = vmatprep.subr.mxu1 %v2984_v49  ;;  %3724 = vmatpush1.msra.mxu0 %v2727_v50 }
 0x505   :  { %v2295_v53 = vld [vmem:[#allocation6 + $0x500] sm:$0xff]  ;;  %v2712_v62 = vunpack.c.h.bf16 %v2167_v52  ;;  %3795 = vmatpush1.msra.mxu1 %v2983_v51  ;;  %v2711_v2 = vunpack.c.l.bf16 %v2167_v52  ;;  %3725 = vmatprep.subr.mxu0 %v2720_v28 }
 0x506   :  { %v2163_v57 = vld [vmem:[#allocation6 + $0xe0] sm:$0xff]  ;;  %v2968_v46 = vunpack.c.h.bf16 %v2295_v53  ;;  %v2967_v3 = vunpack.c.l.bf16 %v2295_v53  ;;  %3796 = vmatprep.subr.mxu1 %v2976_v54  ;;  %3726 = vmatpush1.msra.mxu0 %v2719_v55 }
 0x507   :  { %v2291_v58 = vld [vmem:[#allocation6 + $0x4e0] sm:$0xff]  ;;  %v2704_v6 = vunpack.c.h.bf16 %v2163_v57  ;;  %3797 = vmatpush1.msra.mxu1 %v2975_v56  ;;  %v2703_v8 = vunpack.c.l.bf16 %v2163_v57  ;;  %3727 = vmatprep.subr.mxu0 %v2712_v62 }
 0x508   :  { %v2159_v4 = vld [vmem:[#allocation6 + $0xc0] sm:$0xff]  ;;  %v2960_v7 = vunpack.c.h.bf16 %v2291_v58  ;;  %v2959_v9 = vunpack.c.l.bf16 %v2291_v58  ;;  %3798 = vmatprep.subr.mxu1 %v2968_v46  ;;  %3728 = vmatpush1.msra.mxu0 %v2711_v2 }
 0x509   :  { %v2287_v5 = vld [vmem:[#allocation6 + $0x4c0] sm:$0xff]  ;;  %v2696_v14 = vunpack.c.h.bf16 %v2159_v4  ;;  %3799 = vmatpush1.msra.mxu1 %v2967_v3  ;;  %v2695_v15 = vunpack.c.l.bf16 %v2159_v4  ;;  %3729 = vmatprep.subr.mxu0 %v2704_v6 }
 0x50a   :  { %v2155_v10 = vld [vmem:[#allocation6 + $0xa0] sm:$0xff]  ;;  %v2952_v63 = vunpack.c.h.bf16 %v2287_v5  ;;  %v2951_v16 = vunpack.c.l.bf16 %v2287_v5  ;;  %3800 = vmatprep.subr.mxu1 %v2960_v7  ;;  %3730 = vmatpush1.msra.mxu0 %v2703_v8 }
 0x50b   :  { %v2283_v12 = vld [vmem:[#allocation6 + $0x4a0] sm:$0xff]  ;;  %v2688_v21 = vunpack.c.h.bf16 %v2155_v10  ;;  %3801 = vmatpush1.msra.mxu1 %v2959_v9  ;;  %v2687_v59 = vunpack.c.l.bf16 %v2155_v10  ;;  %3731 = vmatprep.subr.mxu0 %v2696_v14 }
 0x50c   :  { %v2151_v0 = vld [vmem:[#allocation6 + $0x80] sm:$0xff]  ;;  %v2944_v22 = vunpack.c.h.bf16 %v2283_v12  ;;  %v2943_v23 = vunpack.c.l.bf16 %v2283_v12  ;;  %3802 = vmatprep.subr.mxu1 %v2952_v63  ;;  %3732 = vmatpush1.msra.mxu0 %v2695_v15 }
 0x50d   :  { %v2279_v19 = vld [vmem:[#allocation6 + $0x480] sm:$0xff]  ;;  %v2680_v30 = vunpack.c.h.bf16 %v2151_v0  ;;  %3803 = vmatpush1.msra.mxu1 %v2951_v16  ;;  %v2679_v32 = vunpack.c.l.bf16 %v2151_v0  ;;  %3733 = vmatprep.subr.mxu0 %v2688_v21 }
 0x50e   :  { %v2147_v60 = vld [vmem:[#allocation6 + $0x60] sm:$0xff]  ;;  %v2936_v31 = vunpack.c.h.bf16 %v2279_v19  ;;  %v2935_v33 = vunpack.c.l.bf16 %v2279_v19  ;;  %3804 = vmatprep.subr.mxu1 %v2944_v22  ;;  %3734 = vmatpush1.msra.mxu0 %v2687_v59 }
 0x50f   :  { %v2275_v25 = vld [vmem:[#allocation6 + $0x460] sm:$0xff]  ;;  %v2672_v36 = vunpack.c.h.bf16 %v2147_v60  ;;  %3805 = vmatpush1.msra.mxu1 %v2943_v23  ;;  %v2671_v38 = vunpack.c.l.bf16 %v2147_v60  ;;  %3735 = vmatprep.subr.mxu0 %v2680_v30 }
 0x510   :  { %v2143_v34 = vld [vmem:[#allocation6 + $0x40] sm:$0xff]  ;;  %v2928_v37 = vunpack.c.h.bf16 %v2275_v25  ;;  %v2927_v39 = vunpack.c.l.bf16 %v2275_v25  ;;  %3806 = vmatprep.subr.mxu1 %v2936_v31  ;;  %3736 = vmatpush1.msra.mxu0 %v2679_v32 }
 0x511   :  { %v2271_v35 = vld [vmem:[#allocation6 + $0x440] sm:$0xff]  ;;  %v2664_v49 = vunpack.c.h.bf16 %v2143_v34  ;;  %3807 = vmatpush1.msra.mxu1 %v2935_v33  ;;  %v2663_v51 = vunpack.c.l.bf16 %v2143_v34  ;;  %3737 = vmatprep.subr.mxu0 %v2672_v36 }
 0x512   :  { %v2139_v40 = vld [vmem:[#allocation6 + $0x20] sm:$0xff]  ;;  %v2920_v50 = vunpack.c.h.bf16 %v2271_v35  ;;  %v2919_v52 = vunpack.c.l.bf16 %v2271_v35  ;;  %3808 = vmatprep.subr.mxu1 %v2928_v37  ;;  %3738 = vmatpush1.msra.mxu0 %v2671_v38 }
 0x513   :  { %v2267_v42 = vld [vmem:[#allocation6 + $0x420] sm:$0xff]  ;;  %v2656_v54 = vunpack.c.h.bf16 %v2139_v40  ;;  %3809 = vmatpush1.msra.mxu1 %v2927_v39  ;;  %v2655_v56 = vunpack.c.l.bf16 %v2139_v40  ;;  %3739 = vmatprep.subr.mxu0 %v2664_v49 }
 0x514   :  { %v2135_v53 = vld [vmem:[#allocation6] sm:$0xff]  ;;  %v2912_v55 = vunpack.c.h.bf16 %v2267_v42  ;;  %v2911_v57 = vunpack.c.l.bf16 %v2267_v42  ;;  %3810 = vmatprep.subr.mxu1 %v2920_v50  ;;  %3740 = vmatpush1.msra.mxu0 %v2663_v51 }
 0x515   :  { %v2263_v28 = vld [vmem:[#allocation6 + $0x400] sm:$0xff]  ;;  %v2648_v46 = vunpack.c.h.bf16 %v2135_v53  ;;  %3811 = vmatpush1.msra.mxu1 %v2919_v52  ;;  %v2647_v3 = vunpack.c.l.bf16 %v2135_v53  ;;  %3741 = vmatprep.subr.mxu0 %v2656_v54 }
 0x516   :  { %v2259_v58 = vld [vmem:[#allocation6 + $0x3e0] sm:$0xff]  ;;  %v2904_v2 = vunpack.c.h.bf16 %v2263_v28  ;;  %v2903_v4 = vunpack.c.l.bf16 %v2263_v28  ;;  %3812 = vmatprep.subr.mxu1 %v2912_v55  ;;  %3742 = vmatpush1.msra.mxu0 %v2655_v56 }
 0x517   :  { %v2387_v62 = vld [vmem:[#allocation6 + $0x7e0] sm:$0xff]  ;;  %v2896_v7 = vunpack.c.h.bf16 %v2259_v58  ;;  %3813 = vmatpush1.msra.mxu1 %v2911_v57  ;;  %v2895_v9 = vunpack.c.l.bf16 %v2259_v58  ;;  %3743 = vmatprep.subr.mxu0 %v2648_v46 }
 0x518   :  { %v2255_v5 = vld [vmem:[#allocation6 + $0x3c0] sm:$0xff]  ;;  %v3152_v8 = vunpack.c.h.bf16 %v2387_v62  ;;  %v3151_v10 = vunpack.c.l.bf16 %v2387_v62  ;;  %3814 = vmatprep.subr.mxu1 %v2904_v2  ;;  %3744 = vmatpush1.msra.mxu0 %v2647_v3 }
 0x519   :  { %v2383_v6 = vld [vmem:[#allocation6 + $0x7c0] sm:$0xff]  ;;  %v2888_v63 = vunpack.c.h.bf16 %v2255_v5  ;;  %3815 = vmatpush1.msra.mxu1 %v2903_v4  ;;  %v2887_v16 = vunpack.c.l.bf16 %v2255_v5  ;;  %3745 = vmatprep.subr.mxu0 %v2896_v7 }
 0x51a   :  { %v2251_v12 = vld [vmem:[#allocation6 + $0x3a0] sm:$0xff]  ;;  %v3144_v15 = vunpack.c.h.bf16 %v2383_v6  ;;  %v3143_v0 = vunpack.c.l.bf16 %v2383_v6  ;;  %3816 = vmatprep.subr.mxu1 %v3152_v8  ;;  %3746 = vmatpush2.msra.mxu0 %v2895_v9 }
 0x51b   :  { %v2379_v14 = vld [vmem:[#allocation6 + $0x7a0] sm:$0xff]  ;;  %v2880_v22 = vunpack.c.h.bf16 %v2251_v12  ;;  %3817 = vmatpush2.msra.mxu1 %v3151_v10  ;;  %v2879_v23 = vunpack.c.l.bf16 %v2251_v12  ;;  %3747 = vmatprep.subr.mxu0 %v2888_v63 }
 0x51c   :  { %v2247_v19 = vld [vmem:[#allocation6 + $0x380] sm:$0xff]  ;;  %v3136_v59 = vunpack.c.h.bf16 %v2379_v14  ;;  %v3135_v60 = vunpack.c.l.bf16 %v2379_v14  ;;  %3818 = vmatprep.subr.mxu1 %v3144_v15  ;;  %3748 = vmatpush2.msra.mxu0 %v2887_v16 }
 0x51d   :  { %v2375_v21 = vld [vmem:[#allocation6 + $0x780] sm:$0xff]  ;;  %v2872_v31 = vunpack.c.h.bf16 %v2247_v19  ;;  %3819 = vmatpush2.msra.mxu1 %v3143_v0  ;;  %v2871_v33 = vunpack.c.l.bf16 %v2247_v19  ;;  %3749 = vmatprep.subr.mxu0 %v2880_v22 }
 0x51e   :  { %v2243_v25 = vld [vmem:[#allocation6 + $0x360] sm:$0xff]  ;;  %v3128_v32 = vunpack.c.h.bf16 %v2375_v21  ;;  %v3127_v34 = vunpack.c.l.bf16 %v2375_v21  ;;  %3820 = vmatprep.subr.mxu1 %v3136_v59  ;;  %3750 = vmatpush2.msra.mxu0 %v2879_v23 }
 0x51f   :  { %v2371_v30 = vld [vmem:[#allocation6 + $0x760] sm:$0xff]  ;;  %v2864_v37 = vunpack.c.h.bf16 %v2243_v25  ;;  %3821 = vmatpush2.msra.mxu1 %v3135_v60  ;;  %v2863_v39 = vunpack.c.l.bf16 %v2243_v25  ;;  %3751 = vmatprep.subr.mxu0 %v2872_v31 }
 0x520   :  { %v2239_v35 = vld [vmem:[#allocation6 + $0x340] sm:$0xff]  ;;  %v3120_v38 = vunpack.c.h.bf16 %v2371_v30  ;;  %v3119_v40 = vunpack.c.l.bf16 %v2371_v30  ;;  %3822 = vmatprep.subr.mxu1 %v3128_v32  ;;  %3752 = vmatpush2.msra.mxu0 %v2871_v33 }
 0x521   :  { %v2367_v36 = vld [vmem:[#allocation6 + $0x740] sm:$0xff]  ;;  %v2856_v50 = vunpack.c.h.bf16 %v2239_v35  ;;  %3823 = vmatpush2.msra.mxu1 %v3127_v34  ;;  %v2855_v52 = vunpack.c.l.bf16 %v2239_v35  ;;  %3753 = vmatprep.subr.mxu0 %v2864_v37 }
 0x522   :  { %v2235_v42 = vld [vmem:[#allocation6 + $0x320] sm:$0xff]  ;;  %v3112_v51 = vunpack.c.h.bf16 %v2367_v36  ;;  %v3111_v53 = vunpack.c.l.bf16 %v2367_v36  ;;  %3824 = vmatprep.subr.mxu1 %v3120_v38  ;;  %3754 = vmatpush2.msra.mxu0 %v2863_v39 }
 0x523   :  { %v2363_v49 = vld [vmem:[#allocation6 + $0x720] sm:$0xff]  ;;  %v2848_v55 = vunpack.c.h.bf16 %v2235_v42  ;;  %3825 = vmatpush2.msra.mxu1 %v3119_v40  ;;  %v2847_v57 = vunpack.c.l.bf16 %v2235_v42  ;;  %3755 = vmatprep.subr.mxu0 %v2856_v50 }
 0x524   :  { %v2231_v28 = vld [vmem:[#allocation6 + $0x300] sm:$0xff]  ;;  %v3104_v56 = vunpack.c.h.bf16 %v2363_v49  ;;  %v3103_v58 = vunpack.c.l.bf16 %v2363_v49  ;;  %3826 = vmatprep.subr.mxu1 %v3112_v51  ;;  %3756 = vmatpush2.msra.mxu0 %v2855_v52 }
 0x525   :  { %v2359_v54 = vld [vmem:[#allocation6 + $0x700] sm:$0xff]  ;;  %v2840_v2 = vunpack.c.h.bf16 %v2231_v28  ;;  %3827 = vmatpush2.msra.mxu1 %v3111_v53  ;;  %v2839_v4 = vunpack.c.l.bf16 %v2231_v28  ;;  %3757 = vmatprep.subr.mxu0 %v2848_v55 }
 0x526   :  { %v2227_v62 = vld [vmem:[#allocation6 + $0x2e0] sm:$0xff]  ;;  %v3096_v3 = vunpack.c.h.bf16 %v2359_v54  ;;  %v3095_v5 = vunpack.c.l.bf16 %v2359_v54  ;;  %3828 = vmatprep.subr.mxu1 %v3104_v56  ;;  %3758 = vmatpush2.msra.mxu0 %v2847_v57 }
 0x527   :  { %v2355_v46 = vld [vmem:[#allocation6 + $0x6e0] sm:$0xff]  ;;  %v2832_v8 = vunpack.c.h.bf16 %v2227_v62  ;;  %3829 = vmatpush2.msra.mxu1 %v3103_v58  ;;  %v2831_v10 = vunpack.c.l.bf16 %v2227_v62  ;;  %3759 = vmatprep.subr.mxu0 %v2840_v2 }
 0x528   :  { %v2223_v6 = vld [vmem:[#allocation6 + $0x2c0] sm:$0xff]  ;;  %v3088_v9 = vunpack.c.h.bf16 %v2355_v46  ;;  %v3087_v12 = vunpack.c.l.bf16 %v2355_v46  ;;  %3830 = vmatprep.subr.mxu1 %v3096_v3  ;;  %3760 = vmatpush2.msra.mxu0 %v2839_v4 }
 0x529   :  { %v2351_v7 = vld [vmem:[#allocation6 + $0x6c0] sm:$0xff]  ;;  %v2824_v15 = vunpack.c.h.bf16 %v2223_v6  ;;  %3831 = vmatpush2.msra.mxu1 %v3095_v5  ;;  %v2823_v0 = vunpack.c.l.bf16 %v2223_v6  ;;  %3761 = vmatprep.subr.mxu0 %v2832_v8 }
 0x52a   :  { %v2219_v14 = vld [vmem:[#allocation6 + $0x2a0] sm:$0xff]  ;;  %v3080_v16 = vunpack.c.h.bf16 %v2351_v7  ;;  %v3079_v19 = vunpack.c.l.bf16 %v2351_v7  ;;  %3832 = vmatprep.subr.mxu1 %v3088_v9  ;;  %3762 = vmatpush2.msra.mxu0 %v2831_v10 }
 0x52b   :  { %v2347_v63 = vld [vmem:[#allocation6 + $0x6a0] sm:$0xff]  ;;  %v2816_v59 = vunpack.c.h.bf16 %v2219_v14  ;;  %3833 = vmatpush2.msra.mxu1 %v3087_v12  ;;  %v2815_v60 = vunpack.c.l.bf16 %v2219_v14  ;;  %3763 = vmatprep.subr.mxu0 %v2824_v15 }
 0x52c   :  { %v2215_v21 = vld [vmem:[#allocation6 + $0x280] sm:$0xff]  ;;  %v3072_v23 = vunpack.c.h.bf16 %v2347_v63  ;;  %v3071_v25 = vunpack.c.l.bf16 %v2347_v63  ;;  %3834 = vmatprep.subr.mxu1 %v3080_v16  ;;  %3764 = vmatpush2.msra.mxu0 %v2823_v0 }
 0x52d   :  { %v2343_v22 = vld [vmem:[#allocation6 + $0x680] sm:$0xff]  ;;  %v2808_v32 = vunpack.c.h.bf16 %v2215_v21  ;;  %3835 = vmatpush2.msra.mxu1 %v3079_v19  ;;  %v2807_v34 = vunpack.c.l.bf16 %v2215_v21  ;;  %3765 = vmatprep.subr.mxu0 %v2816_v59 }
 0x52e   :  { %v2211_v30 = vld [vmem:[#allocation6 + $0x260] sm:$0xff]  ;;  %v3064_v33 = vunpack.c.h.bf16 %v2343_v22  ;;  %v3063_v35 = vunpack.c.l.bf16 %v2343_v22  ;;  %3836 = vmatprep.subr.mxu1 %v3072_v23  ;;  %3766 = vmatpush2.msra.mxu0 %v2815_v60 }
 0x52f   :  { %v2339_v31 = vld [vmem:[#allocation6 + $0x660] sm:$0xff]  ;;  %v2800_v38 = vunpack.c.h.bf16 %v2211_v30  ;;  %3837 = vmatpush2.msra.mxu1 %v3071_v25  ;;  %v2799_v40 = vunpack.c.l.bf16 %v2211_v30  ;;  %3767 = vmatprep.subr.mxu0 %v2808_v32 }
 0x530   :  { %v2207_v36 = vld [vmem:[#allocation6 + $0x240] sm:$0xff]  ;;  %v3056_v39 = vunpack.c.h.bf16 %v2339_v31  ;;  %v3055_v42 = vunpack.c.l.bf16 %v2339_v31  ;;  %3838 = vmatprep.subr.mxu1 %v3064_v33  ;;  %3768 = vmatpush2.msra.mxu0 %v2807_v34 }
 0x531   :  { %v2335_v37 = vld [vmem:[#allocation6 + $0x640] sm:$0xff]  ;;  %v2792_v51 = vunpack.c.h.bf16 %v2207_v36  ;;  %3839 = vmatpush2.msra.mxu1 %v3063_v35  ;;  %v2791_v53 = vunpack.c.l.bf16 %v2207_v36  ;;  %3769 = vmatprep.subr.mxu0 %v2800_v38 }
 0x532   :  { %v2203_v49 = vld [vmem:[#allocation6 + $0x220] sm:$0xff]  ;;  %v3048_v52 = vunpack.c.h.bf16 %v2335_v37  ;;  %v3047_v28 = vunpack.c.l.bf16 %v2335_v37  ;;  %3840 = vmatprep.subr.mxu1 %v3056_v39  ;;  %3770 = vmatpush2.msra.mxu0 %v2799_v40 }
 0x533   :  { %v2331_v50 = vld [vmem:[#allocation6 + $0x620] sm:$0xff]  ;;  %v2784_v56 = vunpack.c.h.bf16 %v2203_v49  ;;  %3841 = vmatpush2.msra.mxu1 %v3055_v42  ;;  %v2783_v58 = vunpack.c.l.bf16 %v2203_v49  ;;  %3771 = vmatprep.subr.mxu0 %v2792_v51 }
 0x534   :  { %v2199_v54 = vld [vmem:[#allocation6 + $0x200] sm:$0xff]  ;;  %v3040_v57 = vunpack.c.h.bf16 %v2331_v50  ;;  %v3039_v62 = vunpack.c.l.bf16 %v2331_v50  ;;  %3842 = vmatprep.subr.mxu1 %v3048_v52  ;;  %3772 = vmatpush2.msra.mxu0 %v2791_v53 }
 0x535   :  { %v2327_v55 = vld [vmem:[#allocation6 + $0x600] sm:$0xff]  ;;  %v2776_v2 = vunpack.c.h.bf16 %v2199_v54  ;;  %3843 = vmatpush2.msra.mxu1 %v3047_v28  ;;  %v2775_v5 = vunpack.c.l.bf16 %v2199_v54  ;;  %3773 = vmatprep.subr.mxu0 %v2784_v56 }
 0x536   :  { %v2451_v46 = vld [vmem:[#allocation6 + $0x9e0] sm:$0xff]  ;;  %v3032_v3 = vunpack.c.h.bf16 %v2327_v55  ;;  %v3031_v6 = vunpack.c.l.bf16 %v2327_v55  ;;  %3844 = vmatprep.subr.mxu1 %v3040_v57  ;;  %3774 = vmatpush2.msra.mxu0 %v2783_v58 }
 0x537   :  { %v2579_v4 = vld [vmem:[#allocation6 + $0xde0] sm:$0xff]  ;;  %v3280_v7 = vunpack.c.h.bf16 %v2451_v46  ;;  %3845 = vmatpush2.msra.mxu1 %v3039_v62  ;;  %3775 = vmatprep.subr.mxu0 %v2776_v2  ;;  %v3279_v12 = vunpack.c.l.bf16 %v2451_v46 }
 0x538   :  { %v2447_v8 = vld [vmem:[#allocation6 + $0x9c0] sm:$0xff]  ;;  %v3536_v10 = vunpack.c.h.bf16 %v2579_v4  ;;  %3846 = vmatprep.subr.mxu1 %v3032_v3  ;;  %v3535_v14 = vunpack.c.l.bf16 %v2579_v4  ;;  %3776 = vmatpush2.msra.mxu0 %v2775_v5 }
 0x539   :  { %v2575_v9 = vld [vmem:[#allocation6 + $0xdc0] sm:$0xff]  ;;  %3847 = vmatpush2.msra.mxu1 %v3031_v6  ;;  %v3272_v16 = vunpack.c.h.bf16 %v2447_v8  ;;  %3778 = vmatmul.mubr.f32.vlgmr.msra.gmra.mxu0 %v5288_v11  ;;  %v3271_v19 = vunpack.c.l.bf16 %v2447_v8 }
 0x53a   :  { %v2443_v63 = vld [vmem:[#allocation6 + $0x9a0] sm:$0xff]  ;;  %v3528_v0 = vunpack.c.h.bf16 %v2575_v9  ;;  %3855 = vmatprep.subr.mxu0 %v3280_v7  ;;  %v3527_v21 = vunpack.c.l.bf16 %v2575_v9  ;;  %3926 = vmatprep.subr.mxu1 %v3536_v10 }
 0x53b   :  { %v2571_v15 = vld [vmem:[#allocation6 + $0xda0] sm:$0xff]  ;;  %3849 = vmatmul.mubr.f32.vlgmr.msra.gmra.mxu1 %v5296_v24  ;;  %v3264_v23 = vunpack.c.h.bf16 %v2443_v63  ;;  %3856 = vmatpush1.msra.mxu0 %v3279_v12  ;;  %v3263_v25 = vunpack.c.l.bf16 %v2443_v63 }
 0x53c   :  { %v2439_v22 = vld [vmem:[#allocation6 + $0x980] sm:$0xff]  ;;  %v3520_v60 = vunpack.c.h.bf16 %v2571_v15  ;;  %3927 = vmatpush1.msra.mxu1 %v3535_v14  ;;  %v3519_v30 = vunpack.c.l.bf16 %v2571_v15  ;;  %3857 = vmatprep.subr.mxu0 %v3272_v16 }
 0x53d   :  { %v2567_v59 = vld [vmem:[#allocation6 + $0xd80] sm:$0xff]  ;;  %3928 = vmatprep.subr.mxu1 %v3528_v0  ;;  %v3256_v33 = vunpack.c.h.bf16 %v2439_v22  ;;  %3858 = vmatpush1.msra.mxu0 %v3271_v19  ;;  %v3255_v35 = vunpack.c.l.bf16 %v2439_v22 }
 0x53e   :  { %v2435_v31 = vld [vmem:[#allocation6 + $0x960] sm:$0xff]  ;;  %v3512_v34 = vunpack.c.h.bf16 %v2567_v59  ;;  %3929 = vmatpush1.msra.mxu1 %v3527_v21  ;;  %v3511_v36 = vunpack.c.l.bf16 %v2567_v59  ;;  %3859 = vmatprep.subr.mxu0 %v3264_v23 }
 0x53f   :  { %v2563_v32 = vld [vmem:[#allocation6 + $0xd60] sm:$0xff]  ;;  %3930 = vmatprep.subr.mxu1 %v3520_v60  ;;  %v3248_v39 = vunpack.c.h.bf16 %v2435_v31  ;;  %3860 = vmatpush1.msra.mxu0 %v3263_v25  ;;  %v3247_v42 = vunpack.c.l.bf16 %v2435_v31 }
 0x540   :  { %v2431_v37 = vld [vmem:[#allocation6 + $0x940] sm:$0xff]  ;;  %v3504_v40 = vunpack.c.h.bf16 %v2563_v32  ;;  %3931 = vmatpush1.msra.mxu1 %v3519_v30  ;;  %v3503_v49 = vunpack.c.l.bf16 %v2563_v32  ;;  %3861 = vmatprep.subr.mxu0 %v3256_v33 }
 0x541   :  { %v2559_v38 = vld [vmem:[#allocation6 + $0xd40] sm:$0xff]  ;;  %3932 = vmatprep.subr.mxu1 %v3512_v34  ;;  %v3240_v52 = vunpack.c.h.bf16 %v2431_v37  ;;  %3862 = vmatpush1.msra.mxu0 %v3255_v35  ;;  %v3239_v28 = vunpack.c.l.bf16 %v2431_v37 }
 0x542   :  { %v2427_v50 = vld [vmem:[#allocation6 + $0x920] sm:$0xff]  ;;  %v3496_v53 = vunpack.c.h.bf16 %v2559_v38  ;;  %3933 = vmatpush1.msra.mxu1 %v3511_v36  ;;  %v3495_v54 = vunpack.c.l.bf16 %v2559_v38  ;;  %3863 = vmatprep.subr.mxu0 %v3248_v39 }
 0x543   :  { %v2555_v51 = vld [vmem:[#allocation6 + $0xd20] sm:$0xff]  ;;  %3934 = vmatprep.subr.mxu1 %v3504_v40  ;;  %v3232_v57 = vunpack.c.h.bf16 %v2427_v50  ;;  %3864 = vmatpush1.msra.mxu0 %v3247_v42  ;;  %v3231_v62 = vunpack.c.l.bf16 %v2427_v50 }
 0x544   :  { %v2423_v55 = vld [vmem:[#allocation6 + $0x900] sm:$0xff]  ;;  %v3488_v58 = vunpack.c.h.bf16 %v2555_v51  ;;  %3935 = vmatpush1.msra.mxu1 %v3503_v49  ;;  %v3487_v46 = vunpack.c.l.bf16 %v2555_v51  ;;  %3865 = vmatprep.subr.mxu0 %v3240_v52 }
 0x545   :  { %v2551_v56 = vld [vmem:[#allocation6 + $0xd00] sm:$0xff]  ;;  %3936 = vmatprep.subr.mxu1 %v3496_v53  ;;  %v3224_v4 = vunpack.c.h.bf16 %v2423_v55  ;;  %3866 = vmatpush1.msra.mxu0 %v3239_v28  ;;  %v3223_v6 = vunpack.c.l.bf16 %v2423_v55 }
 0x546   :  { %v2419_v2 = vld [vmem:[#allocation6 + $0x8e0] sm:$0xff]  ;;  %v3480_v5 = vunpack.c.h.bf16 %v2551_v56  ;;  %3937 = vmatpush1.msra.mxu1 %v3495_v54  ;;  %v3479_v7 = vunpack.c.l.bf16 %v2551_v56  ;;  %3867 = vmatprep.subr.mxu0 %v3232_v57 }
 0x547   :  { %v2547_v3 = vld [vmem:[#allocation6 + $0xce0] sm:$0xff]  ;;  %3938 = vmatprep.subr.mxu1 %v3488_v58  ;;  %v3216_v10 = vunpack.c.h.bf16 %v2419_v2  ;;  %3868 = vmatpush1.msra.mxu0 %v3231_v62  ;;  %v3215_v14 = vunpack.c.l.bf16 %v2419_v2 }
 0x548   :  { %v2415_v8 = vld [vmem:[#allocation6 + $0x8c0] sm:$0xff]  ;;  %v3472_v12 = vunpack.c.h.bf16 %v2547_v3  ;;  %3939 = vmatpush1.msra.mxu1 %v3487_v46  ;;  %v3471_v63 = vunpack.c.l.bf16 %v2547_v3  ;;  %3869 = vmatprep.subr.mxu0 %v3224_v4 }
 0x549   :  { %v2543_v9 = vld [vmem:[#allocation6 + $0xcc0] sm:$0xff]  ;;  %3940 = vmatprep.subr.mxu1 %v3480_v5  ;;  %v3208_v0 = vunpack.c.h.bf16 %v2415_v8  ;;  %3870 = vmatpush1.msra.mxu0 %v3223_v6  ;;  %v3207_v21 = vunpack.c.l.bf16 %v2415_v8 }
 0x54a   :  { %v2411_v15 = vld [vmem:[#allocation6 + $0x8a0] sm:$0xff]  ;;  %v3464_v19 = vunpack.c.h.bf16 %v2543_v9  ;;  %3941 = vmatpush1.msra.mxu1 %v3479_v7  ;;  %v3463_v22 = vunpack.c.l.bf16 %v2543_v9  ;;  %3871 = vmatprep.subr.mxu0 %v3216_v10 }
 0x54b   :  { %v2539_v16 = vld [vmem:[#allocation6 + $0xca0] sm:$0xff]  ;;  %3942 = vmatprep.subr.mxu1 %v3472_v12  ;;  %v3200_v60 = vunpack.c.h.bf16 %v2411_v15  ;;  %3872 = vmatpush1.msra.mxu0 %v3215_v14  ;;  %v3199_v30 = vunpack.c.l.bf16 %v2411_v15 }
 0x54c   :  { %v2407_v59 = vld [vmem:[#allocation6 + $0x880] sm:$0xff]  ;;  %v3456_v25 = vunpack.c.h.bf16 %v2539_v16  ;;  %3943 = vmatpush1.msra.mxu1 %v3471_v63  ;;  %v3455_v31 = vunpack.c.l.bf16 %v2539_v16  ;;  %3873 = vmatprep.subr.mxu0 %v3208_v0 }
 0x54d   :  { %v2535_v23 = vld [vmem:[#allocation6 + $0xc80] sm:$0xff]  ;;  %3944 = vmatprep.subr.mxu1 %v3464_v19  ;;  %v3192_v34 = vunpack.c.h.bf16 %v2407_v59  ;;  %3874 = vmatpush1.msra.mxu0 %v3207_v21  ;;  %v3191_v36 = vunpack.c.l.bf16 %v2407_v59 }
 0x54e   :  { %v2403_v32 = vld [vmem:[#allocation6 + $0x860] sm:$0xff]  ;;  %v3448_v35 = vunpack.c.h.bf16 %v2535_v23  ;;  %3945 = vmatpush1.msra.mxu1 %v3463_v22  ;;  %v3447_v37 = vunpack.c.l.bf16 %v2535_v23  ;;  %3875 = vmatprep.subr.mxu0 %v3200_v60 }
 0x54f   :  { %v2531_v33 = vld [vmem:[#allocation6 + $0xc60] sm:$0xff]  ;;  %3946 = vmatprep.subr.mxu1 %v3456_v25  ;;  %v3184_v40 = vunpack.c.h.bf16 %v2403_v32  ;;  %3876 = vmatpush1.msra.mxu0 %v3199_v30  ;;  %v3183_v49 = vunpack.c.l.bf16 %v2403_v32 }
 0x550   :  { %v2399_v38 = vld [vmem:[#allocation6 + $0x840] sm:$0xff]  ;;  %v3440_v42 = vunpack.c.h.bf16 %v2531_v33  ;;  %3947 = vmatpush1.msra.mxu1 %v3455_v31  ;;  %v3439_v50 = vunpack.c.l.bf16 %v2531_v33  ;;  %3877 = vmatprep.subr.mxu0 %v3192_v34 }
 0x551   :  { %v2527_v39 = vld [vmem:[#allocation6 + $0xc40] sm:$0xff]  ;;  %3948 = vmatprep.subr.mxu1 %v3448_v35  ;;  %v3176_v53 = vunpack.c.h.bf16 %v2399_v38  ;;  %3878 = vmatpush1.msra.mxu0 %v3191_v36  ;;  %v3175_v54 = vunpack.c.l.bf16 %v2399_v38 }
 0x552   :  { %v2395_v51 = vld [vmem:[#allocation6 + $0x820] sm:$0xff]  ;;  %v3432_v28 = vunpack.c.h.bf16 %v2527_v39  ;;  %3949 = vmatpush1.msra.mxu1 %v3447_v37  ;;  %v3431_v55 = vunpack.c.l.bf16 %v2527_v39  ;;  %3879 = vmatprep.subr.mxu0 %v3184_v40 }
 0x553   :  { %v2523_v52 = vld [vmem:[#allocation6 + $0xc20] sm:$0xff]  ;;  %3950 = vmatprep.subr.mxu1 %v3440_v42  ;;  %v3168_v58 = vunpack.c.h.bf16 %v2395_v51  ;;  %3880 = vmatpush1.msra.mxu0 %v3183_v49  ;;  %v3167_v46 = vunpack.c.l.bf16 %v2395_v51 }
 0x554   :  { %v2391_v56 = vld [vmem:[#allocation6 + $0x800] sm:$0xff]  ;;  %v3424_v62 = vunpack.c.h.bf16 %v2523_v52  ;;  %3951 = vmatpush1.msra.mxu1 %v3439_v50  ;;  %v3423_v2 = vunpack.c.l.bf16 %v2523_v52  ;;  %3881 = vmatprep.subr.mxu0 %v3176_v53 }
 0x555   :  { %v2519_v57 = vld [vmem:[#allocation6 + $0xc00] sm:$0xff]  ;;  %3952 = vmatprep.subr.mxu1 %v3432_v28  ;;  %v3160_v5 = vunpack.c.h.bf16 %v2391_v56  ;;  %3882 = vmatpush1.msra.mxu0 %v3175_v54  ;;  %v3159_v7 = vunpack.c.l.bf16 %v2391_v56 }
 0x556   :  { %v2515_v3 = vld [vmem:[#allocation6 + $0xbe0] sm:$0xff]  ;;  %v3416_v6 = vunpack.c.h.bf16 %v2519_v57  ;;  %3953 = vmatpush1.msra.mxu1 %v3431_v55  ;;  %v3415_v8 = vunpack.c.l.bf16 %v2519_v57  ;;  %3883 = vmatprep.subr.mxu0 %v3168_v58 }
 0x557   :  { %v2643_v4 = vld [vmem:[#allocation6 + $0xfe0] sm:$0xff]  ;;  %3954 = vmatprep.subr.mxu1 %v3424_v62  ;;  %v3408_v12 = vunpack.c.h.bf16 %v2515_v3  ;;  %3884 = vmatpush1.msra.mxu0 %v3167_v46  ;;  %v3407_v63 = vunpack.c.l.bf16 %v2515_v3 }
 0x558   :  { %v2511_v9 = vld [vmem:[#allocation6 + $0xbc0] sm:$0xff]  ;;  %v3664_v14 = vunpack.c.h.bf16 %v2643_v4  ;;  %3955 = vmatpush1.msra.mxu1 %v3423_v2  ;;  %v3663_v15 = vunpack.c.l.bf16 %v2643_v4  ;;  %3885 = vmatprep.subr.mxu0 %v3160_v5 }
 0x559   :  { %v2639_v10 = vld [vmem:[#allocation6 + $0xfc0] sm:$0xff]  ;;  %3956 = vmatprep.subr.mxu1 %v3416_v6  ;;  %v3400_v19 = vunpack.c.h.bf16 %v2511_v9  ;;  %3886 = vmatpush1.msra.mxu0 %v3159_v7  ;;  %v3399_v22 = vunpack.c.l.bf16 %v2511_v9 }
 0x55a   :  { %v2507_v16 = vld [vmem:[#allocation6 + $0xba0] sm:$0xff]  ;;  %v3656_v21 = vunpack.c.h.bf16 %v2639_v10  ;;  %3957 = vmatpush1.msra.mxu1 %v3415_v8  ;;  %v3655_v59 = vunpack.c.l.bf16 %v2639_v10  ;;  %3887 = vmatprep.subr.mxu0 %v3408_v12 }
 0x55b   :  { %v2635_v0 = vld [vmem:[#allocation6 + $0xfa0] sm:$0xff]  ;;  %3958 = vmatprep.subr.mxu1 %v3664_v14  ;;  %v3392_v25 = vunpack.c.h.bf16 %v2507_v16  ;;  %3888 = vmatpush2.msra.mxu0 %v3407_v63  ;;  %v3391_v31 = vunpack.c.l.bf16 %v2507_v16 }
 0x55c   :  { %v2503_v23 = vld [vmem:[#allocation6 + $0xb80] sm:$0xff]  ;;  %v3648_v30 = vunpack.c.h.bf16 %v2635_v0  ;;  %3959 = vmatpush2.msra.mxu1 %v3663_v15  ;;  %v3647_v32 = vunpack.c.l.bf16 %v2635_v0  ;;  %3889 = vmatprep.subr.mxu0 %v3400_v19 }
 0x55d   :  { %v2631_v60 = vld [vmem:[#allocation6 + $0xf80] sm:$0xff]  ;;  %3960 = vmatprep.subr.mxu1 %v3656_v21  ;;  %v3384_v35 = vunpack.c.h.bf16 %v2503_v23  ;;  %3890 = vmatpush2.msra.mxu0 %v3399_v22  ;;  %v3383_v37 = vunpack.c.l.bf16 %v2503_v23 }
 0x55e   :  { %v2499_v33 = vld [vmem:[#allocation6 + $0xb60] sm:$0xff]  ;;  %v3640_v36 = vunpack.c.h.bf16 %v2631_v60  ;;  %3961 = vmatpush2.msra.mxu1 %v3655_v59  ;;  %v3639_v38 = vunpack.c.l.bf16 %v2631_v60  ;;  %3891 = vmatprep.subr.mxu0 %v3392_v25 }
 0x55f   :  { %v2627_v34 = vld [vmem:[#allocation6 + $0xf60] sm:$0xff]  ;;  %3962 = vmatprep.subr.mxu1 %v3648_v30  ;;  %v3376_v42 = vunpack.c.h.bf16 %v2499_v33  ;;  %3892 = vmatpush2.msra.mxu0 %v3391_v31  ;;  %v3375_v50 = vunpack.c.l.bf16 %v2499_v33 }
 0x560   :  { %v2495_v39 = vld [vmem:[#allocation6 + $0xb40] sm:$0xff]  ;;  %v3632_v49 = vunpack.c.h.bf16 %v2627_v34  ;;  %3963 = vmatpush2.msra.mxu1 %v3647_v32  ;;  %v3631_v51 = vunpack.c.l.bf16 %v2627_v34  ;;  %3893 = vmatprep.subr.mxu0 %v3384_v35 }
 0x561   :  { %v2623_v40 = vld [vmem:[#allocation6 + $0xf40] sm:$0xff]  ;;  %3964 = vmatprep.subr.mxu1 %v3640_v36  ;;  %v3368_v28 = vunpack.c.h.bf16 %v2495_v39  ;;  %3894 = vmatpush2.msra.mxu0 %v3383_v37  ;;  %v3367_v55 = vunpack.c.l.bf16 %v2495_v39 }
 0x562   :  { %v2491_v52 = vld [vmem:[#allocation6 + $0xb20] sm:$0xff]  ;;  %v3624_v54 = vunpack.c.h.bf16 %v2623_v40  ;;  %3965 = vmatpush2.msra.mxu1 %v3639_v38  ;;  %v3623_v56 = vunpack.c.l.bf16 %v2623_v40  ;;  %3895 = vmatprep.subr.mxu0 %v3376_v42 }
 0x563   :  { %v2619_v53 = vld [vmem:[#allocation6 + $0xf20] sm:$0xff]  ;;  %3966 = vmatprep.subr.mxu1 %v3632_v49  ;;  %v3360_v62 = vunpack.c.h.bf16 %v2491_v52  ;;  %3896 = vmatpush2.msra.mxu0 %v3375_v50  ;;  %v3359_v2 = vunpack.c.l.bf16 %v2491_v52 }
 0x564   :  { %v2487_v57 = vld [vmem:[#allocation6 + $0xb00] sm:$0xff]  ;;  %v3616_v46 = vunpack.c.h.bf16 %v2619_v53  ;;  %3967 = vmatpush2.msra.mxu1 %v3631_v51  ;;  %v3615_v3 = vunpack.c.l.bf16 %v2619_v53  ;;  %3897 = vmatprep.subr.mxu0 %v3368_v28 }
 0x565   :  { %v2615_v58 = vld [vmem:[#allocation6 + $0xf00] sm:$0xff]  ;;  %3968 = vmatprep.subr.mxu1 %v3624_v54  ;;  %v3352_v6 = vunpack.c.h.bf16 %v2487_v57  ;;  %3898 = vmatpush2.msra.mxu0 %v3367_v55  ;;  %v3351_v8 = vunpack.c.l.bf16 %v2487_v57 }
 0x566   :  { %v2483_v4 = vld [vmem:[#allocation6 + $0xae0] sm:$0xff]  ;;  %v3608_v7 = vunpack.c.h.bf16 %v2615_v58  ;;  %3969 = vmatpush2.msra.mxu1 %v3623_v56  ;;  %v3607_v9 = vunpack.c.l.bf16 %v2615_v58  ;;  %3899 = vmatprep.subr.mxu0 %v3360_v62 }
 0x567   :  { %v2611_v5 = vld [vmem:[#allocation6 + $0xee0] sm:$0xff]  ;;  %3970 = vmatprep.subr.mxu1 %v3616_v46  ;;  %v3344_v14 = vunpack.c.h.bf16 %v2483_v4  ;;  %3900 = vmatpush2.msra.mxu0 %v3359_v2  ;;  %v3343_v15 = vunpack.c.l.bf16 %v2483_v4 }
 0x568   :  { %v2479_v10 = vld [vmem:[#allocation6 + $0xac0] sm:$0xff]  ;;  %v3600_v63 = vunpack.c.h.bf16 %v2611_v5  ;;  %3971 = vmatpush2.msra.mxu1 %v3615_v3  ;;  %v3599_v16 = vunpack.c.l.bf16 %v2611_v5  ;;  %3901 = vmatprep.subr.mxu0 %v3352_v6 }
 0x569   :  { %v2607_v12 = vld [vmem:[#allocation6 + $0xec0] sm:$0xff]  ;;  %3972 = vmatprep.subr.mxu1 %v3608_v7  ;;  %v3336_v21 = vunpack.c.h.bf16 %v2479_v10  ;;  %3902 = vmatpush2.msra.mxu0 %v3351_v8  ;;  %v3335_v59 = vunpack.c.l.bf16 %v2479_v10  ;;  %v2196_v7 = vld [vmem:[#allocation6 + $0x1e8] sm:$0xff] }
 0x56a   :  { %v2475_v0 = vld [vmem:[#allocation6 + $0xaa0] sm:$0xff]  ;;  %v3592_v22 = vunpack.c.h.bf16 %v2607_v12  ;;  %3973 = vmatpush2.msra.mxu1 %v3607_v9  ;;  %v3591_v23 = vunpack.c.l.bf16 %v2607_v12  ;;  %3903 = vmatprep.subr.mxu0 %v3344_v14  ;;  %v2324_v9 = vld [vmem:[#allocation6 + $0x5e8] sm:$0xff]  ;;  %v2770_v12 = vunpack.c.h.bf16 %v2196_v7 }
 0x56b   :  { %v2603_v19 = vld [vmem:[#allocation6 + $0xea0] sm:$0xff]  ;;  %3974 = vmatprep.subr.mxu1 %v3600_v63  ;;  %v3328_v30 = vunpack.c.h.bf16 %v2475_v0  ;;  %3904 = vmatpush2.msra.mxu0 %v3343_v15  ;;  %v3327_v32 = vunpack.c.l.bf16 %v2475_v0  ;;  %v2192_v14 = vld [vmem:[#allocation6 + $0x1c8] sm:$0xff]  ;;  %v3026_v15 = vunpack.c.h.bf16 %v2324_v9  ;;  %v3025_v0 = vunpack.c.l.bf16 %v2324_v9 }
 0x56c   :  { %v2471_v60 = vld [vmem:[#allocation6 + $0xa80] sm:$0xff]  ;;  %v3584_v31 = vunpack.c.h.bf16 %v2603_v19  ;;  %3975 = vmatpush2.msra.mxu1 %v3599_v16  ;;  %v3583_v33 = vunpack.c.l.bf16 %v2603_v19  ;;  %3905 = vmatprep.subr.mxu0 %v3336_v21  ;;  %v2320_v63 = vld [vmem:[#allocation6 + $0x5c8] sm:$0xff]  ;;  %v2769_v16 = vunpack.c.l.bf16 %v2196_v7 }
 0x56d   :  { %v2599_v25 = vld [vmem:[#allocation6 + $0xe80] sm:$0xff]  ;;  %3976 = vmatprep.subr.mxu1 %v3592_v22  ;;  %v3320_v36 = vunpack.c.h.bf16 %v2471_v60  ;;  %3906 = vmatpush2.msra.mxu0 %v3335_v59  ;;  %v3319_v38 = vunpack.c.l.bf16 %v2471_v60  ;;  %v2188_v19 = vld [vmem:[#allocation6 + $0x1a8] sm:$0xff]  ;;  %v2762_v22 = vunpack.c.h.bf16 %v2192_v14  ;;  %v3018_v59 = vunpack.c.h.bf16 %v2320_v63 }
 0x56e   :  { %v2467_v34 = vld [vmem:[#allocation6 + $0xa60] sm:$0xff]  ;;  %v3576_v37 = vunpack.c.h.bf16 %v2599_v25  ;;  %3977 = vmatpush2.msra.mxu1 %v3591_v23  ;;  %v3575_v39 = vunpack.c.l.bf16 %v2599_v25  ;;  %3907 = vmatprep.subr.mxu0 %v3328_v30  ;;  %v2316_v21 = vld [vmem:[#allocation6 + $0x5a8] sm:$0xff]  ;;  %v2761_v23 = vunpack.c.l.bf16 %v2192_v14  ;;  %v3017_v60 = vunpack.c.l.bf16 %v2320_v63 }
 0x56f   :  { %v2595_v35 = vld [vmem:[#allocation6 + $0xe60] sm:$0xff]  ;;  %3978 = vmatprep.subr.mxu1 %v3584_v31  ;;  %v3312_v49 = vunpack.c.h.bf16 %v2467_v34  ;;  %3908 = vmatpush2.msra.mxu0 %v3327_v32  ;;  %v3311_v51 = vunpack.c.l.bf16 %v2467_v34  ;;  %v2184_v25 = vld [vmem:[#allocation6 + $0x188] sm:$0xff]  ;;  %v2754_v31 = vunpack.c.h.bf16 %v2188_v19  ;;  %v3010_v32 = vunpack.c.h.bf16 %v2316_v21 }
 0x570   :  { %v2463_v40 = vld [vmem:[#allocation6 + $0xa40] sm:$0xff]  ;;  %v3568_v50 = vunpack.c.h.bf16 %v2595_v35  ;;  %3979 = vmatpush2.msra.mxu1 %v3583_v33  ;;  %v3567_v52 = vunpack.c.l.bf16 %v2595_v35  ;;  %3909 = vmatprep.subr.mxu0 %v3320_v36  ;;  %v2312_v30 = vld [vmem:[#allocation6 + $0x588] sm:$0xff]  ;;  %v2753_v33 = vunpack.c.l.bf16 %v2188_v19  ;;  %v3009_v34 = vunpack.c.l.bf16 %v2316_v21 }
 0x571   :  { %v2591_v42 = vld [vmem:[#allocation6 + $0xe40] sm:$0xff]  ;;  %3980 = vmatprep.subr.mxu1 %v3576_v37  ;;  %v3304_v54 = vunpack.c.h.bf16 %v2463_v40  ;;  %3910 = vmatpush2.msra.mxu0 %v3319_v38  ;;  %v3303_v56 = vunpack.c.l.bf16 %v2463_v40  ;;  %v2180_v35 = vld [vmem:[#allocation6 + $0x168] sm:$0xff]  ;;  %v2746_v37 = vunpack.c.h.bf16 %v2184_v25  ;;  %v3002_v38 = vunpack.c.h.bf16 %v2312_v30 }
 0x572   :  { %v2459_v53 = vld [vmem:[#allocation6 + $0xa20] sm:$0xff]  ;;  %v3560_v55 = vunpack.c.h.bf16 %v2591_v42  ;;  %3981 = vmatpush2.msra.mxu1 %v3575_v39  ;;  %v3559_v57 = vunpack.c.l.bf16 %v2591_v42  ;;  %3911 = vmatprep.subr.mxu0 %v3312_v49  ;;  %v2308_v36 = vld [vmem:[#allocation6 + $0x568] sm:$0xff]  ;;  %v2745_v39 = vunpack.c.l.bf16 %v2184_v25  ;;  %v3001_v40 = vunpack.c.l.bf16 %v2312_v30 }
 0x573   :  { %v2587_v28 = vld [vmem:[#allocation6 + $0xe20] sm:$0xff]  ;;  %3982 = vmatprep.subr.mxu1 %v3568_v50  ;;  %v3296_v46 = vunpack.c.h.bf16 %v2459_v53  ;;  %3912 = vmatpush2.msra.mxu0 %v3311_v51  ;;  %v3295_v3 = vunpack.c.l.bf16 %v2459_v53  ;;  %v2176_v42 = vld [vmem:[#allocation6 + $0x148] sm:$0xff]  ;;  %v2738_v50 = vunpack.c.h.bf16 %v2180_v35  ;;  %v2994_v51 = vunpack.c.h.bf16 %v2308_v36 }
 0x574   :  { %v2455_v58 = vld [vmem:[#allocation6 + $0xa00] sm:$0xff]  ;;  %v3552_v2 = vunpack.c.h.bf16 %v2587_v28  ;;  %3983 = vmatpush2.msra.mxu1 %v3567_v52  ;;  %v3551_v4 = vunpack.c.l.bf16 %v2587_v28  ;;  %3913 = vmatprep.subr.mxu0 %v3304_v54  ;;  %v2304_v49 = vld [vmem:[#allocation6 + $0x548] sm:$0xff]  ;;  %v2737_v52 = vunpack.c.l.bf16 %v2180_v35  ;;  %v2993_v53 = vunpack.c.l.bf16 %v2308_v36 }
 0x575   :  { %v2583_v62 = vld [vmem:[#allocation6 + $0xe00] sm:$0xff]  ;;  %3984 = vmatprep.subr.mxu1 %v3560_v55  ;;  %v3288_v5 = vunpack.c.h.bf16 %v2455_v58  ;;  %3914 = vmatpush2.msra.mxu0 %v3303_v56  ;;  %v3287_v8 = vunpack.c.l.bf16 %v2455_v58  ;;  %v2172_v28 = vld [vmem:[#allocation6 + $0x128] sm:$0xff]  ;;  %v2730_v55 = vunpack.c.h.bf16 %v2176_v42  ;;  %v2986_v56 = vunpack.c.h.bf16 %v2304_v49 }
 0x576   :  { %v3544_v6 = vunpack.c.h.bf16 %v2583_v62  ;;  %3985 = vmatpush2.msra.mxu1 %v3559_v57  ;;  %3915 = vmatprep.subr.mxu0 %v3296_v46  ;;  %v3543_v10 = vunpack.c.l.bf16 %v2583_v62  ;;  %v2300_v54 = vld [vmem:[#allocation6 + $0x528] sm:$0xff]  ;;  %v2729_v57 = vunpack.c.l.bf16 %v2176_v42  ;;  %v2985_v58 = vunpack.c.l.bf16 %v2304_v49 }
 0x577   :  { %3986 = vmatprep.subr.mxu1 %v3552_v2  ;;  %3916 = vmatpush2.msra.mxu0 %v3295_v3  ;;  %v2168_v62 = vld [vmem:[#allocation6 + $0x108] sm:$0xff]  ;;  %v2722_v2 = vunpack.c.h.bf16 %v2172_v28  ;;  %v2978_v3 = vunpack.c.h.bf16 %v2300_v54 }
 0x578   :  { %3987 = vmatpush2.msra.mxu1 %v3551_v4  ;;  %3917 = vmatprep.subr.mxu0 %v3288_v5  ;;  %v2296_v46 = vld [vmem:[#allocation6 + $0x508] sm:$0xff]  ;;  %v2721_v4 = vunpack.c.l.bf16 %v2172_v28  ;;  %v2977_v5 = vunpack.c.l.bf16 %v2300_v54 }
 0x579   :  { %3988 = vmatprep.subr.mxu1 %v3544_v6  ;;  %3918 = vmatpush2.msra.mxu0 %v3287_v8  ;;  %v2164_v6 = vld [vmem:[#allocation6 + $0xe8] sm:$0xff]  ;;  %v2714_v8 = vunpack.c.h.bf16 %v2168_v62  ;;  %v2970_v9 = vunpack.c.h.bf16 %v2296_v46 }
 0x57a   :  { %3919 = vmatprep.mubr.f32.mxu0 %v5310_v44  ;;  %3989 = vmatpush2.msra.mxu1 %v3543_v10  ;;  %v2292_v7 = vld [vmem:[#allocation6 + $0x4e8] sm:$0xff]  ;;  %v2713_v10 = vunpack.c.l.bf16 %v2168_v62 }
 0x57b   :  { %3920 = vmatmul.mubr.f32.vlgmr.msra.gmra.mxu0 %v5308_v41  ;;  %3990 = vmatprep.mubr.f32.mxu1 %v5322_v1  ;;  %v2160_v14 = vld [vmem:[#allocation6 + $0xc8] sm:$0xff]  ;;  %v2961_v19 = vunpack.c.l.bf16 %v2292_v7 }
 0x57c   :  { %3997 = vmatprep.subr.mxu0 %v2770_v12  ;;  %4068 = vmatprep.subr.mxu1 %v3026_v15  ;;  %v2969_v12 = vunpack.c.l.bf16 %v2296_v46  ;;  %v2288_v63 = vld [vmem:[#allocation6 + $0x4c8] sm:$0xff]  ;;  %v2706_v15 = vunpack.c.h.bf16 %v2164_v6 }
 0x57d   :  { %3991 = vmatmul.mubr.f32.vlgmr.msra.gmra.mxu1 %v5320_v61  ;;  %3998 = vmatpush1.msra.mxu0 %v2769_v16  ;;  %v2962_v16 = vunpack.c.h.bf16 %v2292_v7  ;;  %v2156_v21 = vld [vmem:[#allocation6 + $0xa8] sm:$0xff]  ;;  %v2953_v25 = vunpack.c.l.bf16 %v2288_v63 }
 0x57e   :  { %4069 = vmatpush1.msra.mxu1 %v3025_v0  ;;  %3999 = vmatprep.subr.mxu0 %v2762_v22  ;;  %v2705_v0 = vunpack.c.l.bf16 %v2164_v6  ;;  %v2284_v22 = vld [vmem:[#allocation6 + $0x4a8] sm:$0xff] }
 0x57f   :  { %4070 = vmatprep.subr.mxu1 %v3018_v59  ;;  %4000 = vmatpush1.msra.mxu0 %v2761_v23  ;;  %v2698_v59 = vunpack.c.h.bf16 %v2160_v14  ;;  %v2954_v23 = vunpack.c.h.bf16 %v2288_v63  ;;  %v2152_v30 = vld [vmem:[#allocation6 + $0x88] sm:$0xff]  ;;  %v2945_v35 = vunpack.c.l.bf16 %v2284_v22 }
 0x580   :  { %4071 = vmatpush1.msra.mxu1 %v3017_v60  ;;  %4001 = vmatprep.subr.mxu0 %v2754_v31  ;;  %v2697_v60 = vunpack.c.l.bf16 %v2160_v14  ;;  %v2280_v31 = vld [vmem:[#allocation6 + $0x488] sm:$0xff] }
 0x581   :  { %4072 = vmatprep.subr.mxu1 %v3010_v32  ;;  %4002 = vmatpush1.msra.mxu0 %v2753_v33  ;;  %v2690_v32 = vunpack.c.h.bf16 %v2156_v21  ;;  %v2946_v33 = vunpack.c.h.bf16 %v2284_v22  ;;  %v2148_v36 = vld [vmem:[#allocation6 + $0x68] sm:$0xff]  ;;  %v2937_v42 = vunpack.c.l.bf16 %v2280_v31 }
 0x582   :  { %4073 = vmatpush1.msra.mxu1 %v3009_v34  ;;  %4003 = vmatprep.subr.mxu0 %v2746_v37  ;;  %v2689_v34 = vunpack.c.l.bf16 %v2156_v21  ;;  %v2276_v37 = vld [vmem:[#allocation6 + $0x468] sm:$0xff] }
 0x583   :  { %4074 = vmatprep.subr.mxu1 %v3002_v38  ;;  %4004 = vmatpush1.msra.mxu0 %v2745_v39  ;;  %v2682_v38 = vunpack.c.h.bf16 %v2152_v30  ;;  %v2938_v39 = vunpack.c.h.bf16 %v2280_v31  ;;  %v2144_v49 = vld [vmem:[#allocation6 + $0x48] sm:$0xff]  ;;  %v2929_v28 = vunpack.c.l.bf16 %v2276_v37 }
 0x584   :  { %4075 = vmatpush1.msra.mxu1 %v3001_v40  ;;  %4005 = vmatprep.subr.mxu0 %v2738_v50  ;;  %v2681_v40 = vunpack.c.l.bf16 %v2152_v30  ;;  %v2272_v50 = vld [vmem:[#allocation6 + $0x448] sm:$0xff] }
 0x585   :  { %4076 = vmatprep.subr.mxu1 %v2994_v51  ;;  %4006 = vmatpush1.msra.mxu0 %v2737_v52  ;;  %v2674_v51 = vunpack.c.h.bf16 %v2148_v36  ;;  %v2930_v52 = vunpack.c.h.bf16 %v2276_v37  ;;  %v2140_v54 = vld [vmem:[#allocation6 + $0x28] sm:$0xff]  ;;  %v2921_v62 = vunpack.c.l.bf16 %v2272_v50 }
 0x586   :  { %4077 = vmatpush1.msra.mxu1 %v2993_v53  ;;  %4007 = vmatprep.subr.mxu0 %v2730_v55  ;;  %v2673_v53 = vunpack.c.l.bf16 %v2148_v36  ;;  %v2268_v55 = vld [vmem:[#allocation6 + $0x428] sm:$0xff] }
 0x587   :  { %4078 = vmatprep.subr.mxu1 %v2986_v56  ;;  %4008 = vmatpush1.msra.mxu0 %v2729_v57  ;;  %v2666_v56 = vunpack.c.h.bf16 %v2144_v49  ;;  %v2922_v57 = vunpack.c.h.bf16 %v2272_v50  ;;  %v2136_v46 = vld [vmem:[#allocation6 + $0x8] sm:$0xff]  ;;  %v2913_v6 = vunpack.c.l.bf16 %v2268_v55 }
 0x588   :  { %4079 = vmatpush1.msra.mxu1 %v2985_v58  ;;  %4009 = vmatprep.subr.mxu0 %v2722_v2  ;;  %v2665_v58 = vunpack.c.l.bf16 %v2144_v49  ;;  %v2264_v2 = vld [vmem:[#allocation6 + $0x408] sm:$0xff] }
 0x589   :  { %4080 = vmatprep.subr.mxu1 %v2978_v3  ;;  %4010 = vmatpush1.msra.mxu0 %v2721_v4  ;;  %v2658_v3 = vunpack.c.h.bf16 %v2140_v54  ;;  %v2914_v4 = vunpack.c.h.bf16 %v2268_v55  ;;  %v2260_v7 = vld [vmem:[#allocation6 + $0x3e8] sm:$0xff]  ;;  %v2905_v14 = vunpack.c.l.bf16 %v2264_v2 }
 0x58a   :  { %4081 = vmatpush1.msra.mxu1 %v2977_v5  ;;  %4011 = vmatprep.subr.mxu0 %v2714_v8  ;;  %v2657_v5 = vunpack.c.l.bf16 %v2140_v54  ;;  %v2388_v8 = vld [vmem:[#allocation6 + $0x7e8] sm:$0xff] }
 0x58b   :  { %4082 = vmatprep.subr.mxu1 %v2970_v9  ;;  %4012 = vmatpush1.msra.mxu0 %v2713_v10  ;;  %v2650_v9 = vunpack.c.h.bf16 %v2136_v46  ;;  %v2906_v10 = vunpack.c.h.bf16 %v2264_v2  ;;  %v2256_v63 = vld [vmem:[#allocation6 + $0x3c8] sm:$0xff]  ;;  %v3153_v21 = vunpack.c.l.bf16 %v2388_v8 }
 0x58c   :  { %4083 = vmatpush1.msra.mxu1 %v2969_v12  ;;  %4013 = vmatprep.subr.mxu0 %v2706_v15  ;;  %v2649_v12 = vunpack.c.l.bf16 %v2136_v46  ;;  %v2384_v15 = vld [vmem:[#allocation6 + $0x7c8] sm:$0xff] }
 0x58d   :  { %4084 = vmatprep.subr.mxu1 %v2962_v16  ;;  %4014 = vmatpush1.msra.mxu0 %v2705_v0  ;;  %v2898_v16 = vunpack.c.h.bf16 %v2260_v7  ;;  %v3154_v0 = vunpack.c.h.bf16 %v2388_v8  ;;  %v2252_v22 = vld [vmem:[#allocation6 + $0x3a8] sm:$0xff]  ;;  %v3145_v30 = vunpack.c.l.bf16 %v2384_v15 }
 0x58e   :  { %4085 = vmatpush1.msra.mxu1 %v2961_v19  ;;  %4015 = vmatprep.subr.mxu0 %v2698_v59  ;;  %v2897_v19 = vunpack.c.l.bf16 %v2260_v7  ;;  %v2380_v59 = vld [vmem:[#allocation6 + $0x7a8] sm:$0xff] }
 0x58f   :  { %4086 = vmatprep.subr.mxu1 %v2954_v23  ;;  %4016 = vmatpush1.msra.mxu0 %v2697_v60  ;;  %v2890_v23 = vunpack.c.h.bf16 %v2256_v63  ;;  %v3146_v60 = vunpack.c.h.bf16 %v2384_v15  ;;  %v2248_v31 = vld [vmem:[#allocation6 + $0x388] sm:$0xff]  ;;  %v3137_v36 = vunpack.c.l.bf16 %v2380_v59 }
 0x590   :  { %4087 = vmatpush1.msra.mxu1 %v2953_v25  ;;  %4017 = vmatprep.subr.mxu0 %v2690_v32  ;;  %v2889_v25 = vunpack.c.l.bf16 %v2256_v63  ;;  %v2376_v32 = vld [vmem:[#allocation6 + $0x788] sm:$0xff] }
 0x591   :  { %4088 = vmatprep.subr.mxu1 %v2946_v33  ;;  %4018 = vmatpush1.msra.mxu0 %v2689_v34  ;;  %v2882_v33 = vunpack.c.h.bf16 %v2252_v22  ;;  %v3138_v34 = vunpack.c.h.bf16 %v2380_v59  ;;  %v2244_v37 = vld [vmem:[#allocation6 + $0x368] sm:$0xff]  ;;  %v3129_v49 = vunpack.c.l.bf16 %v2376_v32 }
 0x592   :  { %4089 = vmatpush1.msra.mxu1 %v2945_v35  ;;  %4019 = vmatprep.subr.mxu0 %v2682_v38  ;;  %v2881_v35 = vunpack.c.l.bf16 %v2252_v22  ;;  %v2372_v38 = vld [vmem:[#allocation6 + $0x768] sm:$0xff] }
 0x593   :  { %4090 = vmatprep.subr.mxu1 %v2938_v39  ;;  %4020 = vmatpush1.msra.mxu0 %v2681_v40  ;;  %v2874_v39 = vunpack.c.h.bf16 %v2248_v31  ;;  %v3130_v40 = vunpack.c.h.bf16 %v2376_v32  ;;  %v2240_v50 = vld [vmem:[#allocation6 + $0x348] sm:$0xff]  ;;  %v3121_v54 = vunpack.c.l.bf16 %v2372_v38 }
 0x594   :  { %4091 = vmatpush1.msra.mxu1 %v2937_v42  ;;  %4021 = vmatprep.subr.mxu0 %v2674_v51  ;;  %v2873_v42 = vunpack.c.l.bf16 %v2248_v31  ;;  %v2368_v51 = vld [vmem:[#allocation6 + $0x748] sm:$0xff] }
 0x595   :  { %4092 = vmatprep.subr.mxu1 %v2930_v52  ;;  %4022 = vmatpush1.msra.mxu0 %v2673_v53  ;;  %v2866_v52 = vunpack.c.h.bf16 %v2244_v37  ;;  %v3122_v53 = vunpack.c.h.bf16 %v2372_v38  ;;  %v2236_v55 = vld [vmem:[#allocation6 + $0x328] sm:$0xff]  ;;  %v3113_v46 = vunpack.c.l.bf16 %v2368_v51 }
 0x596   :  { %4093 = vmatpush1.msra.mxu1 %v2929_v28  ;;  %4023 = vmatprep.subr.mxu0 %v2666_v56  ;;  %v2865_v28 = vunpack.c.l.bf16 %v2244_v37  ;;  %v2364_v56 = vld [vmem:[#allocation6 + $0x728] sm:$0xff] }
 0x597   :  { %4094 = vmatprep.subr.mxu1 %v2922_v57  ;;  %4024 = vmatpush1.msra.mxu0 %v2665_v58  ;;  %v2858_v57 = vunpack.c.h.bf16 %v2240_v50  ;;  %v3114_v58 = vunpack.c.h.bf16 %v2368_v51  ;;  %v2232_v2 = vld [vmem:[#allocation6 + $0x308] sm:$0xff]  ;;  %v3105_v7 = vunpack.c.l.bf16 %v2364_v56 }
 0x598   :  { %4095 = vmatpush1.msra.mxu1 %v2921_v62  ;;  %4025 = vmatprep.subr.mxu0 %v2658_v3  ;;  %v2857_v62 = vunpack.c.l.bf16 %v2240_v50  ;;  %v2360_v3 = vld [vmem:[#allocation6 + $0x708] sm:$0xff] }
 0x599   :  { %4096 = vmatprep.subr.mxu1 %v2914_v4  ;;  %4026 = vmatpush1.msra.mxu0 %v2657_v5  ;;  %v2850_v4 = vunpack.c.h.bf16 %v2236_v55  ;;  %v3106_v5 = vunpack.c.h.bf16 %v2364_v56  ;;  %v2228_v8 = vld [vmem:[#allocation6 + $0x2e8] sm:$0xff]  ;;  %v3097_v63 = vunpack.c.l.bf16 %v2360_v3 }
 0x59a   :  { %4097 = vmatpush1.msra.mxu1 %v2913_v6  ;;  %4027 = vmatprep.subr.mxu0 %v2650_v9  ;;  %v2849_v6 = vunpack.c.l.bf16 %v2236_v55  ;;  %v2356_v9 = vld [vmem:[#allocation6 + $0x6e8] sm:$0xff] }
 0x59b   :  { %4098 = vmatprep.subr.mxu1 %v2906_v10  ;;  %4028 = vmatpush1.msra.mxu0 %v2649_v12  ;;  %v2842_v10 = vunpack.c.h.bf16 %v2232_v2  ;;  %v3098_v12 = vunpack.c.h.bf16 %v2360_v3  ;;  %v2224_v15 = vld [vmem:[#allocation6 + $0x2c8] sm:$0xff]  ;;  %v3089_v22 = vunpack.c.l.bf16 %v2356_v9 }
 0x59c   :  { %4099 = vmatpush1.msra.mxu1 %v2905_v14  ;;  %4029 = vmatprep.subr.mxu0 %v2898_v16  ;;  %v2841_v14 = vunpack.c.l.bf16 %v2232_v2  ;;  %v2352_v16 = vld [vmem:[#allocation6 + $0x6c8] sm:$0xff] }
 0x59d   :  { %4100 = vmatprep.subr.mxu1 %v3154_v0  ;;  %4030 = vmatpush2.msra.mxu0 %v2897_v19  ;;  %v2834_v0 = vunpack.c.h.bf16 %v2228_v8  ;;  %v3090_v19 = vunpack.c.h.bf16 %v2356_v9  ;;  %v2220_v59 = vld [vmem:[#allocation6 + $0x2a8] sm:$0xff]  ;;  %v3081_v31 = vunpack.c.l.bf16 %v2352_v16 }
 0x59e   :  { %4101 = vmatpush2.msra.mxu1 %v3153_v21  ;;  %4031 = vmatprep.subr.mxu0 %v2890_v23  ;;  %v2833_v21 = vunpack.c.l.bf16 %v2228_v8  ;;  %v2348_v23 = vld [vmem:[#allocation6 + $0x6a8] sm:$0xff] }
 0x59f   :  { %4102 = vmatprep.subr.mxu1 %v3146_v60  ;;  %4032 = vmatpush2.msra.mxu0 %v2889_v25  ;;  %v2826_v60 = vunpack.c.h.bf16 %v2224_v15  ;;  %v3082_v25 = vunpack.c.h.bf16 %v2352_v16  ;;  %v2216_v32 = vld [vmem:[#allocation6 + $0x288] sm:$0xff]  ;;  %v3073_v37 = vunpack.c.l.bf16 %v2348_v23 }
 0x5a0   :  { %4103 = vmatpush2.msra.mxu1 %v3145_v30  ;;  %4033 = vmatprep.subr.mxu0 %v2882_v33  ;;  %v2825_v30 = vunpack.c.l.bf16 %v2224_v15  ;;  %v2344_v33 = vld [vmem:[#allocation6 + $0x688] sm:$0xff] }
 0x5a1   :  { %4104 = vmatprep.subr.mxu1 %v3138_v34  ;;  %4034 = vmatpush2.msra.mxu0 %v2881_v35  ;;  %v2818_v34 = vunpack.c.h.bf16 %v2220_v59  ;;  %v3074_v35 = vunpack.c.h.bf16 %v2348_v23  ;;  %v2212_v38 = vld [vmem:[#allocation6 + $0x268] sm:$0xff]  ;;  %v3065_v50 = vunpack.c.l.bf16 %v2344_v33 }
 0x5a2   :  { %4105 = vmatpush2.msra.mxu1 %v3137_v36  ;;  %4035 = vmatprep.subr.mxu0 %v2874_v39  ;;  %v2817_v36 = vunpack.c.l.bf16 %v2220_v59  ;;  %v2340_v39 = vld [vmem:[#allocation6 + $0x668] sm:$0xff] }
 0x5a3   :  { %4106 = vmatprep.subr.mxu1 %v3130_v40  ;;  %4036 = vmatpush2.msra.mxu0 %v2873_v42  ;;  %v2810_v40 = vunpack.c.h.bf16 %v2216_v32  ;;  %v3066_v42 = vunpack.c.h.bf16 %v2344_v33  ;;  %v2208_v51 = vld [vmem:[#allocation6 + $0x248] sm:$0xff]  ;;  %v3057_v55 = vunpack.c.l.bf16 %v2340_v39 }
 0x5a4   :  { %4107 = vmatpush2.msra.mxu1 %v3129_v49  ;;  %4037 = vmatprep.subr.mxu0 %v2866_v52  ;;  %v2809_v49 = vunpack.c.l.bf16 %v2216_v32  ;;  %v2336_v52 = vld [vmem:[#allocation6 + $0x648] sm:$0xff] }
 0x5a5   :  { %4108 = vmatprep.subr.mxu1 %v3122_v53  ;;  %4038 = vmatpush2.msra.mxu0 %v2865_v28  ;;  %v2802_v53 = vunpack.c.h.bf16 %v2212_v38  ;;  %v3058_v28 = vunpack.c.h.bf16 %v2340_v39  ;;  %v2204_v56 = vld [vmem:[#allocation6 + $0x228] sm:$0xff]  ;;  %v3049_v2 = vunpack.c.l.bf16 %v2336_v52 }
 0x5a6   :  { %4109 = vmatpush2.msra.mxu1 %v3121_v54  ;;  %4039 = vmatprep.subr.mxu0 %v2858_v57  ;;  %v2801_v54 = vunpack.c.l.bf16 %v2212_v38  ;;  %v2332_v57 = vld [vmem:[#allocation6 + $0x628] sm:$0xff] }
 0x5a7   :  { %4110 = vmatprep.subr.mxu1 %v3114_v58  ;;  %4040 = vmatpush2.msra.mxu0 %v2857_v62  ;;  %v2794_v58 = vunpack.c.h.bf16 %v2208_v51  ;;  %v3050_v62 = vunpack.c.h.bf16 %v2336_v52  ;;  %v2200_v3 = vld [vmem:[#allocation6 + $0x208] sm:$0xff]  ;;  %v3041_v8 = vunpack.c.l.bf16 %v2332_v57 }
 0x5a8   :  { %4111 = vmatpush2.msra.mxu1 %v3113_v46  ;;  %4041 = vmatprep.subr.mxu0 %v2850_v4  ;;  %v2793_v46 = vunpack.c.l.bf16 %v2208_v51  ;;  %v2328_v4 = vld [vmem:[#allocation6 + $0x608] sm:$0xff]  ;;  %v2778_v9 = vunpack.c.h.bf16 %v2200_v3 }
 0x5a9   :  { %4112 = vmatprep.subr.mxu1 %v3106_v5  ;;  %4042 = vmatpush2.msra.mxu0 %v2849_v6  ;;  %v2786_v5 = vunpack.c.h.bf16 %v2204_v56  ;;  %v3042_v6 = vunpack.c.h.bf16 %v2332_v57  ;;  %v3033_v15 = vunpack.c.l.bf16 %v2328_v4  ;;  %v2444_v23 = vld [vmem:[#allocation6 + $0x9a8] sm:$0xff] }
 0x5aa   :  { %4113 = vmatpush2.msra.mxu1 %v3105_v7  ;;  %4043 = vmatprep.subr.mxu0 %v2842_v10  ;;  %v2785_v7 = vunpack.c.l.bf16 %v2204_v56  ;;  %v3034_v10 = vunpack.c.h.bf16 %v2328_v4  ;;  %v2440_v33 = vld [vmem:[#allocation6 + $0x988] sm:$0xff] }
 0x5ab   :  { %4114 = vmatprep.subr.mxu1 %v3098_v12  ;;  %4044 = vmatpush2.msra.mxu0 %v2841_v14  ;;  %v2452_v12 = vld [vmem:[#allocation6 + $0x9e8] sm:$0xff]  ;;  %v2777_v14 = vunpack.c.l.bf16 %v2200_v3 }
 0x5ac   :  { %4115 = vmatpush2.msra.mxu1 %v3097_v63  ;;  %4045 = vmatprep.subr.mxu0 %v2834_v0  ;;  %v2580_v63 = vld [vmem:[#allocation6 + $0xde8] sm:$0xff]  ;;  %v3282_v16 = vunpack.c.h.bf16 %v2452_v12 }
 0x5ad   :  { %4116 = vmatprep.subr.mxu1 %v3090_v19  ;;  %4046 = vmatpush2.msra.mxu0 %v2833_v21  ;;  %v2448_v0 = vld [vmem:[#allocation6 + $0x9c8] sm:$0xff]  ;;  %v3538_v21 = vunpack.c.h.bf16 %v2580_v63  ;;  %v3537_v59 = vunpack.c.l.bf16 %v2580_v63 }
 0x5ae   :  { %4117 = vmatpush2.msra.mxu1 %v3089_v22  ;;  %4047 = vmatprep.subr.mxu0 %v2826_v60  ;;  %v2576_v19 = vld [vmem:[#allocation6 + $0xdc8] sm:$0xff]  ;;  %v3281_v22 = vunpack.c.l.bf16 %v2452_v12 }
 0x5af   :  { %4118 = vmatprep.subr.mxu1 %v3082_v25  ;;  %4048 = vmatpush2.msra.mxu0 %v2825_v30  ;;  %v2572_v60 = vld [vmem:[#allocation6 + $0xda8] sm:$0xff]  ;;  %v3274_v25 = vunpack.c.h.bf16 %v2448_v0  ;;  %v3530_v30 = vunpack.c.h.bf16 %v2576_v19  ;;  %v3529_v32 = vunpack.c.l.bf16 %v2576_v19 }
 0x5b0   :  { %4119 = vmatpush2.msra.mxu1 %v3081_v31  ;;  %4049 = vmatprep.subr.mxu0 %v2818_v34  ;;  %v3273_v31 = vunpack.c.l.bf16 %v2448_v0  ;;  %v2568_v34 = vld [vmem:[#allocation6 + $0xd88] sm:$0xff]  ;;  %v3521_v38 = vunpack.c.l.bf16 %v2572_v60 }
 0x5b1   :  { %4120 = vmatprep.subr.mxu1 %v3074_v35  ;;  %4050 = vmatpush2.msra.mxu0 %v2817_v36  ;;  %v3266_v35 = vunpack.c.h.bf16 %v2444_v23  ;;  %v3522_v36 = vunpack.c.h.bf16 %v2572_v60  ;;  %v2436_v39 = vld [vmem:[#allocation6 + $0x968] sm:$0xff]  ;;  %v3513_v51 = vunpack.c.l.bf16 %v2568_v34 }
 0x5b2   :  { %4121 = vmatpush2.msra.mxu1 %v3073_v37  ;;  %4051 = vmatprep.subr.mxu0 %v2810_v40  ;;  %v3265_v37 = vunpack.c.l.bf16 %v2444_v23  ;;  %v2564_v40 = vld [vmem:[#allocation6 + $0xd68] sm:$0xff] }
 0x5b3   :  { %4122 = vmatprep.subr.mxu1 %v3066_v42  ;;  %4052 = vmatpush2.msra.mxu0 %v2809_v49  ;;  %v3258_v42 = vunpack.c.h.bf16 %v2440_v33  ;;  %v3514_v49 = vunpack.c.h.bf16 %v2568_v34  ;;  %v2432_v52 = vld [vmem:[#allocation6 + $0x948] sm:$0xff]  ;;  %v3505_v56 = vunpack.c.l.bf16 %v2564_v40 }
 0x5b4   :  { %4123 = vmatpush2.msra.mxu1 %v3065_v50  ;;  %4053 = vmatprep.subr.mxu0 %v2802_v53  ;;  %v3257_v50 = vunpack.c.l.bf16 %v2440_v33  ;;  %v2560_v53 = vld [vmem:[#allocation6 + $0xd48] sm:$0xff] }
 0x5b5   :  { %4124 = vmatprep.subr.mxu1 %v3058_v28  ;;  %4054 = vmatpush2.msra.mxu0 %v2801_v54  ;;  %v3250_v28 = vunpack.c.h.bf16 %v2436_v39  ;;  %v3506_v54 = vunpack.c.h.bf16 %v2564_v40  ;;  %v2428_v57 = vld [vmem:[#allocation6 + $0x928] sm:$0xff]  ;;  %v3497_v3 = vunpack.c.l.bf16 %v2560_v53 }
 0x5b6   :  { %4125 = vmatpush2.msra.mxu1 %v3057_v55  ;;  %4055 = vmatprep.subr.mxu0 %v2794_v58  ;;  %v3249_v55 = vunpack.c.l.bf16 %v2436_v39  ;;  %v2556_v58 = vld [vmem:[#allocation6 + $0xd28] sm:$0xff] }
 0x5b7   :  { %4126 = vmatprep.subr.mxu1 %v3050_v62  ;;  %4056 = vmatpush2.msra.mxu0 %v2793_v46  ;;  %v3242_v62 = vunpack.c.h.bf16 %v2432_v52  ;;  %v3498_v46 = vunpack.c.h.bf16 %v2560_v53  ;;  %v2424_v4 = vld [vmem:[#allocation6 + $0x908] sm:$0xff] }
 0x5b8   :  { %4127 = vmatpush2.msra.mxu1 %v3049_v2  ;;  %4057 = vmatprep.subr.mxu0 %v2786_v5  ;;  %v3241_v2 = vunpack.c.l.bf16 %v2432_v52  ;;  %v2552_v5 = vld [vmem:[#allocation6 + $0xd08] sm:$0xff] }
 0x5b9   :  { %4128 = vmatprep.subr.mxu1 %v3042_v6  ;;  %4058 = vmatpush2.msra.mxu0 %v2785_v7  ;;  %v3234_v6 = vunpack.c.h.bf16 %v2428_v57  ;;  %v3490_v7 = vunpack.c.h.bf16 %v2556_v58  ;;  %v2548_v12 = vld [vmem:[#allocation6 + $0xce8] sm:$0xff]  ;;  %v3482_v63 = vunpack.c.h.bf16 %v2552_v5 }
 0x5ba   :  { %4129 = vmatpush2.msra.mxu1 %v3041_v8  ;;  %4059 = vmatprep.subr.mxu0 %v2778_v9  ;;  %v3233_v8 = vunpack.c.l.bf16 %v2428_v57  ;;  %v3489_v9 = vunpack.c.l.bf16 %v2556_v58  ;;  %v2416_v0 = vld [vmem:[#allocation6 + $0x8c8] sm:$0xff]  ;;  %v3473_v23 = vunpack.c.l.bf16 %v2548_v12 }
 0x5bb   :  { %4130 = vmatprep.subr.mxu1 %v3034_v10  ;;  %4060 = vmatpush2.msra.mxu0 %v2777_v14  ;;  %v2420_v10 = vld [vmem:[#allocation6 + $0x8e8] sm:$0xff]  ;;  %v3226_v14 = vunpack.c.h.bf16 %v2424_v4 }
 0x5bc   :  { %4061 = vmatprep.mubr.f32.mxu0 %v5290_v13  ;;  %4131 = vmatpush2.msra.mxu1 %v3033_v15  ;;  %v3225_v15 = vunpack.c.l.bf16 %v2424_v4  ;;  %v2544_v19 = vld [vmem:[#allocation6 + $0xcc8] sm:$0xff] }
 0x5bd   :  { %4062 = vmatmul.mubr.f32.vlgmr.msra.gmra.mxu0 %v5288_v11  ;;  %4132 = vmatprep.mubr.f32.mxu1 %v5298_v26  ;;  %v2412_v60 = vld [vmem:[#allocation6 + $0x8a8] sm:$0xff]  ;;  %v3465_v33 = vunpack.c.l.bf16 %v2544_v19 }
 0x5be   :  { %4139 = vmatprep.subr.mxu0 %v3282_v16  ;;  %4210 = vmatprep.subr.mxu1 %v3538_v21  ;;  %v3481_v16 = vunpack.c.l.bf16 %v2552_v5  ;;  %v3218_v21 = vunpack.c.h.bf16 %v2420_v10  ;;  %v2408_v34 = vld [vmem:[#allocation6 + $0x888] sm:$0xff] }
 0x5bf   :  { %4133 = vmatmul.mubr.f32.vlgmr.msra.gmra.mxu1 %v5296_v24  ;;  %4140 = vmatpush1.msra.mxu0 %v3281_v22  ;;  %v3474_v22 = vunpack.c.h.bf16 %v2548_v12  ;;  %v2404_v40 = vld [vmem:[#allocation6 + $0x868] sm:$0xff] }
 0x5c0   :  { %4211 = vmatpush1.msra.mxu1 %v3537_v59  ;;  %4141 = vmatprep.subr.mxu0 %v3274_v25  ;;  %v3217_v59 = vunpack.c.l.bf16 %v2420_v10  ;;  %v2540_v25 = vld [vmem:[#allocation6 + $0xca8] sm:$0xff] }
 0x5c1   :  { %4212 = vmatprep.subr.mxu1 %v3530_v30  ;;  %4142 = vmatpush1.msra.mxu0 %v3273_v31  ;;  %v3210_v30 = vunpack.c.h.bf16 %v2416_v0  ;;  %v3466_v31 = vunpack.c.h.bf16 %v2544_v19  ;;  %v3457_v39 = vunpack.c.l.bf16 %v2540_v25  ;;  %v2400_v53 = vld [vmem:[#allocation6 + $0x848] sm:$0xff] }
 0x5c2   :  { %4213 = vmatpush1.msra.mxu1 %v3529_v32  ;;  %4143 = vmatprep.subr.mxu0 %v3266_v35  ;;  %v3209_v32 = vunpack.c.l.bf16 %v2416_v0  ;;  %v2536_v35 = vld [vmem:[#allocation6 + $0xc88] sm:$0xff] }
 0x5c3   :  { %4214 = vmatprep.subr.mxu1 %v3522_v36  ;;  %4144 = vmatpush1.msra.mxu0 %v3265_v37  ;;  %v3202_v36 = vunpack.c.h.bf16 %v2412_v60  ;;  %v3458_v37 = vunpack.c.h.bf16 %v2540_v25  ;;  %v3449_v52 = vunpack.c.l.bf16 %v2536_v35  ;;  %v2396_v58 = vld [vmem:[#allocation6 + $0x828] sm:$0xff] }
 0x5c4   :  { %4215 = vmatpush1.msra.mxu1 %v3521_v38  ;;  %4145 = vmatprep.subr.mxu0 %v3258_v42  ;;  %v3201_v38 = vunpack.c.l.bf16 %v2412_v60  ;;  %v2532_v42 = vld [vmem:[#allocation6 + $0xc68] sm:$0xff] }
 0x5c5   :  { %4216 = vmatprep.subr.mxu1 %v3514_v49  ;;  %4146 = vmatpush1.msra.mxu0 %v3257_v50  ;;  %v3194_v49 = vunpack.c.h.bf16 %v2408_v34  ;;  %v3450_v50 = vunpack.c.h.bf16 %v2536_v35  ;;  %v3441_v57 = vunpack.c.l.bf16 %v2532_v42  ;;  %v2392_v5 = vld [vmem:[#allocation6 + $0x808] sm:$0xff] }
 0x5c6   :  { %4217 = vmatpush1.msra.mxu1 %v3513_v51  ;;  %4147 = vmatprep.subr.mxu0 %v3250_v28  ;;  %v3193_v51 = vunpack.c.l.bf16 %v2408_v34  ;;  %v2528_v28 = vld [vmem:[#allocation6 + $0xc48] sm:$0xff] }
 0x5c7   :  { %4218 = vmatprep.subr.mxu1 %v3506_v54  ;;  %4148 = vmatpush1.msra.mxu0 %v3249_v55  ;;  %v3186_v54 = vunpack.c.h.bf16 %v2404_v40  ;;  %v3442_v55 = vunpack.c.h.bf16 %v2532_v42  ;;  %v3433_v4 = vunpack.c.l.bf16 %v2528_v28  ;;  %v2516_v12 = vld [vmem:[#allocation6 + $0xbe8] sm:$0xff] }
 0x5c8   :  { %4219 = vmatpush1.msra.mxu1 %v3505_v56  ;;  %4149 = vmatprep.subr.mxu0 %v3242_v62  ;;  %v3185_v56 = vunpack.c.l.bf16 %v2404_v40  ;;  %v2524_v62 = vld [vmem:[#allocation6 + $0xc28] sm:$0xff] }
 0x5c9   :  { %4220 = vmatprep.subr.mxu1 %v3498_v46  ;;  %4150 = vmatpush1.msra.mxu0 %v3241_v2  ;;  %v3178_v46 = vunpack.c.h.bf16 %v2400_v53  ;;  %v3434_v2 = vunpack.c.h.bf16 %v2528_v28  ;;  %v3425_v10 = vunpack.c.l.bf16 %v2524_v62  ;;  %v2512_v19 = vld [vmem:[#allocation6 + $0xbc8] sm:$0xff] }
 0x5ca   :  { %4221 = vmatpush1.msra.mxu1 %v3497_v3  ;;  %4151 = vmatprep.subr.mxu0 %v3234_v6  ;;  %v3177_v3 = vunpack.c.l.bf16 %v2400_v53  ;;  %v2520_v6 = vld [vmem:[#allocation6 + $0xc08] sm:$0xff] }
 0x5cb   :  { %4222 = vmatprep.subr.mxu1 %v3490_v7  ;;  %4152 = vmatpush1.msra.mxu0 %v3233_v8  ;;  %v3170_v7 = vunpack.c.h.bf16 %v2396_v58  ;;  %v3426_v8 = vunpack.c.h.bf16 %v2524_v62  ;;  %v3417_v0 = vunpack.c.l.bf16 %v2520_v6  ;;  %v2508_v25 = vld [vmem:[#allocation6 + $0xba8] sm:$0xff] }
 0x5cc   :  { %4223 = vmatpush1.msra.mxu1 %v3489_v9  ;;  %4153 = vmatprep.subr.mxu0 %v3226_v14  ;;  %v3169_v9 = vunpack.c.l.bf16 %v2396_v58  ;;  %v2644_v14 = vld [vmem:[#allocation6 + $0xfe8] sm:$0xff] }
 0x5cd   :  { %4224 = vmatprep.subr.mxu1 %v3482_v63  ;;  %4154 = vmatpush1.msra.mxu0 %v3225_v15  ;;  %v3162_v63 = vunpack.c.h.bf16 %v2392_v5  ;;  %v3418_v15 = vunpack.c.h.bf16 %v2520_v6  ;;  %v3665_v60 = vunpack.c.l.bf16 %v2644_v14  ;;  %v2504_v35 = vld [vmem:[#allocation6 + $0xb88] sm:$0xff] }
 0x5ce   :  { %4225 = vmatpush1.msra.mxu1 %v3481_v16  ;;  %4155 = vmatprep.subr.mxu0 %v3218_v21  ;;  %v3161_v16 = vunpack.c.l.bf16 %v2392_v5  ;;  %v2640_v21 = vld [vmem:[#allocation6 + $0xfc8] sm:$0xff] }
 0x5cf   :  { %4226 = vmatprep.subr.mxu1 %v3474_v22  ;;  %4156 = vmatpush1.msra.mxu0 %v3217_v59  ;;  %v3410_v22 = vunpack.c.h.bf16 %v2516_v12  ;;  %v3666_v59 = vunpack.c.h.bf16 %v2644_v14  ;;  %v3657_v34 = vunpack.c.l.bf16 %v2640_v21  ;;  %v2500_v42 = vld [vmem:[#allocation6 + $0xb68] sm:$0xff] }
 0x5d0   :  { %4227 = vmatpush1.msra.mxu1 %v3473_v23  ;;  %4157 = vmatprep.subr.mxu0 %v3210_v30  ;;  %v3409_v23 = vunpack.c.l.bf16 %v2516_v12  ;;  %v2636_v30 = vld [vmem:[#allocation6 + $0xfa8] sm:$0xff] }
 0x5d1   :  { %4228 = vmatprep.subr.mxu1 %v3466_v31  ;;  %4158 = vmatpush1.msra.mxu0 %v3209_v32  ;;  %v3402_v31 = vunpack.c.h.bf16 %v2512_v19  ;;  %v3658_v32 = vunpack.c.h.bf16 %v2640_v21  ;;  %v3649_v40 = vunpack.c.l.bf16 %v2636_v30  ;;  %v2496_v28 = vld [vmem:[#allocation6 + $0xb48] sm:$0xff] }
 0x5d2   :  { %4229 = vmatpush1.msra.mxu1 %v3465_v33  ;;  %4159 = vmatprep.subr.mxu0 %v3202_v36  ;;  %v3401_v33 = vunpack.c.l.bf16 %v2512_v19  ;;  %v2632_v36 = vld [vmem:[#allocation6 + $0xf88] sm:$0xff] }
 0x5d3   :  { %4230 = vmatprep.subr.mxu1 %v3458_v37  ;;  %4160 = vmatpush1.msra.mxu0 %v3201_v38  ;;  %v3394_v37 = vunpack.c.h.bf16 %v2508_v25  ;;  %v3650_v38 = vunpack.c.h.bf16 %v2636_v30  ;;  %v3641_v53 = vunpack.c.l.bf16 %v2632_v36  ;;  %v2492_v62 = vld [vmem:[#allocation6 + $0xb28] sm:$0xff] }
 0x5d4   :  { %4231 = vmatpush1.msra.mxu1 %v3457_v39  ;;  %4161 = vmatprep.subr.mxu0 %v3194_v49  ;;  %v3393_v39 = vunpack.c.l.bf16 %v2508_v25  ;;  %v2628_v49 = vld [vmem:[#allocation6 + $0xf68] sm:$0xff] }
 0x5d5   :  { %4232 = vmatprep.subr.mxu1 %v3450_v50  ;;  %4162 = vmatpush1.msra.mxu0 %v3193_v51  ;;  %v3386_v50 = vunpack.c.h.bf16 %v2504_v35  ;;  %v3642_v51 = vunpack.c.h.bf16 %v2632_v36  ;;  %v3633_v58 = vunpack.c.l.bf16 %v2628_v49  ;;  %v2488_v6 = vld [vmem:[#allocation6 + $0xb08] sm:$0xff] }
 0x5d6   :  { %4233 = vmatpush1.msra.mxu1 %v3449_v52  ;;  %4163 = vmatprep.subr.mxu0 %v3186_v54  ;;  %v3385_v52 = vunpack.c.l.bf16 %v2504_v35  ;;  %v2624_v54 = vld [vmem:[#allocation6 + $0xf48] sm:$0xff] }
 0x5d7   :  { %4234 = vmatprep.subr.mxu1 %v3442_v55  ;;  %4164 = vmatpush1.msra.mxu0 %v3185_v56  ;;  %v3378_v55 = vunpack.c.h.bf16 %v2500_v42  ;;  %v3634_v56 = vunpack.c.h.bf16 %v2628_v49  ;;  %v3625_v5 = vunpack.c.l.bf16 %v2624_v54  ;;  %v2484_v14 = vld [vmem:[#allocation6 + $0xae8] sm:$0xff] }
 0x5d8   :  { %4235 = vmatpush1.msra.mxu1 %v3441_v57  ;;  %4165 = vmatprep.subr.mxu0 %v3178_v46  ;;  %v3377_v57 = vunpack.c.l.bf16 %v2500_v42  ;;  %v2620_v46 = vld [vmem:[#allocation6 + $0xf28] sm:$0xff] }
 0x5d9   :  { %4236 = vmatprep.subr.mxu1 %v3434_v2  ;;  %4166 = vmatpush1.msra.mxu0 %v3177_v3  ;;  %v3370_v2 = vunpack.c.h.bf16 %v2496_v28  ;;  %v3626_v3 = vunpack.c.h.bf16 %v2624_v54  ;;  %v3617_v12 = vunpack.c.l.bf16 %v2620_v46  ;;  %v2480_v21 = vld [vmem:[#allocation6 + $0xac8] sm:$0xff] }
 0x5da   :  { %4237 = vmatpush1.msra.mxu1 %v3433_v4  ;;  %4167 = vmatprep.subr.mxu0 %v3170_v7  ;;  %v3369_v4 = vunpack.c.l.bf16 %v2496_v28  ;;  %v2616_v7 = vld [vmem:[#allocation6 + $0xf08] sm:$0xff] }
 0x5db   :  { %4238 = vmatprep.subr.mxu1 %v3426_v8  ;;  %4168 = vmatpush1.msra.mxu0 %v3169_v9  ;;  %v3362_v8 = vunpack.c.h.bf16 %v2492_v62  ;;  %v3618_v9 = vunpack.c.h.bf16 %v2620_v46  ;;  %v3609_v19 = vunpack.c.l.bf16 %v2616_v7  ;;  %v2476_v30 = vld [vmem:[#allocation6 + $0xaa8] sm:$0xff] }
 0x5dc   :  { %4239 = vmatpush1.msra.mxu1 %v3425_v10  ;;  %4169 = vmatprep.subr.mxu0 %v3162_v63  ;;  %v3361_v10 = vunpack.c.l.bf16 %v2492_v62  ;;  %v2612_v63 = vld [vmem:[#allocation6 + $0xee8] sm:$0xff] }
 0x5dd   :  { %4240 = vmatprep.subr.mxu1 %v3418_v15  ;;  %4170 = vmatpush1.msra.mxu0 %v3161_v16  ;;  %v3354_v15 = vunpack.c.h.bf16 %v2488_v6  ;;  %v3610_v16 = vunpack.c.h.bf16 %v2616_v7  ;;  %v3601_v25 = vunpack.c.l.bf16 %v2612_v63  ;;  %v2472_v36 = vld [vmem:[#allocation6 + $0xa88] sm:$0xff] }
 0x5de   :  { %4241 = vmatpush1.msra.mxu1 %v3417_v0  ;;  %4171 = vmatprep.subr.mxu0 %v3410_v22  ;;  %v3353_v0 = vunpack.c.l.bf16 %v2488_v6  ;;  %v2608_v22 = vld [vmem:[#allocation6 + $0xec8] sm:$0xff] }
 0x5df   :  { %4242 = vmatprep.subr.mxu1 %v3666_v59  ;;  %4172 = vmatpush2.msra.mxu0 %v3409_v23  ;;  %v3346_v59 = vunpack.c.h.bf16 %v2484_v14  ;;  %v3602_v23 = vunpack.c.h.bf16 %v2612_v63  ;;  %v3593_v35 = vunpack.c.l.bf16 %v2608_v22  ;;  %v2468_v49 = vld [vmem:[#allocation6 + $0xa68] sm:$0xff] }
 0x5e0   :  { %4243 = vmatpush2.msra.mxu1 %v3665_v60  ;;  %4173 = vmatprep.subr.mxu0 %v3402_v31  ;;  %v3345_v60 = vunpack.c.l.bf16 %v2484_v14  ;;  %v2604_v31 = vld [vmem:[#allocation6 + $0xea8] sm:$0xff] }
 0x5e1   :  { %4244 = vmatprep.subr.mxu1 %v3658_v32  ;;  %4174 = vmatpush2.msra.mxu0 %v3401_v33  ;;  %v3338_v32 = vunpack.c.h.bf16 %v2480_v21  ;;  %v3594_v33 = vunpack.c.h.bf16 %v2608_v22  ;;  %v3585_v42 = vunpack.c.l.bf16 %v2604_v31  ;;  %v2464_v54 = vld [vmem:[#allocation6 + $0xa48] sm:$0xff] }
 0x5e2   :  { %4245 = vmatpush2.msra.mxu1 %v3657_v34  ;;  %4175 = vmatprep.subr.mxu0 %v3394_v37  ;;  %v3337_v34 = vunpack.c.l.bf16 %v2480_v21  ;;  %v2600_v37 = vld [vmem:[#allocation6 + $0xe88] sm:$0xff] }
 0x5e3   :  { %4246 = vmatprep.subr.mxu1 %v3650_v38  ;;  %4176 = vmatpush2.msra.mxu0 %v3393_v39  ;;  %v3330_v38 = vunpack.c.h.bf16 %v2476_v30  ;;  %v3586_v39 = vunpack.c.h.bf16 %v2604_v31  ;;  %v3577_v28 = vunpack.c.l.bf16 %v2600_v37  ;;  %v2460_v46 = vld [vmem:[#allocation6 + $0xa28] sm:$0xff]  ;;  %v2189_v31 = vld [vmem:[#allocation6 + $0x1b0] sm:$0xff] }
 0x5e4   :  { %4247 = vmatpush2.msra.mxu1 %v3649_v40  ;;  %4177 = vmatprep.subr.mxu0 %v3386_v50  ;;  %v3329_v40 = vunpack.c.l.bf16 %v2476_v30  ;;  %v2596_v50 = vld [vmem:[#allocation6 + $0xe68] sm:$0xff] }
 0x5e5   :  { %4248 = vmatprep.subr.mxu1 %v3642_v51  ;;  %4178 = vmatpush2.msra.mxu0 %v3385_v52  ;;  %v3322_v51 = vunpack.c.h.bf16 %v2472_v36  ;;  %v3578_v52 = vunpack.c.h.bf16 %v2600_v37  ;;  %v3569_v62 = vunpack.c.l.bf16 %v2596_v50  ;;  %v2456_v7 = vld [vmem:[#allocation6 + $0xa08] sm:$0xff]  ;;  %v2185_v37 = vld [vmem:[#allocation6 + $0x190] sm:$0xff] }
 0x5e6   :  { %4249 = vmatpush2.msra.mxu1 %v3641_v53  ;;  %4179 = vmatprep.subr.mxu0 %v3378_v55  ;;  %v3321_v53 = vunpack.c.l.bf16 %v2472_v36  ;;  %v2592_v55 = vld [vmem:[#allocation6 + $0xe48] sm:$0xff]  ;;  %v3290_v63 = vunpack.c.h.bf16 %v2456_v7 }
 0x5e7   :  { %4250 = vmatprep.subr.mxu1 %v3634_v56  ;;  %4180 = vmatpush2.msra.mxu0 %v3377_v57  ;;  %v3314_v56 = vunpack.c.h.bf16 %v2468_v49  ;;  %v3570_v57 = vunpack.c.h.bf16 %v2596_v50  ;;  %v3561_v6 = vunpack.c.l.bf16 %v2592_v55  ;;  %v2181_v50 = vld [vmem:[#allocation6 + $0x170] sm:$0xff] }
 0x5e8   :  { %4251 = vmatpush2.msra.mxu1 %v3633_v58  ;;  %4181 = vmatprep.subr.mxu0 %v3370_v2  ;;  %v3313_v58 = vunpack.c.l.bf16 %v2468_v49  ;;  %v2588_v2 = vld [vmem:[#allocation6 + $0xe28] sm:$0xff] }
 0x5e9   :  { %4252 = vmatprep.subr.mxu1 %v3626_v3  ;;  %4182 = vmatpush2.msra.mxu0 %v3369_v4  ;;  %v3306_v3 = vunpack.c.h.bf16 %v2464_v54  ;;  %v3562_v4 = vunpack.c.h.bf16 %v2592_v55  ;;  %v3553_v14 = vunpack.c.l.bf16 %v2588_v2  ;;  %v2177_v55 = vld [vmem:[#allocation6 + $0x150] sm:$0xff] }
 0x5ea   :  { %4253 = vmatpush2.msra.mxu1 %v3625_v5  ;;  %4183 = vmatprep.subr.mxu0 %v3362_v8  ;;  %v3305_v5 = vunpack.c.l.bf16 %v2464_v54  ;;  %v2584_v8 = vld [vmem:[#allocation6 + $0xe08] sm:$0xff] }
 0x5eb   :  { %4254 = vmatprep.subr.mxu1 %v3618_v9  ;;  %4184 = vmatpush2.msra.mxu0 %v3361_v10  ;;  %v3298_v9 = vunpack.c.h.bf16 %v2460_v46  ;;  %v3554_v10 = vunpack.c.h.bf16 %v2588_v2  ;;  %v3545_v21 = vunpack.c.l.bf16 %v2584_v8  ;;  %v2173_v2 = vld [vmem:[#allocation6 + $0x130] sm:$0xff] }
 0x5ec   :  { %4255 = vmatpush2.msra.mxu1 %v3617_v12  ;;  %4185 = vmatprep.subr.mxu0 %v3354_v15  ;;  %v3297_v12 = vunpack.c.l.bf16 %v2460_v46  ;;  %v3546_v15 = vunpack.c.h.bf16 %v2584_v8  ;;  %v2169_v8 = vld [vmem:[#allocation6 + $0x110] sm:$0xff] }
 0x5ed   :  { %4256 = vmatprep.subr.mxu1 %v3610_v16  ;;  %4186 = vmatpush2.msra.mxu0 %v3353_v0  ;;  %v2197_v16 = vld [vmem:[#allocation6 + $0x1f0] sm:$0xff]  ;;  %v3289_v0 = vunpack.c.l.bf16 %v2456_v7 }
 0x5ee   :  { %4257 = vmatpush2.msra.mxu1 %v3609_v19  ;;  %4187 = vmatprep.subr.mxu0 %v3346_v59  ;;  %v2325_v19 = vld [vmem:[#allocation6 + $0x5f0] sm:$0xff]  ;;  %v2772_v22 = vunpack.c.h.bf16 %v2197_v16 }
 0x5ef   :  { %4258 = vmatprep.subr.mxu1 %v3602_v23  ;;  %4188 = vmatpush2.msra.mxu0 %v3345_v60  ;;  %v2193_v59 = vld [vmem:[#allocation6 + $0x1d0] sm:$0xff]  ;;  %v3028_v60 = vunpack.c.h.bf16 %v2325_v19  ;;  %v3027_v30 = vunpack.c.l.bf16 %v2325_v19 }
 0x5f0   :  { %4259 = vmatpush2.msra.mxu1 %v3601_v25  ;;  %4189 = vmatprep.subr.mxu0 %v3338_v32  ;;  %v2321_v23 = vld [vmem:[#allocation6 + $0x5d0] sm:$0xff]  ;;  %v2771_v25 = vunpack.c.l.bf16 %v2197_v16 }
 0x5f1   :  { %4260 = vmatprep.subr.mxu1 %v3594_v33  ;;  %4190 = vmatpush2.msra.mxu0 %v3337_v34  ;;  %v2317_v32 = vld [vmem:[#allocation6 + $0x5b0] sm:$0xff]  ;;  %v2764_v33 = vunpack.c.h.bf16 %v2193_v59  ;;  %v3020_v34 = vunpack.c.h.bf16 %v2321_v23  ;;  %v3019_v36 = vunpack.c.l.bf16 %v2321_v23 }
 0x5f2   :  { %4261 = vmatpush2.msra.mxu1 %v3593_v35  ;;  %4191 = vmatprep.subr.mxu0 %v3330_v38  ;;  %v2763_v35 = vunpack.c.l.bf16 %v2193_v59  ;;  %v2313_v38 = vld [vmem:[#allocation6 + $0x590] sm:$0xff]  ;;  %v3011_v49 = vunpack.c.l.bf16 %v2317_v32 }
 0x5f3   :  { %4262 = vmatprep.subr.mxu1 %v3586_v39  ;;  %4192 = vmatpush2.msra.mxu0 %v3329_v40  ;;  %v2756_v39 = vunpack.c.h.bf16 %v2189_v31  ;;  %v3012_v40 = vunpack.c.h.bf16 %v2317_v32  ;;  %v3003_v54 = vunpack.c.l.bf16 %v2313_v38  ;;  %v2293_v16 = vld [vmem:[#allocation6 + $0x4f0] sm:$0xff] }
 0x5f4   :  { %4263 = vmatpush2.msra.mxu1 %v3585_v42  ;;  %4193 = vmatprep.subr.mxu0 %v3322_v51  ;;  %v2755_v42 = vunpack.c.l.bf16 %v2189_v31  ;;  %v2309_v51 = vld [vmem:[#allocation6 + $0x570] sm:$0xff]  ;;  %v2963_v31 = vunpack.c.l.bf16 %v2293_v16 }
 0x5f5   :  { %4264 = vmatprep.subr.mxu1 %v3578_v52  ;;  %4194 = vmatpush2.msra.mxu0 %v3321_v53  ;;  %v2748_v52 = vunpack.c.h.bf16 %v2185_v37  ;;  %v3004_v53 = vunpack.c.h.bf16 %v2313_v38  ;;  %v2995_v46 = vunpack.c.l.bf16 %v2309_v51  ;;  %v2161_v59 = vld [vmem:[#allocation6 + $0xd0] sm:$0xff] }
 0x5f6   :  { %4265 = vmatpush2.msra.mxu1 %v3577_v28  ;;  %4195 = vmatprep.subr.mxu0 %v3314_v56  ;;  %v2747_v28 = vunpack.c.l.bf16 %v2185_v37  ;;  %v2305_v56 = vld [vmem:[#allocation6 + $0x550] sm:$0xff] }
 0x5f7   :  { %4266 = vmatprep.subr.mxu1 %v3570_v57  ;;  %4196 = vmatpush2.msra.mxu0 %v3313_v58  ;;  %v2740_v57 = vunpack.c.h.bf16 %v2181_v50  ;;  %v2996_v58 = vunpack.c.h.bf16 %v2309_v51  ;;  %v2987_v7 = vunpack.c.l.bf16 %v2305_v56  ;;  %v2289_v23 = vld [vmem:[#allocation6 + $0x4d0] sm:$0xff] }
 0x5f8   :  { %4267 = vmatpush2.msra.mxu1 %v3569_v62  ;;  %4197 = vmatprep.subr.mxu0 %v3306_v3  ;;  %v2739_v62 = vunpack.c.l.bf16 %v2181_v50  ;;  %v2301_v3 = vld [vmem:[#allocation6 + $0x530] sm:$0xff]  ;;  %v2955_v37 = vunpack.c.l.bf16 %v2289_v23 }
 0x5f9   :  { %4268 = vmatprep.subr.mxu1 %v3562_v4  ;;  %4198 = vmatpush2.msra.mxu0 %v3305_v5  ;;  %v2732_v4 = vunpack.c.h.bf16 %v2177_v55  ;;  %v2988_v5 = vunpack.c.h.bf16 %v2305_v56  ;;  %v2157_v32 = vld [vmem:[#allocation6 + $0xb0] sm:$0xff] }
 0x5fa   :  { %4269 = vmatpush2.msra.mxu1 %v3561_v6  ;;  %4199 = vmatprep.subr.mxu0 %v3298_v9  ;;  %v2731_v6 = vunpack.c.l.bf16 %v2177_v55  ;;  %v2297_v9 = vld [vmem:[#allocation6 + $0x510] sm:$0xff] }
 0x5fb   :  { %4270 = vmatprep.subr.mxu1 %v3554_v10  ;;  %4200 = vmatpush2.msra.mxu0 %v3297_v12  ;;  %v2724_v10 = vunpack.c.h.bf16 %v2173_v2  ;;  %v2980_v12 = vunpack.c.h.bf16 %v2301_v3  ;;  %v2972_v19 = vunpack.c.h.bf16 %v2297_v9  ;;  %v2153_v38 = vld [vmem:[#allocation6 + $0x90] sm:$0xff] }
 0x5fc   :  { %4271 = vmatpush2.msra.mxu1 %v3553_v14  ;;  %4201 = vmatprep.subr.mxu0 %v3290_v63  ;;  %v2723_v14 = vunpack.c.l.bf16 %v2173_v2  ;;  %v2979_v63 = vunpack.c.l.bf16 %v2301_v3  ;;  %v2149_v51 = vld [vmem:[#allocation6 + $0x70] sm:$0xff] }
 0x5fd   :  { %4272 = vmatprep.subr.mxu1 %v3546_v15  ;;  %4202 = vmatpush2.msra.mxu0 %v3289_v0  ;;  %v2165_v15 = vld [vmem:[#allocation6 + $0xf0] sm:$0xff]  ;;  %v2716_v0 = vunpack.c.h.bf16 %v2169_v8 }
 0x5fe   :  { %4203 = vmatprep.mubr.f32.mxu0 %v5310_v44  ;;  %4273 = vmatpush2.msra.mxu1 %v3545_v21  ;;  %v2715_v21 = vunpack.c.l.bf16 %v2169_v8  ;;  %v2145_v56 = vld [vmem:[#allocation6 + $0x50] sm:$0xff] }
 0x5ff   :  { %4204 = vmatmul.mubr.f32.vlgmr.msra.gmra.mxu0 %v5308_v41  ;;  %4274 = vmatprep.mubr.f32.mxu1 %v5322_v1  ;;  %v2141_v3 = vld [vmem:[#allocation6 + $0x30] sm:$0xff] }
 0x600   :  { %4281 = vmatprep.subr.mxu0 %v2772_v22  ;;  %4352 = vmatprep.subr.mxu1 %v3028_v60  ;;  %v2971_v22 = vunpack.c.l.bf16 %v2297_v9  ;;  %v2708_v60 = vunpack.c.h.bf16 %v2165_v15  ;;  %v2137_v9 = vld [vmem:[#allocation6 + $0x10] sm:$0xff] }
 0x601   :  { %4275 = vmatmul.mubr.f32.vlgmr.msra.gmra.mxu1 %v5320_v61  ;;  %4282 = vmatpush1.msra.mxu0 %v2771_v25  ;;  %v2964_v25 = vunpack.c.h.bf16 %v2293_v16  ;;  %v2261_v16 = vld [vmem:[#allocation6 + $0x3f0] sm:$0xff] }
 0x602   :  { %4353 = vmatpush1.msra.mxu1 %v3027_v30  ;;  %4283 = vmatprep.subr.mxu0 %v2764_v33  ;;  %v2707_v30 = vunpack.c.l.bf16 %v2165_v15  ;;  %v2285_v33 = vld [vmem:[#allocation6 + $0x4b0] sm:$0xff] }
 0x603   :  { %4354 = vmatprep.subr.mxu1 %v3020_v34  ;;  %4284 = vmatpush1.msra.mxu0 %v2763_v35  ;;  %v2700_v34 = vunpack.c.h.bf16 %v2161_v59  ;;  %v2956_v35 = vunpack.c.h.bf16 %v2289_v23  ;;  %v2947_v50 = vunpack.c.l.bf16 %v2285_v33  ;;  %v2257_v23 = vld [vmem:[#allocation6 + $0x3d0] sm:$0xff] }
 0x604   :  { %4355 = vmatpush1.msra.mxu1 %v3019_v36  ;;  %4285 = vmatprep.subr.mxu0 %v2756_v39  ;;  %v2699_v36 = vunpack.c.l.bf16 %v2161_v59  ;;  %v2281_v39 = vld [vmem:[#allocation6 + $0x490] sm:$0xff] }
 0x605   :  { %4356 = vmatprep.subr.mxu1 %v3012_v40  ;;  %4286 = vmatpush1.msra.mxu0 %v2755_v42  ;;  %v2692_v40 = vunpack.c.h.bf16 %v2157_v32  ;;  %v2948_v42 = vunpack.c.h.bf16 %v2285_v33  ;;  %v2939_v55 = vunpack.c.l.bf16 %v2281_v39  ;;  %v2253_v33 = vld [vmem:[#allocation6 + $0x3b0] sm:$0xff] }
 0x606   :  { %4357 = vmatpush1.msra.mxu1 %v3011_v49  ;;  %4287 = vmatprep.subr.mxu0 %v2748_v52  ;;  %v2691_v49 = vunpack.c.l.bf16 %v2157_v32  ;;  %v2277_v52 = vld [vmem:[#allocation6 + $0x470] sm:$0xff] }
 0x607   :  { %4358 = vmatprep.subr.mxu1 %v3004_v53  ;;  %4288 = vmatpush1.msra.mxu0 %v2747_v28  ;;  %v2684_v53 = vunpack.c.h.bf16 %v2153_v38  ;;  %v2940_v28 = vunpack.c.h.bf16 %v2281_v39  ;;  %v2931_v2 = vunpack.c.l.bf16 %v2277_v52  ;;  %v2249_v39 = vld [vmem:[#allocation6 + $0x390] sm:$0xff] }
 0x608   :  { %4359 = vmatpush1.msra.mxu1 %v3003_v54  ;;  %4289 = vmatprep.subr.mxu0 %v2740_v57  ;;  %v2683_v54 = vunpack.c.l.bf16 %v2153_v38  ;;  %v2273_v57 = vld [vmem:[#allocation6 + $0x450] sm:$0xff] }
 0x609   :  { %4360 = vmatprep.subr.mxu1 %v2996_v58  ;;  %4290 = vmatpush1.msra.mxu0 %v2739_v62  ;;  %v2676_v58 = vunpack.c.h.bf16 %v2149_v51  ;;  %v2932_v62 = vunpack.c.h.bf16 %v2277_v52  ;;  %v2923_v8 = vunpack.c.l.bf16 %v2273_v57  ;;  %v2245_v52 = vld [vmem:[#allocation6 + $0x370] sm:$0xff] }
 0x60a   :  { %4361 = vmatpush1.msra.mxu1 %v2995_v46  ;;  %4291 = vmatprep.subr.mxu0 %v2732_v4  ;;  %v2675_v46 = vunpack.c.l.bf16 %v2149_v51  ;;  %v2269_v4 = vld [vmem:[#allocation6 + $0x430] sm:$0xff] }
 0x60b   :  { %4362 = vmatprep.subr.mxu1 %v2988_v5  ;;  %4292 = vmatpush1.msra.mxu0 %v2731_v6  ;;  %v2668_v5 = vunpack.c.h.bf16 %v2145_v56  ;;  %v2924_v6 = vunpack.c.h.bf16 %v2273_v57  ;;  %v2915_v15 = vunpack.c.l.bf16 %v2269_v4  ;;  %v2241_v57 = vld [vmem:[#allocation6 + $0x350] sm:$0xff] }
 0x60c   :  { %4363 = vmatpush1.msra.mxu1 %v2987_v7  ;;  %4293 = vmatprep.subr.mxu0 %v2724_v10  ;;  %v2667_v7 = vunpack.c.l.bf16 %v2145_v56  ;;  %v2265_v10 = vld [vmem:[#allocation6 + $0x410] sm:$0xff] }
 0x60d   :  { %4364 = vmatprep.subr.mxu1 %v2980_v12  ;;  %4294 = vmatpush1.msra.mxu0 %v2723_v14  ;;  %v2660_v12 = vunpack.c.h.bf16 %v2141_v3  ;;  %v2916_v14 = vunpack.c.h.bf16 %v2269_v4  ;;  %v2907_v59 = vunpack.c.l.bf16 %v2265_v10  ;;  %v2237_v4 = vld [vmem:[#allocation6 + $0x330] sm:$0xff] }
 0x60e   :  { %4365 = vmatpush1.msra.mxu1 %v2979_v63  ;;  %4295 = vmatprep.subr.mxu0 %v2716_v0  ;;  %v2659_v63 = vunpack.c.l.bf16 %v2141_v3  ;;  %v2389_v0 = vld [vmem:[#allocation6 + $0x7f0] sm:$0xff] }
 0x60f   :  { %4366 = vmatprep.subr.mxu1 %v2972_v19  ;;  %4296 = vmatpush1.msra.mxu0 %v2715_v21  ;;  %v2652_v19 = vunpack.c.h.bf16 %v2137_v9  ;;  %v2908_v21 = vunpack.c.h.bf16 %v2265_v10  ;;  %v3155_v32 = vunpack.c.l.bf16 %v2389_v0  ;;  %v2233_v10 = vld [vmem:[#allocation6 + $0x310] sm:$0xff] }
 0x610   :  { %4367 = vmatpush1.msra.mxu1 %v2971_v22  ;;  %4297 = vmatprep.subr.mxu0 %v2708_v60  ;;  %v2651_v22 = vunpack.c.l.bf16 %v2137_v9  ;;  %v2385_v60 = vld [vmem:[#allocation6 + $0x7d0] sm:$0xff] }
 0x611   :  { %4368 = vmatprep.subr.mxu1 %v2964_v25  ;;  %4298 = vmatpush1.msra.mxu0 %v2707_v30  ;;  %v2900_v25 = vunpack.c.h.bf16 %v2261_v16  ;;  %v3156_v30 = vunpack.c.h.bf16 %v2389_v0  ;;  %v3147_v38 = vunpack.c.l.bf16 %v2385_v60  ;;  %v2229_v0 = vld [vmem:[#allocation6 + $0x2f0] sm:$0xff] }
 0x612   :  { %4369 = vmatpush1.msra.mxu1 %v2963_v31  ;;  %4299 = vmatprep.subr.mxu0 %v2700_v34  ;;  %v2899_v31 = vunpack.c.l.bf16 %v2261_v16  ;;  %v2381_v34 = vld [vmem:[#allocation6 + $0x7b0] sm:$0xff] }
 0x613   :  { %4370 = vmatprep.subr.mxu1 %v2956_v35  ;;  %4300 = vmatpush1.msra.mxu0 %v2699_v36  ;;  %v2892_v35 = vunpack.c.h.bf16 %v2257_v23  ;;  %v3148_v36 = vunpack.c.h.bf16 %v2385_v60  ;;  %v3139_v51 = vunpack.c.l.bf16 %v2381_v34  ;;  %v2225_v60 = vld [vmem:[#allocation6 + $0x2d0] sm:$0xff] }
 0x614   :  { %4371 = vmatpush1.msra.mxu1 %v2955_v37  ;;  %4301 = vmatprep.subr.mxu0 %v2692_v40  ;;  %v2891_v37 = vunpack.c.l.bf16 %v2257_v23  ;;  %v2377_v40 = vld [vmem:[#allocation6 + $0x790] sm:$0xff] }
 0x615   :  { %4372 = vmatprep.subr.mxu1 %v2948_v42  ;;  %4302 = vmatpush1.msra.mxu0 %v2691_v49  ;;  %v2884_v42 = vunpack.c.h.bf16 %v2253_v33  ;;  %v3140_v49 = vunpack.c.h.bf16 %v2381_v34  ;;  %v3131_v56 = vunpack.c.l.bf16 %v2377_v40  ;;  %v2221_v34 = vld [vmem:[#allocation6 + $0x2b0] sm:$0xff] }
 0x616   :  { %4373 = vmatpush1.msra.mxu1 %v2947_v50  ;;  %4303 = vmatprep.subr.mxu0 %v2684_v53  ;;  %v2883_v50 = vunpack.c.l.bf16 %v2253_v33  ;;  %v2373_v53 = vld [vmem:[#allocation6 + $0x770] sm:$0xff] }
 0x617   :  { %4374 = vmatprep.subr.mxu1 %v2940_v28  ;;  %4304 = vmatpush1.msra.mxu0 %v2683_v54  ;;  %v2876_v28 = vunpack.c.h.bf16 %v2249_v39  ;;  %v3132_v54 = vunpack.c.h.bf16 %v2377_v40  ;;  %v3123_v3 = vunpack.c.l.bf16 %v2373_v53 }
 0x618   :  { %4375 = vmatpush1.msra.mxu1 %v2939_v55  ;;  %4305 = vmatprep.subr.mxu0 %v2676_v58  ;;  %v2875_v55 = vunpack.c.l.bf16 %v2249_v39  ;;  %v2369_v58 = vld [vmem:[#allocation6 + $0x750] sm:$0xff]  ;;  %v2827_v39 = vunpack.c.l.bf16 %v2225_v60 }
 0x619   :  { %4376 = vmatprep.subr.mxu1 %v2932_v62  ;;  %4306 = vmatpush1.msra.mxu0 %v2675_v46  ;;  %v2868_v62 = vunpack.c.h.bf16 %v2245_v52  ;;  %v3124_v46 = vunpack.c.h.bf16 %v2373_v53  ;;  %v3115_v9 = vunpack.c.l.bf16 %v2369_v58 }
 0x61a   :  { %4377 = vmatpush1.msra.mxu1 %v2931_v2  ;;  %4307 = vmatprep.subr.mxu0 %v2668_v5  ;;  %v2867_v2 = vunpack.c.l.bf16 %v2245_v52  ;;  %v2365_v5 = vld [vmem:[#allocation6 + $0x730] sm:$0xff] }
 0x61b   :  { %4378 = vmatprep.subr.mxu1 %v2924_v6  ;;  %4308 = vmatpush1.msra.mxu0 %v2667_v7  ;;  %v2860_v6 = vunpack.c.h.bf16 %v2241_v57  ;;  %v3116_v7 = vunpack.c.h.bf16 %v2369_v58  ;;  %v3107_v16 = vunpack.c.l.bf16 %v2365_v5 }
 0x61c   :  { %4379 = vmatpush1.msra.mxu1 %v2923_v8  ;;  %4309 = vmatprep.subr.mxu0 %v2660_v12  ;;  %v2859_v8 = vunpack.c.l.bf16 %v2241_v57  ;;  %v2361_v12 = vld [vmem:[#allocation6 + $0x710] sm:$0xff] }
 0x61d   :  { %4380 = vmatprep.subr.mxu1 %v2916_v14  ;;  %4310 = vmatpush1.msra.mxu0 %v2659_v63  ;;  %v2852_v14 = vunpack.c.h.bf16 %v2237_v4  ;;  %v3108_v63 = vunpack.c.h.bf16 %v2365_v5  ;;  %v3099_v23 = vunpack.c.l.bf16 %v2361_v12  ;;  %v3850_v5 = vpop.f32.mrf.mxu1 }
 0x61e   :  { %4381 = vmatpush1.msra.mxu1 %v2915_v15  ;;  %4311 = vmatprep.subr.mxu0 %v2652_v19  ;;  %v2851_v15 = vunpack.c.l.bf16 %v2237_v4  ;;  %v2357_v19 = vld [vmem:[#allocation6 + $0x6f0] sm:$0xff] }
 0x61f   :  { %4382 = vmatprep.subr.mxu1 %v2908_v21  ;;  %4312 = vmatpush1.msra.mxu0 %v2651_v22  ;;  %v2844_v21 = vunpack.c.h.bf16 %v2233_v10  ;;  %v3100_v22 = vunpack.c.h.bf16 %v2361_v12  ;;  %v3091_v33 = vunpack.c.l.bf16 %v2357_v19  ;;  %v2337_v4 = vld [vmem:[#allocation6 + $0x650] sm:$0xff] }
 0x620   :  { %4383 = vmatpush1.msra.mxu1 %v2907_v59  ;;  %4313 = vmatprep.subr.mxu0 %v2900_v25  ;;  %v2843_v59 = vunpack.c.l.bf16 %v2233_v10  ;;  %v2353_v25 = vld [vmem:[#allocation6 + $0x6d0] sm:$0xff] }
 0x621   :  { %4384 = vmatprep.subr.mxu1 %v3156_v30  ;;  %4314 = vmatpush2.msra.mxu0 %v2899_v31  ;;  %v2836_v30 = vunpack.c.h.bf16 %v2229_v0  ;;  %v3092_v31 = vunpack.c.h.bf16 %v2357_v19  ;;  %v3083_v40 = vunpack.c.l.bf16 %v2353_v25  ;;  %v2205_v12 = vld [vmem:[#allocation6 + $0x230] sm:$0xff] }
 0x622   :  { %4385 = vmatpush2.msra.mxu1 %v3155_v32  ;;  %4315 = vmatprep.subr.mxu0 %v2892_v35  ;;  %v2835_v32 = vunpack.c.l.bf16 %v2229_v0  ;;  %v2349_v35 = vld [vmem:[#allocation6 + $0x6b0] sm:$0xff]  ;;  %v3051_v0 = vunpack.c.l.bf16 %v2337_v4 }
 0x623   :  { %4386 = vmatprep.subr.mxu1 %v3148_v36  ;;  %4316 = vmatpush2.msra.mxu0 %v2891_v37  ;;  %v3671_v36 = vld [vmem:[#allocation8 + $0xf] sm:$0xff]  ;;  %v2828_v37 = vunpack.c.h.bf16 %v2225_v60  ;;  %v3076_v52 = vunpack.c.h.bf16 %v2349_v35 }
 0x624   :  { %4387 = vmatpush2.msra.mxu1 %v3147_v38  ;;  %4317 = vmatprep.subr.mxu0 %v2884_v42  ;;  %v3084_v38 = vunpack.c.h.bf16 %v2353_v25  ;;  %v2217_v42 = vld [vmem:[#allocation6 + $0x290] sm:$0xff]  ;;  %v3676_v53 = vrot.slane %v3671_v36, %v5237_v18  ;;  %v2787_v25 = vunpack.c.l.bf16 %v2205_v12 }
 0x625   :  { %4388 = vmatprep.subr.mxu1 %v3140_v49  ;;  %4318 = vmatpush2.msra.mxu0 %v2883_v50  ;;  %v2345_v49 = vld [vmem:[#allocation6 + $0x690] sm:$0xff]  ;;  %v3779_v50 = vpop.f32.mrf.mxu0  ;;  %v2812_v57 = vunpack.c.h.bf16 %v2217_v42 }
 0x626   :  { %4389 = vmatpush2.msra.mxu1 %v3139_v51  ;;  %4319 = vmatprep.subr.mxu0 %v2876_v28  ;;  %v2820_v51 = vunpack.c.h.bf16 %v2221_v34  ;;  %v2819_v28 = vunpack.c.l.bf16 %v2221_v34  ;;  %v3068_v58 = vunpack.c.h.bf16 %v2345_v49  ;;  %v2201_v19 = vld [vmem:[#allocation6 + $0x210] sm:$0xff] }
 0x627   :  { %4390 = vmatprep.subr.mxu1 %v3132_v54  ;;  %4320 = vmatpush2.msra.mxu0 %v2875_v55  ;;  %v3075_v54 = vunpack.c.l.bf16 %v2349_v35  ;;  %v2213_v55 = vld [vmem:[#allocation6 + $0x270] sm:$0xff]  ;;  %v3781_v18 = vpop.f32.mrf.mxu0 }
 0x628   :  { %4391 = vmatpush2.msra.mxu1 %v3131_v56  ;;  %4321 = vmatprep.subr.mxu0 %v2868_v62  ;;  %v2341_v56 = vld [vmem:[#allocation6 + $0x670] sm:$0xff]  ;;  %v3680_v62 = vrot.slane %v3671_v36, %v5240_v20  ;;  %v2779_v36 = vunpack.c.l.bf16 %v2201_v19 }
 0x629   :  { %4392 = vmatprep.subr.mxu1 %v3124_v46  ;;  %4322 = vmatpush2.msra.mxu0 %v2867_v2  ;;  %v2811_v46 = vunpack.c.l.bf16 %v2217_v42  ;;  %v3067_v2 = vunpack.c.l.bf16 %v2345_v49  ;;  %v3059_v10 = vunpack.c.l.bf16 %v2341_v56  ;;  %v2453_v34 = vld [vmem:[#allocation6 + $0x9f0] sm:$0xff] }
 0x62a   :  { %4393 = vmatpush2.msra.mxu1 %v3123_v3  ;;  %4323 = vmatprep.subr.mxu0 %v2860_v6  ;;  %v2209_v3 = vld [vmem:[#allocation6 + $0x250] sm:$0xff]  ;;  %v2804_v6 = vunpack.c.h.bf16 %v2213_v55  ;;  %v3284_v49 = vunpack.c.h.bf16 %v2453_v34 }
 0x62b   :  { %4394 = vmatprep.subr.mxu1 %v3116_v7  ;;  %4324 = vmatpush2.msra.mxu0 %v2859_v8  ;;  %v3060_v7 = vunpack.c.h.bf16 %v2341_v56  ;;  %v3780_v8 = vadd.f32 %v3779_v50, %v3676_v53  ;;  %v2796_v20 = vunpack.c.h.bf16 %v2209_v3  ;;  %v2577_v53 = vld [vmem:[#allocation6 + $0xdd0] sm:$0xff] }
 0x62c   :  { %4395 = vmatpush2.msra.mxu1 %v3115_v9  ;;  %4325 = vmatprep.subr.mxu0 %v2852_v14  ;;  %v2803_v9 = vunpack.c.l.bf16 %v2213_v55  ;;  %v2333_v14 = vld [vmem:[#allocation6 + $0x630] sm:$0xff]  ;;  %v3283_v55 = vunpack.c.l.bf16 %v2453_v34 }
 0x62d   :  { %4396 = vmatprep.subr.mxu1 %v3108_v63  ;;  %4326 = vmatpush2.msra.mxu0 %v2851_v15  ;;  %v3052_v63 = vunpack.c.h.bf16 %v2337_v4  ;;  %v3782_v15 = vadd.f32 %v3781_v18, %v3680_v62  ;;  %v3851_v60 = vadd.f32 %v3850_v5, %v3780_v8  ;;  %v2573_v62 = vld [vmem:[#allocation6 + $0xdb0] sm:$0xff]  ;;  %v3531_v4 = vunpack.c.l.bf16 %v2577_v53 }
 0x62e   :  { %4397 = vmatpush2.msra.mxu1 %v3107_v16  ;;  %4327 = vmatprep.subr.mxu0 %v2844_v21  ;;  %v2795_v16 = vunpack.c.l.bf16 %v2209_v3  ;;  %v2329_v21 = vld [vmem:[#allocation6 + $0x610] sm:$0xff] }
 0x62f   :  { %4398 = vmatprep.subr.mxu1 %v3100_v22  ;;  %4328 = vmatpush2.msra.mxu0 %v2843_v59  ;;  %v3852_v22 = vpop.f32.mrf.mxu1  ;;  %v2788_v59 = vunpack.c.h.bf16 %v2205_v12  ;;  %v2441_v5 = vld [vmem:[#allocation6 + $0x990] sm:$0xff] }
 0x630   :  { %4399 = vmatpush2.msra.mxu1 %v3099_v23  ;;  %4329 = vmatprep.subr.mxu0 %v2836_v30  ;;  %v3044_v23 = vunpack.c.h.bf16 %v2333_v14  ;;  %v3043_v30 = vunpack.c.l.bf16 %v2333_v14  ;;  %v3853_v35 = vadd.f32 %v3852_v22, %v3782_v15  ;;  %v2569_v18 = vld [vmem:[#allocation6 + $0xd90] sm:$0xff]  ;;  %v3260_v14 = vunpack.c.h.bf16 %v2441_v5 }
 0x631   :  { %4400 = vmatprep.subr.mxu1 %v3092_v31  ;;  %4330 = vmatpush2.msra.mxu0 %v2835_v32  ;;  %v2780_v31 = vunpack.c.h.bf16 %v2201_v19  ;;  %v3036_v32 = vunpack.c.h.bf16 %v2329_v21  ;;  %v2565_v12 = vld [vmem:[#allocation6 + $0xd70] sm:$0xff]  ;;  %v3515_v15 = vunpack.c.l.bf16 %v2569_v18 }
 0x632   :  { %4401 = vmatpush2.msra.mxu1 %v3091_v33  ;;  %4331 = vmatprep.subr.mxu0 %v2828_v37  ;;  %v2553_v34 = vld [vmem:[#allocation6 + $0xd10] sm:$0xff] }
 0x633   :  { %4402 = vmatprep.subr.mxu1 %v3084_v38  ;;  %4332 = vmatpush2.msra.mxu0 %v2827_v39  ;;  %v2581_v38 = vld [vmem:[#allocation6 + $0xdf0] sm:$0xff]  ;;  %v3035_v39 = vunpack.c.l.bf16 %v2329_v21  ;;  %v3508_v21 = vunpack.c.h.bf16 %v2565_v12 }
 0x634   :  { %4403 = vmatpush2.msra.mxu1 %v3083_v40  ;;  %4333 = vmatprep.subr.mxu0 %v2820_v51  ;;  %v3539_v56 = vunpack.c.l.bf16 %v2581_v38 }
 0x635   :  { %4404 = vmatprep.subr.mxu1 %v3076_v52  ;;  %4334 = vmatpush2.msra.mxu0 %v2819_v28  ;;  %v2449_v52 = vld [vmem:[#allocation6 + $0x9d0] sm:$0xff]  ;;  %v3540_v28 = vunpack.c.h.bf16 %v2581_v38 }
 0x636   :  { %4405 = vmatpush2.msra.mxu1 %v3075_v54  ;;  %4335 = vmatprep.subr.mxu0 %v2812_v57  ;;  %v3275_v3 = vunpack.c.l.bf16 %v2449_v52 }
 0x637   :  { %4406 = vmatprep.subr.mxu1 %v3068_v58  ;;  %4336 = vmatpush2.msra.mxu0 %v2811_v46  ;;  %v2445_v58 = vld [vmem:[#allocation6 + $0x9b0] sm:$0xff]  ;;  %v3276_v46 = vunpack.c.h.bf16 %v2449_v52 }
 0x638   :  { %4407 = vmatpush2.msra.mxu1 %v3067_v2  ;;  %4337 = vmatprep.subr.mxu0 %v2804_v6  ;;  %v3532_v2 = vunpack.c.h.bf16 %v2577_v53  ;;  %v3268_v6 = vunpack.c.h.bf16 %v2445_v58  ;;  %v3267_v8 = vunpack.c.l.bf16 %v2445_v58  ;;  %v2417_v52 = vld [vmem:[#allocation6 + $0x8d0] sm:$0xff] }
 0x639   :  { %4408 = vmatprep.subr.mxu1 %v3060_v7  ;;  %4338 = vmatpush2.msra.mxu0 %v2803_v9  ;;  %v3524_v7 = vunpack.c.h.bf16 %v2573_v62  ;;  %v3523_v9 = vunpack.c.l.bf16 %v2573_v62  ;;  %v2545_v53 = vld [vmem:[#allocation6 + $0xcd0] sm:$0xff]  ;;  %v3212_v62 = vunpack.c.h.bf16 %v2417_v52 }
 0x63a   :  { %4409 = vmatpush2.msra.mxu1 %v3059_v10  ;;  %4339 = vmatprep.subr.mxu0 %v2796_v20  ;;  %v2437_v10 = vld [vmem:[#allocation6 + $0x970] sm:$0xff]  ;;  %v3516_v20 = vunpack.c.h.bf16 %v2569_v18 }
 0x63b   :  { %4410 = vmatprep.subr.mxu1 %v3052_v63  ;;  %v3921_v33 = vpop.f32.mrf.mxu0  ;;  %4340 = vmatpush2.msra.mxu0 %v2795_v16  ;;  %v3259_v63 = vunpack.c.l.bf16 %v2441_v5  ;;  %v2433_v16 = vld [vmem:[#allocation6 + $0x950] sm:$0xff]  ;;  %v3252_v19 = vunpack.c.h.bf16 %v2437_v10  ;;  %v3251_v22 = vunpack.c.l.bf16 %v2437_v10 }
 0x63c   :  { %4411 = vmatpush2.msra.mxu1 %v3051_v0  ;;  %v3922_v37 = vadd.f32 %v3921_v33, %v3851_v60  ;;  %4341 = vmatprep.subr.mxu0 %v2788_v59  ;;  %v2561_v0 = vld [vmem:[#allocation6 + $0xd50] sm:$0xff]  ;;  %v3507_v59 = vunpack.c.l.bf16 %v2565_v12 }
 0x63d   :  { %4412 = vmatprep.subr.mxu1 %v3044_v23  ;;  %v3992_v40 = vpop.f32.mrf.mxu1  ;;  %v3923_v42 = vpop.f32.mrf.mxu0  ;;  %4342 = vmatpush2.msra.mxu0 %v2787_v25  ;;  %v2429_v23 = vld [vmem:[#allocation6 + $0x930] sm:$0xff]  ;;  %v3244_v25 = vunpack.c.h.bf16 %v2433_v16 }
 0x63e   :  { %4413 = vmatpush2.msra.mxu1 %v3043_v30  ;;  %v3993_v50 = vadd.f32 %v3992_v40, %v3922_v37  ;;  %v3924_v51 = vadd.f32 %v3923_v42, %v3853_v35  ;;  %4343 = vmatprep.subr.mxu0 %v2780_v31  ;;  %v2557_v60 = vld [vmem:[#allocation6 + $0xd30] sm:$0xff]  ;;  %v3500_v30 = vunpack.c.h.bf16 %v2561_v0  ;;  %v3243_v31 = vunpack.c.l.bf16 %v2433_v16 }
 0x63f   :  { %4414 = vmatprep.subr.mxu1 %v3036_v32  ;;  %v3994_v54 = vpop.f32.mrf.mxu1  ;;  %4344 = vmatpush2.msra.mxu0 %v2779_v36  ;;  %v3499_v32 = vunpack.c.l.bf16 %v2561_v0  ;;  %v2425_v33 = vld [vmem:[#allocation6 + $0x910] sm:$0xff]  ;;  %v3236_v35 = vunpack.c.h.bf16 %v2429_v23  ;;  %v3492_v36 = vunpack.c.h.bf16 %v2557_v60  ;;  %v3235_v37 = vunpack.c.l.bf16 %v2429_v23 }
 0x640   :  { %4345 = vmatprep.mubr.f32.mxu0 %v5290_v13  ;;  %4849 = vst [vmem:[%s5407_s7] sm:$0xff] %v3993_v50  ;;  %v3995_v57 = vadd.f32 %v3994_v54, %v3924_v51  ;;  %4415 = vmatpush2.msra.mxu1 %v3035_v39  ;;  %v3491_v38 = vunpack.c.l.bf16 %v2557_v60  ;;  %v2421_v39 = vld [vmem:[#allocation6 + $0x8f0] sm:$0xff]  ;;  %v3228_v42 = vunpack.c.h.bf16 %v2425_v33  ;;  %v3227_v50 = vunpack.c.l.bf16 %v2425_v33 }
 0x641   :  { %4346 = vmatmul.mubr.f32.vlgmr.msra.gmra.mxu0 %v5288_v11  ;;  %4416 = vmatprep.mubr.f32.mxu1 %v5298_v26  ;;  %v2549_v40 = vld [vmem:[#allocation6 + $0xcf0] sm:$0xff]  ;;  %v3483_v51 = vunpack.c.l.bf16 %v2553_v34 }
 0x642   :  { %4423 = vmatprep.subr.mxu0 %v3284_v49  ;;  %4850 = vst [vmem:[%s5407_s7 + $0x8] sm:$0xff] %v3995_v57  ;;  %4494 = vmatprep.subr.mxu1 %v3540_v28  ;;  %v3484_v49 = vunpack.c.h.bf16 %v2553_v34  ;;  %v3220_v28 = vunpack.c.h.bf16 %v2421_v39  ;;  %v3476_v54 = vunpack.c.h.bf16 %v2549_v40  ;;  %v2413_v57 = vld [vmem:[#allocation6 + $0x8b0] sm:$0xff] }
 0x643   :  { %4417 = vmatmul.mubr.f32.vlgmr.msra.gmra.mxu1 %v5296_v24  ;;  %4424 = vmatpush1.msra.mxu0 %v3283_v55  ;;  %v3219_v55 = vunpack.c.l.bf16 %v2421_v39  ;;  %v2541_v58 = vld [vmem:[#allocation6 + $0xcb0] sm:$0xff]  ;;  %v3204_v18 = vunpack.c.h.bf16 %v2413_v57 }
 0x644   :  { %4495 = vmatpush1.msra.mxu1 %v3539_v56  ;;  %4425 = vmatprep.subr.mxu0 %v3276_v46  ;;  %v3475_v56 = vunpack.c.l.bf16 %v2549_v40  ;;  %v3468_v46 = vunpack.c.h.bf16 %v2545_v53  ;;  %v2537_v5 = vld [vmem:[#allocation6 + $0xc90] sm:$0xff] }
 0x645   :  { %4496 = vmatprep.subr.mxu1 %v3532_v2  ;;  %4426 = vmatpush1.msra.mxu0 %v3275_v3  ;;  %v3211_v2 = vunpack.c.l.bf16 %v2417_v52  ;;  %v3467_v3 = vunpack.c.l.bf16 %v2545_v53  ;;  %v2533_v10 = vld [vmem:[#allocation6 + $0xc70] sm:$0xff] }
 0x646   :  { %4497 = vmatpush1.msra.mxu1 %v3531_v4  ;;  %4427 = vmatprep.subr.mxu0 %v3268_v6  ;;  %v2409_v4 = vld [vmem:[#allocation6 + $0x890] sm:$0xff]  ;;  %v3460_v6 = vunpack.c.h.bf16 %v2541_v58 }
 0x647   :  { %4498 = vmatprep.subr.mxu1 %v3524_v7  ;;  %4428 = vmatpush1.msra.mxu0 %v3267_v8  ;;  %v3203_v7 = vunpack.c.l.bf16 %v2413_v57  ;;  %v3459_v8 = vunpack.c.l.bf16 %v2541_v58  ;;  %v3196_v12 = vunpack.c.h.bf16 %v2409_v4  ;;  %v2529_v16 = vld [vmem:[#allocation6 + $0xc50] sm:$0xff] }
 0x648   :  { %4499 = vmatpush1.msra.mxu1 %v3523_v9  ;;  %4429 = vmatprep.subr.mxu0 %v3260_v14  ;;  %v2405_v9 = vld [vmem:[#allocation6 + $0x870] sm:$0xff]  ;;  %v3452_v14 = vunpack.c.h.bf16 %v2537_v5 }
 0x649   :  { %4500 = vmatprep.subr.mxu1 %v3516_v20  ;;  %4430 = vmatpush1.msra.mxu0 %v3259_v63  ;;  %v3195_v20 = vunpack.c.l.bf16 %v2409_v4  ;;  %v3451_v63 = vunpack.c.l.bf16 %v2537_v5  ;;  %v3188_v0 = vunpack.c.h.bf16 %v2405_v9  ;;  %v2525_v23 = vld [vmem:[#allocation6 + $0xc30] sm:$0xff] }
 0x64a   :  { %4501 = vmatpush1.msra.mxu1 %v3515_v15  ;;  %4431 = vmatprep.subr.mxu0 %v3252_v19  ;;  %v2401_v15 = vld [vmem:[#allocation6 + $0x850] sm:$0xff]  ;;  %v3444_v19 = vunpack.c.h.bf16 %v2533_v10 }
 0x64b   :  { %4502 = vmatprep.subr.mxu1 %v3508_v21  ;;  %4432 = vmatpush1.msra.mxu0 %v3251_v22  ;;  %v3187_v21 = vunpack.c.l.bf16 %v2405_v9  ;;  %v3443_v22 = vunpack.c.l.bf16 %v2533_v10  ;;  %v3180_v60 = vunpack.c.h.bf16 %v2401_v15  ;;  %v2521_v33 = vld [vmem:[#allocation6 + $0xc10] sm:$0xff] }
 0x64c   :  { %4503 = vmatpush1.msra.mxu1 %v3507_v59  ;;  %4433 = vmatprep.subr.mxu0 %v3244_v25  ;;  %v2397_v59 = vld [vmem:[#allocation6 + $0x830] sm:$0xff]  ;;  %v3436_v25 = vunpack.c.h.bf16 %v2529_v16 }
 0x64d   :  { %4504 = vmatprep.subr.mxu1 %v3500_v30  ;;  %4434 = vmatpush1.msra.mxu0 %v3243_v31  ;;  %v3179_v30 = vunpack.c.l.bf16 %v2401_v15  ;;  %v3435_v31 = vunpack.c.l.bf16 %v2529_v16  ;;  %v3172_v34 = vunpack.c.h.bf16 %v2397_v59  ;;  %v2645_v39 = vld [vmem:[#allocation6 + $0xff0] sm:$0xff] }
 0x64e   :  { %4505 = vmatpush1.msra.mxu1 %v3499_v32  ;;  %4435 = vmatprep.subr.mxu0 %v3236_v35  ;;  %v2393_v32 = vld [vmem:[#allocation6 + $0x810] sm:$0xff]  ;;  %v3428_v35 = vunpack.c.h.bf16 %v2525_v23 }
 0x64f   :  { %4506 = vmatprep.subr.mxu1 %v3492_v36  ;;  %4436 = vmatpush1.msra.mxu0 %v3235_v37  ;;  %v3171_v36 = vunpack.c.l.bf16 %v2397_v59  ;;  %v3427_v37 = vunpack.c.l.bf16 %v2525_v23  ;;  %v3164_v40 = vunpack.c.h.bf16 %v2393_v32  ;;  %v2641_v52 = vld [vmem:[#allocation6 + $0xfd0] sm:$0xff] }
 0x650   :  { %4507 = vmatpush1.msra.mxu1 %v3491_v38  ;;  %4437 = vmatprep.subr.mxu0 %v3228_v42  ;;  %v2517_v38 = vld [vmem:[#allocation6 + $0xbf0] sm:$0xff]  ;;  %v3420_v42 = vunpack.c.h.bf16 %v2521_v33 }
 0x651   :  { %4508 = vmatprep.subr.mxu1 %v3484_v49  ;;  %4438 = vmatpush1.msra.mxu0 %v3227_v50  ;;  %v3163_v49 = vunpack.c.l.bf16 %v2393_v32  ;;  %v3419_v50 = vunpack.c.l.bf16 %v2521_v33  ;;  %v3412_v53 = vunpack.c.h.bf16 %v2517_v38  ;;  %v2637_v57 = vld [vmem:[#allocation6 + $0xfb0] sm:$0xff] }
 0x652   :  { %4509 = vmatpush1.msra.mxu1 %v3483_v51  ;;  %4439 = vmatprep.subr.mxu0 %v3220_v28  ;;  %v2513_v51 = vld [vmem:[#allocation6 + $0xbd0] sm:$0xff]  ;;  %v3668_v28 = vunpack.c.h.bf16 %v2645_v39 }
 0x653   :  { %4510 = vmatprep.subr.mxu1 %v3476_v54  ;;  %4440 = vmatpush1.msra.mxu0 %v3219_v55  ;;  %v3411_v54 = vunpack.c.l.bf16 %v2517_v38  ;;  %v3667_v55 = vunpack.c.l.bf16 %v2645_v39  ;;  %v3404_v58 = vunpack.c.h.bf16 %v2513_v51  ;;  %v2633_v4 = vld [vmem:[#allocation6 + $0xf90] sm:$0xff] }
 0x654   :  { %4511 = vmatpush1.msra.mxu1 %v3475_v56  ;;  %4441 = vmatprep.subr.mxu0 %v3212_v62  ;;  %v2509_v56 = vld [vmem:[#allocation6 + $0xbb0] sm:$0xff]  ;;  %v3660_v62 = vunpack.c.h.bf16 %v2641_v52 }
 0x655   :  { %4512 = vmatprep.subr.mxu1 %v3468_v46  ;;  %4442 = vmatpush1.msra.mxu0 %v3211_v2  ;;  %v3403_v46 = vunpack.c.l.bf16 %v2513_v51  ;;  %v3659_v2 = vunpack.c.l.bf16 %v2641_v52  ;;  %v3396_v5 = vunpack.c.h.bf16 %v2509_v56  ;;  %v2629_v9 = vld [vmem:[#allocation6 + $0xf70] sm:$0xff] }
 0x656   :  { %4513 = vmatpush1.msra.mxu1 %v3467_v3  ;;  %4443 = vmatprep.subr.mxu0 %v3204_v18  ;;  %v2505_v3 = vld [vmem:[#allocation6 + $0xb90] sm:$0xff]  ;;  %v3652_v18 = vunpack.c.h.bf16 %v2637_v57 }
 0x657   :  { %4514 = vmatprep.subr.mxu1 %v3460_v6  ;;  %4444 = vmatpush1.msra.mxu0 %v3203_v7  ;;  %v3395_v6 = vunpack.c.l.bf16 %v2509_v56  ;;  %v3651_v7 = vunpack.c.l.bf16 %v2637_v57  ;;  %v3388_v10 = vunpack.c.h.bf16 %v2505_v3  ;;  %v2625_v15 = vld [vmem:[#allocation6 + $0xf50] sm:$0xff] }
 0x658   :  { %4515 = vmatpush1.msra.mxu1 %v3459_v8  ;;  %4445 = vmatprep.subr.mxu0 %v3196_v12  ;;  %v2501_v8 = vld [vmem:[#allocation6 + $0xb70] sm:$0xff]  ;;  %v3644_v12 = vunpack.c.h.bf16 %v2633_v4 }
 0x659   :  { %4516 = vmatprep.subr.mxu1 %v3452_v14  ;;  %4446 = vmatpush1.msra.mxu0 %v3195_v20  ;;  %v3387_v14 = vunpack.c.l.bf16 %v2505_v3  ;;  %v3643_v20 = vunpack.c.l.bf16 %v2633_v4  ;;  %v3380_v16 = vunpack.c.h.bf16 %v2501_v8  ;;  %v2621_v59 = vld [vmem:[#allocation6 + $0xf30] sm:$0xff] }
 0x65a   :  { %4517 = vmatpush1.msra.mxu1 %v3451_v63  ;;  %4447 = vmatprep.subr.mxu0 %v3188_v0  ;;  %v2497_v63 = vld [vmem:[#allocation6 + $0xb50] sm:$0xff]  ;;  %v3636_v0 = vunpack.c.h.bf16 %v2629_v9 }
 0x65b   :  { %4518 = vmatprep.subr.mxu1 %v3444_v19  ;;  %4448 = vmatpush1.msra.mxu0 %v3187_v21  ;;  %v3379_v19 = vunpack.c.l.bf16 %v2501_v8  ;;  %v3635_v21 = vunpack.c.l.bf16 %v2629_v9  ;;  %v3372_v23 = vunpack.c.h.bf16 %v2497_v63  ;;  %v2617_v32 = vld [vmem:[#allocation6 + $0xf10] sm:$0xff] }
 0x65c   :  { %4519 = vmatpush1.msra.mxu1 %v3443_v22  ;;  %4449 = vmatprep.subr.mxu0 %v3180_v60  ;;  %v2493_v22 = vld [vmem:[#allocation6 + $0xb30] sm:$0xff]  ;;  %v3628_v60 = vunpack.c.h.bf16 %v2625_v15 }
 0x65d   :  { %4520 = vmatprep.subr.mxu1 %v3436_v25  ;;  %4450 = vmatpush1.msra.mxu0 %v3179_v30  ;;  %v3371_v25 = vunpack.c.l.bf16 %v2497_v63  ;;  %v3627_v30 = vunpack.c.l.bf16 %v2625_v15  ;;  %v3364_v33 = vunpack.c.h.bf16 %v2493_v22  ;;  %v2613_v38 = vld [vmem:[#allocation6 + $0xef0] sm:$0xff] }
 0x65e   :  { %4521 = vmatpush1.msra.mxu1 %v3435_v31  ;;  %4451 = vmatprep.subr.mxu0 %v3172_v34  ;;  %v2489_v31 = vld [vmem:[#allocation6 + $0xb10] sm:$0xff]  ;;  %v3620_v34 = vunpack.c.h.bf16 %v2621_v59 }
 0x65f   :  { %4522 = vmatprep.subr.mxu1 %v3428_v35  ;;  %4452 = vmatpush1.msra.mxu0 %v3171_v36  ;;  %v3363_v35 = vunpack.c.l.bf16 %v2493_v22  ;;  %v3619_v36 = vunpack.c.l.bf16 %v2621_v59  ;;  %v3356_v39 = vunpack.c.h.bf16 %v2489_v31  ;;  %v2609_v51 = vld [vmem:[#allocation6 + $0xed0] sm:$0xff] }
 0x660   :  { %4523 = vmatpush1.msra.mxu1 %v3427_v37  ;;  %4453 = vmatprep.subr.mxu0 %v3164_v40  ;;  %v2485_v37 = vld [vmem:[#allocation6 + $0xaf0] sm:$0xff]  ;;  %v3612_v40 = vunpack.c.h.bf16 %v2617_v32 }
 0x661   :  { %4524 = vmatprep.subr.mxu1 %v3420_v42  ;;  %4454 = vmatpush1.msra.mxu0 %v3163_v49  ;;  %v3355_v42 = vunpack.c.l.bf16 %v2489_v31  ;;  %v3611_v49 = vunpack.c.l.bf16 %v2617_v32  ;;  %v3348_v52 = vunpack.c.h.bf16 %v2485_v37  ;;  %v2605_v56 = vld [vmem:[#allocation6 + $0xeb0] sm:$0xff] }
 0x662   :  { %4525 = vmatpush1.msra.mxu1 %v3419_v50  ;;  %4455 = vmatprep.subr.mxu0 %v3412_v53  ;;  %v2481_v50 = vld [vmem:[#allocation6 + $0xad0] sm:$0xff]  ;;  %v3604_v53 = vunpack.c.h.bf16 %v2613_v38 }
 0x663   :  { %4526 = vmatprep.subr.mxu1 %v3668_v28  ;;  %4456 = vmatpush2.msra.mxu0 %v3411_v54  ;;  %v3347_v28 = vunpack.c.l.bf16 %v2485_v37  ;;  %v3603_v54 = vunpack.c.l.bf16 %v2613_v38  ;;  %v3340_v57 = vunpack.c.h.bf16 %v2481_v50  ;;  %v2601_v3 = vld [vmem:[#allocation6 + $0xe90] sm:$0xff]  ;;  %v2198_v38 = vld [vmem:[#allocation6 + $0x1f8] sm:$0xff] }
 0x664   :  { %4527 = vmatpush2.msra.mxu1 %v3667_v55  ;;  %4457 = vmatprep.subr.mxu0 %v3404_v58  ;;  %v2477_v55 = vld [vmem:[#allocation6 + $0xab0] sm:$0xff]  ;;  %v3596_v58 = vunpack.c.h.bf16 %v2609_v51 }
 0x665   :  { %4528 = vmatprep.subr.mxu1 %v3660_v62  ;;  %4458 = vmatpush2.msra.mxu0 %v3403_v46  ;;  %v3339_v62 = vunpack.c.l.bf16 %v2481_v50  ;;  %v3595_v46 = vunpack.c.l.bf16 %v2609_v51  ;;  %v3332_v4 = vunpack.c.h.bf16 %v2477_v55  ;;  %v2597_v8 = vld [vmem:[#allocation6 + $0xe70] sm:$0xff]  ;;  %v2194_v50 = vld [vmem:[#allocation6 + $0x1d8] sm:$0xff] }
 0x666   :  { %4529 = vmatpush2.msra.mxu1 %v3659_v2  ;;  %4459 = vmatprep.subr.mxu0 %v3396_v5  ;;  %v2473_v2 = vld [vmem:[#allocation6 + $0xa90] sm:$0xff]  ;;  %v3588_v5 = vunpack.c.h.bf16 %v2605_v56  ;;  %v2322_v51 = vld [vmem:[#allocation6 + $0x5d8] sm:$0xff] }
 0x667   :  { %4530 = vmatprep.subr.mxu1 %v3652_v18  ;;  %4460 = vmatpush2.msra.mxu0 %v3395_v6  ;;  %v3331_v18 = vunpack.c.l.bf16 %v2477_v55  ;;  %v3587_v6 = vunpack.c.l.bf16 %v2605_v56  ;;  %v3324_v9 = vunpack.c.h.bf16 %v2473_v2  ;;  %v2593_v63 = vld [vmem:[#allocation6 + $0xe50] sm:$0xff]  ;;  %v2318_v55 = vld [vmem:[#allocation6 + $0x5b8] sm:$0xff]  ;;  %v2766_v56 = vunpack.c.h.bf16 %v2194_v50 }
 0x668   :  { %4531 = vmatpush2.msra.mxu1 %v3651_v7  ;;  %4461 = vmatprep.subr.mxu0 %v3388_v10  ;;  %v2469_v7 = vld [vmem:[#allocation6 + $0xa70] sm:$0xff]  ;;  %v3580_v10 = vunpack.c.h.bf16 %v2601_v3 }
 0x669   :  { %4532 = vmatprep.subr.mxu1 %v3644_v12  ;;  %4462 = vmatpush2.msra.mxu0 %v3387_v14  ;;  %v3323_v12 = vunpack.c.l.bf16 %v2473_v2  ;;  %v3579_v14 = vunpack.c.l.bf16 %v2601_v3  ;;  %v3316_v15 = vunpack.c.h.bf16 %v2469_v7  ;;  %v2589_v22 = vld [vmem:[#allocation6 + $0xe30] sm:$0xff]  ;;  %v2314_v2 = vld [vmem:[#allocation6 + $0x598] sm:$0xff] }
 0x66a   :  { %4533 = vmatpush2.msra.mxu1 %v3643_v20  ;;  %4463 = vmatprep.subr.mxu0 %v3380_v16  ;;  %v2465_v20 = vld [vmem:[#allocation6 + $0xa50] sm:$0xff]  ;;  %v3572_v16 = vunpack.c.h.bf16 %v2597_v8 }
 0x66b   :  { %4534 = vmatprep.subr.mxu1 %v3636_v0  ;;  %4464 = vmatpush2.msra.mxu0 %v3379_v19  ;;  %v3315_v0 = vunpack.c.l.bf16 %v2469_v7  ;;  %v3571_v19 = vunpack.c.l.bf16 %v2597_v8  ;;  %v3308_v59 = vunpack.c.h.bf16 %v2465_v20  ;;  %v2585_v31 = vld [vmem:[#allocation6 + $0xe10] sm:$0xff]  ;;  %v2310_v7 = vld [vmem:[#allocation6 + $0x578] sm:$0xff] }
 0x66c   :  { %4535 = vmatpush2.msra.mxu1 %v3635_v21  ;;  %4465 = vmatprep.subr.mxu0 %v3372_v23  ;;  %v2461_v21 = vld [vmem:[#allocation6 + $0xa30] sm:$0xff]  ;;  %v3564_v23 = vunpack.c.h.bf16 %v2593_v63  ;;  %v3548_v37 = vunpack.c.h.bf16 %v2585_v31 }
 0x66d   :  { %4536 = vmatprep.subr.mxu1 %v3628_v60  ;;  %4466 = vmatpush2.msra.mxu0 %v3371_v25  ;;  %v3307_v60 = vunpack.c.l.bf16 %v2465_v20  ;;  %v3563_v25 = vunpack.c.l.bf16 %v2593_v63  ;;  %v3300_v32 = vunpack.c.h.bf16 %v2461_v21  ;;  %v2306_v20 = vld [vmem:[#allocation6 + $0x558] sm:$0xff] }
 0x66e   :  { %4537 = vmatpush2.msra.mxu1 %v3627_v30  ;;  %4467 = vmatprep.subr.mxu0 %v3364_v33  ;;  %v2457_v30 = vld [vmem:[#allocation6 + $0xa10] sm:$0xff]  ;;  %v3556_v33 = vunpack.c.h.bf16 %v2589_v22 }
 0x66f   :  { %4538 = vmatprep.subr.mxu1 %v3620_v34  ;;  %4468 = vmatpush2.msra.mxu0 %v3363_v35  ;;  %v3299_v34 = vunpack.c.l.bf16 %v2461_v21  ;;  %v3555_v35 = vunpack.c.l.bf16 %v2589_v22  ;;  %v2302_v21 = vld [vmem:[#allocation6 + $0x538] sm:$0xff] }
 0x670   :  { %4539 = vmatpush2.msra.mxu1 %v3619_v36  ;;  %4469 = vmatprep.subr.mxu0 %v3356_v39  ;;  %v3292_v36 = vunpack.c.h.bf16 %v2457_v30  ;;  %v3291_v39 = vunpack.c.l.bf16 %v2457_v30  ;;  %v2298_v30 = vld [vmem:[#allocation6 + $0x518] sm:$0xff] }
 0x671   :  { %4540 = vmatprep.subr.mxu1 %v3612_v40  ;;  %4470 = vmatpush2.msra.mxu0 %v3355_v42  ;;  %v2326_v40 = vld [vmem:[#allocation6 + $0x5f8] sm:$0xff]  ;;  %v3547_v42 = vunpack.c.l.bf16 %v2585_v31 }
 0x672   :  { %4541 = vmatpush2.msra.mxu1 %v3611_v49  ;;  %4471 = vmatprep.subr.mxu0 %v3348_v52  ;;  %v2774_v49 = vunpack.c.h.bf16 %v2198_v38  ;;  %v3030_v52 = vunpack.c.h.bf16 %v2326_v40 }
 0x673   :  { %4542 = vmatprep.subr.mxu1 %v3604_v53  ;;  %4472 = vmatpush2.msra.mxu0 %v3347_v28  ;;  %v2773_v53 = vunpack.c.l.bf16 %v2198_v38  ;;  %v3029_v28 = vunpack.c.l.bf16 %v2326_v40  ;;  %v2974_v38 = vunpack.c.h.bf16 %v2298_v30  ;;  %v2973_v40 = vunpack.c.l.bf16 %v2298_v30 }
 0x674   :  { %4543 = vmatpush2.msra.mxu1 %v3603_v54  ;;  %4473 = vmatprep.subr.mxu0 %v3340_v57  ;;  %v2190_v54 = vld [vmem:[#allocation6 + $0x1b8] sm:$0xff]  ;;  %v3022_v57 = vunpack.c.h.bf16 %v2322_v51 }
 0x675   :  { %4544 = vmatprep.subr.mxu1 %v3596_v58  ;;  %4474 = vmatpush2.msra.mxu0 %v3339_v62  ;;  %v2765_v58 = vunpack.c.l.bf16 %v2194_v50  ;;  %v3021_v62 = vunpack.c.l.bf16 %v2322_v51  ;;  %v2758_v3 = vunpack.c.h.bf16 %v2190_v54 }
 0x676   :  { %4545 = vmatpush2.msra.mxu1 %v3595_v46  ;;  %4475 = vmatprep.subr.mxu0 %v3332_v4  ;;  %v2186_v46 = vld [vmem:[#allocation6 + $0x198] sm:$0xff]  ;;  %v3014_v4 = vunpack.c.h.bf16 %v2318_v55 }
 0x677   :  { %4546 = vmatprep.subr.mxu1 %v3588_v5  ;;  %4476 = vmatpush2.msra.mxu0 %v3331_v18  ;;  %v2757_v5 = vunpack.c.l.bf16 %v2190_v54  ;;  %v3013_v18 = vunpack.c.l.bf16 %v2318_v55  ;;  %v2750_v8 = vunpack.c.h.bf16 %v2186_v46  ;;  %v2286_v54 = vld [vmem:[#allocation6 + $0x4b8] sm:$0xff] }
 0x678   :  { %4547 = vmatpush2.msra.mxu1 %v3587_v6  ;;  %4477 = vmatprep.subr.mxu0 %v3324_v9  ;;  %v2182_v6 = vld [vmem:[#allocation6 + $0x178] sm:$0xff]  ;;  %v3006_v9 = vunpack.c.h.bf16 %v2314_v2 }
 0x679   :  { %4548 = vmatprep.subr.mxu1 %v3580_v10  ;;  %4478 = vmatpush2.msra.mxu0 %v3323_v12  ;;  %v2749_v10 = vunpack.c.l.bf16 %v2186_v46  ;;  %v3005_v12 = vunpack.c.l.bf16 %v2314_v2  ;;  %v2742_v63 = vunpack.c.h.bf16 %v2182_v6  ;;  %v2282_v46 = vld [vmem:[#allocation6 + $0x498] sm:$0xff] }
 0x67a   :  { %4549 = vmatpush2.msra.mxu1 %v3579_v14  ;;  %4479 = vmatprep.subr.mxu0 %v3316_v15  ;;  %v2178_v14 = vld [vmem:[#allocation6 + $0x158] sm:$0xff]  ;;  %v2998_v15 = vunpack.c.h.bf16 %v2310_v7 }
 0x67b   :  { %4550 = vmatprep.subr.mxu1 %v3572_v16  ;;  %4480 = vmatpush2.msra.mxu0 %v3315_v0  ;;  %v2741_v16 = vunpack.c.l.bf16 %v2182_v6  ;;  %v2997_v0 = vunpack.c.l.bf16 %v2310_v7  ;;  %v2734_v22 = vunpack.c.h.bf16 %v2178_v14  ;;  %v2278_v6 = vld [vmem:[#allocation6 + $0x478] sm:$0xff] }
 0x67c   :  { %4551 = vmatpush2.msra.mxu1 %v3571_v19  ;;  %4481 = vmatprep.subr.mxu0 %v3308_v59  ;;  %v2174_v19 = vld [vmem:[#allocation6 + $0x138] sm:$0xff]  ;;  %v2990_v59 = vunpack.c.h.bf16 %v2306_v20 }
 0x67d   :  { %4552 = vmatprep.subr.mxu1 %v3564_v23  ;;  %4482 = vmatpush2.msra.mxu0 %v3307_v60  ;;  %v2733_v23 = vunpack.c.l.bf16 %v2178_v14  ;;  %v2989_v60 = vunpack.c.l.bf16 %v2306_v20  ;;  %v2726_v31 = vunpack.c.h.bf16 %v2174_v19  ;;  %v2274_v14 = vld [vmem:[#allocation6 + $0x458] sm:$0xff] }
 0x67e   :  { %4553 = vmatpush2.msra.mxu1 %v3563_v25  ;;  %4483 = vmatprep.subr.mxu0 %v3300_v32  ;;  %v2170_v25 = vld [vmem:[#allocation6 + $0x118] sm:$0xff]  ;;  %v2982_v32 = vunpack.c.h.bf16 %v2302_v21 }
 0x67f   :  { %4554 = vmatprep.subr.mxu1 %v3556_v33  ;;  %4484 = vmatpush2.msra.mxu0 %v3299_v34  ;;  %v2725_v33 = vunpack.c.l.bf16 %v2174_v19  ;;  %v2981_v34 = vunpack.c.l.bf16 %v2302_v21  ;;  %v2270_v19 = vld [vmem:[#allocation6 + $0x438] sm:$0xff] }
 0x680   :  { %4555 = vmatpush2.msra.mxu1 %v3555_v35  ;;  %4485 = vmatprep.subr.mxu0 %v3292_v36  ;;  %v2166_v35 = vld [vmem:[#allocation6 + $0xf8] sm:$0xff] }
 0x681   :  { %4556 = vmatprep.subr.mxu1 %v3548_v37  ;;  %4486 = vmatpush2.msra.mxu0 %v3291_v39  ;;  %v2294_v36 = vld [vmem:[#allocation6 + $0x4f8] sm:$0xff]  ;;  %v2718_v37 = vunpack.c.h.bf16 %v2170_v25  ;;  %v2717_v39 = vunpack.c.l.bf16 %v2170_v25  ;;  %v2710_v50 = vunpack.c.h.bf16 %v2166_v35 }
 0x682   :  { %4487 = vmatprep.mubr.f32.mxu0 %v5310_v44  ;;  %4557 = vmatpush2.msra.mxu1 %v3547_v42  ;;  %v2162_v42 = vld [vmem:[#allocation6 + $0xd8] sm:$0xff]  ;;  %v2966_v51 = vunpack.c.h.bf16 %v2294_v36 }
 0x683   :  { %4488 = vmatmul.mubr.f32.vlgmr.msra.gmra.mxu0 %v5308_v41  ;;  %4558 = vmatprep.mubr.f32.mxu1 %v5322_v1  ;;  %v2702_v55 = vunpack.c.h.bf16 %v2162_v42  ;;  %v2266_v25 = vld [vmem:[#allocation6 + $0x418] sm:$0xff] }
 0x684   :  { %4565 = vmatprep.subr.mxu0 %v2774_v49  ;;  %4636 = vmatprep.subr.mxu1 %v3030_v52  ;;  %v2290_v49 = vld [vmem:[#allocation6 + $0x4d8] sm:$0xff]  ;;  %v2709_v52 = vunpack.c.l.bf16 %v2166_v35 }
 0x685   :  { %4559 = vmatmul.mubr.f32.vlgmr.msra.gmra.mxu1 %v5320_v61  ;;  %4566 = vmatpush1.msra.mxu0 %v2773_v53  ;;  %v2965_v53 = vunpack.c.l.bf16 %v2294_v36  ;;  %v2390_v35 = vld [vmem:[#allocation6 + $0x7f8] sm:$0xff] }
 0x686   :  { %4637 = vmatpush1.msra.mxu1 %v3029_v28  ;;  %4567 = vmatprep.subr.mxu0 %v2766_v56  ;;  %v2158_v28 = vld [vmem:[#allocation6 + $0xb8] sm:$0xff]  ;;  %v2958_v56 = vunpack.c.h.bf16 %v2290_v49 }
 0x687   :  { %4638 = vmatprep.subr.mxu1 %v3022_v57  ;;  %4568 = vmatpush1.msra.mxu0 %v2765_v58  ;;  %v2701_v57 = vunpack.c.l.bf16 %v2162_v42  ;;  %v2957_v58 = vunpack.c.l.bf16 %v2290_v49  ;;  %v2694_v2 = vunpack.c.h.bf16 %v2158_v28  ;;  %v2386_v42 = vld [vmem:[#allocation6 + $0x7d8] sm:$0xff] }
 0x688   :  { %4639 = vmatpush1.msra.mxu1 %v3021_v62  ;;  %4569 = vmatprep.subr.mxu0 %v2758_v3  ;;  %v2154_v62 = vld [vmem:[#allocation6 + $0x98] sm:$0xff]  ;;  %v2950_v3 = vunpack.c.h.bf16 %v2286_v54 }
 0x689   :  { %4640 = vmatprep.subr.mxu1 %v3014_v4  ;;  %4570 = vmatpush1.msra.mxu0 %v2757_v5  ;;  %v2693_v4 = vunpack.c.l.bf16 %v2158_v28  ;;  %v2949_v5 = vunpack.c.l.bf16 %v2286_v54  ;;  %v2686_v7 = vunpack.c.h.bf16 %v2154_v62  ;;  %v2382_v28 = vld [vmem:[#allocation6 + $0x7b8] sm:$0xff] }
 0x68a   :  { %4641 = vmatpush1.msra.mxu1 %v3013_v18  ;;  %4571 = vmatprep.subr.mxu0 %v2750_v8  ;;  %v2150_v18 = vld [vmem:[#allocation6 + $0x78] sm:$0xff]  ;;  %v2942_v8 = vunpack.c.h.bf16 %v2282_v46 }
 0x68b   :  { %4642 = vmatprep.subr.mxu1 %v3006_v9  ;;  %4572 = vmatpush1.msra.mxu0 %v2749_v10  ;;  %v2685_v9 = vunpack.c.l.bf16 %v2154_v62  ;;  %v2941_v10 = vunpack.c.l.bf16 %v2282_v46  ;;  %v2678_v20 = vunpack.c.h.bf16 %v2150_v18  ;;  %v2378_v62 = vld [vmem:[#allocation6 + $0x798] sm:$0xff] }
 0x68c   :  { %4643 = vmatpush1.msra.mxu1 %v3005_v12  ;;  %4573 = vmatprep.subr.mxu0 %v2742_v63  ;;  %v2146_v12 = vld [vmem:[#allocation6 + $0x58] sm:$0xff]  ;;  %v2934_v63 = vunpack.c.h.bf16 %v2278_v6 }
 0x68d   :  { %4644 = vmatprep.subr.mxu1 %v2998_v15  ;;  %4574 = vmatpush1.msra.mxu0 %v2741_v16  ;;  %v2677_v15 = vunpack.c.l.bf16 %v2150_v18  ;;  %v2933_v16 = vunpack.c.l.bf16 %v2278_v6  ;;  %v2670_v21 = vunpack.c.h.bf16 %v2146_v12  ;;  %v2374_v18 = vld [vmem:[#allocation6 + $0x778] sm:$0xff] }
 0x68e   :  { %4645 = vmatpush1.msra.mxu1 %v2997_v0  ;;  %4575 = vmatprep.subr.mxu0 %v2734_v22  ;;  %v2142_v0 = vld [vmem:[#allocation6 + $0x38] sm:$0xff]  ;;  %v2926_v22 = vunpack.c.h.bf16 %v2274_v14 }
 0x68f   :  { %4646 = vmatprep.subr.mxu1 %v2990_v59  ;;  %4576 = vmatpush1.msra.mxu0 %v2733_v23  ;;  %v2669_v59 = vunpack.c.l.bf16 %v2146_v12  ;;  %v2925_v23 = vunpack.c.l.bf16 %v2274_v14  ;;  %v2662_v30 = vunpack.c.h.bf16 %v2142_v0  ;;  %v2370_v12 = vld [vmem:[#allocation6 + $0x758] sm:$0xff] }
 0x690   :  { %4647 = vmatpush1.msra.mxu1 %v2989_v60  ;;  %4577 = vmatprep.subr.mxu0 %v2726_v31  ;;  %v2138_v60 = vld [vmem:[#allocation6 + $0x18] sm:$0xff]  ;;  %v2918_v31 = vunpack.c.h.bf16 %v2270_v19 }
 0x691   :  { %4648 = vmatprep.subr.mxu1 %v2982_v32  ;;  %4578 = vmatpush1.msra.mxu0 %v2725_v33  ;;  %v2661_v32 = vunpack.c.l.bf16 %v2142_v0  ;;  %v2917_v33 = vunpack.c.l.bf16 %v2270_v19  ;;  %v2654_v36 = vunpack.c.h.bf16 %v2138_v60  ;;  %v2366_v0 = vld [vmem:[#allocation6 + $0x738] sm:$0xff] }
 0x692   :  { %4649 = vmatpush1.msra.mxu1 %v2981_v34  ;;  %4579 = vmatprep.subr.mxu0 %v2718_v37  ;;  %v2262_v34 = vld [vmem:[#allocation6 + $0x3f8] sm:$0xff]  ;;  %v2910_v37 = vunpack.c.h.bf16 %v2266_v25 }
 0x693   :  { %4650 = vmatprep.subr.mxu1 %v2974_v38  ;;  %4580 = vmatpush1.msra.mxu0 %v2717_v39  ;;  %v2653_v38 = vunpack.c.l.bf16 %v2138_v60  ;;  %v2909_v39 = vunpack.c.l.bf16 %v2266_v25  ;;  %v2902_v49 = vunpack.c.h.bf16 %v2262_v34  ;;  %v2362_v60 = vld [vmem:[#allocation6 + $0x718] sm:$0xff] }
 0x694   :  { %4651 = vmatpush1.msra.mxu1 %v2973_v40  ;;  %4581 = vmatprep.subr.mxu0 %v2710_v50  ;;  %v2258_v40 = vld [vmem:[#allocation6 + $0x3d8] sm:$0xff]  ;;  %v3158_v50 = vunpack.c.h.bf16 %v2390_v35 }
 0x695   :  { %4652 = vmatprep.subr.mxu1 %v2966_v51  ;;  %4582 = vmatpush1.msra.mxu0 %v2709_v52  ;;  %v2901_v51 = vunpack.c.l.bf16 %v2262_v34  ;;  %v3157_v52 = vunpack.c.l.bf16 %v2390_v35  ;;  %v2894_v54 = vunpack.c.h.bf16 %v2258_v40  ;;  %v2358_v34 = vld [vmem:[#allocation6 + $0x6f8] sm:$0xff] }
 0x696   :  { %4653 = vmatpush1.msra.mxu1 %v2965_v53  ;;  %4583 = vmatprep.subr.mxu0 %v2702_v55  ;;  %v2254_v53 = vld [vmem:[#allocation6 + $0x3b8] sm:$0xff]  ;;  %v3150_v55 = vunpack.c.h.bf16 %v2386_v42 }
 0x697   :  { %4654 = vmatprep.subr.mxu1 %v2958_v56  ;;  %4584 = vmatpush1.msra.mxu0 %v2701_v57  ;;  %v2893_v56 = vunpack.c.l.bf16 %v2258_v40  ;;  %v3149_v57 = vunpack.c.l.bf16 %v2386_v42  ;;  %v2886_v46 = vunpack.c.h.bf16 %v2254_v53  ;;  %v2354_v40 = vld [vmem:[#allocation6 + $0x6d8] sm:$0xff] }
 0x698   :  { %4655 = vmatpush1.msra.mxu1 %v2957_v58  ;;  %4585 = vmatprep.subr.mxu0 %v2694_v2  ;;  %v2250_v58 = vld [vmem:[#allocation6 + $0x398] sm:$0xff]  ;;  %v3142_v2 = vunpack.c.h.bf16 %v2382_v28 }
 0x699   :  { %4656 = vmatprep.subr.mxu1 %v2950_v3  ;;  %4586 = vmatpush1.msra.mxu0 %v2693_v4  ;;  %v2885_v3 = vunpack.c.l.bf16 %v2254_v53  ;;  %v3141_v4 = vunpack.c.l.bf16 %v2382_v28  ;;  %v2878_v6 = vunpack.c.h.bf16 %v2250_v58  ;;  %v2350_v53 = vld [vmem:[#allocation6 + $0x6b8] sm:$0xff] }
 0x69a   :  { %4657 = vmatpush1.msra.mxu1 %v2949_v5  ;;  %4587 = vmatprep.subr.mxu0 %v2686_v7  ;;  %v2246_v5 = vld [vmem:[#allocation6 + $0x378] sm:$0xff]  ;;  %v3134_v7 = vunpack.c.h.bf16 %v2378_v62 }
 0x69b   :  { %4658 = vmatprep.subr.mxu1 %v2942_v8  ;;  %4588 = vmatpush1.msra.mxu0 %v2685_v9  ;;  %v2877_v8 = vunpack.c.l.bf16 %v2250_v58  ;;  %v3133_v9 = vunpack.c.l.bf16 %v2378_v62  ;;  %v2870_v14 = vunpack.c.h.bf16 %v2246_v5  ;;  %v2346_v58 = vld [vmem:[#allocation6 + $0x698] sm:$0xff]  ;;  %v4063_v62 = vpop.f32.mrf.mxu0 }
 0x69c   :  { %4659 = vmatpush1.msra.mxu1 %v2941_v10  ;;  %4589 = vmatprep.subr.mxu0 %v2678_v20  ;;  %v2242_v10 = vld [vmem:[#allocation6 + $0x358] sm:$0xff]  ;;  %v3126_v20 = vunpack.c.h.bf16 %v2374_v18 }
 0x69d   :  { %4660 = vmatprep.subr.mxu1 %v2934_v63  ;;  %4590 = vmatpush1.msra.mxu0 %v2677_v15  ;;  %v2869_v63 = vunpack.c.l.bf16 %v2246_v5  ;;  %v3125_v15 = vunpack.c.l.bf16 %v2374_v18  ;;  %v2862_v19 = vunpack.c.h.bf16 %v2242_v10  ;;  %v3077_v18 = vunpack.c.l.bf16 %v2350_v53 }
 0x69e   :  { %4661 = vmatpush1.msra.mxu1 %v2933_v16  ;;  %4591 = vmatprep.subr.mxu0 %v2670_v21  ;;  %v2238_v16 = vld [vmem:[#allocation6 + $0x338] sm:$0xff]  ;;  %v3118_v21 = vunpack.c.h.bf16 %v2370_v12 }
 0x69f   :  { %4662 = vmatprep.subr.mxu1 %v2926_v22  ;;  %4592 = vmatpush1.msra.mxu0 %v2669_v59  ;;  %v2861_v22 = vunpack.c.l.bf16 %v2242_v10  ;;  %v3117_v59 = vunpack.c.l.bf16 %v2370_v12  ;;  %v2854_v25 = vunpack.c.h.bf16 %v2238_v16 }
 0x6a0   :  { %4663 = vmatpush1.msra.mxu1 %v2925_v23  ;;  %4593 = vmatprep.subr.mxu0 %v2662_v30  ;;  %v2234_v23 = vld [vmem:[#allocation6 + $0x318] sm:$0xff]  ;;  %v3110_v30 = vunpack.c.h.bf16 %v2366_v0 }
 0x6a1   :  { %4664 = vmatprep.subr.mxu1 %v2918_v31  ;;  %4594 = vmatpush1.msra.mxu0 %v2661_v32  ;;  %v2853_v31 = vunpack.c.l.bf16 %v2238_v16  ;;  %v3109_v32 = vunpack.c.l.bf16 %v2366_v0  ;;  %v2846_v35 = vunpack.c.h.bf16 %v2234_v23 }
 0x6a2   :  { %4665 = vmatpush1.msra.mxu1 %v2917_v33  ;;  %4595 = vmatprep.subr.mxu0 %v2654_v36  ;;  %v2230_v33 = vld [vmem:[#allocation6 + $0x2f8] sm:$0xff]  ;;  %v3102_v36 = vunpack.c.h.bf16 %v2362_v60 }
 0x6a3   :  { %4666 = vmatprep.subr.mxu1 %v2910_v37  ;;  %4596 = vmatpush1.msra.mxu0 %v2653_v38  ;;  %v2845_v37 = vunpack.c.l.bf16 %v2234_v23  ;;  %v3101_v38 = vunpack.c.l.bf16 %v2362_v60  ;;  %v2838_v42 = vunpack.c.h.bf16 %v2230_v33  ;;  %v2334_v23 = vld [vmem:[#allocation6 + $0x638] sm:$0xff] }
 0x6a4   :  { %4667 = vmatpush1.msra.mxu1 %v2909_v39  ;;  %4597 = vmatprep.subr.mxu0 %v2902_v49  ;;  %v2226_v39 = vld [vmem:[#allocation6 + $0x2d8] sm:$0xff]  ;;  %v3094_v49 = vunpack.c.h.bf16 %v2358_v34 }
 0x6a5   :  { %4668 = vmatprep.subr.mxu1 %v3158_v50  ;;  %4598 = vmatpush2.msra.mxu0 %v2901_v51  ;;  %v2837_v50 = vunpack.c.l.bf16 %v2230_v33  ;;  %v3093_v51 = vunpack.c.l.bf16 %v2358_v34  ;;  %v2830_v28 = vunpack.c.h.bf16 %v2226_v39  ;;  %v2330_v33 = vld [vmem:[#allocation6 + $0x618] sm:$0xff] }
 0x6a6   :  { %4669 = vmatpush2.msra.mxu1 %v3157_v52  ;;  %4599 = vmatprep.subr.mxu0 %v2894_v54  ;;  %v2222_v52 = vld [vmem:[#allocation6 + $0x2b8] sm:$0xff]  ;;  %v3086_v54 = vunpack.c.h.bf16 %v2354_v40 }
 0x6a7   :  { %4670 = vmatprep.subr.mxu1 %v3150_v55  ;;  %4600 = vmatpush2.msra.mxu0 %v2893_v56  ;;  %v2829_v55 = vunpack.c.l.bf16 %v2226_v39  ;;  %v3085_v56 = vunpack.c.l.bf16 %v2354_v40  ;;  %v2821_v5 = vunpack.c.l.bf16 %v2222_v52  ;;  %v3045_v39 = vunpack.c.l.bf16 %v2334_v23 }
 0x6a8   :  { %4671 = vmatpush2.msra.mxu1 %v3149_v57  ;;  %4601 = vmatprep.subr.mxu0 %v2886_v46  ;;  %v2218_v57 = vld [vmem:[#allocation6 + $0x298] sm:$0xff]  ;;  %v2822_v46 = vunpack.c.h.bf16 %v2222_v52 }
 0x6a9   :  { %4672 = vmatprep.subr.mxu1 %v3142_v2  ;;  %4602 = vmatpush2.msra.mxu0 %v2885_v3  ;;  %v3078_v2 = vunpack.c.h.bf16 %v2350_v53  ;;  %v5356_v3 = vld [vmem:[#allocation8 + $0xf] sm:$0xff]  ;;  %v2813_v12 = vunpack.c.l.bf16 %v2218_v57 }
 0x6aa   :  { %4673 = vmatpush2.msra.mxu1 %v3141_v4  ;;  %4603 = vmatprep.subr.mxu0 %v2878_v6  ;;  %v3684_v4 = vrot.slane %v5356_v3, %v5249_v43  ;;  %v2214_v6 = vld [vmem:[#allocation6 + $0x278] sm:$0xff]  ;;  %v3688_v10 = vrot.slane %v5356_v3, %v5252_v45  ;;  %v4134_v43 = vpop.f32.mrf.mxu1 }
 0x6ab   :  { %4674 = vmatprep.subr.mxu1 %v3134_v7  ;;  %4604 = vmatpush2.msra.mxu0 %v2877_v8  ;;  %v2342_v7 = vld [vmem:[#allocation6 + $0x678] sm:$0xff]  ;;  %v2814_v8 = vunpack.c.h.bf16 %v2218_v57  ;;  %v2806_v16 = vunpack.c.h.bf16 %v2214_v6 }
 0x6ac   :  { %4675 = vmatpush2.msra.mxu1 %v3133_v9  ;;  %4605 = vmatprep.subr.mxu0 %v2870_v14  ;;  %v3070_v9 = vunpack.c.h.bf16 %v2346_v58  ;;  %v3069_v14 = vunpack.c.l.bf16 %v2346_v58  ;;  %v3062_v0 = vunpack.c.h.bf16 %v2342_v7  ;;  %v4136_v34 = vpop.f32.mrf.mxu1 }
 0x6ad   :  { %4676 = vmatprep.subr.mxu1 %v3126_v20  ;;  %4606 = vmatpush2.msra.mxu0 %v2869_v63  ;;  %v2210_v20 = vld [vmem:[#allocation6 + $0x258] sm:$0xff] }
 0x6ae   :  { %4677 = vmatpush2.msra.mxu1 %v3125_v15  ;;  %4607 = vmatprep.subr.mxu0 %v2862_v19  ;;  %v2338_v63 = vld [vmem:[#allocation6 + $0x658] sm:$0xff]  ;;  %v4065_v15 = vpop.f32.mrf.mxu0  ;;  %v4064_v19 = vadd.f32 %v4063_v62, %v3684_v4  ;;  %v2798_v45 = vunpack.c.h.bf16 %v2210_v20 }
 0x6af   :  { %4678 = vmatprep.subr.mxu1 %v3118_v21  ;;  %4608 = vmatpush2.msra.mxu0 %v2861_v22  ;;  %v2805_v21 = vunpack.c.l.bf16 %v2214_v6  ;;  %v3061_v22 = vunpack.c.l.bf16 %v2342_v7  ;;  %v3054_v60 = vunpack.c.h.bf16 %v2338_v63 }
 0x6b0   :  { %4679 = vmatpush2.msra.mxu1 %v3117_v59  ;;  %4609 = vmatprep.subr.mxu0 %v2854_v25  ;;  %v2206_v59 = vld [vmem:[#allocation6 + $0x238] sm:$0xff]  ;;  %v4066_v25 = vadd.f32 %v4065_v15, %v3688_v10 }
 0x6b1   :  { %4680 = vmatprep.subr.mxu1 %v3110_v30  ;;  %4610 = vmatpush2.msra.mxu0 %v2853_v31  ;;  %v2797_v30 = vunpack.c.l.bf16 %v2210_v20  ;;  %v3053_v31 = vunpack.c.l.bf16 %v2338_v63  ;;  %v2570_v63 = vld [vmem:[#allocation6 + $0xd98] sm:$0xff] }
 0x6b2   :  { %4681 = vmatpush2.msra.mxu1 %v3109_v32  ;;  %4611 = vmatprep.subr.mxu0 %v2846_v35  ;;  %v2202_v32 = vld [vmem:[#allocation6 + $0x218] sm:$0xff]  ;;  %v2790_v35 = vunpack.c.h.bf16 %v2206_v59 }
 0x6b3   :  { %4682 = vmatprep.subr.mxu1 %v3102_v36  ;;  %4612 = vmatpush2.msra.mxu0 %v2845_v37  ;;  %v3046_v36 = vunpack.c.h.bf16 %v2334_v23  ;;  %v4135_v37 = vadd.f32 %v4134_v43, %v4064_v19  ;;  %v2782_v40 = vunpack.c.h.bf16 %v2202_v32  ;;  %v2781_v52 = vunpack.c.l.bf16 %v2202_v32  ;;  %v2434_v23 = vld [vmem:[#allocation6 + $0x958] sm:$0xff] }
 0x6b4   :  { %4683 = vmatpush2.msra.mxu1 %v3101_v38  ;;  %4613 = vmatprep.subr.mxu0 %v2838_v42  ;;  %v2789_v38 = vunpack.c.l.bf16 %v2206_v59  ;;  %v3038_v42 = vunpack.c.h.bf16 %v2330_v33  ;;  %v3517_v59 = vunpack.c.l.bf16 %v2570_v63  ;;  %v2558_v32 = vld [vmem:[#allocation6 + $0xd38] sm:$0xff] }
 0x6b5   :  { %4684 = vmatprep.subr.mxu1 %v3094_v49  ;;  %4614 = vmatpush2.msra.mxu0 %v2837_v50  ;;  %v2454_v50 = vld [vmem:[#allocation6 + $0x9f8] sm:$0xff] }
 0x6b6   :  { %4685 = vmatpush2.msra.mxu1 %v3093_v51  ;;  %4615 = vmatprep.subr.mxu0 %v2830_v28  ;;  %v4137_v51 = vadd.f32 %v4136_v34, %v4066_v25  ;;  %v2582_v28 = vld [vmem:[#allocation6 + $0xdf8] sm:$0xff]  ;;  %v3286_v57 = vunpack.c.h.bf16 %v2454_v50 }
 0x6b7   :  { %4686 = vmatprep.subr.mxu1 %v3086_v54  ;;  %4616 = vmatpush2.msra.mxu0 %v2829_v55  ;;  %v3037_v54 = vunpack.c.l.bf16 %v2330_v33  ;;  %v3542_v4 = vunpack.c.h.bf16 %v2582_v28  ;;  %v3541_v6 = vunpack.c.l.bf16 %v2582_v28  ;;  %v3246_v33 = vunpack.c.h.bf16 %v2434_v23 }
 0x6b8   :  { %4687 = vmatpush2.msra.mxu1 %v3085_v56  ;;  %4617 = vmatprep.subr.mxu0 %v2822_v46  ;;  %v2450_v46 = vld [vmem:[#allocation6 + $0x9d8] sm:$0xff] }
 0x6b9   :  { %4688 = vmatprep.subr.mxu1 %v3078_v2  ;;  %4618 = vmatpush2.msra.mxu0 %v2821_v5  ;;  %v2578_v2 = vld [vmem:[#allocation6 + $0xdd8] sm:$0xff]  ;;  %v3278_v10 = vunpack.c.h.bf16 %v2450_v46 }
 0x6ba   :  { %4689 = vmatpush2.msra.mxu1 %v3077_v18  ;;  %4619 = vmatprep.subr.mxu0 %v2814_v8  ;;  %v3285_v18 = vunpack.c.l.bf16 %v2454_v50  ;;  %v2446_v8 = vld [vmem:[#allocation6 + $0x9b8] sm:$0xff]  ;;  %v3533_v20 = vunpack.c.l.bf16 %v2578_v2 }
 0x6bb   :  { %4690 = vmatprep.subr.mxu1 %v3070_v9  ;;  %4620 = vmatpush2.msra.mxu0 %v2813_v12  ;;  %v2574_v9 = vld [vmem:[#allocation6 + $0xdb8] sm:$0xff]  ;;  %v3534_v12 = vunpack.c.h.bf16 %v2578_v2  ;;  %v3270_v43 = vunpack.c.h.bf16 %v2446_v8 }
 0x6bc   :  { %4691 = vmatpush2.msra.mxu1 %v3069_v14  ;;  %4621 = vmatprep.subr.mxu0 %v2806_v16  ;;  %v3277_v14 = vunpack.c.l.bf16 %v2450_v46  ;;  %v3526_v15 = vunpack.c.h.bf16 %v2574_v9  ;;  %v3525_v16 = vunpack.c.l.bf16 %v2574_v9  ;;  %v2422_v50 = vld [vmem:[#allocation6 + $0x8f8] sm:$0xff] }
 0x6bd   :  { %4692 = vmatprep.subr.mxu1 %v3062_v0  ;;  %4622 = vmatpush2.msra.mxu0 %v2805_v21  ;;  %v2438_v0 = vld [vmem:[#allocation6 + $0x978] sm:$0xff]  ;;  %v3518_v21 = vunpack.c.h.bf16 %v2570_v63 }
 0x6be   :  { %4693 = vmatpush2.msra.mxu1 %v3061_v22  ;;  %4623 = vmatprep.subr.mxu0 %v2798_v45  ;;  %v2562_v45 = vld [vmem:[#allocation6 + $0xd58] sm:$0xff]  ;;  %v3253_v25 = vunpack.c.l.bf16 %v2438_v0 }
 0x6bf   :  { %4694 = vmatprep.subr.mxu1 %v3054_v60  ;;  %v4205_v49 = vpop.f32.mrf.mxu0  ;;  %4624 = vmatpush2.msra.mxu0 %v2797_v30  ;;  %v3502_v34 = vunpack.c.h.bf16 %v2562_v45  ;;  %v2414_v2 = vld [vmem:[#allocation6 + $0x8b8] sm:$0xff] }
 0x6c0   :  { %4695 = vmatpush2.msra.mxu1 %v3053_v31  ;;  %v4206_v53 = vadd.f32 %v4205_v49, %v4135_v37  ;;  %4625 = vmatprep.subr.mxu0 %v2790_v35  ;;  %v2430_v31 = vld [vmem:[#allocation6 + $0x938] sm:$0xff]  ;;  %v3245_v35 = vunpack.c.l.bf16 %v2434_v23  ;;  %v3493_v49 = vunpack.c.l.bf16 %v2558_v32 }
 0x6c1   :  { %4696 = vmatprep.subr.mxu1 %v3046_v36  ;;  %v4276_v55 = vpop.f32.mrf.mxu1  ;;  %v4207_v56 = vpop.f32.mrf.mxu0  ;;  %4626 = vmatpush2.msra.mxu0 %v2789_v38  ;;  %v3501_v36 = vunpack.c.l.bf16 %v2562_v45  ;;  %v2426_v37 = vld [vmem:[#allocation6 + $0x918] sm:$0xff] }
 0x6c2   :  { %4697 = vmatpush2.msra.mxu1 %v3045_v39  ;;  %v4277_v58 = vadd.f32 %v4276_v55, %v4206_v53  ;;  %v4208_v62 = vadd.f32 %v4207_v56, %v4137_v51  ;;  %4627 = vmatprep.subr.mxu0 %v2782_v40  ;;  %v2554_v38 = vld [vmem:[#allocation6 + $0xd18] sm:$0xff]  ;;  %v3238_v39 = vunpack.c.h.bf16 %v2430_v31  ;;  %v3494_v40 = vunpack.c.h.bf16 %v2558_v32 }
 0x6c3   :  { %4698 = vmatprep.subr.mxu1 %v3038_v42  ;;  %v4278_v5 = vpop.f32.mrf.mxu1  ;;  %4628 = vmatpush2.msra.mxu0 %v2781_v52  ;;  %v3237_v42 = vunpack.c.l.bf16 %v2430_v31  ;;  %v2550_v51 = vld [vmem:[#allocation6 + $0xcf8] sm:$0xff]  ;;  %v3230_v52 = vunpack.c.h.bf16 %v2426_v37  ;;  %v3486_v53 = vunpack.c.h.bf16 %v2554_v38  ;;  %v3229_v28 = vunpack.c.l.bf16 %v2426_v37 }
 0x6c4   :  { %4629 = vmatprep.mubr.f32.mxu0 %v5290_v13  ;;  %4851 = vst [vmem:[%s5407_s7 + $0x10] sm:$0xff] %v4277_v58  ;;  %v4279_v7 = vadd.f32 %v4278_v5, %v4208_v62  ;;  %4699 = vmatpush2.msra.mxu1 %v3037_v54  ;;  %v2442_v13 = vld [vmem:[#allocation6 + $0x998] sm:$0xff]  ;;  %v3485_v54 = vunpack.c.l.bf16 %v2554_v38  ;;  %v3478_v58 = vunpack.c.h.bf16 %v2550_v51  ;;  %v3221_v62 = vunpack.c.l.bf16 %v2422_v50 }
 0x6c5   :  { %4630 = vmatmul.mubr.f32.vlgmr.msra.gmra.mxu0 %v5288_v11  ;;  %4700 = vmatprep.mubr.f32.mxu1 %v5298_v26  ;;  %v3269_v11 = vunpack.c.l.bf16 %v2446_v8  ;;  %v2566_v26 = vld [vmem:[#allocation6 + $0xd78] sm:$0xff]  ;;  %v3262_v19 = vunpack.c.h.bf16 %v2442_v13  ;;  %v3261_v22 = vunpack.c.l.bf16 %v2442_v13  ;;  %v3477_v46 = vunpack.c.l.bf16 %v2550_v51 }
 0x6c6   :  { %4707 = vmatprep.subr.mxu0 %v3286_v57  ;;  %4852 = vst [vmem:[%s5407_s7 + $0x18] sm:$0xff] %v4279_v7  ;;  %4778 = vmatprep.subr.mxu1 %v3542_v4  ;;  %v3510_v60 = vunpack.c.h.bf16 %v2566_v26  ;;  %v3509_v30 = vunpack.c.l.bf16 %v2566_v26  ;;  %v2418_v55 = vld [vmem:[#allocation6 + $0x8d8] sm:$0xff]  ;;  %v3222_v57 = vunpack.c.h.bf16 %v2422_v50 }
 0x6c7   :  { %4701 = vmatmul.mubr.f32.vlgmr.msra.gmra.mxu1 %v5296_v24  ;;  %4708 = vmatpush1.msra.mxu0 %v3285_v18  ;;  %v3254_v24 = vunpack.c.h.bf16 %v2438_v0  ;;  %v2546_v56 = vld [vmem:[#allocation6 + $0xcd8] sm:$0xff]  ;;  %v3214_v5 = vunpack.c.h.bf16 %v2418_v55 }
 0x6c8   :  { %4779 = vmatpush1.msra.mxu1 %v3541_v6  ;;  %4709 = vmatprep.subr.mxu0 %v3278_v10  ;;  %v2542_v4 = vld [vmem:[#allocation6 + $0xcb8] sm:$0xff]  ;;  %v3470_v18 = vunpack.c.h.bf16 %v2546_v56  ;;  %v3213_v6 = vunpack.c.l.bf16 %v2418_v55  ;;  %v3469_v7 = vunpack.c.l.bf16 %v2546_v56  ;;  %v3206_v10 = vunpack.c.h.bf16 %v2414_v2 }
 0x6c9   :  { %4780 = vmatprep.subr.mxu1 %v3534_v12  ;;  %4710 = vmatpush1.msra.mxu0 %v3277_v14  ;;  %v2410_v8 = vld [vmem:[#allocation6 + $0x898] sm:$0xff]  ;;  %v3462_v12 = vunpack.c.h.bf16 %v2542_v4  ;;  %v3205_v14 = vunpack.c.l.bf16 %v2414_v2 }
 0x6ca   :  { %4781 = vmatpush1.msra.mxu1 %v3533_v20  ;;  %4711 = vmatprep.subr.mxu0 %v3270_v43  ;;  %v2538_v9 = vld [vmem:[#allocation6 + $0xc98] sm:$0xff]  ;;  %v3461_v20 = vunpack.c.l.bf16 %v2542_v4  ;;  %v3198_v43 = vunpack.c.h.bf16 %v2410_v8 }
 0x6cb   :  { %4782 = vmatprep.subr.mxu1 %v3526_v15  ;;  %4712 = vmatpush1.msra.mxu0 %v3269_v11  ;;  %v2406_v13 = vld [vmem:[#allocation6 + $0x878] sm:$0xff]  ;;  %v3454_v15 = vunpack.c.h.bf16 %v2538_v9  ;;  %v3197_v11 = vunpack.c.l.bf16 %v2410_v8 }
 0x6cc   :  { %4783 = vmatpush1.msra.mxu1 %v3525_v16  ;;  %4713 = vmatprep.subr.mxu0 %v3262_v19  ;;  %v2534_v63 = vld [vmem:[#allocation6 + $0xc78] sm:$0xff]  ;;  %v3453_v16 = vunpack.c.l.bf16 %v2538_v9  ;;  %v3190_v19 = vunpack.c.h.bf16 %v2406_v13 }
 0x6cd   :  { %4784 = vmatprep.subr.mxu1 %v3518_v21  ;;  %4714 = vmatpush1.msra.mxu0 %v3261_v22  ;;  %v2402_v0 = vld [vmem:[#allocation6 + $0x858] sm:$0xff]  ;;  %v3446_v21 = vunpack.c.h.bf16 %v2534_v63  ;;  %v3189_v22 = vunpack.c.l.bf16 %v2406_v13 }
 0x6ce   :  { %4785 = vmatpush1.msra.mxu1 %v3517_v59  ;;  %4715 = vmatprep.subr.mxu0 %v3254_v24  ;;  %v2530_v26 = vld [vmem:[#allocation6 + $0xc58] sm:$0xff]  ;;  %v3445_v59 = vunpack.c.l.bf16 %v2534_v63  ;;  %v3182_v24 = vunpack.c.h.bf16 %v2402_v0 }
 0x6cf   :  { %4786 = vmatprep.subr.mxu1 %v3510_v60  ;;  %4716 = vmatpush1.msra.mxu0 %v3253_v25  ;;  %v2398_v23 = vld [vmem:[#allocation6 + $0x838] sm:$0xff]  ;;  %v3438_v60 = vunpack.c.h.bf16 %v2530_v26  ;;  %v3181_v25 = vunpack.c.l.bf16 %v2402_v0 }
 0x6d0   :  { %4787 = vmatpush1.msra.mxu1 %v3509_v30  ;;  %4717 = vmatprep.subr.mxu0 %v3246_v33  ;;  %v2526_v45 = vld [vmem:[#allocation6 + $0xc38] sm:$0xff]  ;;  %v3437_v30 = vunpack.c.l.bf16 %v2530_v26  ;;  %v3174_v33 = vunpack.c.h.bf16 %v2398_v23 }
 0x6d1   :  { %4788 = vmatprep.subr.mxu1 %v3502_v34  ;;  %4718 = vmatpush1.msra.mxu0 %v3245_v35  ;;  %v2394_v31 = vld [vmem:[#allocation6 + $0x818] sm:$0xff]  ;;  %v3430_v34 = vunpack.c.h.bf16 %v2526_v45  ;;  %v3173_v35 = vunpack.c.l.bf16 %v2398_v23 }
 0x6d2   :  { %4789 = vmatpush1.msra.mxu1 %v3501_v36  ;;  %4719 = vmatprep.subr.mxu0 %v3238_v39  ;;  %v2522_v32 = vld [vmem:[#allocation6 + $0xc18] sm:$0xff]  ;;  %v3429_v36 = vunpack.c.l.bf16 %v2526_v45  ;;  %v3166_v39 = vunpack.c.h.bf16 %v2394_v31 }
 0x6d3   :  { %4790 = vmatprep.subr.mxu1 %v3494_v40  ;;  %4720 = vmatpush1.msra.mxu0 %v3237_v42  ;;  %v2518_v37 = vld [vmem:[#allocation6 + $0xbf8] sm:$0xff]  ;;  %v3422_v40 = vunpack.c.h.bf16 %v2522_v32  ;;  %v3165_v42 = vunpack.c.l.bf16 %v2394_v31 }
 0x6d4   :  { %4791 = vmatpush1.msra.mxu1 %v3493_v49  ;;  %4721 = vmatprep.subr.mxu0 %v3230_v52  ;;  %v2646_v38 = vld [vmem:[#allocation6 + $0xff8] sm:$0xff]  ;;  %v3421_v49 = vunpack.c.l.bf16 %v2522_v32  ;;  %v3414_v52 = vunpack.c.h.bf16 %v2518_v37 }
 0x6d5   :  { %4792 = vmatprep.subr.mxu1 %v3486_v53  ;;  %4722 = vmatpush1.msra.mxu0 %v3229_v28  ;;  %v2514_v50 = vld [vmem:[#allocation6 + $0xbd8] sm:$0xff]  ;;  %v3670_v53 = vunpack.c.h.bf16 %v2646_v38  ;;  %v3413_v28 = vunpack.c.l.bf16 %v2518_v37 }
 0x6d6   :  { %4793 = vmatpush1.msra.mxu1 %v3485_v54  ;;  %4723 = vmatprep.subr.mxu0 %v3222_v57  ;;  %v2642_v51 = vld [vmem:[#allocation6 + $0xfd8] sm:$0xff]  ;;  %v3669_v54 = vunpack.c.l.bf16 %v2646_v38  ;;  %v3406_v57 = vunpack.c.h.bf16 %v2514_v50 }
 0x6d7   :  { %4794 = vmatprep.subr.mxu1 %v3478_v58  ;;  %4724 = vmatpush1.msra.mxu0 %v3221_v62  ;;  %v2510_v55 = vld [vmem:[#allocation6 + $0xbb8] sm:$0xff]  ;;  %v3662_v58 = vunpack.c.h.bf16 %v2642_v51  ;;  %v3405_v62 = vunpack.c.l.bf16 %v2514_v50 }
 0x6d8   :  { %4795 = vmatpush1.msra.mxu1 %v3477_v46  ;;  %4725 = vmatprep.subr.mxu0 %v3214_v5  ;;  %v2638_v56 = vld [vmem:[#allocation6 + $0xfb8] sm:$0xff]  ;;  %v3661_v46 = vunpack.c.l.bf16 %v2642_v51  ;;  %v3398_v5 = vunpack.c.h.bf16 %v2510_v55 }
 0x6d9   :  { %4796 = vmatprep.subr.mxu1 %v3470_v18  ;;  %4726 = vmatpush1.msra.mxu0 %v3213_v6  ;;  %v2506_v2 = vld [vmem:[#allocation6 + $0xb98] sm:$0xff]  ;;  %v3654_v18 = vunpack.c.h.bf16 %v2638_v56  ;;  %v3397_v6 = vunpack.c.l.bf16 %v2510_v55 }
 0x6da   :  { %4797 = vmatpush1.msra.mxu1 %v3469_v7  ;;  %4727 = vmatprep.subr.mxu0 %v3206_v10  ;;  %v2634_v4 = vld [vmem:[#allocation6 + $0xf98] sm:$0xff]  ;;  %v3653_v7 = vunpack.c.l.bf16 %v2638_v56  ;;  %v3390_v10 = vunpack.c.h.bf16 %v2506_v2 }
 0x6db   :  { %4798 = vmatprep.subr.mxu1 %v3462_v12  ;;  %4728 = vmatpush1.msra.mxu0 %v3205_v14  ;;  %v2502_v8 = vld [vmem:[#allocation6 + $0xb78] sm:$0xff]  ;;  %v3646_v12 = vunpack.c.h.bf16 %v2634_v4  ;;  %v3389_v14 = vunpack.c.l.bf16 %v2506_v2 }
 0x6dc   :  { %4799 = vmatpush1.msra.mxu1 %v3461_v20  ;;  %4729 = vmatprep.subr.mxu0 %v3198_v43  ;;  %v2630_v9 = vld [vmem:[#allocation6 + $0xf78] sm:$0xff]  ;;  %v3645_v20 = vunpack.c.l.bf16 %v2634_v4  ;;  %v3382_v43 = vunpack.c.h.bf16 %v2502_v8 }
 0x6dd   :  { %4800 = vmatprep.subr.mxu1 %v3454_v15  ;;  %4730 = vmatpush1.msra.mxu0 %v3197_v11  ;;  %v2498_v13 = vld [vmem:[#allocation6 + $0xb58] sm:$0xff]  ;;  %v3638_v15 = vunpack.c.h.bf16 %v2630_v9  ;;  %v3381_v11 = vunpack.c.l.bf16 %v2502_v8 }
 0x6de   :  { %4801 = vmatpush1.msra.mxu1 %v3453_v16  ;;  %4731 = vmatprep.subr.mxu0 %v3190_v19  ;;  %v2626_v63 = vld [vmem:[#allocation6 + $0xf58] sm:$0xff]  ;;  %v3637_v16 = vunpack.c.l.bf16 %v2630_v9  ;;  %v3374_v19 = vunpack.c.h.bf16 %v2498_v13 }
 0x6df   :  { %4802 = vmatprep.subr.mxu1 %v3446_v21  ;;  %4732 = vmatpush1.msra.mxu0 %v3189_v22  ;;  %v2494_v0 = vld [vmem:[#allocation6 + $0xb38] sm:$0xff]  ;;  %v3630_v21 = vunpack.c.h.bf16 %v2626_v63  ;;  %v3373_v22 = vunpack.c.l.bf16 %v2498_v13 }
 0x6e0   :  { %4803 = vmatpush1.msra.mxu1 %v3445_v59  ;;  %4733 = vmatprep.subr.mxu0 %v3182_v24  ;;  %v2622_v26 = vld [vmem:[#allocation6 + $0xf38] sm:$0xff]  ;;  %v3629_v59 = vunpack.c.l.bf16 %v2626_v63  ;;  %v3366_v24 = vunpack.c.h.bf16 %v2494_v0 }
 0x6e1   :  { %4804 = vmatprep.subr.mxu1 %v3438_v60  ;;  %4734 = vmatpush1.msra.mxu0 %v3181_v25  ;;  %v2490_v23 = vld [vmem:[#allocation6 + $0xb18] sm:$0xff]  ;;  %v3622_v60 = vunpack.c.h.bf16 %v2622_v26  ;;  %v3365_v25 = vunpack.c.l.bf16 %v2494_v0 }
 0x6e2   :  { %4805 = vmatpush1.msra.mxu1 %v3437_v30  ;;  %4735 = vmatprep.subr.mxu0 %v3174_v33  ;;  %v2618_v45 = vld [vmem:[#allocation6 + $0xf18] sm:$0xff]  ;;  %v3621_v30 = vunpack.c.l.bf16 %v2622_v26  ;;  %v3358_v33 = vunpack.c.h.bf16 %v2490_v23 }
 0x6e3   :  { %4806 = vmatprep.subr.mxu1 %v3430_v34  ;;  %4736 = vmatpush1.msra.mxu0 %v3173_v35  ;;  %v2486_v31 = vld [vmem:[#allocation6 + $0xaf8] sm:$0xff]  ;;  %v3614_v34 = vunpack.c.h.bf16 %v2618_v45  ;;  %v3357_v35 = vunpack.c.l.bf16 %v2490_v23 }
 0x6e4   :  { %4807 = vmatpush1.msra.mxu1 %v3429_v36  ;;  %4737 = vmatprep.subr.mxu0 %v3166_v39  ;;  %v2614_v32 = vld [vmem:[#allocation6 + $0xef8] sm:$0xff]  ;;  %v3613_v36 = vunpack.c.l.bf16 %v2618_v45  ;;  %v3350_v39 = vunpack.c.h.bf16 %v2486_v31 }
 0x6e5   :  { %4808 = vmatprep.subr.mxu1 %v3422_v40  ;;  %4738 = vmatpush1.msra.mxu0 %v3165_v42  ;;  %v2482_v37 = vld [vmem:[#allocation6 + $0xad8] sm:$0xff]  ;;  %v3606_v40 = vunpack.c.h.bf16 %v2614_v32  ;;  %v3349_v42 = vunpack.c.l.bf16 %v2486_v31  ;;  %v3696_v31 = vrot.slane %v5356_v3, %v1525_v29 }
 0x6e6   :  { %4809 = vmatpush1.msra.mxu1 %v3421_v49  ;;  %4739 = vmatprep.subr.mxu0 %v3414_v52  ;;  %v2610_v38 = vld [vmem:[#allocation6 + $0xed8] sm:$0xff]  ;;  %v3605_v49 = vunpack.c.l.bf16 %v2614_v32  ;;  %v3342_v52 = vunpack.c.h.bf16 %v2482_v37 }
 0x6e7   :  { %4810 = vmatprep.subr.mxu1 %v3670_v53  ;;  %4740 = vmatpush2.msra.mxu0 %v3413_v28  ;;  %v2478_v50 = vld [vmem:[#allocation6 + $0xab8] sm:$0xff]  ;;  %v3598_v53 = vunpack.c.h.bf16 %v2610_v38  ;;  %v3341_v28 = vunpack.c.l.bf16 %v2482_v37 }
 0x6e8   :  { %4811 = vmatpush2.msra.mxu1 %v3669_v54  ;;  %4741 = vmatprep.subr.mxu0 %v3406_v57  ;;  %v2606_v51 = vld [vmem:[#allocation6 + $0xeb8] sm:$0xff]  ;;  %v3597_v54 = vunpack.c.l.bf16 %v2610_v38  ;;  %v3334_v57 = vunpack.c.h.bf16 %v2478_v50 }
 0x6e9   :  { %4812 = vmatprep.subr.mxu1 %v3662_v58  ;;  %4742 = vmatpush2.msra.mxu0 %v3405_v62  ;;  %v2474_v55 = vld [vmem:[#allocation6 + $0xa98] sm:$0xff]  ;;  %v3590_v58 = vunpack.c.h.bf16 %v2606_v51  ;;  %v3333_v62 = vunpack.c.l.bf16 %v2478_v50  ;;  %v3704_v50 = vrot.slane %v5356_v3, %v1533_v48 }
 0x6ea   :  { %4813 = vmatpush2.msra.mxu1 %v3661_v46  ;;  %4743 = vmatprep.subr.mxu0 %v3398_v5  ;;  %v2602_v56 = vld [vmem:[#allocation6 + $0xe98] sm:$0xff]  ;;  %v3589_v46 = vunpack.c.l.bf16 %v2606_v51  ;;  %v3326_v5 = vunpack.c.h.bf16 %v2474_v55 }
 0x6eb   :  { %4814 = vmatprep.subr.mxu1 %v3654_v18  ;;  %4744 = vmatpush2.msra.mxu0 %v3397_v6  ;;  %v2470_v2 = vld [vmem:[#allocation6 + $0xa78] sm:$0xff]  ;;  %v3582_v18 = vunpack.c.h.bf16 %v2602_v56  ;;  %v3325_v6 = vunpack.c.l.bf16 %v2474_v55 }
 0x6ec   :  { %4815 = vmatpush2.msra.mxu1 %v3653_v7  ;;  %4745 = vmatprep.subr.mxu0 %v3390_v10  ;;  %v2598_v4 = vld [vmem:[#allocation6 + $0xe78] sm:$0xff]  ;;  %v3581_v7 = vunpack.c.l.bf16 %v2602_v56  ;;  %v3318_v10 = vunpack.c.h.bf16 %v2470_v2 }
 0x6ed   :  { %4816 = vmatprep.subr.mxu1 %v3646_v12  ;;  %4746 = vmatpush2.msra.mxu0 %v3389_v14  ;;  %v2466_v8 = vld [vmem:[#allocation6 + $0xa58] sm:$0xff]  ;;  %v3574_v12 = vunpack.c.h.bf16 %v2598_v4  ;;  %v3317_v14 = vunpack.c.l.bf16 %v2470_v2 }
 0x6ee   :  { %4817 = vmatpush2.msra.mxu1 %v3645_v20  ;;  %4747 = vmatprep.subr.mxu0 %v3382_v43  ;;  %v2594_v9 = vld [vmem:[#allocation6 + $0xe58] sm:$0xff]  ;;  %v3573_v20 = vunpack.c.l.bf16 %v2598_v4  ;;  %v3310_v43 = vunpack.c.h.bf16 %v2466_v8 }
 0x6ef   :  { %4818 = vmatprep.subr.mxu1 %v3638_v15  ;;  %4748 = vmatpush2.msra.mxu0 %v3381_v11  ;;  %v2462_v13 = vld [vmem:[#allocation6 + $0xa38] sm:$0xff]  ;;  %v3566_v15 = vunpack.c.h.bf16 %v2594_v9  ;;  %v3309_v11 = vunpack.c.l.bf16 %v2466_v8 }
 0x6f0   :  { %4819 = vmatpush2.msra.mxu1 %v3637_v16  ;;  %4749 = vmatprep.subr.mxu0 %v3374_v19  ;;  %v2590_v63 = vld [vmem:[#allocation6 + $0xe38] sm:$0xff]  ;;  %v3565_v16 = vunpack.c.l.bf16 %v2594_v9  ;;  %v3302_v19 = vunpack.c.h.bf16 %v2462_v13 }
 0x6f1   :  { %4820 = vmatprep.subr.mxu1 %v3630_v21  ;;  %4750 = vmatpush2.msra.mxu0 %v3373_v22  ;;  %v2458_v0 = vld [vmem:[#allocation6 + $0xa18] sm:$0xff]  ;;  %v3558_v21 = vunpack.c.h.bf16 %v2590_v63  ;;  %v3301_v22 = vunpack.c.l.bf16 %v2462_v13 }
 0x6f2   :  { %4821 = vmatpush2.msra.mxu1 %v3629_v59  ;;  %4751 = vmatprep.subr.mxu0 %v3366_v24  ;;  %v2586_v26 = vld [vmem:[#allocation6 + $0xe18] sm:$0xff]  ;;  %v3557_v59 = vunpack.c.l.bf16 %v2590_v63  ;;  %v3294_v23 = vunpack.c.h.bf16 %v2458_v0  ;;  %v3293_v24 = vunpack.c.l.bf16 %v2458_v0 }
 0x6f3   :  { %4822 = vmatprep.subr.mxu1 %v3622_v60  ;;  %4752 = vmatpush2.msra.mxu0 %v3365_v25  ;;  %v3550_v45 = vunpack.c.h.bf16 %v2586_v26  ;;  %v3549_v60 = vunpack.c.l.bf16 %v2586_v26 }
 0x6f4   :  { %4823 = vmatpush2.msra.mxu1 %v3621_v30  ;;  %4753 = vmatprep.subr.mxu0 %v3358_v33  ;;  %v3692_v30 = vrot.slane %v5356_v3, %v1521_v27 }
 0x6f5   :  { %4824 = vmatprep.subr.mxu1 %v3614_v34  ;;  %4754 = vmatpush2.msra.mxu0 %v3357_v35 }
 0x6f6   :  { %4825 = vmatpush2.msra.mxu1 %v3613_v36  ;;  %4755 = vmatprep.subr.mxu0 %v3350_v39 }
 0x6f7   :  { %4826 = vmatprep.subr.mxu1 %v3606_v40  ;;  %4756 = vmatpush2.msra.mxu0 %v3349_v42 }
 0x6f8   :  { %4827 = vmatpush2.msra.mxu1 %v3605_v49  ;;  %4757 = vmatprep.subr.mxu0 %v3342_v52  ;;  %v3700_v49 = vrot.slane %v5356_v3, %v1529_v47 }
 0x6f9   :  { %4828 = vmatprep.subr.mxu1 %v3598_v53  ;;  %4758 = vmatpush2.msra.mxu0 %v3341_v28 }
 0x6fa   :  { %4829 = vmatpush2.msra.mxu1 %v3597_v54  ;;  %4759 = vmatprep.subr.mxu0 %v3334_v57 }
 0x6fb   :  { %4830 = vmatprep.subr.mxu1 %v3590_v58  ;;  %4760 = vmatpush2.msra.mxu0 %v3333_v62 }
 0x6fc   :  { %4831 = vmatpush2.msra.mxu1 %v3589_v46  ;;  %4761 = vmatprep.subr.mxu0 %v3326_v5 }
 0x6fd   :  { %4832 = vmatprep.subr.mxu1 %v3582_v18  ;;  %4762 = vmatpush2.msra.mxu0 %v3325_v6 }
 0x6fe   :  { %4833 = vmatpush2.msra.mxu1 %v3581_v7  ;;  %4763 = vmatprep.subr.mxu0 %v3318_v10 }
 0x6ff   :  { %4834 = vmatprep.subr.mxu1 %v3574_v12  ;;  %4764 = vmatpush2.msra.mxu0 %v3317_v14 }
 0x700   :  { %4835 = vmatpush2.msra.mxu1 %v3573_v20  ;;  %4765 = vmatprep.subr.mxu0 %v3310_v43 }
 0x701   :  { %4836 = vmatprep.subr.mxu1 %v3566_v15  ;;  %4766 = vmatpush2.msra.mxu0 %v3309_v11  ;;  %v4347_v25 = vpop.f32.mrf.mxu0 }
 0x702   :  { %4837 = vmatpush2.msra.mxu1 %v3565_v16  ;;  %4767 = vmatprep.subr.mxu0 %v3302_v19  ;;  %v4348_v34 = vadd.f32 %v4347_v25, %v3692_v30 }
 0x703   :  { %4838 = vmatprep.subr.mxu1 %v3558_v21  ;;  %4768 = vmatpush2.msra.mxu0 %v3301_v22  ;;  %v4418_v32 = vpop.f32.mrf.mxu1  ;;  %v4349_v33 = vpop.f32.mrf.mxu0 }
 0x704   :  { %4839 = vmatpush2.msra.mxu1 %v3557_v59  ;;  %4769 = vmatprep.subr.mxu0 %v3294_v23  ;;  %v4419_v36 = vadd.f32 %v4418_v32, %v4348_v34 }
 0x705   :  { %4840 = vmatprep.subr.mxu1 %v3550_v45  ;;  %4770 = vmatpush2.msra.mxu0 %v3293_v24  ;;  %v4420_v35 = vpop.f32.mrf.mxu1 }
 0x706   :  { %4771 = vmatprep.mubr.f32.mxu0 %v5310_v44  ;;  %4841 = vmatpush2.msra.mxu1 %v3549_v60  ;;  %v4350_v44 = vadd.f32 %v4349_v33, %v3696_v31 }
 0x707   :  { %4842 = vmatprep.mubr.f32.mxu1 %v5322_v1  ;;  %4772 = vmatmul.mubr.f32.vlgmr.msra.gmra.mxu0 %v5308_v41 }
 0x708   :  { %4843 = vmatmul.mubr.f32.vlgmr.msra.gmra.mxu1 %v5320_v61  ;;  %v4421_v37 = vadd.f32 %v4420_v35, %v4350_v44 }
 0x743   :  { %v4489_v1 = vpop.f32.mrf.mxu0 }
 0x744   :  { %v4490_v41 = vadd.f32 %v4489_v1, %v4419_v36 }
 0x745   :  { %v4560_v38 = vpop.f32.mrf.mxu1  ;;  %v4491_v61 = vpop.f32.mrf.mxu0 }
 0x746   :  { %v4561_v39 = vadd.f32 %v4560_v38, %v4490_v41  ;;  %v4492_v40 = vadd.f32 %v4491_v61, %v4421_v37 }
 0x747   :  { %v4562_v42 = vpop.f32.mrf.mxu1 }
 0x748   :  { %4853 = vst [vmem:[%s5407_s7 + $0x20] sm:$0xff] %v4561_v39  ;;  %v4563_v27 = vadd.f32 %v4562_v42, %v4492_v40 }
 0x74a   :  { %4854 = vst [vmem:[%s5407_s7 + $0x28] sm:$0xff] %v4563_v27 }
 0x785   :  { %v4631_v29 = vpop.f32.mrf.mxu0 }
 0x786   :  { %v4632_v53 = vadd.f32 %v4631_v29, %v3700_v49 }
 0x787   :  { %v4702_v51 = vpop.f32.mrf.mxu1  ;;  %v4633_v52 = vpop.f32.mrf.mxu0 }
 0x788   :  { %v4634_v28 = vadd.f32 %v4633_v52, %v3704_v50  ;;  %v4703_v55 = vadd.f32 %v4702_v51, %v4632_v53 }
 0x789   :  { %v4704_v54 = vpop.f32.mrf.mxu1 }
 0x78a   :  { %v4705_v58 = vadd.f32 %v4704_v54, %v4634_v28 }
 0x7c7   :  { %v4773_v56 = vpop.f32.mrf.mxu0 }
 0x7c8   :  { %v4844_v57 = vpop.f32.mrf.mxu1  ;;  %v4774_v62 = vadd.f32 %v4773_v56, %v4703_v55 }
 0x7c9   :  { %v4775_v46 = vpop.f32.mrf.mxu0 }
 0x7ca   :  { %v4845_v2 = vadd.f32 %v4844_v57, %v4774_v62  ;;  %v4776_v4 = vadd.f32 %v4775_v46, %v4705_v58  ;;  %v4846_v5 = vpop.f32.mrf.mxu1 }
 0x7cc   :  { %4855 = vst [vmem:[%s5407_s7 + $0x30] sm:$0xff] %v4845_v2  ;;  %v4847_v17 = vadd.f32 %v4846_v5, %v4776_v4 }
 0x7ce   :  { %4856 = vst [vmem:[%s5407_s7 + $0x38] sm:$0xff] %v4847_v17 }
 0x7cf   :  { %4861 = vsyncpa [#allocation9], 1 }
 0x7d0   :  { %4862 = vsyncmov [#allocation7] }
 0x7d3   :  { %s4863_s19 = vpop.sfrf %4862 }
 0x7d4   :  { %p4897_p2 = scmp.ne.s32.totalorder %s4863_s19, 0 }
 0x7d6   :  { %4867 = shalt.err (%p4897_p2)  }
 0x7d7   :  { %4869 = vsyncmov [#allocation7 + $0x1] }
 0x7da   :  { %s4870_s20 = vpop.sfrf %4869 }
 0x7db   :  { %p4898_p3 = scmp.ne.s32.totalorder %s4870_s20, 0 }
 0x7dd   :  { %4874 = shalt.err (%p4898_p3)  }
 0x7de   :  { %4876 = vsyncmov [#allocation7 + $0x2] }
 0x7e1   :  { %s4877_s21 = vpop.sfrf %4876 }
 0x7e2   :  { %p4899_p4 = scmp.ne.s32.totalorder %s4877_s21, 0 }
 0x7e4   :  { %4881 = shalt.err (%p4899_p4)  }
 0x7e5   :  { %4883 = vsyncmov [#allocation7 + $0x3] }
 0x7e8   :  { %s4884_s2 = vpop.sfrf %4883 }
 0x7e9   :  { %p4900_p5 = scmp.ne.s32.totalorder %s4884_s2, 0 }
 0x7eb   :  { %4888 = shalt.err (%p4900_p5)  }
 0x7ec   :  { %4890 = vsyncmov [#allocation7 + $0x4] }
 0x7ef   :  { %s4891_s22 = vpop.sfrf %4890 }
 0x7f0   :  { %p4901_p6 = scmp.ne.s32.totalorder %s4891_s22, 0 }
 0x7f2   :  { %4895 = shalt.err (%p4901_p6)  }

</bundles_post_ra>
